<compile_context>
chip_gen: v5e
topology: v5e:2x2
jax: 0.10.0
libtpu: 0.0.40
codegen_flags: <defaults>
</compile_context>

<pallas_src>
import jax
import jax.numpy as jnp
from jax import lax
from jax.experimental import pallas as pl
from jax.experimental.pallas import tpu as pltpu

NPAD = 128                      # lane-dense channel padding
VMEM_LIMIT = 32 * 1024 * 1024   # safe scoped-VMEM budget on v5e/v6e/v7x


def _round_up(x, m):
    return ((x + m - 1) // m) * m


def _choose_tile_m(m, cap=512, align=16):
    """Row tile: large enough to amortize per-step overhead, capped for v7x VMEM."""
    if m >= cap:
        return cap
    return _round_up(max(m, align), align)


# ----------------------------------------------------------------------------
# Pallas kernels
# ----------------------------------------------------------------------------
def _conv_sigmoid_pool_kernel(p00_ref, p01_ref, p10_ref, p11_ref, w_ref, b_ref, o_ref):
    """o = 0.25 * sum_q sigmoid(p_q @ w + b) over the four 2x2-pool quadrants."""
    w = w_ref[...]
    b = b_ref[...]

    def branch(p_ref):
        acc = jnp.dot(p_ref[...], w, preferred_element_type=jnp.float32)
        return jax.nn.sigmoid(acc + b)

    s = branch(p00_ref) + branch(p01_ref) + branch(p10_ref) + branch(p11_ref)
    o_ref[...] = (s * 0.25).astype(o_ref.dtype)


def _fc_stack_kernel(x_ref, w1_ref, b1_ref, w2_ref, b2_ref, w3_ref, b3_ref, o_ref):
    """Fused 400->120(sig)->84(sig)->10; hidden dims padded to 128.
    Zero-padded weight *rows* make the sigmoid(0)=0.5 junk in padded columns inert."""
    h = jnp.dot(x_ref[...], w1_ref[...], preferred_element_type=jnp.float32) + b1_ref[...]
    h = jax.nn.sigmoid(h)
    h = jnp.dot(h.astype(jnp.bfloat16), w2_ref[...],
                preferred_element_type=jnp.float32) + b2_ref[...]
    h = jax.nn.sigmoid(h)
    o = jnp.dot(h.astype(jnp.bfloat16), w3_ref[...],
                preferred_element_type=jnp.float32) + b3_ref[...]
    o_ref[...] = o.astype(o_ref.dtype)


# ----------------------------------------------------------------------------
# Wrappers
# ----------------------------------------------------------------------------
def conv_sigmoid_pool(x, w_mat, b_row, kh, kw, oc):
    """x: (B, H, W, C) NHWC. w_mat: (kh*kw*C, NPAD) bf16, rows ordered (ki, kj, c).
    b_row: (1, NPAD) f32. Returns avg-pool2x2(sigmoid(conv(x))): (B, OH//2, OW//2, oc) bf16."""
    B, H, W, C = x.shape
    OH, OW = H - kh + 1, W - kw + 1
    POH, POW = OH // 2, OW // 2
    K = kh * kw * C
    M = B * POH * POW

    # im2col per pool quadrant (plain-JAX strided views -> stack; no Pallas work).
    # TODO(synk): for large batches, replace with an in-kernel shifted-view K-loop
    # to avoid im2col HBM amplification.
    def quadrant(dy, dx):
        cols = []
        for ki in range(kh):
            for kj in range(kw):
                cols.append(x[:, dy + ki:dy + ki + 2 * POH:2,
                              dx + kj:dx + kj + 2 * POW:2, :])
        p = jnp.stack(cols, axis=3)                      # (B, POH, POW, kh*kw, C)
        return p.reshape(M, K).astype(jnp.bfloat16)

    quads = [quadrant(0, 0), quadrant(0, 1), quadrant(1, 0), quadrant(1, 1)]

    TM = _choose_tile_m(M)
    Mpad = _round_up(M, TM)
    if Mpad != M:
        quads = [jnp.pad(q, ((0, Mpad - M), (0, 0))) for q in quads]

    p_spec = pl.BlockSpec((TM, K), lambda i: (i, 0))
    const = lambda i: (0, 0)
    out = pl.pallas_call(
        _conv_sigmoid_pool_kernel,
        out_shape=jax.ShapeDtypeStruct((Mpad, NPAD), jnp.bfloat16),
        grid=(Mpad // TM,),
        in_specs=[p_spec, p_spec, p_spec, p_spec,
                  pl.BlockSpec((K, NPAD), const),
                  pl.BlockSpec((1, NPAD), const)],
        out_specs=pl.BlockSpec((TM, NPAD), lambda i: (i, 0)),
        compiler_params=pltpu.CompilerParams(
            dimension_semantics=("parallel",),
            vmem_limit_bytes=VMEM_LIMIT),
    )(*quads, w_mat, b_row)
    return out[:M, :oc].reshape(B, POH, POW, oc)


def fc_stack(feat, prep):
    """feat: (B, 400) bf16, NHWC-flattened.  Returns (B, 10) f32 logits."""
    B, K = feat.shape
    TM = _choose_tile_m(B)
    Mpad = _round_up(B, TM)
    x = jnp.pad(feat, ((0, Mpad - B), (0, 0))) if Mpad != B else feat

    const = lambda i: (0, 0)
    out = pl.pallas_call(
        _fc_stack_kernel,
        out_shape=jax.ShapeDtypeStruct((Mpad, NPAD), jnp.float32),
        grid=(Mpad // TM,),
        in_specs=[pl.BlockSpec((TM, K), lambda i: (i, 0)),
                  pl.BlockSpec((K, NPAD), const),
                  pl.BlockSpec((1, NPAD), const),
                  pl.BlockSpec((NPAD, NPAD), const),
                  pl.BlockSpec((1, NPAD), const),
                  pl.BlockSpec((NPAD, NPAD), const),
                  pl.BlockSpec((1, NPAD), const)],
        out_specs=pl.BlockSpec((TM, NPAD), lambda i: (i, 0)),
        compiler_params=pltpu.CompilerParams(
            dimension_semantics=("parallel",),
            vmem_limit_bytes=VMEM_LIMIT),
    )(x, prep["fc1_w"], prep["fc1_b"], prep["fc2_w"], prep["fc2_b"],
      prep["fc3_w"], prep["fc3_b"])
    return out[:B, :10]


# ----------------------------------------------------------------------------
# Parameters (PyTorch layout) + one-time kernel-layout prep
# ----------------------------------------------------------------------------
def _uniform(key, shape, bound):
    return jax.random.uniform(key, shape, jnp.float32, minval=-bound, maxval=bound)


def init_lenet_params(key):
    ks = jax.random.split(key, 10)
    p = {}
    fan = 1 * 5 * 5
    p["c1_w"] = _uniform(ks[0], (6, 1, 5, 5), fan ** -0.5)
    p["c1_b"] = _uniform(ks[1], (6,), fan ** -0.5)
    fan = 6 * 5 * 5
    p["c3_w"] = _uniform(ks[2], (16, 6, 5, 5), fan ** -0.5)
    p["c3_b"] = _uniform(ks[3], (16,), fan ** -0.5)
    fan = 400
    p["c5_w"] = _uniform(ks[4], (120, 400), fan ** -0.5)
    p["c5_b"] = _uniform(ks[5], (120,), fan ** -0.5)
    fan = 120
    p["f6_w"] = _uniform(ks[6], (84, 120), fan ** -0.5)
    p["f6_b"] = _uniform(ks[7], (84,), fan ** -0.5)
    fan = 84
    p["out_w"] = _uniform(ks[8], (10, 84), fan ** -0.5)
    p["out_b"] = _uniform(ks[9], (10,), fan ** -0.5)
    return p


def prepare_params(params):
    """One-time layout prep (outside jit): NHWC conv weight matrices, NHWC-flatten
    permuted FC weights, all output/hidden dims zero-padded to 128, bf16 matmul inputs."""

    def pad_cols(a, n=NPAD):
        return jnp.pad(a, ((0, 0), (0, n - a.shape[1])))

    prep = {}
    # conv1: (6,1,5,5) -> (kh,kw,C,OC) -> (25, 6) -> (25, 128)
    w = params["c1_w"].transpose(2, 3, 1, 0).reshape(5 * 5 * 1, 6)
    prep["c1_w"] = pad_cols(w).astype(jnp.bfloat16)
    prep["c1_b"] = pad_cols(params["c1_b"].reshape(1, 6)).astype(jnp.float32)
    # conv2: (16,6,5,5) -> (150, 16) -> (150, 128)
    w = params["c3_w"].transpose(2, 3, 1, 0).reshape(5 * 5 * 6, 16)
    prep["c3_w"] = pad_cols(w).astype(jnp.bfloat16)
    prep["c3_b"] = pad_cols(params["c3_b"].reshape(1, 16)).astype(jnp.float32)
    # fc1: PyTorch (120,400) with inputs ordered (C,H,W); permute to NHWC flatten (H,W,C)
    w = params["c5_w"].reshape(120, 16, 5, 5).transpose(0, 2, 3, 1).reshape(120, 400).T
    prep["fc1_w"] = pad_cols(w).astype(jnp.bfloat16)                   # (400, 128)
    prep["fc1_b"] = pad_cols(params["c5_b"].reshape(1, 120)).astype(jnp.float32)
    # fc2: (84,120) -> (120,84) -> (128,128); zero rows keep padded h-columns inert
    w = params["f6_w"].T
    prep["fc2_w"] = jnp.pad(w, ((0, NPAD - 120), (0, NPAD - 84))).astype(jnp.bfloat16)
    prep["fc2_b"] = pad_cols(params["f6_b"].reshape(1, 84)).astype(jnp.float32)
    # fc3: (10,84) -> (84,10) -> (128,128)
    w = params["out_w"].T
    prep["fc3_w"] = jnp.pad(w, ((0, NPAD - 84), (0, NPAD - 10))).astype(jnp.bfloat16)
    prep["fc3_b"] = pad_cols(params["out_b"].reshape(1, 10)).astype(jnp.float32)
    return prep


# ----------------------------------------------------------------------------
# Forward pass + pure-JAX reference
# ----------------------------------------------------------------------------
@jax.jit
def lenet_forward(prep, x_nchw):
    x = jnp.transpose(x_nchw, (0, 2, 3, 1))                          # NHWC (B,32,32,1)
    B = x.shape[0]
    x = conv_sigmoid_pool(x, prep["c1_w"], prep["c1_b"], 5, 5, 6)    # (B,14,14,6)
    x = conv_sigmoid_pool(x, prep["c3_w"], prep["c3_b"], 5, 5, 16)   # (B,5,5,16)
    feat = x.reshape(B, 5 * 5 * 16)                                  # NHWC flatten (H,W,C)
    return fc_stack(feat, prep)                                      # (B,10) f32


def lenet_reference(params, x):
    """Pure-JAX f32 reference with PyTorch NCHW semantics (validation only)."""
    def conv(x, w, b):
        y = lax.conv_general_dilated(x, w, (1, 1), "VALID",
                                     dimension_numbers=("NCHW", "OIHW", "NCHW"))
        return jax.nn.sigmoid(y + b.reshape(1, -1, 1, 1))

    def pool(x):
        return (x[:, :, 0::2, 0::2] + x[:, :, 0::2, 1::2]
                + x[:, :, 1::2, 0::2] + x[:, :, 1::2, 1::2]) * 0.25

    y = pool(conv(x, params["c1_w"], params["c1_b"]))
    y = pool(conv(y, params["c3_w"], params["c3_b"]))
    f = y.reshape(y.shape[0], -1)
    f = jax.nn.sigmoid(f @ params["c5_w"].T + params["c5_b"])
    f = jax.nn.sigmoid(f @ params["f6_w"].T + params["f6_b"])
    return f @ params["out_w"].T + params["out_b"]


if __name__ == "__main__":
    key = jax.random.PRNGKey(0)
    pkey, xkey = jax.random.split(key)
    params = init_lenet_params(pkey)
    prep = prepare_params(params)
    # LeNet expects 32x32 single-channel images (so the flatten is 16*5*5 = 400).
    x = jax.random.normal(xkey, (2, 1, 32, 32), dtype=jnp.float32)

    out = jax.block_until_ready(lenet_forward(prep, x))
    assert out.shape == (2, 10) and out.dtype == jnp.float32

    ref = jax.block_until_ready(lenet_reference(params, x))
    err = float(jnp.max(jnp.abs(out - ref)))
    assert err < 5e-2, f"mismatch vs reference: max abs err {err}"
    print("KERNEL_OK")
</pallas_src>

<mosaic_0001>
module attributes {stable_mosaic.version = 11 : i64} {
  func.func @_conv_sigmoid_pool_kernel(%arg0: i32, %arg1: memref<400x25xbf16, #tpu.memory_space<vmem>>, %arg2: memref<400x25xbf16, #tpu.memory_space<vmem>>, %arg3: memref<400x25xbf16, #tpu.memory_space<vmem>>, %arg4: memref<400x25xbf16, #tpu.memory_space<vmem>>, %arg5: memref<25x128xbf16, #tpu.memory_space<vmem>>, %arg6: memref<1x128xf32, #tpu.memory_space<vmem>>, %arg7: memref<400x128xbf16, #tpu.memory_space<vmem>>) attributes {dimension_semantics = [#tpu.dimension_semantics<parallel>], iteration_bounds = array<i64: 1>, scalar_prefetch = 0 : i64, scratch_operands = 0 : i64, tpu.core_type = #tpu.core_type<tc>, window_params = [{transform_indices = @transform_0, window_bounds = array<i64: 400, 25>}, {transform_indices = @transform_1, window_bounds = array<i64: 400, 25>}, {transform_indices = @transform_2, window_bounds = array<i64: 400, 25>}, {transform_indices = @transform_3, window_bounds = array<i64: 400, 25>}, {pipeline_mode = #tpu.pipeline_mode<synchronous>, transform_indices = @transform_4, window_bounds = array<i64: 25, 128>}, {pipeline_mode = #tpu.pipeline_mode<synchronous>, transform_indices = @transform_5, window_bounds = array<i64: 1, 128>}, {transform_indices = @transform_6, window_bounds = array<i64: 400, 128>}]} {
    %c0 = arith.constant 0 : index
    %c0_0 = arith.constant 0 : index
    %0 = vector.load %arg5[%c0, %c0_0] : memref<25x128xbf16, #tpu.memory_space<vmem>>, vector<25x128xbf16>
    %c0_1 = arith.constant 0 : index
    %c0_2 = arith.constant 0 : index
    %1 = vector.load %arg6[%c0_1, %c0_2] : memref<1x128xf32, #tpu.memory_space<vmem>>, vector<1x128xf32>
    %c0_3 = arith.constant 0 : index
    %c0_4 = arith.constant 0 : index
    %2 = vector.load %arg1[%c0_3, %c0_4] : memref<400x25xbf16, #tpu.memory_space<vmem>>, vector<400x25xbf16>
    %cst = arith.constant dense<0.000000e+00> : vector<400x128xf32>
    %3 = tpu.matmul %2, %0, %cst {dimension_numbers = #tpu.dot_dimension_numbers<[1], [0], [0], [1], [0, 0, 1, 1], [], []>} : vector<400x25xbf16>, vector<25x128xbf16>, vector<400x128xf32> -> vector<400x128xf32>
    %4 = vector.broadcast %1 : vector<1x128xf32> to vector<400x128xf32>
    %5 = arith.addf %3, %4 : vector<400x128xf32>
    %6 = arith.negf %5 : vector<400x128xf32>
    %7 = math.exp %6 : vector<400x128xf32>
    %cst_5 = arith.constant 1.000000e+00 : f32
    %8 = vector.broadcast %cst_5 : f32 to vector<400x128xf32>
    %9 = arith.addf %8, %7 : vector<400x128xf32>
    %10 = arith.divf %8, %9 : vector<400x128xf32>
    %c0_6 = arith.constant 0 : index
    %c0_7 = arith.constant 0 : index
    %11 = vector.load %arg2[%c0_6, %c0_7] : memref<400x25xbf16, #tpu.memory_space<vmem>>, vector<400x25xbf16>
    %cst_8 = arith.constant dense<0.000000e+00> : vector<400x128xf32>
    %12 = tpu.matmul %11, %0, %cst_8 {dimension_numbers = #tpu.dot_dimension_numbers<[1], [0], [0], [1], [0, 0, 1, 1], [], []>} : vector<400x25xbf16>, vector<25x128xbf16>, vector<400x128xf32> -> vector<400x128xf32>
    %13 = vector.broadcast %1 : vector<1x128xf32> to vector<400x128xf32>
    %14 = arith.addf %12, %13 : vector<400x128xf32>
    %15 = arith.negf %14 : vector<400x128xf32>
    %16 = math.exp %15 : vector<400x128xf32>
    %cst_9 = arith.constant 1.000000e+00 : f32
    %17 = vector.broadcast %cst_9 : f32 to vector<400x128xf32>
    %18 = arith.addf %17, %16 : vector<400x128xf32>
    %19 = arith.divf %17, %18 : vector<400x128xf32>
    %20 = arith.addf %10, %19 : vector<400x128xf32>
    %c0_10 = arith.constant 0 : index
    %c0_11 = arith.constant 0 : index
    %21 = vector.load %arg3[%c0_10, %c0_11] : memref<400x25xbf16, #tpu.memory_space<vmem>>, vector<400x25xbf16>
    %cst_12 = arith.constant dense<0.000000e+00> : vector<400x128xf32>
    %22 = tpu.matmul %21, %0, %cst_12 {dimension_numbers = #tpu.dot_dimension_numbers<[1], [0], [0], [1], [0, 0, 1, 1], [], []>} : vector<400x25xbf16>, vector<25x128xbf16>, vector<400x128xf32> -> vector<400x128xf32>
    %23 = vector.broadcast %1 : vector<1x128xf32> to vector<400x128xf32>
    %24 = arith.addf %22, %23 : vector<400x128xf32>
    %25 = arith.negf %24 : vector<400x128xf32>
    %26 = math.exp %25 : vector<400x128xf32>
    %cst_13 = arith.constant 1.000000e+00 : f32
    %27 = vector.broadcast %cst_13 : f32 to vector<400x128xf32>
    %28 = arith.addf %27, %26 : vector<400x128xf32>
    %29 = arith.divf %27, %28 : vector<400x128xf32>
    %30 = arith.addf %20, %29 : vector<400x128xf32>
    %c0_14 = arith.constant 0 : index
    %c0_15 = arith.constant 0 : index
    %31 = vector.load %arg4[%c0_14, %c0_15] : memref<400x25xbf16, #tpu.memory_space<vmem>>, vector<400x25xbf16>
    %cst_16 = arith.constant dense<0.000000e+00> : vector<400x128xf32>
    %32 = tpu.matmul %31, %0, %cst_16 {dimension_numbers = #tpu.dot_dimension_numbers<[1], [0], [0], [1], [0, 0, 1, 1], [], []>} : vector<400x25xbf16>, vector<25x128xbf16>, vector<400x128xf32> -> vector<400x128xf32>
    %33 = vector.broadcast %1 : vector<1x128xf32> to vector<400x128xf32>
    %34 = arith.addf %32, %33 : vector<400x128xf32>
    %35 = arith.negf %34 : vector<400x128xf32>
    %36 = math.exp %35 : vector<400x128xf32>
    %cst_17 = arith.constant 1.000000e+00 : f32
    %37 = vector.broadcast %cst_17 : f32 to vector<400x128xf32>
    %38 = arith.addf %37, %36 : vector<400x128xf32>
    %39 = arith.divf %37, %38 : vector<400x128xf32>
    %40 = arith.addf %30, %39 : vector<400x128xf32>
    %cst_18 = arith.constant 2.500000e-01 : f32
    %41 = vector.broadcast %cst_18 : f32 to vector<400x128xf32>
    %42 = arith.mulf %40, %41 : vector<400x128xf32>
    %43 = arith.truncf %42 : vector<400x128xf32> to vector<400x128xbf16>
    %c0_19 = arith.constant 0 : index
    %c0_20 = arith.constant 0 : index
    %44 = vector.load %arg7[%c0_19, %c0_20] : memref<400x128xbf16, #tpu.memory_space<vmem>>, vector<400x128xbf16>
    tpu.vector_store %arg7[%c0_19, %c0_20], %43 {strides = array<i32>} : memref<400x128xbf16, #tpu.memory_space<vmem>>, vector<400x128xbf16>,
    return
  }
  func.func @transform_0(%arg0: i32) -> (i32, i32) {
    %c0_i32 = arith.constant 0 : i32
    %c0_i32_0 = arith.constant 0 : i32
    return %arg0, %c0_i32 : i32, i32
  }
  func.func @transform_1(%arg0: i32) -> (i32, i32) {
    %c0_i32 = arith.constant 0 : i32
    %c0_i32_0 = arith.constant 0 : i32
    return %arg0, %c0_i32 : i32, i32
  }
  func.func @transform_2(%arg0: i32) -> (i32, i32) {
    %c0_i32 = arith.constant 0 : i32
    %c0_i32_0 = arith.constant 0 : i32
    return %arg0, %c0_i32 : i32, i32
  }
  func.func @transform_3(%arg0: i32) -> (i32, i32) {
    %c0_i32 = arith.constant 0 : i32
    %c0_i32_0 = arith.constant 0 : i32
    return %arg0, %c0_i32 : i32, i32
  }
  func.func @transform_4(%arg0: i32) -> (i32, i32) {
    %c0_i32 = arith.constant 0 : i32
    %c0_i32_0 = arith.constant 0 : i32
    %c0_i32_1 = arith.constant 0 : i32
    return %c0_i32, %c0_i32_0 : i32, i32
  }
  func.func @transform_5(%arg0: i32) -> (i32, i32) {
    %c0_i32 = arith.constant 0 : i32
    %c0_i32_0 = arith.constant 0 : i32
    %c0_i32_1 = arith.constant 0 : i32
    return %c0_i32, %c0_i32_0 : i32, i32
  }
  func.func @transform_6(%arg0: i32) -> (i32, i32) {
    %c0_i32 = arith.constant 0 : i32
    %c0_i32_0 = arith.constant 0 : i32
    return %arg0, %c0_i32 : i32, i32
  }
}

module attributes {stable_mosaic.version = 11 : i64} {
  func.func @_conv_sigmoid_pool_kernel(%arg0: i32, %arg1: memref<64x150xbf16, #tpu.memory_space<vmem>>, %arg2: memref<64x150xbf16, #tpu.memory_space<vmem>>, %arg3: memref<64x150xbf16, #tpu.memory_space<vmem>>, %arg4: memref<64x150xbf16, #tpu.memory_space<vmem>>, %arg5: memref<150x128xbf16, #tpu.memory_space<vmem>>, %arg6: memref<1x128xf32, #tpu.memory_space<vmem>>, %arg7: memref<64x128xbf16, #tpu.memory_space<vmem>>) attributes {dimension_semantics = [#tpu.dimension_semantics<parallel>], iteration_bounds = array<i64: 1>, scalar_prefetch = 0 : i64, scratch_operands = 0 : i64, tpu.core_type = #tpu.core_type<tc>, window_params = [{transform_indices = @transform_0, window_bounds = array<i64: 64, 150>}, {transform_indices = @transform_1, window_bounds = array<i64: 64, 150>}, {transform_indices = @transform_2, window_bounds = array<i64: 64, 150>}, {transform_indices = @transform_3, window_bounds = array<i64: 64, 150>}, {pipeline_mode = #tpu.pipeline_mode<synchronous>, transform_indices = @transform_4, window_bounds = array<i64: 150, 128>}, {pipeline_mode = #tpu.pipeline_mode<synchronous>, transform_indices = @transform_5, window_bounds = array<i64: 1, 128>}, {transform_indices = @transform_6, window_bounds = array<i64: 64, 128>}]} {
    %c0 = arith.constant 0 : index
    %c0_0 = arith.constant 0 : index
    %0 = vector.load %arg5[%c0, %c0_0] : memref<150x128xbf16, #tpu.memory_space<vmem>>, vector<150x128xbf16>
    %c0_1 = arith.constant 0 : index
    %c0_2 = arith.constant 0 : index
    %1 = vector.load %arg6[%c0_1, %c0_2] : memref<1x128xf32, #tpu.memory_space<vmem>>, vector<1x128xf32>
    %c0_3 = arith.constant 0 : index
    %c0_4 = arith.constant 0 : index
    %2 = vector.load %arg1[%c0_3, %c0_4] : memref<64x150xbf16, #tpu.memory_space<vmem>>, vector<64x150xbf16>
    %cst = arith.constant dense<0.000000e+00> : vector<64x128xf32>
    %3 = tpu.matmul %2, %0, %cst {dimension_numbers = #tpu.dot_dimension_numbers<[1], [0], [0], [1], [0, 0, 1, 1], [], []>} : vector<64x150xbf16>, vector<150x128xbf16>, vector<64x128xf32> -> vector<64x128xf32>
    %4 = vector.broadcast %1 : vector<1x128xf32> to vector<64x128xf32>
    %5 = arith.addf %3, %4 : vector<64x128xf32>
    %6 = arith.negf %5 : vector<64x128xf32>
    %7 = math.exp %6 : vector<64x128xf32>
    %cst_5 = arith.constant 1.000000e+00 : f32
    %8 = vector.broadcast %cst_5 : f32 to vector<64x128xf32>
    %9 = arith.addf %8, %7 : vector<64x128xf32>
    %10 = arith.divf %8, %9 : vector<64x128xf32>
    %c0_6 = arith.constant 0 : index
    %c0_7 = arith.constant 0 : index
    %11 = vector.load %arg2[%c0_6, %c0_7] : memref<64x150xbf16, #tpu.memory_space<vmem>>, vector<64x150xbf16>
    %cst_8 = arith.constant dense<0.000000e+00> : vector<64x128xf32>
    %12 = tpu.matmul %11, %0, %cst_8 {dimension_numbers = #tpu.dot_dimension_numbers<[1], [0], [0], [1], [0, 0, 1, 1], [], []>} : vector<64x150xbf16>, vector<150x128xbf16>, vector<64x128xf32> -> vector<64x128xf32>
    %13 = vector.broadcast %1 : vector<1x128xf32> to vector<64x128xf32>
    %14 = arith.addf %12, %13 : vector<64x128xf32>
    %15 = arith.negf %14 : vector<64x128xf32>
    %16 = math.exp %15 : vector<64x128xf32>
    %cst_9 = arith.constant 1.000000e+00 : f32
    %17 = vector.broadcast %cst_9 : f32 to vector<64x128xf32>
    %18 = arith.addf %17, %16 : vector<64x128xf32>
    %19 = arith.divf %17, %18 : vector<64x128xf32>
    %20 = arith.addf %10, %19 : vector<64x128xf32>
    %c0_10 = arith.constant 0 : index
    %c0_11 = arith.constant 0 : index
    %21 = vector.load %arg3[%c0_10, %c0_11] : memref<64x150xbf16, #tpu.memory_space<vmem>>, vector<64x150xbf16>
    %cst_12 = arith.constant dense<0.000000e+00> : vector<64x128xf32>
    %22 = tpu.matmul %21, %0, %cst_12 {dimension_numbers = #tpu.dot_dimension_numbers<[1], [0], [0], [1], [0, 0, 1, 1], [], []>} : vector<64x150xbf16>, vector<150x128xbf16>, vector<64x128xf32> -> vector<64x128xf32>
    %23 = vector.broadcast %1 : vector<1x128xf32> to vector<64x128xf32>
    %24 = arith.addf %22, %23 : vector<64x128xf32>
    %25 = arith.negf %24 : vector<64x128xf32>
    %26 = math.exp %25 : vector<64x128xf32>
    %cst_13 = arith.constant 1.000000e+00 : f32
    %27 = vector.broadcast %cst_13 : f32 to vector<64x128xf32>
    %28 = arith.addf %27, %26 : vector<64x128xf32>
    %29 = arith.divf %27, %28 : vector<64x128xf32>
    %30 = arith.addf %20, %29 : vector<64x128xf32>
    %c0_14 = arith.constant 0 : index
    %c0_15 = arith.constant 0 : index
    %31 = vector.load %arg4[%c0_14, %c0_15] : memref<64x150xbf16, #tpu.memory_space<vmem>>, vector<64x150xbf16>
    %cst_16 = arith.constant dense<0.000000e+00> : vector<64x128xf32>
    %32 = tpu.matmul %31, %0, %cst_16 {dimension_numbers = #tpu.dot_dimension_numbers<[1], [0], [0], [1], [0, 0, 1, 1], [], []>} : vector<64x150xbf16>, vector<150x128xbf16>, vector<64x128xf32> -> vector<64x128xf32>
    %33 = vector.broadcast %1 : vector<1x128xf32> to vector<64x128xf32>
    %34 = arith.addf %32, %33 : vector<64x128xf32>
    %35 = arith.negf %34 : vector<64x128xf32>
    %36 = math.exp %35 : vector<64x128xf32>
    %cst_17 = arith.constant 1.000000e+00 : f32
    %37 = vector.broadcast %cst_17 : f32 to vector<64x128xf32>
    %38 = arith.addf %37, %36 : vector<64x128xf32>
    %39 = arith.divf %37, %38 : vector<64x128xf32>
    %40 = arith.addf %30, %39 : vector<64x128xf32>
    %cst_18 = arith.constant 2.500000e-01 : f32
    %41 = vector.broadcast %cst_18 : f32 to vector<64x128xf32>
    %42 = arith.mulf %40, %41 : vector<64x128xf32>
    %43 = arith.truncf %42 : vector<64x128xf32> to vector<64x128xbf16>
    %c0_19 = arith.constant 0 : index
    %c0_20 = arith.constant 0 : index
    %44 = vector.load %arg7[%c0_19, %c0_20] : memref<64x128xbf16, #tpu.memory_space<vmem>>, vector<64x128xbf16>
    tpu.vector_store %arg7[%c0_19, %c0_20], %43 {strides = array<i32>} : memref<64x128xbf16, #tpu.memory_space<vmem>>, vector<64x128xbf16>,
    return
  }
  func.func @transform_0(%arg0: i32) -> (i32, i32) {
    %c0_i32 = arith.constant 0 : i32
    %c0_i32_0 = arith.constant 0 : i32
    return %arg0, %c0_i32 : i32, i32
  }
  func.func @transform_1(%arg0: i32) -> (i32, i32) {
    %c0_i32 = arith.constant 0 : i32
    %c0_i32_0 = arith.constant 0 : i32
    return %arg0, %c0_i32 : i32, i32
  }
  func.func @transform_2(%arg0: i32) -> (i32, i32) {
    %c0_i32 = arith.constant 0 : i32
    %c0_i32_0 = arith.constant 0 : i32
    return %arg0, %c0_i32 : i32, i32
  }
  func.func @transform_3(%arg0: i32) -> (i32, i32) {
    %c0_i32 = arith.constant 0 : i32
    %c0_i32_0 = arith.constant 0 : i32
    return %arg0, %c0_i32 : i32, i32
  }
  func.func @transform_4(%arg0: i32) -> (i32, i32) {
    %c0_i32 = arith.constant 0 : i32
    %c0_i32_0 = arith.constant 0 : i32
    %c0_i32_1 = arith.constant 0 : i32
    return %c0_i32, %c0_i32_0 : i32, i32
  }
  func.func @transform_5(%arg0: i32) -> (i32, i32) {
    %c0_i32 = arith.constant 0 : i32
    %c0_i32_0 = arith.constant 0 : i32
    %c0_i32_1 = arith.constant 0 : i32
    return %c0_i32, %c0_i32_0 : i32, i32
  }
  func.func @transform_6(%arg0: i32) -> (i32, i32) {
    %c0_i32 = arith.constant 0 : i32
    %c0_i32_0 = arith.constant 0 : i32
    return %arg0, %c0_i32 : i32, i32
  }
}

module attributes {stable_mosaic.version = 11 : i64} {
  func.func @_fc_stack_kernel(%arg0: i32, %arg1: memref<16x400xbf16, #tpu.memory_space<vmem>>, %arg2: memref<400x128xbf16, #tpu.memory_space<vmem>>, %arg3: memref<1x128xf32, #tpu.memory_space<vmem>>, %arg4: memref<128x128xbf16, #tpu.memory_space<vmem>>, %arg5: memref<1x128xf32, #tpu.memory_space<vmem>>, %arg6: memref<128x128xbf16, #tpu.memory_space<vmem>>, %arg7: memref<1x128xf32, #tpu.memory_space<vmem>>, %arg8: memref<16x128xf32, #tpu.memory_space<vmem>>) attributes {dimension_semantics = [#tpu.dimension_semantics<parallel>], iteration_bounds = array<i64: 1>, scalar_prefetch = 0 : i64, scratch_operands = 0 : i64, tpu.core_type = #tpu.core_type<tc>, window_params = [{transform_indices = @transform_0, window_bounds = array<i64: 16, 400>}, {pipeline_mode = #tpu.pipeline_mode<synchronous>, transform_indices = @transform_1, window_bounds = array<i64: 400, 128>}, {pipeline_mode = #tpu.pipeline_mode<synchronous>, transform_indices = @transform_2, window_bounds = array<i64: 1, 128>}, {pipeline_mode = #tpu.pipeline_mode<synchronous>, transform_indices = @transform_3, window_bounds = array<i64: 128, 128>}, {pipeline_mode = #tpu.pipeline_mode<synchronous>, transform_indices = @transform_4, window_bounds = array<i64: 1, 128>}, {pipeline_mode = #tpu.pipeline_mode<synchronous>, transform_indices = @transform_5, window_bounds = array<i64: 128, 128>}, {pipeline_mode = #tpu.pipeline_mode<synchronous>, transform_indices = @transform_6, window_bounds = array<i64: 1, 128>}, {transform_indices = @transform_7, window_bounds = array<i64: 16, 128>}]} {
    %c0 = arith.constant 0 : index
    %c0_0 = arith.constant 0 : index
    %0 = vector.load %arg1[%c0, %c0_0] : memref<16x400xbf16, #tpu.memory_space<vmem>>, vector<16x400xbf16>
    %c0_1 = arith.constant 0 : index
    %c0_2 = arith.constant 0 : index
    %1 = vector.load %arg2[%c0_1, %c0_2] : memref<400x128xbf16, #tpu.memory_space<vmem>>, vector<400x128xbf16>
    %cst = arith.constant dense<0.000000e+00> : vector<16x128xf32>
    %2 = tpu.matmul %0, %1, %cst {dimension_numbers = #tpu.dot_dimension_numbers<[1], [0], [0], [1], [0, 0, 1, 1], [], []>} : vector<16x400xbf16>, vector<400x128xbf16>, vector<16x128xf32> -> vector<16x128xf32>
    %c0_3 = arith.constant 0 : index
    %c0_4 = arith.constant 0 : index
    %3 = vector.load %arg3[%c0_3, %c0_4] : memref<1x128xf32, #tpu.memory_space<vmem>>, vector<1x128xf32>
    %4 = vector.broadcast %3 : vector<1x128xf32> to vector<16x128xf32>
    %5 = arith.addf %2, %4 : vector<16x128xf32>
    %6 = arith.negf %5 : vector<16x128xf32>
    %7 = math.exp %6 : vector<16x128xf32>
    %cst_5 = arith.constant 1.000000e+00 : f32
    %8 = vector.broadcast %cst_5 : f32 to vector<16x128xf32>
    %9 = arith.addf %8, %7 : vector<16x128xf32>
    %10 = arith.divf %8, %9 : vector<16x128xf32>
    %11 = arith.truncf %10 : vector<16x128xf32> to vector<16x128xbf16>
    %c0_6 = arith.constant 0 : index
    %c0_7 = arith.constant 0 : index
    %12 = vector.load %arg4[%c0_6, %c0_7] : memref<128x128xbf16, #tpu.memory_space<vmem>>, vector<128x128xbf16>
    %cst_8 = arith.constant dense<0.000000e+00> : vector<16x128xf32>
    %13 = tpu.matmul %11, %12, %cst_8 {dimension_numbers = #tpu.dot_dimension_numbers<[1], [0], [0], [1], [0, 0, 1, 1], [], []>} : vector<16x128xbf16>, vector<128x128xbf16>, vector<16x128xf32> -> vector<16x128xf32>
    %c0_9 = arith.constant 0 : index
    %c0_10 = arith.constant 0 : index
    %14 = vector.load %arg5[%c0_9, %c0_10] : memref<1x128xf32, #tpu.memory_space<vmem>>, vector<1x128xf32>
    %15 = vector.broadcast %14 : vector<1x128xf32> to vector<16x128xf32>
    %16 = arith.addf %13, %15 : vector<16x128xf32>
    %17 = arith.negf %16 : vector<16x128xf32>
    %18 = math.exp %17 : vector<16x128xf32>
    %cst_11 = arith.constant 1.000000e+00 : f32
    %19 = vector.broadcast %cst_11 : f32 to vector<16x128xf32>
    %20 = arith.addf %19, %18 : vector<16x128xf32>
    %21 = arith.divf %19, %20 : vector<16x128xf32>
    %22 = arith.truncf %21 : vector<16x128xf32> to vector<16x128xbf16>
    %c0_12 = arith.constant 0 : index
    %c0_13 = arith.constant 0 : index
    %23 = vector.load %arg6[%c0_12, %c0_13] : memref<128x128xbf16, #tpu.memory_space<vmem>>, vector<128x128xbf16>
    %cst_14 = arith.constant dense<0.000000e+00> : vector<16x128xf32>
    %24 = tpu.matmul %22, %23, %cst_14 {dimension_numbers = #tpu.dot_dimension_numbers<[1], [0], [0], [1], [0, 0, 1, 1], [], []>} : vector<16x128xbf16>, vector<128x128xbf16>, vector<16x128xf32> -> vector<16x128xf32>
    %c0_15 = arith.constant 0 : index
    %c0_16 = arith.constant 0 : index
    %25 = vector.load %arg7[%c0_15, %c0_16] : memref<1x128xf32, #tpu.memory_space<vmem>>, vector<1x128xf32>
    %26 = vector.broadcast %25 : vector<1x128xf32> to vector<16x128xf32>
    %27 = arith.addf %24, %26 : vector<16x128xf32>
    %c0_17 = arith.constant 0 : index
    %c0_18 = arith.constant 0 : index
    %28 = vector.load %arg8[%c0_17, %c0_18] : memref<16x128xf32, #tpu.memory_space<vmem>>, vector<16x128xf32>
    tpu.vector_store %arg8[%c0_17, %c0_18], %27 {strides = array<i32>} : memref<16x128xf32, #tpu.memory_space<vmem>>, vector<16x128xf32>,
    return
  }
  func.func @transform_0(%arg0: i32) -> (i32, i32) {
    %c0_i32 = arith.constant 0 : i32
    %c0_i32_0 = arith.constant 0 : i32
    return %arg0, %c0_i32 : i32, i32
  }
  func.func @transform_1(%arg0: i32) -> (i32, i32) {
    %c0_i32 = arith.constant 0 : i32
    %c0_i32_0 = arith.constant 0 : i32
    %c0_i32_1 = arith.constant 0 : i32
    return %c0_i32, %c0_i32_0 : i32, i32
  }
  func.func @transform_2(%arg0: i32) -> (i32, i32) {
    %c0_i32 = arith.constant 0 : i32
    %c0_i32_0 = arith.constant 0 : i32
    %c0_i32_1 = arith.constant 0 : i32
    return %c0_i32, %c0_i32_0 : i32, i32
  }
  func.func @transform_3(%arg0: i32) -> (i32, i32) {
    %c0_i32 = arith.constant 0 : i32
    %c0_i32_0 = arith.constant 0 : i32
    %c0_i32_1 = arith.constant 0 : i32
    return %c0_i32, %c0_i32_0 : i32, i32
  }
  func.func @transform_4(%arg0: i32) -> (i32, i32) {
    %c0_i32 = arith.constant 0 : i32
    %c0_i32_0 = arith.constant 0 : i32
    %c0_i32_1 = arith.constant 0 : i32
    return %c0_i32, %c0_i32_0 : i32, i32
  }
  func.func @transform_5(%arg0: i32) -> (i32, i32) {
    %c0_i32 = arith.constant 0 : i32
    %c0_i32_0 = arith.constant 0 : i32
    %c0_i32_1 = arith.constant 0 : i32
    return %c0_i32, %c0_i32_0 : i32, i32
  }
  func.func @transform_6(%arg0: i32) -> (i32, i32) {
    %c0_i32 = arith.constant 0 : i32
    %c0_i32_0 = arith.constant 0 : i32
    %c0_i32_1 = arith.constant 0 : i32
    return %c0_i32, %c0_i32_0 : i32, i32
  }
  func.func @transform_7(%arg0: i32) -> (i32, i32) {
    %c0_i32 = arith.constant 0 : i32
    %c0_i32_0 = arith.constant 0 : i32
    return %arg0, %c0_i32 : i32, i32
  }
}

</mosaic_0001>

<bundles_post_ra>
// kernel: lenet_forward.3
= control target key start
LH: loop header
LB: loop body
LE: loop exit
PB: predicated region body
PF: predicated region fallthrough
CT: control target
= control target key end

     0   :  { %vm294_vm0 = vcmask 1043456   ;;  %vm295_vm1 = vcmask 1044480   ;;  %v7460_v2 = vmov 65535   ;;  %vm218_vm2 = vcmask 203776   ;;  %s12897_s4 = inlined_call_operand.vmem [shape: bf16[25,128], index: 4, kind: input, shape index: {}]   ;;  %s12898_s5 = inlined_call_operand.vmem [shape: f32[1,128], index: 5, kind: input, shape index: {}]   ;;  %s12899_s0 = inlined_call_operand.vmem [shape: bf16[400,25], index: 0, kind: input, shape index: {}]   ;;  %s12900_s1 = inlined_call_operand.vmem [shape: bf16[400,25], index: 1, kind: input, shape index: {}]   ;;  %s12901_s2 = inlined_call_operand.vmem [shape: bf16[400,25], index: 2, kind: input, shape index: {}]   ;;  %s12902_s3 = inlined_call_operand.vmem [shape: bf16[400,25], index: 3, kind: input, shape index: {}]   ;;  %s12903_s6 = inlined_call_operand.vmem [shape: bf16[400,128], index: 6, kind: output, shape index: {}]  }
   0x1   :  { %v5797_v0 = vld [vmem:[%s12897_s4 + $0x8] sm:$0xf]  ;;  %v6400_v1 = vld [vmem:[%s12897_s4 + $0x8] sm:$0x10]  ;;  %v296_v3 = vsel %vm294_vm0, 4294967295, %v7460_v2  ;;  %v6399_v7 = vld [vmem:[%s12897_s4] sm:$0xff] }
   0x2   :  { %v5798_v4 = vor.u32 %v6400_v1, %v5797_v0  ;;  %v297_v5 = vsel %vm295_vm1, %v296_v3, 0  ;;  %v6401_v8 = vld [vmem:[%s12899_s0] sm:$0xff]  ;;  %v6402_v12 = vld [vmem:[%s12899_s0 + $0x8] sm:$0xff]  ;;  %v6403_v16 = vld [vmem:[%s12899_s0 + $0x10] sm:$0xff] }
   0x3   :  { %v6426_v9 = vld [vmem:[%s12900_s1] sm:$0xff]  ;;  %v6427_v13 = vld [vmem:[%s12900_s1 + $0x8] sm:$0xff]  ;;  %v6428_v17 = vld [vmem:[%s12900_s1 + $0x10] sm:$0xff] }
   0x4   :  { %v299_v6 = vand.u32 %v5798_v4, %v297_v5  ;;  %v6451_v10 = vld [vmem:[%s12901_s2] sm:$0xff]  ;;  %v6452_v14 = vld [vmem:[%s12901_s2 + $0x8] sm:$0xff]  ;;  %v6453_v18 = vld [vmem:[%s12901_s2 + $0x10] sm:$0xff] }
   0x5   :  { %v6476_v11 = vld [vmem:[%s12902_s3] sm:$0xff]  ;;  %v6477_v15 = vld [vmem:[%s12902_s3 + $0x8] sm:$0xff]  ;;  %v6478_v19 = vld [vmem:[%s12902_s3 + $0x10] sm:$0xff] }
   0x6   :  { %307 = vmatpush.bf16.msra.mxu0 %v299_v6  ;;  %1641 = vmatpush.bf16.msra.mxu1 %v299_v6  ;;  %v6404_v20 = vld [vmem:[%s12899_s0 + $0x18] sm:$0xff]  ;;  %v6405_v24 = vld [vmem:[%s12899_s0 + $0x20] sm:$0xff]  ;;  %v6406_v28 = vld [vmem:[%s12899_s0 + $0x28] sm:$0xff] }
   0x7   :  { %3025 = vmatpush.bf16.msra.mxu2 %v299_v6  ;;  %4409 = vmatpush.bf16.msra.mxu3 %v299_v6  ;;  %v6429_v21 = vld [vmem:[%s12900_s1 + $0x18] sm:$0xff]  ;;  %v6430_v25 = vld [vmem:[%s12900_s1 + $0x20] sm:$0xff]  ;;  %v6431_v29 = vld [vmem:[%s12900_s1 + $0x28] sm:$0xff] }
   0x8   :  { %v6454_v22 = vld [vmem:[%s12901_s2 + $0x18] sm:$0xff]  ;;  %v6455_v26 = vld [vmem:[%s12901_s2 + $0x20] sm:$0xff]  ;;  %v6456_v30 = vld [vmem:[%s12901_s2 + $0x28] sm:$0xff] }
   0x9   :  { %v6479_v23 = vld [vmem:[%s12902_s3 + $0x18] sm:$0xff]  ;;  %v6480_v27 = vld [vmem:[%s12902_s3 + $0x20] sm:$0xff]  ;;  %v6481_v31 = vld [vmem:[%s12902_s3 + $0x28] sm:$0xff] }
   0xa   :  { %308 = vmatpush.bf16.msra.mxu0 %v6399_v7  ;;  %1642 = vmatpush.bf16.msra.mxu1 %v6399_v7  ;;  %v6407_v32 = vld [vmem:[%s12899_s0 + $0x30] sm:$0xff]  ;;  %v6408_v36 = vld [vmem:[%s12899_s0 + $0x38] sm:$0xff]  ;;  %v7636_v40 = vld [vmem:[%s12898_s5] ss:$0 sm:$0xff] }
   0xb   :  { %3026 = vmatpush.bf16.msra.mxu2 %v6399_v7  ;;  %4410 = vmatpush.bf16.msra.mxu3 %v6399_v7  ;;  %v6432_v33 = vld [vmem:[%s12900_s1 + $0x30] sm:$0xff]  ;;  %v6433_v37 = vld [vmem:[%s12900_s1 + $0x38] sm:$0xff]  ;;  %v6409_v41 = vld [vmem:[%s12899_s0 + $0x40] sm:$0xff] }
   0xc   :  { %v6457_v34 = vld [vmem:[%s12901_s2 + $0x30] sm:$0xff]  ;;  %v6458_v38 = vld [vmem:[%s12901_s2 + $0x38] sm:$0xff]  ;;  %v6434_v42 = vld [vmem:[%s12900_s1 + $0x40] sm:$0xff] }
   0xd   :  { %5799 = vmatmul.msk.bf16.vlgmr.msra.gmra.mxu0 %vm218_vm2, %v6401_v8  ;;  %5974 = vmatmul.msk.bf16.vlgmr.msra.gmra.mxu1 %vm218_vm2, %v6426_v9  ;;  %v6482_v35 = vld [vmem:[%s12902_s3 + $0x30] sm:$0xff]  ;;  %v6483_v39 = vld [vmem:[%s12902_s3 + $0x38] sm:$0xff]  ;;  %v6459_v45 = vld [vmem:[%s12901_s2 + $0x40] sm:$0xff] }
   0xe   :  { %6149 = vmatmul.msk.bf16.vlgmr.msra.gmra.mxu2 %vm218_vm2, %v6451_v10  ;;  %6324 = vmatmul.msk.bf16.vlgmr.msra.gmra.mxu3 %vm218_vm2, %v6476_v11  ;;  %v6484_v46 = vld [vmem:[%s12902_s3 + $0x40] sm:$0xff]  ;;  %v6410_v5 = vld [vmem:[%s12899_s0 + $0x48] sm:$0xff] }
   0xf   :  { %v6435_v6 = vld [vmem:[%s12900_s1 + $0x48] sm:$0xff] }
  0x10   :  { %v6460_v8 = vld [vmem:[%s12901_s2 + $0x48] sm:$0xff] }
  0x11   :  { %v6485_v9 = vld [vmem:[%s12902_s3 + $0x48] sm:$0xff] }
  0x1d   :  { %5800 = vmatmul.msk.bf16.gmra.mxu0 %vm218_vm2, %v6402_v12  ;;  %5975 = vmatmul.msk.bf16.gmra.mxu1 %vm218_vm2, %v6427_v13 }
  0x1e   :  { %6150 = vmatmul.msk.bf16.gmra.mxu2 %vm218_vm2, %v6452_v14  ;;  %6325 = vmatmul.msk.bf16.gmra.mxu3 %vm218_vm2, %v6477_v15 }
  0x2d   :  { %5801 = vmatmul.msk.bf16.gmra.mxu0 %vm218_vm2, %v6403_v16  ;;  %5976 = vmatmul.msk.bf16.gmra.mxu1 %vm218_vm2, %v6428_v17 }
  0x2e   :  { %6151 = vmatmul.msk.bf16.gmra.mxu2 %vm218_vm2, %v6453_v18  ;;  %6326 = vmatmul.msk.bf16.gmra.mxu3 %vm218_vm2, %v6478_v19 }
  0x3d   :  { %5802 = vmatmul.msk.bf16.gmra.mxu0 %vm218_vm2, %v6404_v20  ;;  %5977 = vmatmul.msk.bf16.gmra.mxu1 %vm218_vm2, %v6429_v21 }
  0x3e   :  { %6152 = vmatmul.msk.bf16.gmra.mxu2 %vm218_vm2, %v6454_v22  ;;  %6327 = vmatmul.msk.bf16.gmra.mxu3 %vm218_vm2, %v6479_v23 }
  0x4d   :  { %5803 = vmatmul.msk.bf16.gmra.mxu0 %vm218_vm2, %v6405_v24  ;;  %5978 = vmatmul.msk.bf16.gmra.mxu1 %vm218_vm2, %v6430_v25 }
  0x4e   :  { %6153 = vmatmul.msk.bf16.gmra.mxu2 %vm218_vm2, %v6455_v26  ;;  %6328 = vmatmul.msk.bf16.gmra.mxu3 %vm218_vm2, %v6480_v27 }
  0x5d   :  { %5804 = vmatmul.msk.bf16.gmra.mxu0 %vm218_vm2, %v6406_v28  ;;  %5979 = vmatmul.msk.bf16.gmra.mxu1 %vm218_vm2, %v6431_v29 }
  0x5e   :  { %6154 = vmatmul.msk.bf16.gmra.mxu2 %vm218_vm2, %v6456_v30  ;;  %6329 = vmatmul.msk.bf16.gmra.mxu3 %vm218_vm2, %v6481_v31 }
  0x6d   :  { %5805 = vmatmul.msk.bf16.gmra.mxu0 %vm218_vm2, %v6407_v32  ;;  %5980 = vmatmul.msk.bf16.gmra.mxu1 %vm218_vm2, %v6432_v33 }
  0x6e   :  { %6155 = vmatmul.msk.bf16.gmra.mxu2 %vm218_vm2, %v6457_v34  ;;  %6330 = vmatmul.msk.bf16.gmra.mxu3 %vm218_vm2, %v6482_v35 }
  0x7d   :  { %5806 = vmatmul.msk.bf16.gmra.mxu0 %vm218_vm2, %v6408_v36  ;;  %5981 = vmatmul.msk.bf16.gmra.mxu1 %vm218_vm2, %v6433_v37 }
  0x7e   :  { %6156 = vmatmul.msk.bf16.gmra.mxu2 %vm218_vm2, %v6458_v38  ;;  %6331 = vmatmul.msk.bf16.gmra.mxu3 %vm218_vm2, %v6483_v39 }
  0x8a   :  { %v310_v43 = vpop.f32.mrf.mxu0  ;;  %v1644_v44 = vpop.f32.mrf.mxu1 }
  0x8b   :  { %v311_v47 = vadd.f32 %v7636_v40, %v310_v43  ;;  %v1645_v48 = vadd.f32 %v7636_v40, %v1644_v44 }
  0x8d   :  { %v5824_v49 = vmul.f32 -1.442695, %v311_v47  ;;  %v5999_v50 = vmul.f32 -1.442695, %v1645_v48  ;;  %5807 = vmatmul.msk.bf16.gmra.mxu0 %vm218_vm2, %v6409_v41  ;;  %5982 = vmatmul.msk.bf16.gmra.mxu1 %vm218_vm2, %v6434_v42 }
  0x8e   :  { %6157 = vmatmul.msk.bf16.gmra.mxu2 %vm218_vm2, %v6459_v45  ;;  %6332 = vmatmul.msk.bf16.gmra.mxu3 %vm218_vm2, %v6484_v46 }
  0x8f   :  { %6652 = vpow2.f32 %v5824_v49 }
  0x90   :  { %6654 = vpow2.f32 %v5999_v50 }
  0x91   :  { %v3028_v51 = vpop.f32.mrf.mxu2  ;;  %v4412_v52 = vpop.f32.mrf.mxu3 }
  0x92   :  { %v3029_v53 = vadd.f32 %v7636_v40, %v3028_v51  ;;  %v4413_v54 = vadd.f32 %v7636_v40, %v4412_v52  ;;  %v312_v55 = vpop.f32.mrf.mxu0  ;;  %v1646_v56 = vpop.f32.mrf.mxu1 }
  0x93   :  { %v313_v57 = vadd.f32 %v7636_v40, %v312_v55  ;;  %v1647_v58 = vadd.f32 %v7636_v40, %v1646_v56 }
  0x94   :  { %v6174_v59 = vmul.f32 -1.442695, %v3029_v53  ;;  %v6349_v60 = vmul.f32 -1.442695, %v4413_v54 }
  0x95   :  { %v6653_v61 = vpop.eup %6652  ;;  %v5825_v0 = vmul.f32 -1.442695, %v313_v57  ;;  %v6000_v2 = vmul.f32 -1.442695, %v1647_v58 }
  0x96   :  { %v6655_v62 = vpop.eup %6654  ;;  %v7660_v63 = vadd.f32 1.0, %v6653_v61  ;;  %6656 = vpow2.f32 %v6174_v59 }
  0x97   :  { %v7662_v1 = vadd.f32 1.0, %v6655_v62  ;;  %6658 = vpow2.f32 %v6349_v60 }
  0x98   :  { %6660 = vrcp.f32 %v7660_v63  ;;  %vm640_vm3 = vweird.f32 %v7660_v63  ;;  %v646_v22 = vand.u32 2147483648, %v7660_v63  ;;  %v644_v28 = vand.u32 2147483647, %v7660_v63 }
  0x99   :  { %6662 = vrcp.f32 %v7662_v1  ;;  %v3030_v3 = vpop.f32.mrf.mxu2  ;;  %v4414_v4 = vpop.f32.mrf.mxu3  ;;  %v1980_v24 = vand.u32 2147483648, %v7662_v1  ;;  %v1978_v29 = vand.u32 2147483647, %v7662_v1  ;;  %vm1974_vm4 = vweird.f32 %v7662_v1 }
  0x9a   :  { %6664 = vpow2.f32 %v5825_v0  ;;  %v3031_v7 = vadd.f32 %v7636_v40, %v3030_v3  ;;  %v4415_v11 = vadd.f32 %v7636_v40, %v4414_v4  ;;  %v315_v19 = vpop.f32.mrf.mxu0  ;;  %v1649_v20 = vpop.f32.mrf.mxu1  ;;  %v647_v36 = vor.u32 1.1754944e-38, %v646_v22 }
  0x9b   :  { %6666 = vpow2.f32 %v6000_v2  ;;  %v316_v31 = vadd.f32 %v7636_v40, %v315_v19  ;;  %v1650_v32 = vadd.f32 %v7636_v40, %v1649_v20  ;;  %v1981_v38 = vor.u32 1.1754944e-38, %v1980_v24 }
  0x9c   :  { %v6657_v10 = vpop.eup %6656  ;;  %v6175_v16 = vmul.f32 -1.442695, %v3031_v7  ;;  %v6350_v25 = vmul.f32 -1.442695, %v4415_v11  ;;  %vm7714_vm5 = vcmp.eq.f32.partialorder %v644_v28, 8.507059e+37  ;;  %vm7718_vm6 = vcmp.eq.f32.partialorder %v1978_v29, 8.507059e+37 }
  0x9d   :  { %v6659_v12 = vpop.eup %6658  ;;  %v7680_v13 = vadd.f32 1.0, %v6657_v10  ;;  %5808 = vmatmul.msk.bf16.gmra.mxu0 %vm218_vm2, %v6410_v5  ;;  %5983 = vmatmul.msk.bf16.gmra.mxu1 %vm218_vm2, %v6435_v6  ;;  %v5826_v47 = vmul.f32 -1.442695, %v316_v31  ;;  %v7729_v48 = vmul.f32 -1.442695, %v1650_v32 }
  0x9e   :  { %v7684_v14 = vpop.eup %6660  ;;  %v7686_v15 = vadd.f32 1.0, %v6659_v12  ;;  %6158 = vmatmul.msk.bf16.gmra.mxu2 %vm218_vm2, %v6460_v8  ;;  %6333 = vmatmul.msk.bf16.gmra.mxu3 %vm218_vm2, %v6485_v9 }
  0x9f   :  { %v7690_v17 = vpop.eup %6662  ;;  %v636_v18 = vmul.f32 %v7684_v14, %v7660_v63  ;;  %6668 = vrcp.f32 %v7680_v13  ;;  %v3362_v43 = vand.u32 2147483647, %v7680_v13  ;;  %v3364_v44 = vand.u32 2147483648, %v7680_v13 }
  0xa0   :  { %v6665_v21 = vpop.eup %6664  ;;  %v1970_v23 = vmul.f32 %v7690_v17, %v7662_v1  ;;  %6670 = vrcp.f32 %v7686_v15  ;;  %v4748_v45 = vand.u32 2147483648, %v7686_v15  ;;  %vm641_vm7 = vweird.f32 %v7684_v14 }
  0xa1   :  { %v6667_v26 = vpop.eup %6666  ;;  %v637_v27 = vsub.f32 1.0, %v636_v18  ;;  %6672 = vpow2.f32 %v6175_v16  ;;  %v7707_v34 = vadd.f32 1.0, %v6665_v21  ;;  %vm1975_vm8 = vweird.f32 %v7690_v17  ;;  %vm7743_vm10 = vmor %vm640_vm3, %vm641_vm7  ;;  %v3033_v61 = vpop.f32.mrf.mxu2 }
  0xa2   :  { %v1971_v30 = vsub.f32 1.0, %v1970_v23  ;;  %v7709_v35 = vadd.f32 1.0, %v6667_v26  ;;  %6674 = vpow2.f32 %v6350_v25  ;;  %vm3358_vm9 = vweird.f32 %v7680_v13  ;;  %vm7759_vm13 = vmor %vm1974_vm4, %vm1975_vm8  ;;  %v4417_v31 = vpop.f32.mrf.mxu3  ;;  %v317_v56 = vpop.f32.mrf.mxu0 }
  0xa3   :  { %v638_v33 = vmul.f32 %v7684_v14, %v637_v27  ;;  %6676 = vrcp.f32 %v7707_v34  ;;  %v4746_v55 = vand.u32 2147483647, %v7686_v15  ;;  %vm7747_vm11 = vcmp.eq.f32.partialorder %v3362_v43, 8.507059e+37  ;;  %v6411_v43 = vld [vmem:[%s12899_s0 + $0x50] sm:$0xff] }
  0xa4   :  { %v1972_v37 = vmul.f32 %v7690_v17, %v1971_v30  ;;  %6678 = vrcp.f32 %v7709_v35  ;;  %v3365_v58 = vor.u32 1.1754944e-38, %v3364_v44  ;;  %vm4742_vm12 = vweird.f32 %v7686_v15  ;;  %v6436_v44 = vld [vmem:[%s12900_s1 + $0x50] sm:$0xff] }
  0xa5   :  { %v7712_v39 = vpop.eup %6668  ;;  %v639_v50 = vadd.f32 %v7684_v14, %v638_v33  ;;  %v7752_v59 = vor.u32 1.1754944e-38, %v4748_v45  ;;  %v659_v60 = vand.u32 2147483647, %v7707_v34  ;;  %v661_v3 = vand.u32 2147483648, %v7707_v34 }
  0xa6   :  { %v3354_v46 = vmul.f32 %v7712_v39, %v7680_v13  ;;  %v7731_v49 = vpop.eup %6670  ;;  %v1973_v51 = vadd.f32 %v7690_v17, %v1972_v37  ;;  %vm3359_vm14 = vweird.f32 %v7712_v39  ;;  %6680 = vpow2.f32 %v5826_v47 }
  0xa7   :  { %v6673_v52 = vpop.eup %6672  ;;  %v4738_v54 = vmul.f32 %v7731_v49, %v7686_v15  ;;  %v643_v5 = vsel %vm7743_vm10, %v7684_v14, %v639_v50  ;;  %v3034_v10 = vadd.f32 %v7636_v40, %v3033_v61  ;;  %vm655_vm15 = vweird.f32 %v7707_v34  ;;  %vm7796_vm1 = vmor %vm3358_vm9, %vm3359_vm14  ;;  %v6486_v50 = vld [vmem:[%s12902_s3 + $0x50] sm:$0xff] }
  0xa8   :  { %v3355_v53 = vsub.f32 1.0, %v3354_v46  ;;  %v6675_v62 = vpop.eup %6674  ;;  %v1977_v1 = vsel %vm7759_vm13, %v7690_v17, %v1973_v51  ;;  %v7774_v6 = vadd.f32 1.0, %v6673_v52  ;;  %vm1989_vm0 = vweird.f32 %v7709_v35 }
  0xa9   :  { %v4739_v2 = vsub.f32 1.0, %v4738_v54  ;;  %v7766_v4 = vpop.eup %6676  ;;  %v7786_v12 = vadd.f32 1.0, %v6675_v62  ;;  %v648_v14 = vsel %vm7714_vm5, %v647_v36, %v643_v5  ;;  %v1982_v16 = vsel %vm7718_vm6, %v1981_v38, %v1977_v1  ;;  %v1651_v5 = vpop.f32.mrf.mxu1 }
  0xaa   :  { %v3356_v0 = vmul.f32 %v7712_v39, %v3355_v53  ;;  %v651_v9 = vmul.f32 %v7766_v4, %v7707_v34  ;;  %v7781_v11 = vpop.eup %6678  ;;  %6682 = vrcp.f32 %v7774_v6  ;;  %vm7800_vm3 = vcmp.eq.f32.partialorder %v4746_v55, 8.507059e+37  ;;  %v4419_v17 = vpop.f32.mrf.mxu3 }
  0xab   :  { %v4740_v8 = vmul.f32 %v7731_v49, %v4739_v2  ;;  %vm7804_vm4 = vcmp.eq.f32.partialorder %v659_v60, 8.507059e+37  ;;  %v1985_v21 = vmul.f32 %v7781_v11, %v7709_v35  ;;  %vm4743_vm5 = vweird.f32 %v7731_v49 }
  0xac   :  { %v3357_v7 = vadd.f32 %v7712_v39, %v3356_v0  ;;  %v652_v19 = vsub.f32 1.0, %v651_v9  ;;  %v662_v22 = vor.u32 1.1754944e-38, %v661_v3  ;;  %v1993_v23 = vand.u32 2147483647, %v7709_v35  ;;  %v6681_v27 = vpop.eup %6680  ;;  %vm7825_vm7 = vmor %vm4742_vm12, %vm4743_vm5 }
  0xad   :  { %v4741_v24 = vadd.f32 %v7731_v49, %v4740_v8  ;;  %vm656_vm6 = vweird.f32 %v7766_v4  ;;  %v1986_v26 = vsub.f32 1.0, %v1985_v21  ;;  %v2719_v28 = vadd.f32 %v1982_v16, %v648_v14  ;;  %5809 = vmatmul.msk.bf16.gmra.mxu0 %vm218_vm2, %v6411_v43  ;;  %5984 = vmatmul.msk.bf16.gmra.mxu1 %vm218_vm2, %v6436_v44 }
  0xae   :  { %v3361_v13 = vsel %vm7796_vm1, %v7712_v39, %v3357_v7  ;;  %v653_v25 = vmul.f32 %v7766_v4, %v652_v19  ;;  %v1995_v29 = vand.u32 2147483648, %v7709_v35  ;;  %v3377_v30 = vand.u32 2147483647, %v7774_v6  ;;  %vm7834_vm9 = vmor %vm655_vm15, %vm656_vm6  ;;  %6334 = vmatmul.msk.bf16.gmra.mxu3 %vm218_vm2, %v6486_v50 }
  0xaf   :  { %6684 = vrcp.f32 %v7786_v12  ;;  %v3366_v32 = vsel %vm7747_vm11, %v3365_v58, %v3361_v13  ;;  %v1987_v37 = vmul.f32 %v7781_v11, %v1986_v26  ;;  %vm1990_vm8 = vweird.f32 %v7781_v11 }
  0xb0   :  { %v654_v36 = vadd.f32 %v7766_v4, %v653_v25  ;;  %v6683_v38 = vpop.eup %6682  ;;  %v3379_v41 = vand.u32 2147483648, %v7774_v6  ;;  %v7839_v15 = vadd.f32 1.0, %v6681_v27  ;;  %6686 = vpow2.f32 %v7729_v48  ;;  %v6461_v48 = vld [vmem:[%s12901_s2 + $0x50] sm:$0xff]  ;;  %vm7866_vm10 = vmor %vm1989_vm0, %vm1990_vm8 }
  0xb1   :  { %v6176_v42 = vmul.f32 -1.442695, %v3034_v10  ;;  %v4745_v34 = vsel %vm7825_vm7, %v7731_v49, %v4741_v24  ;;  %v1988_v46 = vadd.f32 %v7781_v11, %v1987_v37  ;;  %v3369_v47 = vmul.f32 %v6683_v38, %v7774_v6  ;;  %6159 = vmatmul.msk.bf16.gmra.mxu2 %vm218_vm2, %v6461_v48  ;;  %v3035_v10 = vpop.f32.mrf.mxu2 }
  0xb2   :  { %v658_v45 = vsel %vm7834_vm9, %v7766_v4, %v654_v36  ;;  %v4103_v51 = vadd.f32 %v3366_v32, %v2719_v28  ;;  %vm7870_vm11 = vcmp.eq.f32.partialorder %v1993_v23, 8.507059e+37  ;;  %v1996_v53 = vor.u32 1.1754944e-38, %v1995_v29 }
  0xb3   :  { %vm3373_vm12 = vweird.f32 %v7774_v6  ;;  %v1992_v54 = vsel %vm7866_vm10, %v7781_v11, %v1988_v46  ;;  %v3370_v35 = vsub.f32 1.0, %v3369_v47  ;;  %vm7880_vm13 = vcmp.eq.f32.partialorder %v3377_v30, 8.507059e+37 }
  0xb4   :  { %6688 = vrcp.f32 %v7839_v15  ;;  %v4750_v58 = vsel %vm7800_vm3, %v7752_v59, %v4745_v34  ;;  %v663_v60 = vsel %vm7804_vm4, %v662_v22, %v658_v45  ;;  %v3380_v61 = vor.u32 1.1754944e-38, %v3379_v41 }
  0xb5   :  { %v6685_v57 = vpop.eup %6684  ;;  %6690 = vpow2.f32 %v6176_v42  ;;  %v1997_v62 = vsel %vm7870_vm11, %v1996_v53, %v1992_v54  ;;  %v3371_v63 = vmul.f32 %v6683_v38, %v3370_v35  ;;  %vm3374_vm14 = vweird.f32 %v6683_v38  ;;  %v6437_v35 = vld [vmem:[%s12900_s1 + $0x58] sm:$0xff] }
  0xb6   :  { %v4753_v0 = vmul.f32 %v6685_v57, %v7786_v12  ;;  %v6687_v2 = vpop.eup %6686  ;;  %v5487_v3 = vadd.f32 %v4750_v58, %v4103_v51  ;;  %vm4757_vm15 = vweird.f32 %v7786_v12  ;;  %v4418_v4 = vadd.f32 %v7636_v40, %v4417_v31  ;;  %vm3375_vm0 = vmor %vm3373_vm12, %vm3374_vm14 }
  0xb7   :  { %v318_v59 = vadd.f32 %v7636_v40, %v317_v56  ;;  %v3372_v1 = vadd.f32 %v6683_v38, %v3371_v63  ;;  %v4761_v8 = vand.u32 2147483647, %v7786_v12  ;;  %v7899_v9 = vadd.f32 1.0, %v6687_v2 }
  0xb8   :  { %v4754_v7 = vsub.f32 1.0, %v4753_v0  ;;  %v2720_v11 = vadd.f32 %v1997_v62, %v663_v60  ;;  %vm4758_vm1 = vweird.f32 %v6685_v57  ;;  %v4763_v14 = vand.u32 2147483648, %v7786_v12 }
  0xb9   :  { %v6351_v16 = vmul.f32 -1.442695, %v4418_v4  ;;  %v3376_v19 = vsel %vm3375_vm0, %v6683_v38, %v3372_v1  ;;  %6692 = vrcp.f32 %v7899_v9  ;;  %v1652_v21 = vadd.f32 %v7636_v40, %v1651_v5  ;;  %vm4759_vm3 = vmor %vm4757_vm15, %vm4758_vm1  ;;  %v320_v38 = vpop.f32.mrf.mxu0  ;;  %v1654_v1 = vpop.f32.mrf.mxu1 }
  0xba   :  { %v7904_v18 = vpop.eup %6688  ;;  %v4755_v20 = vmul.f32 %v6685_v57, %v4754_v7  ;;  %v3381_v22 = vsel %vm7880_vm13, %v3380_v61, %v3376_v19  ;;  %v5827_v23 = vmul.f32 -1.442695, %v318_v59  ;;  %v3036_v24 = vadd.f32 %v7636_v40, %v3035_v10  ;;  %v4422_v59 = vpop.f32.mrf.mxu3 }
  0xbb   :  { %v6691_v13 = vpop.eup %6690  ;;  %v666_v6 = vmul.f32 %v7904_v18, %v7839_v15  ;;  %v4104_v25 = vadd.f32 %v3381_v22, %v2720_v11  ;;  %v4420_v28 = vadd.f32 %v7636_v40, %v4419_v17  ;;  %v4764_v29 = vor.u32 1.1754944e-38, %v4763_v14 }
  0xbc   :  { %v4756_v26 = vadd.f32 %v6685_v57, %v4755_v20  ;;  %v7913_v27 = vadd.f32 1.0, %v6691_v13  ;;  %6694 = vpow2.f32 %v6351_v16  ;;  %vm4762_vm4 = vcmp.eq.f32.partialorder %v4761_v8, 8.507059e+37 }
  0xbd   :  { %v667_v30 = vsub.f32 1.0, %v666_v6  ;;  %v6002_v32 = vmul.f32 -1.442695, %v1652_v21  ;;  %v5537_v33 = vmul.f32 0.25, %v5487_v3  ;;  %v6177_v42 = vmul.f32 -1.442695, %v3036_v24  ;;  %v3038_v24 = vpop.f32.mrf.mxu2  ;;  %5985 = vmatmul.msk.bf16.gmra.mxu1 %vm218_vm2, %v6437_v35 }
  0xbe   :  { %v4760_v31 = vsel %vm4759_vm3, %v6685_v57, %v4756_v26  ;;  %6696 = vrcp.f32 %v7913_v27  ;;  %v6352_v12 = vmul.f32 -1.442695, %v4420_v28  ;;  %vm670_vm5 = vweird.f32 %v7839_v15 }
  0xbf   :  { %v4765_v36 = vsel %vm4762_vm4, %v4764_v29, %v4760_v31  ;;  %v668_v37 = vmul.f32 %v7904_v18, %v667_v30  ;;  %v7921_v39 = vpop.eup %6692  ;;  %6698 = vpow2.f32 %v5827_v23  ;;  %v674_v43 = vand.u32 2147483647, %v7839_v15 }
  0xc0   :  { %v5488_v41 = vadd.f32 %v4765_v36, %v4104_v25  ;;  %v676_v44 = vand.u32 2147483648, %v7839_v15  ;;  %v2000_v34 = vmul.f32 %v7921_v39, %v7899_v9  ;;  %vm671_vm6 = vweird.f32 %v7904_v18 }
  0xc1   :  { %6700 = vpow2.f32 %v6002_v32  ;;  %v321_v46 = vadd.f32 %v7636_v40, %v320_v38  ;;  %v2008_v50 = vand.u32 2147483647, %v7899_v9  ;;  %v2010_v51 = vand.u32 2147483648, %v7899_v9  ;;  %vm7954_vm10 = vmor %vm670_vm5, %vm671_vm6 }
  0xc2   :  { %v5538_v45 = vmul.f32 0.25, %v5488_v41  ;;  %v6695_v47 = vpop.eup %6694  ;;  %v2001_v48 = vsub.f32 1.0, %v2000_v34  ;;  %6702 = vpow2.f32 %v6177_v42  ;;  %v669_v53 = vadd.f32 %v7904_v18, %v668_v37 }
  0xc3   :  { %v7935_v54 = vadd.f32 1.0, %v6695_v47  ;;  %6704 = vpow2.f32 %v6352_v12  ;;  %vm7937_vm7 = vcmp.eq.f32.partialorder %v674_v43, 8.507059e+37  ;;  %vm2005_vm8 = vweird.f32 %v7921_v39 }
  0xc4   :  { %v7932_v49 = vpop.eup %6696  ;;  %v6504_v52 = vpack.c.bf16 %v5538_v45, %v5537_v33  ;;  %v2002_v55 = vmul.f32 %v7921_v39, %v2001_v48  ;;  %v677_v58 = vor.u32 1.1754944e-38, %v676_v44  ;;  %vm2004_vm9 = vweird.f32 %v7899_v9 }
  0xc5   :  { %v3384_v56 = vmul.f32 %v7932_v49, %v7913_v27  ;;  %v6699_v57 = vpop.eup %6698  ;;  %6706 = vrcp.f32 %v7935_v54  ;;  %v5828_v60 = vmul.f32 -1.442695, %v321_v46  ;;  %v3392_v0 = vand.u32 2147483647, %v7913_v27  ;;  %vm7967_vm11 = vmor %vm2004_vm9, %vm2005_vm8 }
  0xc6   :  { %6505 = vst [vmem:[%s12903_s6] sm:$0xff] %v6504_v52   ;;  %v2003_v62 = vadd.f32 %v7921_v39, %v2002_v55  ;;  %v7960_v2 = vadd.f32 1.0, %v6699_v57  ;;  %v673_v4 = vsel %vm7954_vm10, %v7904_v18, %v669_v53  ;;  %vm7971_vm12 = vcmp.eq.f32.partialorder %v2008_v50, 8.507059e+37  ;;  %v6412_v53 = vld [vmem:[%s12899_s0 + $0x58] sm:$0xff] }
  0xc7   :  { %v3385_v63 = vsub.f32 1.0, %v3384_v56  ;;  %v6701_v3 = vpop.eup %6700  ;;  %v2011_v5 = vor.u32 1.1754944e-38, %v2010_v51  ;;  %vm3388_vm13 = vweird.f32 %v7913_v27  ;;  %vm3389_vm14 = vweird.f32 %v7932_v49  ;;  %v6462_v55 = vld [vmem:[%s12901_s2 + $0x58] sm:$0xff]  ;;  %5810 = vmatmul.msk.bf16.gmra.mxu0 %vm218_vm2, %v6412_v53 }
  0xc8   :  { %v6703_v7 = vpop.eup %6702  ;;  %v2007_v8 = vsel %vm7967_vm11, %v7921_v39, %v2003_v62  ;;  %6708 = vrcp.f32 %v7960_v2  ;;  %v3394_v11 = vand.u32 2147483648, %v7913_v27  ;;  %v4778_v14 = vand.u32 2147483648, %v7935_v54  ;;  %vm8002_vm0 = vmor %vm3388_vm13, %vm3389_vm14  ;;  %6160 = vmatmul.msk.bf16.gmra.mxu2 %vm218_vm2, %v6462_v55 }
  0xc9   :  { %v3386_v9 = vmul.f32 %v7932_v49, %v3385_v63  ;;  %v6705_v10 = vpop.eup %6704  ;;  %v7984_v16 = vadd.f32 1.0, %v6701_v3  ;;  %6710 = vpow2.f32 %v5828_v60  ;;  %vm7987_vm15 = vcmp.eq.f32.partialorder %v3392_v0, 8.507059e+37  ;;  %v6487_v60 = vld [vmem:[%s12902_s3 + $0x58] sm:$0xff] }
  0xca   :  { %v7991_v19 = vadd.f32 1.0, %v6703_v7  ;;  %v1655_v20 = vadd.f32 %v7636_v40, %v1654_v1  ;;  %v678_v13 = vsel %vm7937_vm7, %v677_v58, %v673_v4  ;;  %v2012_v22 = vsel %vm7971_vm12, %v2011_v5, %v2007_v8  ;;  %6335 = vmatmul.msk.bf16.gmra.mxu3 %vm218_vm2, %v6487_v60 }
  0xcb   :  { %v3387_v17 = vadd.f32 %v7932_v49, %v3386_v9  ;;  %v7994_v21 = vpop.eup %6706  ;;  %v689_v23 = vand.u32 2147483647, %v7960_v2  ;;  %6712 = vrcp.f32 %v7984_v16  ;;  %v691_v28 = vand.u32 2147483648, %v7960_v2 }
  0xcc   :  { %v4768_v26 = vmul.f32 %v7994_v21, %v7935_v54  ;;  %v8014_v29 = vadd.f32 1.0, %v6705_v10  ;;  %v3395_v27 = vor.u32 1.1754944e-38, %v3394_v11  ;;  %v4776_v30 = vand.u32 2147483647, %v7935_v54 }
  0xcd   :  { %v3391_v25 = vsel %vm8002_vm0, %v7932_v49, %v3387_v17  ;;  %v8017_v31 = vor.u32 1.1754944e-38, %v4778_v14  ;;  %6714 = vrcp.f32 %v7991_v19  ;;  %vm4772_vm1 = vweird.f32 %v7935_v54 }
  0xce   :  { %v8020_v32 = vpop.eup %6708  ;;  %v4769_v33 = vsub.f32 1.0, %v4768_v26  ;;  %vm685_vm3 = vweird.f32 %v7960_v2  ;;  %v6003_v36 = vmul.f32 -1.442695, %v1655_v20  ;;  %v8025_v37 = vadd.f32 %v7636_v40, %v3038_v24 }
  0xcf   :  { %v6711_v38 = vpop.eup %6710  ;;  %v2721_v39 = vadd.f32 %v2012_v22, %v678_v13  ;;  %v3396_v41 = vsel %vm7987_vm15, %v3395_v27, %v3391_v25  ;;  %v681_v42 = vmul.f32 %v8020_v32, %v7960_v2  ;;  %v2023_v12 = vand.u32 2147483647, %v7984_v16  ;;  %v322_v13 = vpop.f32.mrf.mxu0 }
  0xd0   :  { %v4770_v43 = vmul.f32 %v7994_v21, %v4769_v33  ;;  %vm8033_vm4 = vcmp.eq.f32.partialorder %v689_v23, 8.507059e+37  ;;  %v692_v34 = vor.u32 1.1754944e-38, %v691_v28  ;;  %v2025_v45 = vand.u32 2147483648, %v7984_v16 }
  0xd1   :  { %6716 = vrcp.f32 %v8014_v29  ;;  %v6713_v46 = vpop.eup %6712  ;;  %vm4773_vm5 = vweird.f32 %v7994_v21  ;;  %v682_v47 = vsub.f32 1.0, %v681_v42  ;;  %vm2019_vm6 = vweird.f32 %v7984_v16 }
  0xd2   :  { %v3407_v48 = vand.u32 2147483647, %v7991_v19  ;;  %v8042_v50 = vadd.f32 %v3396_v41, %v2721_v39  ;;  %v2015_v51 = vmul.f32 %v6713_v46, %v7984_v16  ;;  %vm3403_vm7 = vweird.f32 %v7991_v19  ;;  %vm8096_vm15 = vmor %vm4772_vm1, %vm4773_vm5  ;;  %v1656_v39 = vpop.f32.mrf.mxu1 }
  0xd3   :  { %v3409_v49 = vand.u32 2147483648, %v7991_v19  ;;  %v8047_v52 = vadd.f32 1.0, %v6711_v38  ;;  %v6715_v56 = vpop.eup %6714  ;;  %v683_v57 = vmul.f32 %v8020_v32, %v682_v47  ;;  %vm686_vm8 = vweird.f32 %v8020_v32 }
  0xd4   :  { %vm8060_vm9 = vcmp.eq.f32.partialorder %v2023_v12, 8.507059e+37  ;;  %6718 = vpow2.f32 %v6003_v36  ;;  %v4771_v61 = vadd.f32 %v7994_v21, %v4770_v43  ;;  %vm8068_vm10 = vcmp.eq.f32.partialorder %v4776_v30, 8.507059e+37  ;;  %vm8088_vm13 = vmor %vm685_vm3, %vm686_vm8 }
  0xd5   :  { %v2016_v63 = vsub.f32 1.0, %v2015_v51  ;;  %v2026_v0 = vor.u32 1.1754944e-38, %v2025_v45  ;;  %v3399_v3 = vmul.f32 %v6715_v56, %v7991_v19  ;;  %v684_v4 = vadd.f32 %v8020_v32, %v683_v57  ;;  %v3040_v45 = vpop.f32.mrf.mxu2  ;;  %v4424_v51 = vpop.f32.mrf.mxu3 }
  0xd6   :  { %vm8076_vm11 = vcmp.eq.f32.partialorder %v3407_v48, 8.507059e+37  ;;  %vm4787_vm12 = vweird.f32 %v8014_v29  ;;  %6720 = vrcp.f32 %v8047_v52  ;;  %vm2020_vm14 = vweird.f32 %v6713_v46 }
  0xd7   :  { %v6717_v5 = vpop.eup %6716  ;;  %v2017_v7 = vmul.f32 %v6713_v46, %v2016_v63  ;;  %v3400_v8 = vsub.f32 1.0, %v3399_v3  ;;  %v3410_v9 = vor.u32 1.1754944e-38, %v3409_v49  ;;  %v688_v2 = vsel %vm8088_vm13, %v8020_v32, %v684_v4  ;;  %vm2021_vm1 = vmor %vm2019_vm6, %vm2020_vm14  ;;  %v325_v3 = vpop.f32.mrf.mxu0 }
  0xd8   :  { %v4783_v11 = vmul.f32 %v6717_v5, %v8014_v29  ;;  %v4791_v14 = vand.u32 2147483647, %v8014_v29  ;;  %v4793_v17 = vand.u32 2147483648, %v8014_v29  ;;  %v4775_v18 = vsel %vm8096_vm15, %v7994_v21, %v4771_v61 }
  0xd9   :  { %v2018_v20 = vadd.f32 %v6713_v46, %v2017_v7  ;;  %v3401_v54 = vmul.f32 %v6715_v56, %v3400_v8  ;;  %vm3404_vm0 = vweird.f32 %v6715_v56  ;;  %v693_v6 = vsel %vm8033_vm4, %v692_v34, %v688_v2 }
  0xda   :  { %v6719_v22 = vpop.eup %6718  ;;  %v4784_v23 = vsub.f32 1.0, %v4783_v11  ;;  %vm4788_vm3 = vweird.f32 %v6717_v5  ;;  %v6178_v24 = vmul.f32 -1.442695, %v8025_v37  ;;  %v4423_v21 = vadd.f32 %v7636_v40, %v4422_v59  ;;  %vm3405_vm4 = vmor %vm3403_vm7, %vm3404_vm0 }
  0xdb   :  { %v2022_v25 = vsel %vm2021_vm1, %v6713_v46, %v2018_v20  ;;  %v3402_v26 = vadd.f32 %v6715_v56, %v3401_v54  ;;  %v8115_v28 = vadd.f32 1.0, %v6719_v22  ;;  %v323_v32 = vadd.f32 %v7636_v40, %v322_v13  ;;  %vm4789_vm6 = vmor %vm4787_vm12, %vm4788_vm3  ;;  %v1659_v54 = vpop.f32.mrf.mxu1 }
  0xdc   :  { %v8118_v27 = vpop.eup %6720  ;;  %v2027_v30 = vsel %vm8060_vm9, %v2026_v0, %v2022_v25  ;;  %v4785_v16 = vmul.f32 %v6717_v5, %v4784_v23  ;;  %6722 = vpow2.f32 %v6178_v24  ;;  %vm8125_vm5 = vcmp.eq.f32.partialorder %v4791_v14, 8.507059e+37 }
  0xdd   :  { %v2722_v33 = vadd.f32 %v2027_v30, %v693_v6  ;;  %v3406_v36 = vsel %vm3405_vm4, %v6715_v56, %v3402_v26  ;;  %v696_v38 = vmul.f32 %v8118_v27, %v8047_v52  ;;  %v4780_v41 = vsel %vm8068_vm10, %v8017_v31, %v4775_v18  ;;  %v3043_v13 = vpop.f32.mrf.mxu2 }
  0xde   :  { %v3411_v19 = vsel %vm8076_vm11, %v3410_v9, %v3406_v36  ;;  %v4786_v42 = vadd.f32 %v6717_v5, %v4785_v16  ;;  %6724 = vrcp.f32 %v8115_v28  ;;  %v5489_v12 = vadd.f32 %v4780_v41, %v8042_v50 }
  0xdf   :  { %v4106_v43 = vadd.f32 %v3411_v19, %v2722_v33  ;;  %v4794_v44 = vor.u32 1.1754944e-38, %v4793_v17  ;;  %v697_v34 = vsub.f32 1.0, %v696_v38  ;;  %v6353_v47 = vmul.f32 -1.442695, %v4423_v21 }
  0xe0   :  { %v4790_v46 = vsel %vm4789_vm6, %v6717_v5, %v4786_v42  ;;  %v5829_v48 = vmul.f32 -1.442695, %v323_v32  ;;  %v1657_v31 = vadd.f32 %v7636_v40, %v1656_v39  ;;  %v3041_v29 = vadd.f32 %v7636_v40, %v3040_v45 }
  0xe1   :  { %v4795_v49 = vsel %vm8125_vm5, %v4794_v44, %v4790_v46  ;;  %v698_v53 = vmul.f32 %v8118_v27, %v697_v34  ;;  %6726 = vpow2.f32 %v6353_v47  ;;  %v704_v56 = vand.u32 2147483647, %v8047_v52 }
  0xe2   :  { %v6723_v50 = vpop.eup %6722  ;;  %v5490_v35 = vadd.f32 %v4795_v49, %v4106_v43  ;;  %v6004_v55 = vmul.f32 -1.442695, %v1657_v31  ;;  %6728 = vpow2.f32 %v5829_v48  ;;  %v4425_v58 = vadd.f32 %v7636_v40, %v4424_v51 }
  0xe3   :  { %v8147_v57 = vadd.f32 1.0, %v6723_v50  ;;  %v5539_v61 = vmul.f32 0.25, %v5489_v12  ;;  %v706_v63 = vand.u32 2147483648, %v8047_v52  ;;  %v6179_v0 = vmul.f32 -1.442695, %v3041_v29 }
  0xe4   :  { %v8150_v60 = vpop.eup %6724  ;;  %v5540_v62 = vmul.f32 0.25, %v5490_v35  ;;  %v699_v4 = vadd.f32 %v8118_v27, %v698_v53  ;;  %vm701_vm7 = vweird.f32 %v8118_v27  ;;  %vm700_vm8 = vweird.f32 %v8047_v52 }
  0xe5   :  { %v2030_v15 = vmul.f32 %v8150_v60, %v8115_v28  ;;  %6730 = vrcp.f32 %v8147_v57  ;;  %v6354_v1 = vmul.f32 -1.442695, %v4425_v58  ;;  %v326_v7 = vadd.f32 %v7636_v40, %v325_v3  ;;  %vm8163_vm9 = vmor %vm700_vm8, %vm701_vm7 }
  0xe6   :  { %v6509_v59 = vpack.c.bf16 %v5540_v62, %v5539_v61  ;;  %6732 = vpow2.f32 %v6004_v55  ;;  %vm8167_vm10 = vcmp.eq.f32.partialorder %v704_v56, 8.507059e+37  ;;  %v707_v52 = vor.u32 1.1754944e-38, %v706_v63 }
  0xe7   :  { %v2031_v5 = vsub.f32 1.0, %v2030_v15  ;;  %6734 = vpow2.f32 %v6179_v0  ;;  %v6727_v8 = vpop.eup %6726  ;;  %v2038_v2 = vand.u32 2147483647, %v8115_v28  ;;  %v2040_v11 = vand.u32 2147483648, %v8115_v28 }
  0xe8   :  { %6626 = vst [vmem:[%s12903_s6 + $0x8] sm:$0xff] %v6509_v59   ;;  %v6729_v14 = vpop.eup %6728  ;;  %v703_v17 = vsel %vm8163_vm9, %v8118_v27, %v699_v4  ;;  %v8177_v20 = vadd.f32 1.0, %v6727_v8  ;;  %6736 = vpow2.f32 %v6354_v1  ;;  %vm2035_vm11 = vweird.f32 %v8150_v60 }
  0xe9   :  { %v2032_v18 = vmul.f32 %v8150_v60, %v2031_v5  ;;  %v3422_v22 = vand.u32 2147483647, %v8147_v57  ;;  %v3424_v6 = vand.u32 2147483648, %v8147_v57  ;;  %v8182_v23 = vadd.f32 1.0, %v6729_v14  ;;  %v6463_v14 = vld [vmem:[%s12901_s2 + $0x60] sm:$0xff] }
  0xea   :  { %vm2034_vm12 = vweird.f32 %v8115_v28  ;;  %6738 = vrcp.f32 %v8177_v20  ;;  %v5830_v26 = vmul.f32 -1.442695, %v326_v7  ;;  %v1660_v30 = vadd.f32 %v7636_v40, %v1659_v54  ;;  %6161 = vmatmul.msk.bf16.gmra.mxu2 %vm218_vm2, %v6463_v14  ;;  %v3045_v14 = vpop.f32.mrf.mxu2 }
  0xeb   :  { %v6731_v24 = vpop.eup %6730  ;;  %v2033_v25 = vadd.f32 %v8150_v60, %v2032_v18  ;;  %6740 = vrcp.f32 %v8182_v23  ;;  %v3044_v16 = vadd.f32 %v7636_v40, %v3043_v13  ;;  %v708_v33 = vsel %vm8167_vm10, %v707_v52, %v703_v17  ;;  %vm8195_vm13 = vmor %vm2034_vm12, %vm2035_vm11 }
  0xec   :  { %v6733_v21 = vpop.eup %6732  ;;  %v3414_v27 = vmul.f32 %v6731_v24, %v8147_v57  ;;  %vm8199_vm14 = vcmp.eq.f32.partialorder %v2038_v2, 8.507059e+37  ;;  %v2041_v37 = vor.u32 1.1754944e-38, %v2040_v11  ;;  %vm3418_vm15 = vweird.f32 %v8147_v57  ;;  %v6413_v2 = vld [vmem:[%s12899_s0 + $0x60] sm:$0xff] }
  0xed   :  { %v6735_v32 = vpop.eup %6734  ;;  %v2037_v40 = vsel %vm8195_vm13, %v8150_v60, %v2033_v25  ;;  %vm8207_vm0 = vcmp.eq.f32.partialorder %v3422_v22, 8.507059e+37  ;;  %v3425_v41 = vor.u32 1.1754944e-38, %v3424_v6  ;;  %v4808_v42 = vand.u32 2147483648, %v8177_v20  ;;  %v6438_v11 = vld [vmem:[%s12900_s1 + $0x60] sm:$0xff]  ;;  %5811 = vmatmul.msk.bf16.gmra.mxu0 %vm218_vm2, %v6413_v2 }
  0xee   :  { %v3415_v38 = vsub.f32 1.0, %v3414_v27  ;;  %v6737_v19 = vpop.eup %6736  ;;  %v8212_v12 = vadd.f32 1.0, %v6733_v21  ;;  %v8214_v43 = vadd.f32 1.0, %v6735_v32  ;;  %6742 = vpow2.f32 %v5830_v26  ;;  %v6488_v6 = vld [vmem:[%s12902_s3 + $0x60] sm:$0xff]  ;;  %5986 = vmatmul.msk.bf16.gmra.mxu1 %vm218_vm2, %v6438_v11 }
  0xef   :  { %vm3419_vm1 = vweird.f32 %v6731_v24  ;;  %v6005_v34 = vmul.f32 -1.442695, %v1660_v30  ;;  %v8216_v45 = vmul.f32 -1.442695, %v3044_v16  ;;  %v2042_v47 = vsel %vm8199_vm14, %v2041_v37, %v2037_v40  ;;  %6336 = vmatmul.msk.bf16.gmra.mxu3 %vm218_vm2, %v6488_v6 }
  0xf0   :  { %v3416_v44 = vmul.f32 %v6731_v24, %v3415_v38  ;;  %v8218_v46 = vpop.eup %6738  ;;  %v719_v48 = vand.u32 2147483647, %v8182_v23  ;;  %6744 = vrcp.f32 %v8212_v12  ;;  %v8224_v31 = vadd.f32 1.0, %v6737_v19  ;;  %vm8234_vm3 = vmor %vm3418_vm15, %vm3419_vm1  ;;  %v4427_v38 = vpop.f32.mrf.mxu3 }
  0xf1   :  { %v8226_v51 = vpop.eup %6740  ;;  %v4798_v53 = vmul.f32 %v8218_v46, %v8177_v20  ;;  %v721_v50 = vand.u32 2147483648, %v8182_v23  ;;  %6746 = vrcp.f32 %v8214_v43  ;;  %v4806_v55 = vand.u32 2147483647, %v8177_v20 }
  0xf2   :  { %v3417_v49 = vadd.f32 %v6731_v24, %v3416_v44  ;;  %v8239_v29 = vor.u32 1.1754944e-38, %v4808_v42  ;;  %v711_v56 = vmul.f32 %v8226_v51, %v8182_v23  ;;  %vm715_vm4 = vweird.f32 %v8182_v23 }
  0xf3   :  { %v4799_v60 = vsub.f32 1.0, %v4798_v53  ;;  %v2053_v61 = vand.u32 2147483647, %v8212_v12  ;;  %6748 = vpow2.f32 %v6005_v34  ;;  %v2723_v62 = vadd.f32 %v2042_v47, %v708_v33  ;;  %v327_v34 = vpop.f32.mrf.mxu0 }
  0xf4   :  { %v3421_v58 = vsel %vm8234_vm3, %v6731_v24, %v3417_v49  ;;  %v6743_v57 = vpop.eup %6742  ;;  %vm4802_vm5 = vweird.f32 %v8177_v20  ;;  %v712_v63 = vsub.f32 1.0, %v711_v56  ;;  %v2055_v0 = vand.u32 2147483648, %v8212_v12 }
  0xf5   :  { %6750 = vrcp.f32 %v8224_v31  ;;  %vm4803_vm6 = vweird.f32 %v8218_v46  ;;  %vm8251_vm7 = vcmp.eq.f32.partialorder %v719_v48, 8.507059e+37  ;;  %v722_v4 = vor.u32 1.1754944e-38, %v721_v50 }
  0xf6   :  { %vm2049_vm8 = vweird.f32 %v8212_v12  ;;  %v8256_v15 = vpop.eup %6744  ;;  %v3426_v59 = vsel %vm8207_vm0, %v3425_v41, %v3421_v58  ;;  %v4800_v5 = vmul.f32 %v8218_v46, %v4799_v60  ;;  %v713_v1 = vmul.f32 %v8226_v51, %v712_v63  ;;  %vm8327_vm3 = vmor %vm4802_vm5, %vm4803_vm6 }
  0xf7   :  { %v3437_v7 = vand.u32 2147483647, %v8214_v43  ;;  %v8263_v8 = vpop.eup %6746  ;;  %vm716_vm9 = vweird.f32 %v8226_v51  ;;  %v2045_v9 = vmul.f32 %v8256_v15, %v8212_v12  ;;  %vm8268_vm10 = vcmp.eq.f32.partialorder %v2053_v61, 8.507059e+37 }
  0xf8   :  { %v8272_v52 = vadd.f32 1.0, %v6743_v57  ;;  %vm8283_vm11 = vcmp.eq.f32.partialorder %v4806_v55, 8.507059e+37  ;;  %v714_v18 = vadd.f32 %v8226_v51, %v713_v1  ;;  %v2056_v54 = vor.u32 1.1754944e-38, %v2055_v0  ;;  %vm8303_vm13 = vmor %vm715_vm4, %vm716_vm9  ;;  %v8373_v57 = vld [vmem:[%s12898_s5] ss:$0 sm:$0xff]  ;;  %v4429_v17 = vpop.f32.mrf.mxu3 }
  0xf9   :  { %v3429_v13 = vmul.f32 %v8263_v8, %v8214_v43  ;;  %v3439_v22 = vand.u32 2147483648, %v8214_v43  ;;  %v6749_v24 = vpop.eup %6748  ;;  %v4107_v25 = vadd.f32 %v3426_v59, %v2723_v62  ;;  %v2046_v26 = vsub.f32 1.0, %v2045_v9 }
  0xfa   :  { %vm3433_vm12 = vweird.f32 %v8214_v43  ;;  %6752 = vrcp.f32 %v8272_v52  ;;  %v4801_v27 = vadd.f32 %v8218_v46, %v4800_v5  ;;  %vm8307_vm14 = vcmp.eq.f32.partialorder %v3437_v7, 8.507059e+37 }
  0xfb   :  { %v6751_v21 = vpop.eup %6750  ;;  %v3430_v16 = vsub.f32 1.0, %v3429_v13  ;;  %vm4817_vm15 = vweird.f32 %v8224_v31  ;;  %v718_v33 = vsel %vm8303_vm13, %v8226_v51, %v714_v18  ;;  %v2047_v23 = vmul.f32 %v8256_v15, %v2046_v26  ;;  %v1661_v51 = vpop.f32.mrf.mxu1 }
  0xfc   :  { %vm2050_vm0 = vweird.f32 %v8256_v15  ;;  %v4813_v28 = vmul.f32 %v6751_v21, %v8224_v31  ;;  %vm3434_vm1 = vweird.f32 %v8263_v8  ;;  %v3440_v37 = vor.u32 1.1754944e-38, %v3439_v22  ;;  %v330_v22 = vpop.f32.mrf.mxu0 }
  0xfd   :  { %v3431_v36 = vmul.f32 %v8263_v8, %v3430_v16  ;;  %v4821_v40 = vand.u32 2147483647, %v8224_v31  ;;  %v2048_v41 = vadd.f32 %v8256_v15, %v2047_v23  ;;  %v4823_v42 = vand.u32 2147483648, %v8224_v31  ;;  %vm2051_vm4 = vmor %vm2049_vm8, %vm2050_vm0 }
  0xfe   :  { %v4814_v19 = vsub.f32 1.0, %v4813_v28  ;;  %v8333_v44 = vadd.f32 1.0, %v6749_v24  ;;  %v4805_v47 = vsel %vm8327_vm3, %v8218_v46, %v4801_v27  ;;  %v723_v48 = vsel %vm8251_vm7, %v722_v4, %v718_v33  ;;  %vm3435_vm5 = vmor %vm3433_vm12, %vm3434_vm1 }
  0xff   :  { %v3432_v20 = vadd.f32 %v8263_v8, %v3431_v36  ;;  %6754 = vpow2.f32 %v8216_v45  ;;  %v2052_v53 = vsel %vm2051_vm4, %v8256_v15, %v2048_v41  ;;  %vm4818_vm6 = vweird.f32 %v6751_v21 }
 0x100   :  { %v8346_v49 = vpop.eup %6752  ;;  %v4815_v46 = vmul.f32 %v6751_v21, %v4814_v19  ;;  %6756 = vrcp.f32 %v8333_v44  ;;  %v2057_v12 = vsel %vm8268_vm10, %v2056_v54, %v2052_v53  ;;  %vm8357_vm7 = vcmp.eq.f32.partialorder %v4821_v40, 8.507059e+37  ;;  %vm4819_vm8 = vmor %vm4817_vm15, %vm4818_vm6 }
 0x101   :  { %v3436_v50 = vsel %vm3435_vm5, %v8263_v8, %v3432_v20  ;;  %v726_v35 = vmul.f32 %v8346_v49, %v8272_v52  ;;  %v4810_v43 = vsel %vm8283_vm11, %v8239_v29, %v4805_v47  ;;  %v2724_v55 = vadd.f32 %v2057_v12, %v723_v48 }
 0x102   :  { %v3441_v56 = vsel %vm8307_vm14, %v3440_v37, %v3436_v50  ;;  %v4816_v58 = vadd.f32 %v6751_v21, %v4815_v46  ;;  %v5491_v60 = vadd.f32 %v4810_v43, %v4107_v25  ;;  %v4824_v61 = vor.u32 1.1754944e-38, %v4823_v42  ;;  %v3048_v43 = vpop.f32.mrf.mxu2 }
 0x103   :  { %v4428_v62 = vadd.f32 %v8373_v57, %v4427_v38  ;;  %v328_v63 = vadd.f32 %v8373_v57, %v327_v34  ;;  %v4108_v29 = vadd.f32 %v3441_v56, %v2724_v55  ;;  %v727_v3 = vsub.f32 1.0, %v726_v35  ;;  %v1664_v24 = vpop.f32.mrf.mxu1  ;;  %v4432_v55 = vpop.f32.mrf.mxu3 }
 0x104   :  { %v4820_v0 = vsel %vm4819_vm8, %v6751_v21, %v4816_v58  ;;  %v1662_v4 = vadd.f32 %v8373_v57, %v1661_v51  ;;  %v734_v10 = vand.u32 2147483647, %v8272_v52  ;;  %v736_v2 = vand.u32 2147483648, %v8272_v52 }
 0x105   :  { %v6755_v15 = vpop.eup %6754  ;;  %v4825_v31 = vsel %vm8357_vm7, %v4824_v61, %v4820_v0  ;;  %v6355_v59 = vmul.f32 -1.442695, %v4428_v62  ;;  %v5831_v8 = vmul.f32 -1.442695, %v328_v63  ;;  %v5541_v18 = vmul.f32 0.25, %v5491_v60 }
 0x106   :  { %v8380_v5 = vpop.eup %6756  ;;  %v5492_v1 = vadd.f32 %v4825_v31, %v4108_v29  ;;  %v8382_v7 = vadd.f32 1.0, %v6755_v15  ;;  %v6006_v9 = vmul.f32 -1.442695, %v1662_v4  ;;  %v728_v13 = vmul.f32 %v8346_v49, %v727_v3 }
 0x107   :  { %v2060_v11 = vmul.f32 %v8380_v5, %v8333_v44  ;;  %6758 = vpow2.f32 %v6355_v59  ;;  %vm730_vm9 = vweird.f32 %v8272_v52  ;;  %v2068_v21 = vand.u32 2147483647, %v8333_v44 }
 0x108   :  { %v5542_v54 = vmul.f32 0.25, %v5492_v1  ;;  %6760 = vrcp.f32 %v8382_v7  ;;  %v3046_v27 = vadd.f32 %v8373_v57, %v3045_v14  ;;  %v4430_v30 = vadd.f32 %v8373_v57, %v4429_v17 }
 0x109   :  { %v2061_v6 = vsub.f32 1.0, %v2060_v11  ;;  %6762 = vpow2.f32 %v5831_v8  ;;  %v729_v16 = vadd.f32 %v8346_v49, %v728_v13  ;;  %vm731_vm10 = vweird.f32 %v8346_v49 }
 0x10a   :  { %v6514_v25 = vpack.c.bf16 %v5542_v54, %v5541_v18  ;;  %6764 = vpow2.f32 %v6006_v9  ;;  %vm8400_vm11 = vcmp.eq.f32.partialorder %v734_v10, 8.507059e+37  ;;  %v737_v33 = vor.u32 1.1754944e-38, %v736_v2  ;;  %vm8415_vm14 = vmor %vm730_vm9, %vm731_vm10 }
 0x10b   :  { %v2062_v26 = vmul.f32 %v8380_v5, %v2061_v6  ;;  %vm2064_vm12 = vweird.f32 %v8333_v44  ;;  %v2070_v28 = vand.u32 2147483648, %v8333_v44  ;;  %v6181_v36 = vmul.f32 -1.442695, %v3046_v27  ;;  %v332_v44 = vpop.f32.mrf.mxu0  ;;  %v1666_v62 = vpop.f32.mrf.mxu1 }
 0x10c   :  { %6627 = vst [vmem:[%s12903_s6 + $0x10] sm:$0xff] %v6514_v25   ;;  %v331_v37 = vadd.f32 %v8373_v57, %v330_v22  ;;  %vm2065_vm13 = vweird.f32 %v8380_v5  ;;  %v6356_v41 = vmul.f32 -1.442695, %v4430_v30  ;;  %vm8419_vm15 = vcmp.eq.f32.partialorder %v2068_v21, 8.507059e+37 }
 0x10d   :  { %v6759_v23 = vpop.eup %6758  ;;  %v2063_v38 = vadd.f32 %v8380_v5, %v2062_v26  ;;  %6766 = vpow2.f32 %v6181_v36  ;;  %v1665_v48 = vadd.f32 %v8373_v57, %v1664_v24  ;;  %v733_v51 = vsel %vm8415_vm14, %v8346_v49, %v729_v16  ;;  %vm8434_vm0 = vmor %vm2064_vm12, %vm2065_vm13 }
 0x10e   :  { %v8407_v40 = vpop.eup %6760  ;;  %v8411_v39 = vadd.f32 1.0, %v6759_v23  ;;  %v3452_v52 = vand.u32 2147483647, %v8382_v7  ;;  %v3454_v53 = vand.u32 2147483648, %v8382_v7  ;;  %v2071_v12 = vor.u32 1.1754944e-38, %v2070_v28 }
 0x10f   :  { %v6763_v19 = vpop.eup %6762  ;;  %v3444_v47 = vmul.f32 %v8407_v40, %v8382_v7  ;;  %v5832_v35 = vmul.f32 -1.442695, %v331_v37  ;;  %v2067_v49 = vsel %vm8434_vm0, %v8380_v5, %v2063_v38  ;;  %vm3448_vm1 = vweird.f32 %v8382_v7  ;;  %v6414_v37 = vld [vmem:[%s12899_s0 + $0x68] sm:$0xff] }
 0x110   :  { %v6765_v20 = vpop.eup %6764  ;;  %6768 = vrcp.f32 %v8411_v39  ;;  %v8438_v45 = vadd.f32 1.0, %v6763_v19  ;;  %v738_v58 = vsel %vm8400_vm11, %v737_v33, %v733_v51  ;;  %v6007_v61 = vmul.f32 -1.442695, %v1665_v48  ;;  %v6489_v48 = vld [vmem:[%s12902_s3 + $0x68] sm:$0xff]  ;;  %5812 = vmatmul.msk.bf16.gmra.mxu0 %vm218_vm2, %v6414_v37 }
 0x111   :  { %v3445_v50 = vsub.f32 1.0, %v3444_v47  ;;  %v8444_v56 = vadd.f32 1.0, %v6765_v20  ;;  %6770 = vpow2.f32 %v6356_v41  ;;  %vm8450_vm3 = vcmp.eq.f32.partialorder %v3452_v52, 8.507059e+37  ;;  %v6464_v47 = vld [vmem:[%s12901_s2 + $0x68] sm:$0xff]  ;;  %6337 = vmatmul.msk.bf16.gmra.mxu3 %vm218_vm2, %v6489_v48 }
 0x112   :  { %6772 = vrcp.f32 %v8438_v45  ;;  %v3455_v29 = vor.u32 1.1754944e-38, %v3454_v53  ;;  %v3049_v0 = vadd.f32 %v8373_v57, %v3048_v43  ;;  %v8457_v3 = vadd.f32 %v8373_v57, %v4432_v55  ;;  %6162 = vmatmul.msk.bf16.gmra.mxu2 %vm218_vm2, %v6464_v47 }
 0x113   :  { %v3446_v60 = vmul.f32 %v8407_v40, %v3445_v50  ;;  %6774 = vrcp.f32 %v8444_v56  ;;  %v6767_v4 = vpop.eup %6766  ;;  %v2072_v15 = vsel %vm8419_vm15, %v2071_v12, %v2067_v49  ;;  %v4838_v31 = vand.u32 2147483648, %v8411_v39 }
 0x114   :  { %6776 = vpow2.f32 %v5832_v35  ;;  %v8463_v59 = vadd.f32 %v8373_v57, %v332_v44  ;;  %vm3449_vm4 = vweird.f32 %v8407_v40  ;;  %v8469_v8 = vadd.f32 1.0, %v6767_v4 }
 0x115   :  { %v3447_v1 = vadd.f32 %v8407_v40, %v3446_v60  ;;  %v8472_v9 = vadd.f32 %v8373_v57, %v1666_v62  ;;  %vm4832_vm5 = vweird.f32 %v8411_v39  ;;  %v4836_v2 = vand.u32 2147483647, %v8411_v39  ;;  %vm8485_vm6 = vmor %vm3448_vm1, %vm3449_vm4 }
 0x116   :  { %v8465_v5 = vpop.eup %6768  ;;  %6778 = vpow2.f32 %v6007_v61  ;;  %v2725_v14 = vadd.f32 %v2072_v15, %v738_v58  ;;  %v749_v17 = vand.u32 2147483647, %v8438_v45  ;;  %v751_v18 = vand.u32 2147483648, %v8438_v45 }
 0x117   :  { %v4828_v10 = vmul.f32 %v8465_v5, %v8411_v39  ;;  %v6771_v11 = vpop.eup %6770  ;;  %6780 = vrcp.f32 %v8469_v8  ;;  %v8489_v6 = vor.u32 1.1754944e-38, %v4838_v31  ;;  %v2083_v24 = vand.u32 2147483647, %v8444_v56 }
 0x118   :  { %v8481_v54 = vpop.eup %6772  ;;  %v6182_v25 = vmul.f32 -1.442695, %v3049_v0  ;;  %v3451_v21 = vsel %vm8485_vm6, %v8407_v40, %v3447_v1  ;;  %vm745_vm7 = vweird.f32 %v8438_v45  ;;  %v8500_v7 = vadd.f32 1.0, %v6771_v11  ;;  %v6439_v40 = vld [vmem:[%s12900_s1 + $0x68] sm:$0xff] }
 0x119   :  { %v4829_v22 = vsub.f32 1.0, %v4828_v10  ;;  %v8492_v26 = vpop.eup %6774  ;;  %v741_v27 = vmul.f32 %v8481_v54, %v8438_v45  ;;  %vm2079_vm8 = vweird.f32 %v8444_v56  ;;  %v2085_v33 = vand.u32 2147483648, %v8444_v56  ;;  %5987 = vmatmul.msk.bf16.gmra.mxu1 %vm218_vm2, %v6439_v40 }
 0x11a   :  { %v6777_v30 = vpop.eup %6776  ;;  %v2075_v32 = vmul.f32 %v8492_v26, %v8444_v56  ;;  %vm8507_vm9 = vcmp.eq.f32.partialorder %v749_v17, 8.507059e+37  ;;  %v752_v36 = vor.u32 1.1754944e-38, %v751_v18  ;;  %6782 = vrcp.f32 %v8500_v7 }
 0x11b   :  { %v4830_v16 = vmul.f32 %v8465_v5, %v4829_v22  ;;  %v742_v23 = vsub.f32 1.0, %v741_v27  ;;  %v3456_v41 = vsel %vm8450_vm3, %v3455_v29, %v3451_v21  ;;  %vm4833_vm10 = vweird.f32 %v8465_v5 }
 0x11c   :  { %v6779_v38 = vpop.eup %6778  ;;  %vm8521_vm11 = vcmp.eq.f32.partialorder %v4836_v2, 8.507059e+37  ;;  %v2076_v42 = vsub.f32 1.0, %v2075_v32  ;;  %vm8525_vm12 = vcmp.eq.f32.partialorder %v2083_v24, 8.507059e+37  ;;  %vm746_vm13 = vweird.f32 %v8481_v54  ;;  %vm8551_vm15 = vmor %vm4832_vm5, %vm4833_vm10 }
 0x11d   :  { %v6781_v20 = vpop.eup %6780  ;;  %v743_v51 = vmul.f32 %v8481_v54, %v742_v23  ;;  %v8537_v52 = vadd.f32 1.0, %v6777_v30  ;;  %6784 = vpow2.f32 %v6182_v25  ;;  %v4831_v53 = vadd.f32 %v8465_v5, %v4830_v16  ;;  %vm8562_vm0 = vmor %vm745_vm7, %vm746_vm13 }
 0x11e   :  { %v2077_v46 = vmul.f32 %v8492_v26, %v2076_v42  ;;  %vm2080_vm14 = vweird.f32 %v8492_v26  ;;  %v3459_v12 = vmul.f32 %v6781_v20, %v8469_v8  ;;  %v2086_v43 = vor.u32 1.1754944e-38, %v2085_v33 }
 0x11f   :  { %v744_v35 = vadd.f32 %v8481_v54, %v743_v51  ;;  %v3467_v55 = vand.u32 2147483647, %v8469_v8  ;;  %v3469_v49 = vand.u32 2147483648, %v8469_v8  ;;  %6786 = vrcp.f32 %v8537_v52  ;;  %vm2081_vm1 = vmor %vm2079_vm8, %vm2080_vm14 }
 0x120   :  { %v2078_v39 = vadd.f32 %v8492_v26, %v2077_v46  ;;  %v3460_v58 = vsub.f32 1.0, %v3459_v12  ;;  %v8568_v60 = vadd.f32 1.0, %v6779_v38  ;;  %v6783_v61 = vpop.eup %6782  ;;  %v4109_v62 = vadd.f32 %v3456_v41, %v2725_v14  ;;  %v4434_v12 = vpop.f32.mrf.mxu3 }
 0x121   :  { %v748_v63 = vsel %vm8562_vm0, %v8481_v54, %v744_v35  ;;  %vm3463_vm3 = vweird.f32 %v8469_v8  ;;  %v6357_v45 = vmul.f32 -1.442695, %v8457_v3  ;;  %v4835_v29 = vsel %vm8551_vm15, %v8465_v5, %v4831_v53 }
 0x122   :  { %v2082_v0 = vsel %vm2081_vm1, %v8492_v26, %v2078_v39  ;;  %v3461_v4 = vmul.f32 %v6781_v20, %v3460_v58  ;;  %vm3464_vm4 = vweird.f32 %v6781_v20  ;;  %vm8583_vm5 = vcmp.eq.f32.partialorder %v3467_v55, 8.507059e+37  ;;  %v3050_v26 = vpop.f32.mrf.mxu2 }
 0x123   :  { %v6785_v15 = vpop.eup %6784  ;;  %v3470_v1 = vor.u32 1.1754944e-38, %v3469_v49  ;;  %v4843_v56 = vmul.f32 %v6783_v61, %v8500_v7  ;;  %v4851_v10 = vand.u32 2147483647, %v8500_v7  ;;  %v753_v3 = vsel %vm8507_vm9, %v752_v36, %v748_v63  ;;  %vm3465_vm6 = vmor %vm3463_vm3, %vm3464_vm4 }
 0x124   :  { %v2087_v5 = vsel %vm8525_vm12, %v2086_v43, %v2082_v0  ;;  %v3462_v2 = vadd.f32 %v6781_v20, %v3461_v4  ;;  %6788 = vrcp.f32 %v8568_v60  ;;  %v4840_v11 = vsel %vm8521_vm11, %v8489_v6, %v4835_v29  ;;  %v335_v4 = vpop.f32.mrf.mxu0 }
 0x125   :  { %v4844_v14 = vsub.f32 1.0, %v4843_v56  ;;  %vm4848_vm7 = vweird.f32 %v6783_v61  ;;  %v4853_v17 = vand.u32 2147483648, %v8500_v7  ;;  %v8600_v18 = vpop.eup %6786  ;;  %v8602_v13 = vadd.f32 1.0, %v6785_v15  ;;  %v1669_v15 = vpop.f32.mrf.mxu1 }
 0x126   :  { %v3466_v54 = vsel %vm3465_vm6, %v6781_v20, %v3462_v2  ;;  %6790 = vpow2.f32 %v6357_v45  ;;  %v5833_v22 = vmul.f32 -1.442695, %v8463_v59  ;;  %v2726_v24 = vadd.f32 %v2087_v5, %v753_v3 }
 0x127   :  { %v3471_v25 = vsel %vm8583_vm5, %v3470_v1, %v3466_v54  ;;  %v4845_v6 = vmul.f32 %v6783_v61, %v4844_v14  ;;  %v756_v8 = vmul.f32 %v8600_v18, %v8537_v52  ;;  %v5493_v21 = vadd.f32 %v4840_v11, %v4109_v62 }
 0x128   :  { %vm4847_vm8 = vweird.f32 %v8500_v7  ;;  %vm8610_vm9 = vcmp.eq.f32.partialorder %v4851_v10, 8.507059e+37  ;;  %6792 = vrcp.f32 %v8602_v13  ;;  %v4110_v30 = vadd.f32 %v3471_v25, %v2726_v24 }
 0x129   :  { %v4846_v59 = vadd.f32 %v6783_v61, %v4845_v6  ;;  %v4854_v16 = vor.u32 1.1754944e-38, %v4853_v17  ;;  %v757_v32 = vsub.f32 1.0, %v756_v8  ;;  %vm4849_vm10 = vmor %vm4847_vm8, %vm4848_vm7  ;;  %vm760_vm11 = vweird.f32 %v8537_v52 }
 0x12a   :  { %v8615_v33 = vpop.eup %6788  ;;  %6794 = vpow2.f32 %v5833_v22  ;;  %v6008_v23 = vmul.f32 -1.442695, %v8472_v9  ;;  %v3051_v7 = vadd.f32 %v8373_v57, %v3050_v26  ;;  %v764_v37 = vand.u32 2147483647, %v8537_v52  ;;  %v3053_v8 = vpop.f32.mrf.mxu2 }
 0x12b   :  { %v4850_v28 = vsel %vm4849_vm10, %v6783_v61, %v4846_v59  ;;  %v758_v36 = vmul.f32 %v8600_v18, %v757_v32  ;;  %v2090_v40 = vmul.f32 %v8615_v33, %v8568_v60  ;;  %v5543_v41 = vmul.f32 0.25, %v5493_v21  ;;  %v4437_v59 = vpop.f32.mrf.mxu3 }
 0x12c   :  { %v6791_v38 = vpop.eup %6790  ;;  %v4855_v19 = vsel %vm8610_vm9, %v4854_v16, %v4850_v28  ;;  %v766_v42 = vand.u32 2147483648, %v8537_v52  ;;  %6796 = vpow2.f32 %v6008_v23  ;;  %v2098_v47 = vand.u32 2147483647, %v8568_v60 }
 0x12d   :  { %v5494_v34 = vadd.f32 %v4855_v19, %v4110_v30  ;;  %v2091_v9 = vsub.f32 1.0, %v2090_v40  ;;  %v8629_v48 = vadd.f32 1.0, %v6791_v38  ;;  %v759_v51 = vadd.f32 %v8600_v18, %v758_v36 }
 0x12e   :  { %v8631_v20 = vpop.eup %6792  ;;  %vm761_vm12 = vweird.f32 %v8600_v18  ;;  %v2100_v53 = vand.u32 2147483648, %v8568_v60  ;;  %v6183_v46 = vmul.f32 -1.442695, %v3051_v7  ;;  %vm2095_vm13 = vweird.f32 %v8615_v33 }
 0x12f   :  { %v5544_v50 = vmul.f32 0.25, %v5494_v34  ;;  %v2092_v35 = vmul.f32 %v8615_v33, %v2091_v9  ;;  %v3474_v43 = vmul.f32 %v8631_v20, %v8602_v13  ;;  %vm8640_vm14 = vcmp.eq.f32.partialorder %v764_v37, 8.507059e+37  ;;  %vm8648_vm0 = vmor %vm760_vm11, %vm761_vm12 }
 0x130   :  { %v6795_v55 = vpop.eup %6794  ;;  %v767_v44 = vor.u32 1.1754944e-38, %v766_v42  ;;  %vm2094_vm15 = vweird.f32 %v8568_v60  ;;  %6798 = vrcp.f32 %v8629_v48  ;;  %v4435_v63 = vadd.f32 %v8373_v57, %v4434_v12 }
 0x131   :  { %v6519_v39 = vpack.c.bf16 %v5544_v50, %v5543_v41  ;;  %v2093_v61 = vadd.f32 %v8615_v33, %v2092_v35  ;;  %v3475_v62 = vsub.f32 1.0, %v3474_v43  ;;  %v763_v29 = vsel %vm8648_vm0, %v8600_v18, %v759_v51  ;;  %vm8657_vm1 = vmor %vm2094_vm15, %vm2095_vm13  ;;  %v1671_v35 = vpop.f32.mrf.mxu1 }
 0x132   :  { %v6797_v45 = vpop.eup %6796  ;;  %vm8661_vm3 = vcmp.eq.f32.partialorder %v2098_v47, 8.507059e+37  ;;  %v8665_v0 = vadd.f32 1.0, %v6795_v55  ;;  %6800 = vpow2.f32 %v6183_v46  ;;  %v2101_v1 = vor.u32 1.1754944e-38, %v2100_v53 }
 0x133   :  { %6628 = vst [vmem:[%s12903_s6 + $0x18] sm:$0xff] %v6519_v39   ;;  %v2097_v31 = vsel %vm8657_vm1, %v8615_v33, %v2093_v61  ;;  %v3476_v56 = vmul.f32 %v8631_v20, %v3475_v62  ;;  %v8674_v10 = vadd.f32 1.0, %v6797_v45  ;;  %v3482_v3 = vand.u32 2147483647, %v8602_v13  ;;  %v337_v62 = vpop.f32.mrf.mxu0  ;;  %v6465_v45 = vld [vmem:[%s12901_s2 + $0x70] sm:$0xff] }
 0x134   :  { %v3484_v5 = vand.u32 2147483648, %v8602_v13  ;;  %v4868_v2 = vand.u32 2147483648, %v8629_v48  ;;  %6802 = vrcp.f32 %v8665_v0  ;;  %v768_v11 = vsel %vm8640_vm14, %v767_v44, %v763_v29  ;;  %6163 = vmatmul.msk.bf16.gmra.mxu2 %vm218_vm2, %v6465_v45 }
 0x135   :  { %v6358_v14 = vmul.f32 -1.442695, %v4435_v63  ;;  %v336_v17 = vadd.f32 %v8373_v57, %v335_v4  ;;  %v1670_v18 = vadd.f32 %v8373_v57, %v1669_v15  ;;  %v2102_v22 = vsel %vm8661_vm3, %v2101_v1, %v2097_v31  ;;  %v6440_v63 = vld [vmem:[%s12900_s1 + $0x70] sm:$0xff] }
 0x136   :  { %v8684_v54 = vpop.eup %6798  ;;  %v3477_v24 = vadd.f32 %v8631_v20, %v3476_v56  ;;  %vm3479_vm4 = vweird.f32 %v8631_v20  ;;  %6804 = vrcp.f32 %v8674_v10  ;;  %vm3478_vm5 = vweird.f32 %v8602_v13  ;;  %v6490_v31 = vld [vmem:[%s12902_s3 + $0x70] sm:$0xff]  ;;  %5988 = vmatmul.msk.bf16.gmra.mxu1 %vm218_vm2, %v6440_v63 }
 0x137   :  { %v4858_v25 = vmul.f32 %v8684_v54, %v8629_v48  ;;  %v4866_v6 = vand.u32 2147483647, %v8629_v48  ;;  %vm8695_vm6 = vcmp.eq.f32.partialorder %v3482_v3, 8.507059e+37  ;;  %v3485_v27 = vor.u32 1.1754944e-38, %v3484_v5  ;;  %vm8702_vm8 = vmor %vm3478_vm5, %vm3479_vm4  ;;  %6338 = vmatmul.msk.bf16.gmra.mxu3 %vm218_vm2, %v6490_v31  ;;  %v4439_v31 = vpop.f32.mrf.mxu3 }
 0x138   :  { %v6801_v26 = vpop.eup %6800  ;;  %vm4862_vm7 = vweird.f32 %v8629_v48  ;;  %v8700_v30 = vor.u32 1.1754944e-38, %v4868_v2  ;;  %v2727_v16 = vadd.f32 %v2102_v22, %v768_v11  ;;  %6806 = vpow2.f32 %v6358_v14  ;;  %v6415_v48 = vld [vmem:[%s12899_s0 + $0x70] sm:$0xff] }
 0x139   :  { %v4859_v32 = vsub.f32 1.0, %v4858_v25  ;;  %v8706_v33 = vadd.f32 1.0, %v6801_v26  ;;  %v3481_v7 = vsel %vm8702_vm8, %v8631_v20, %v3477_v24  ;;  %v5834_v28 = vmul.f32 -1.442695, %v336_v17  ;;  %5813 = vmatmul.msk.bf16.gmra.mxu0 %vm218_vm2, %v6415_v48 }
 0x13a   :  { %v8708_v23 = vpop.eup %6802  ;;  %v6009_v36 = vmul.f32 -1.442695, %v1670_v18  ;;  %v3054_v37 = vadd.f32 %v8373_v57, %v3053_v8  ;;  %vm8715_vm9 = vcmp.eq.f32.partialorder %v4866_v6, 8.507059e+37  ;;  %v4438_v19 = vadd.f32 %v8373_v57, %v4437_v59 }
 0x13b   :  { %v4860_v40 = vmul.f32 %v8684_v54, %v4859_v32  ;;  %v771_v41 = vmul.f32 %v8708_v23, %v8665_v0  ;;  %6808 = vrcp.f32 %v8706_v33  ;;  %vm4863_vm10 = vweird.f32 %v8684_v54 }
 0x13c   :  { %v8723_v42 = vpop.eup %6804  ;;  %vm775_vm11 = vweird.f32 %v8665_v0  ;;  %v779_v34 = vand.u32 2147483647, %v8665_v0  ;;  %v781_v9 = vand.u32 2147483648, %v8665_v0  ;;  %6810 = vpow2.f32 %v5834_v28  ;;  %vm8738_vm13 = vmor %vm4862_vm7, %vm4863_vm10 }
 0x13d   :  { %v4861_v47 = vadd.f32 %v8684_v54, %v4860_v40  ;;  %v772_v20 = vsub.f32 1.0, %v771_v41  ;;  %v2105_v51 = vmul.f32 %v8723_v42, %v8674_v10  ;;  %v2113_v53 = vand.u32 2147483647, %v8674_v10 }
 0x13e   :  { %v3486_v46 = vsel %vm8695_vm6, %v3485_v27, %v3481_v7  ;;  %vm2109_vm12 = vweird.f32 %v8674_v10  ;;  %6812 = vpow2.f32 %v6009_v36  ;;  %v6184_v12 = vmul.f32 -1.442695, %v3054_v37  ;;  %v6807_v50 = vpop.eup %6806 }
 0x13f   :  { %v773_v43 = vmul.f32 %v8708_v23, %v772_v20  ;;  %v2106_v55 = vsub.f32 1.0, %v2105_v51  ;;  %v2115_v49 = vand.u32 2147483648, %v8674_v10  ;;  %v6359_v44 = vmul.f32 -1.442695, %v4438_v19 }
 0x140   :  { %vm8744_vm14 = vcmp.eq.f32.partialorder %v779_v34, 8.507059e+37  ;;  %v782_v58 = vor.u32 1.1754944e-38, %v781_v9  ;;  %v8748_v61 = vadd.f32 1.0, %v6807_v50  ;;  %6814 = vpow2.f32 %v6184_v12 }
 0x141   :  { %v6809_v29 = vpop.eup %6808  ;;  %v4111_v60 = vadd.f32 %v3486_v46, %v2727_v16  ;;  %v4865_v52 = vsel %vm8738_vm13, %v8684_v54, %v4861_v47  ;;  %v2107_v4 = vmul.f32 %v8723_v42, %v2106_v55  ;;  %vm8763_vm15 = vcmp.eq.f32.partialorder %v2113_v53, 8.507059e+37 }
 0x142   :  { %6816 = vpow2.f32 %v6359_v44  ;;  %v6811_v1 = vpop.eup %6810  ;;  %v774_v56 = vadd.f32 %v8708_v23, %v773_v43  ;;  %vm776_vm0 = vweird.f32 %v8708_v23  ;;  %v3489_v3 = vmul.f32 %v6809_v29, %v8706_v33 }
 0x143   :  { %6818 = vrcp.f32 %v8748_v61  ;;  %v2108_v5 = vadd.f32 %v8723_v42, %v2107_v4  ;;  %vm2110_vm1 = vweird.f32 %v8723_v42  ;;  %v3497_v2 = vand.u32 2147483647, %v8706_v33  ;;  %vm8792_vm3 = vmor %vm775_vm11, %vm776_vm0 }
 0x144   :  { %v338_v11 = vadd.f32 %v8373_v57, %v337_v62  ;;  %v6813_v14 = vpop.eup %6812  ;;  %v4870_v17 = vsel %vm8715_vm9, %v8700_v30, %v4865_v52  ;;  %v3490_v18 = vsub.f32 1.0, %v3489_v3  ;;  %v3499_v54 = vand.u32 2147483648, %v8706_v33  ;;  %vm8805_vm5 = vmor %vm2109_vm12, %vm2110_vm1 }
 0x145   :  { %v8786_v22 = vadd.f32 1.0, %v6811_v1  ;;  %v5495_v24 = vadd.f32 %v4870_v17, %v4111_v60  ;;  %v2116_v6 = vor.u32 1.1754944e-38, %v2115_v49  ;;  %vm3494_vm4 = vweird.f32 %v6809_v29 }
 0x146   :  { %v8796_v8 = vadd.f32 1.0, %v6813_v14  ;;  %v6815_v26 = vpop.eup %6814  ;;  %v778_v21 = vsel %vm8792_vm3, %v8708_v23, %v774_v56  ;;  %v3491_v0 = vmul.f32 %v6809_v29, %v3490_v18  ;;  %v4881_v30 = vand.u32 2147483647, %v8748_v61 }
 0x147   :  { %6820 = vrcp.f32 %v8786_v22  ;;  %v2112_v16 = vsel %vm8805_vm5, %v8723_v42, %v2108_v5  ;;  %vm3493_vm6 = vweird.f32 %v8706_v33  ;;  %vm8815_vm7 = vcmp.eq.f32.partialorder %v3497_v2, 8.507059e+37 }
 0x148   :  { %v6817_v59 = vpop.eup %6816  ;;  %v5835_v10 = vmul.f32 -1.442695, %v338_v11  ;;  %v3492_v23 = vadd.f32 %v6809_v29, %v3491_v0  ;;  %v3500_v7 = vor.u32 1.1754944e-38, %v3499_v54  ;;  %vm4877_vm8 = vweird.f32 %v8748_v61  ;;  %vm3495_vm9 = vmor %vm3493_vm6, %vm3494_vm4  ;;  %v340_v0 = vpop.f32.mrf.mxu0 }
 0x149   :  { %v6819_v32 = vpop.eup %6818  ;;  %6822 = vrcp.f32 %v8796_v8  ;;  %v8821_v28 = vmul.f32 0.25, %v5495_v24  ;;  %v783_v36 = vsel %vm8744_vm14, %v782_v58, %v778_v21  ;;  %v4883_v37 = vand.u32 2147483648, %v8748_v61 }
 0x14a   :  { %v4873_v33 = vmul.f32 %v6819_v32, %v8748_v61  ;;  %v2117_v40 = vsel %vm8763_vm15, %v2116_v6, %v2112_v16  ;;  %v3496_v38 = vsel %vm3495_vm9, %v6809_v29, %v3492_v23  ;;  %vm8830_vm10 = vcmp.eq.f32.partialorder %v4881_v30, 8.507059e+37  ;;  %v3055_v29 = vpop.f32.mrf.mxu2 }
 0x14b   :  { %v8834_v19 = vadd.f32 1.0, %v6815_v26  ;;  %v794_v34 = vand.u32 2147483647, %v8786_v22  ;;  %v8837_v9 = vadd.f32 1.0, %v6817_v59  ;;  %6824 = vpow2.f32 %v5835_v10 }
 0x14c   :  { %v4874_v42 = vsub.f32 1.0, %v4873_v33  ;;  %v3501_v20 = vsel %vm8815_vm7, %v3500_v7, %v3496_v38  ;;  %v796_v51 = vand.u32 2147483648, %v8786_v22  ;;  %v2130_v53 = vand.u32 2147483648, %v8796_v8  ;;  %v1674_v7 = vpop.f32.mrf.mxu1 }
 0x14d   :  { %v8839_v47 = vpop.eup %6820  ;;  %6826 = vrcp.f32 %v8834_v19  ;;  %v2728_v46 = vadd.f32 %v2117_v40, %v783_v36  ;;  %vm4878_vm11 = vweird.f32 %v6819_v32  ;;  %v4884_v55 = vor.u32 1.1754944e-38, %v4883_v37 }
 0x14e   :  { %v4875_v12 = vmul.f32 %v6819_v32, %v4874_v42  ;;  %v786_v50 = vmul.f32 %v8839_v47, %v8786_v22  ;;  %vm790_vm12 = vweird.f32 %v8786_v22  ;;  %v2128_v49 = vand.u32 2147483647, %v8796_v8  ;;  %vm4879_vm13 = vmor %vm4877_vm8, %vm4878_vm11 }
 0x14f   :  { %v8848_v43 = vpop.eup %6822  ;;  %6828 = vrcp.f32 %v8837_v9  ;;  %v4112_v44 = vadd.f32 %v3501_v20, %v2728_v46  ;;  %vm8857_vm14 = vcmp.eq.f32.partialorder %v794_v34, 8.507059e+37  ;;  %v797_v63 = vor.u32 1.1754944e-38, %v796_v51 }
 0x150   :  { %v4876_v39 = vadd.f32 %v6819_v32, %v4875_v12  ;;  %v787_v58 = vsub.f32 1.0, %v786_v50  ;;  %v2120_v62 = vmul.f32 %v8848_v43, %v8796_v8  ;;  %vm2124_vm15 = vweird.f32 %v8796_v8  ;;  %v4442_v50 = vpop.f32.mrf.mxu3 }
 0x151   :  { %v2131_v45 = vor.u32 1.1754944e-38, %v2130_v53  ;;  %v6825_v60 = vpop.eup %6824  ;;  %vm791_vm0 = vweird.f32 %v8839_v47  ;;  %vm8866_vm1 = vcmp.eq.f32.partialorder %v2128_v49, 8.507059e+37  ;;  %v3512_v3 = vand.u32 2147483647, %v8834_v19 }
 0x152   :  { %v4880_v52 = vsel %vm4879_vm13, %v6819_v32, %v4876_v39  ;;  %v788_v4 = vmul.f32 %v8839_v47, %v787_v58  ;;  %v2121_v15 = vsub.f32 1.0, %v2120_v62  ;;  %v3514_v5 = vand.u32 2147483648, %v8834_v19  ;;  %vm8887_vm4 = vmor %vm790_vm12, %vm791_vm0  ;;  %v3058_v53 = vpop.f32.mrf.mxu2 }
 0x153   :  { %v6827_v1 = vpop.eup %6826  ;;  %v4885_v61 = vsel %vm8830_vm10, %v4884_v55, %v4880_v52  ;;  %v8872_v2 = vadd.f32 1.0, %v6825_v60  ;;  %vm2125_vm3 = vweird.f32 %v8848_v43  ;;  %v1672_v24 = vadd.f32 %v8373_v57, %v1671_v35  ;;  %v342_v52 = vpop.f32.mrf.mxu0 }
 0x154   :  { %v5496_v11 = vadd.f32 %v4885_v61, %v4112_v44  ;;  %v789_v14 = vadd.f32 %v8839_v47, %v788_v4  ;;  %v2122_v17 = vmul.f32 %v8848_v43, %v2121_v15  ;;  %v3504_v18 = vmul.f32 %v6827_v1, %v8834_v19  ;;  %vm8908_vm7 = vmor %vm2124_vm15, %vm2125_vm3 }
 0x155   :  { %v8877_v54 = vpop.eup %6828  ;;  %6830 = vrcp.f32 %v8872_v2  ;;  %v3056_v25 = vadd.f32 %v8373_v57, %v3055_v29  ;;  %vm3508_vm5 = vweird.f32 %v8834_v19  ;;  %vm8896_vm6 = vcmp.eq.f32.partialorder %v3512_v3, 8.507059e+37 }
 0x156   :  { %v5546_v6 = vmul.f32 0.25, %v5496_v11  ;;  %v2123_v21 = vadd.f32 %v8848_v43, %v2122_v17  ;;  %v3505_v27 = vsub.f32 1.0, %v3504_v18  ;;  %v793_v30 = vsel %vm8887_vm4, %v8839_v47, %v789_v14  ;;  %v6416_v17 = vld [vmem:[%s12899_s0 + $0x78] sm:$0xff] }
 0x157   :  { %v4888_v22 = vmul.f32 %v8877_v54, %v8837_v9  ;;  %v4896_v16 = vand.u32 2147483647, %v8837_v9  ;;  %vm3509_vm8 = vweird.f32 %v6827_v1  ;;  %v3515_v23 = vor.u32 1.1754944e-38, %v3514_v5  ;;  %v6441_v18 = vld [vmem:[%s12900_s1 + $0x78] sm:$0xff]  ;;  %5814 = vmatmul.msk.bf16.gmra.mxu0 %vm218_vm2, %v6416_v17 }
 0x158   :  { %v6524_v13 = vpack.c.bf16 %v5546_v6, %v8821_v28  ;;  %v3506_v32 = vmul.f32 %v6827_v1, %v3505_v27  ;;  %v2127_v36 = vsel %vm8908_vm7, %v8848_v43, %v2123_v21  ;;  %v6010_v37 = vmul.f32 -1.442695, %v1672_v24  ;;  %vm8926_vm9 = vmor %vm3508_vm5, %vm3509_vm8  ;;  %v1676_v21 = vpop.f32.mrf.mxu1  ;;  %5989 = vmatmul.msk.bf16.gmra.mxu1 %vm218_vm2, %v6441_v18 }
 0x159   :  { %v4889_v33 = vsub.f32 1.0, %v4888_v22  ;;  %v6185_v40 = vmul.f32 -1.442695, %v3056_v25  ;;  %v798_v8 = vsel %vm8857_vm14, %v797_v63, %v793_v30  ;;  %v4898_v38 = vand.u32 2147483648, %v8837_v9 }
 0x15a   :  { %6629 = vst [vmem:[%s12903_s6 + $0x20] sm:$0xff] %v6524_v13   ;;  %v3507_v28 = vadd.f32 %v6827_v1, %v3506_v32  ;;  %v4440_v41 = vadd.f32 %v8373_v57, %v4439_v31  ;;  %6832 = vpow2.f32 %v6010_v37  ;;  %v341_v20 = vadd.f32 %v8373_v57, %v340_v0  ;;  %v3060_v22 = vpop.f32.mrf.mxu2  ;;  %v4444_v13 = vpop.f32.mrf.mxu3 }
 0x15b   :  { %v8922_v42 = vpop.eup %6830  ;;  %v4890_v47 = vmul.f32 %v8877_v54, %v4889_v33  ;;  %v1675_v51 = vadd.f32 %v8373_v57, %v1674_v7  ;;  %v2132_v46 = vsel %vm8866_vm1, %v2131_v45, %v2127_v36  ;;  %6834 = vpow2.f32 %v6185_v40  ;;  %v9011_v33 = vld [vmem:[%s12898_s5] ss:$0 sm:$0xff] }
 0x15c   :  { %v3511_v12 = vsel %vm8926_vm9, %v6827_v1, %v3507_v28  ;;  %v801_v19 = vmul.f32 %v8922_v42, %v8872_v2  ;;  %vm4893_vm10 = vweird.f32 %v8877_v54  ;;  %v6360_v43 = vmul.f32 -1.442695, %v4440_v41 }
 0x15d   :  { %v4891_v35 = vadd.f32 %v8877_v54, %v4890_v47  ;;  %v5836_v55 = vmul.f32 -1.442695, %v341_v20  ;;  %v3516_v49 = vsel %vm8896_vm6, %v3515_v23, %v3511_v12  ;;  %v6011_v39 = vmul.f32 -1.442695, %v1675_v51 }
 0x15e   :  { %v802_v44 = vsub.f32 1.0, %v801_v19  ;;  %v3059_v58 = vadd.f32 %v8373_v57, %v3058_v53  ;;  %v2729_v62 = vadd.f32 %v2132_v46, %v798_v8  ;;  %vm4892_vm11 = vweird.f32 %v8837_v9 }
 0x15f   :  { %6836 = vpow2.f32 %v6360_v43  ;;  %v4443_v48 = vadd.f32 %v8373_v57, %v4442_v50  ;;  %vm8946_vm12 = vmor %vm4892_vm11, %vm4893_vm10  ;;  %vm8950_vm13 = vcmp.eq.f32.partialorder %v4896_v16, 8.507059e+37  ;;  %v4899_v31 = vor.u32 1.1754944e-38, %v4898_v38 }
 0x160   :  { %v803_v29 = vmul.f32 %v8922_v42, %v802_v44  ;;  %6838 = vpow2.f32 %v5836_v55  ;;  %v6186_v60 = vmul.f32 -1.442695, %v3059_v58  ;;  %v6833_v4 = vpop.eup %6832  ;;  %v4113_v15 = vadd.f32 %v3516_v49, %v2729_v62 }
 0x161   :  { %v4895_v9 = vsel %vm8946_vm12, %v8877_v54, %v4891_v35  ;;  %6840 = vpow2.f32 %v6011_v39  ;;  %v6835_v1 = vpop.eup %6834  ;;  %v809_v61 = vand.u32 2147483647, %v8872_v2  ;;  %v811_v56 = vand.u32 2147483648, %v8872_v2  ;;  %v6466_v54 = vld [vmem:[%s12901_s2 + $0x78] sm:$0xff] }
 0x162   :  { %v8960_v3 = vadd.f32 1.0, %v6833_v4  ;;  %6842 = vpow2.f32 %v6186_v60  ;;  %v8962_v5 = vadd.f32 1.0, %v6835_v1  ;;  %v6361_v11 = vmul.f32 -1.442695, %v4443_v48  ;;  %6164 = vmatmul.msk.bf16.gmra.mxu2 %vm218_vm2, %v6466_v54 }
 0x163   :  { %v343_v14 = vadd.f32 %v8373_v57, %v342_v52  ;;  %v4900_v24 = vsel %vm8950_vm13, %v4899_v31, %v4895_v9  ;;  %v804_v25 = vadd.f32 %v8922_v42, %v803_v29  ;;  %vm806_vm14 = vweird.f32 %v8922_v42  ;;  %v6491_v57 = vld [vmem:[%s12902_s3 + $0x78] sm:$0xff] }
 0x164   :  { %6844 = vrcp.f32 %v8960_v3  ;;  %v5497_v26 = vadd.f32 %v4900_v24, %v4113_v15  ;;  %vm805_vm15 = vweird.f32 %v8872_v2  ;;  %vm8986_vm0 = vcmp.eq.f32.partialorder %v809_v61, 8.507059e+37  ;;  %6339 = vmatmul.msk.bf16.gmra.mxu3 %vm218_vm2, %v6491_v57 }
 0x165   :  { %v6837_v6 = vpop.eup %6836  ;;  %6846 = vrcp.f32 %v8962_v5  ;;  %v812_v30 = vor.u32 1.1754944e-38, %v811_v56  ;;  %vm8996_vm1 = vmor %vm805_vm15, %vm806_vm14  ;;  %v2143_v2 = vand.u32 2147483647, %v8960_v3  ;;  %v5837_v32 = vmul.f32 -1.442695, %v343_v14 }
 0x166   :  { %v6839_v27 = vpop.eup %6838  ;;  %v8990_v59 = vadd.f32 1.0, %v6837_v6  ;;  %6848 = vpow2.f32 %v6361_v11  ;;  %v808_v7 = vsel %vm8996_vm1, %v8922_v42, %v804_v25  ;;  %v2145_v36 = vand.u32 2147483648, %v8960_v3 }
 0x167   :  { %v6841_v16 = vpop.eup %6840  ;;  %v9001_v10 = vadd.f32 1.0, %v6839_v27  ;;  %v1677_v37 = vadd.f32 %v9011_v33, %v1676_v21  ;;  %v9014_v40 = vmul.f32 0.25, %v5497_v26  ;;  %v3527_v8 = vand.u32 2147483647, %v8962_v5 }
 0x168   :  { %v6843_v23 = vpop.eup %6842  ;;  %6850 = vrcp.f32 %v8990_v59  ;;  %v9019_v28 = vadd.f32 %v9011_v33, %v3060_v22  ;;  %vm2139_vm3 = vweird.f32 %v8960_v3  ;;  %v3529_v41 = vand.u32 2147483648, %v8962_v5 }
 0x169   :  { %6852 = vrcp.f32 %v9001_v10  ;;  %v9023_v42 = vadd.f32 1.0, %v6841_v16  ;;  %v9025_v34 = vadd.f32 1.0, %v6843_v23  ;;  %v813_v20 = vsel %vm8986_vm0, %v812_v30, %v808_v7 }
 0x16a   :  { %v6845_v38 = vpop.eup %6844  ;;  %vm9030_vm4 = vcmp.eq.f32.partialorder %v2143_v2, 8.507059e+37  ;;  %vm3523_vm5 = vweird.f32 %v8962_v5  ;;  %v2146_v46 = vor.u32 1.1754944e-38, %v2145_v36  ;;  %6854 = vpow2.f32 %v5837_v32 }
 0x16b   :  { %v6847_v47 = vpop.eup %6846  ;;  %v2135_v51 = vmul.f32 %v6845_v38, %v8960_v3  ;;  %v9036_v19 = vmul.f32 -1.442695, %v1677_v37  ;;  %vm9038_vm6 = vcmp.eq.f32.partialorder %v3527_v8, 8.507059e+37  ;;  %v4911_v55 = vand.u32 2147483647, %v8990_v59 }
 0x16c   :  { %v3519_v12 = vmul.f32 %v6847_v47, %v8962_v5  ;;  %v6849_v50 = vpop.eup %6848  ;;  %6856 = vrcp.f32 %v9023_v42  ;;  %v3530_v39 = vor.u32 1.1754944e-38, %v3529_v41  ;;  %v4913_v58 = vand.u32 2147483648, %v8990_v59 }
 0x16d   :  { %v2136_v35 = vsub.f32 1.0, %v2135_v51  ;;  %6858 = vrcp.f32 %v9025_v34  ;;  %vm2140_vm7 = vweird.f32 %v6845_v38  ;;  %vm4907_vm8 = vweird.f32 %v8990_v59 }
 0x16e   :  { %v6851_v49 = vpop.eup %6850  ;;  %v3520_v44 = vsub.f32 1.0, %v3519_v12  ;;  %vm3524_vm9 = vweird.f32 %v6847_v47  ;;  %v824_v60 = vand.u32 2147483647, %v9001_v10  ;;  %vm9053_vm10 = vcmp.eq.f32.partialorder %v4911_v55, 8.507059e+37  ;;  %vm2141_vm12 = vmor %vm2139_vm3, %vm2140_vm7 }
 0x16f   :  { %v9046_v62 = vpop.eup %6852  ;;  %v2137_v48 = vmul.f32 %v6845_v38, %v2136_v35  ;;  %v4903_v63 = vmul.f32 %v6851_v49, %v8990_v59  ;;  %vm820_vm11 = vweird.f32 %v9001_v10  ;;  %v826_v9 = vand.u32 2147483648, %v9001_v10  ;;  %vm3525_vm13 = vmor %vm3523_vm5, %vm3524_vm9 }
 0x170   :  { %v3521_v45 = vmul.f32 %v6847_v47, %v3520_v44  ;;  %v816_v29 = vmul.f32 %v9046_v62, %v9001_v10  ;;  %v6855_v31 = vpop.eup %6854  ;;  %v4914_v61 = vor.u32 1.1754944e-38, %v4913_v58  ;;  %v2158_v11 = vand.u32 2147483647, %v9023_v42  ;;  %v1679_v58 = vpop.f32.mrf.mxu1 }
 0x171   :  { %v2138_v52 = vadd.f32 %v6845_v38, %v2137_v48  ;;  %v4904_v4 = vsub.f32 1.0, %v4903_v63  ;;  %vm4908_vm14 = vweird.f32 %v6851_v49  ;;  %v9067_v54 = vadd.f32 1.0, %v6849_v50  ;;  %v6467_v50 = vld [vmem:[%s12901_s2 + $0x80] sm:$0xff] }
 0x172   :  { %v3522_v1 = vadd.f32 %v6847_v47, %v3521_v45  ;;  %v817_v56 = vsub.f32 1.0, %v816_v29  ;;  %v9062_v14 = vpop.eup %6856  ;;  %vm9078_vm15 = vcmp.eq.f32.partialorder %v824_v60, 8.507059e+37  ;;  %v2160_v0 = vand.u32 2147483648, %v9023_v42  ;;  %vm4909_vm0 = vmor %vm4907_vm8, %vm4908_vm14  ;;  %6165 = vmatmul.msk.bf16.gmra.mxu2 %vm218_vm2, %v6467_v50 }
 0x173   :  { %v2142_v17 = vsel %vm2141_vm12, %v6845_v38, %v2138_v52  ;;  %v4905_v18 = vmul.f32 %v6851_v49, %v4904_v4  ;;  %v9069_v24 = vpop.eup %6858  ;;  %v2150_v6 = vmul.f32 %v9062_v14, %v9023_v42  ;;  %vm821_vm1 = vweird.f32 %v9046_v62 }
 0x174   :  { %v2147_v3 = vsel %vm9030_vm4, %v2146_v46, %v2142_v17  ;;  %v3526_v25 = vsel %vm3525_vm13, %v6847_v47, %v3522_v1  ;;  %v818_v57 = vmul.f32 %v9046_v62, %v817_v56  ;;  %v3534_v22 = vmul.f32 %v9069_v24, %v9025_v34  ;;  %vm9102_vm5 = vmor %vm820_vm11, %vm821_vm1 }
 0x175   :  { %v2730_v26 = vadd.f32 %v2147_v3, %v813_v20  ;;  %v3531_v5 = vsel %vm9038_vm6, %v3530_v39, %v3526_v25  ;;  %v4906_v21 = vadd.f32 %v6851_v49, %v4905_v18  ;;  %v2151_v30 = vsub.f32 1.0, %v2150_v6  ;;  %v345_v39 = vpop.f32.mrf.mxu0 }
 0x176   :  { %v9088_v16 = vadd.f32 1.0, %v6855_v31  ;;  %v819_v23 = vadd.f32 %v9046_v62, %v818_v57  ;;  %6860 = vrcp.f32 %v9067_v54  ;;  %v3535_v36 = vsub.f32 1.0, %v3534_v22  ;;  %v4447_v31 = vpop.f32.mrf.mxu3 }
 0x177   :  { %v4114_v2 = vadd.f32 %v3531_v5, %v2730_v26  ;;  %v4910_v32 = vsel %vm4909_vm0, %v6851_v49, %v4906_v21  ;;  %v2152_v59 = vmul.f32 %v9062_v14, %v2151_v30  ;;  %v3542_v37 = vand.u32 2147483647, %v9025_v34 }
 0x178   :  { %v4915_v7 = vsel %vm9053_vm10, %v4914_v61, %v4910_v32  ;;  %v827_v38 = vor.u32 1.1754944e-38, %v826_v9  ;;  %vm2154_vm3 = vweird.f32 %v9023_v42  ;;  %vm2155_vm4 = vweird.f32 %v9062_v14 }
 0x179   :  { %v5498_v8 = vadd.f32 %v4915_v7, %v4114_v2  ;;  %v2153_v47 = vadd.f32 %v9062_v14, %v2152_v59  ;;  %v3536_v20 = vmul.f32 %v9069_v24, %v3535_v36  ;;  %v3544_v51 = vand.u32 2147483648, %v9025_v34  ;;  %vm9118_vm8 = vmor %vm2154_vm3, %vm2155_vm4 }
 0x17a   :  { %6862 = vrcp.f32 %v9088_v16  ;;  %v823_v42 = vsel %vm9102_vm5, %v9046_v62, %v819_v23  ;;  %vm9113_vm6 = vcmp.eq.f32.partialorder %v2158_v11, 8.507059e+37  ;;  %vm3538_vm7 = vweird.f32 %v9025_v34 }
 0x17b   :  { %v5548_v53 = vmul.f32 0.25, %v5498_v8  ;;  %v2161_v12 = vor.u32 1.1754944e-38, %v2160_v0  ;;  %vm3539_vm9 = vweird.f32 %v9069_v24  ;;  %vm9123_vm10 = vcmp.eq.f32.partialorder %v3542_v37, 8.507059e+37 }
 0x17c   :  { %6864 = vpow2.f32 %v9036_v19  ;;  %v9128_v35 = vpop.eup %6860  ;;  %v2157_v55 = vsel %vm9118_vm8, %v9062_v14, %v2153_v47  ;;  %v3537_v49 = vadd.f32 %v9069_v24, %v3536_v20  ;;  %v6187_v44 = vmul.f32 -1.442695, %v9019_v28  ;;  %vm9155_vm12 = vmor %vm3538_vm7, %vm3539_vm9 }
 0x17d   :  { %v6529_v43 = vpack.c.bf16 %v5548_v53, %v9014_v40  ;;  %v828_v62 = vsel %vm9078_vm15, %v827_v38, %v823_v42  ;;  %v3545_v48 = vor.u32 1.1754944e-38, %v3544_v51  ;;  %v4918_v19 = vmul.f32 %v9128_v35, %v9067_v54  ;;  %v3063_v40 = vpop.f32.mrf.mxu2  ;;  %v347_v23 = vpop.f32.mrf.mxu0  ;;  %v6417_v51 = vld [vmem:[%s12899_s0 + $0x80] sm:$0xff] }
 0x17e   :  { %vm4922_vm11 = vweird.f32 %v9067_v54  ;;  %v4926_v63 = vand.u32 2147483647, %v9067_v54  ;;  %v4928_v28 = vand.u32 2147483648, %v9067_v54  ;;  %6866 = vpow2.f32 %v6187_v44  ;;  %v6442_v53 = vld [vmem:[%s12900_s1 + $0x80] sm:$0xff]  ;;  %5815 = vmatmul.msk.bf16.gmra.mxu0 %vm218_vm2, %v6417_v51 }
 0x17f   :  { %6630 = vst [vmem:[%s12903_s6 + $0x28] sm:$0xff] %v6529_v43   ;;  %v4445_v45 = vadd.f32 %v9011_v33, %v4444_v13  ;;  %v2162_v60 = vsel %vm9113_vm6, %v2161_v12, %v2157_v55  ;;  %v4919_v4 = vsub.f32 1.0, %v4918_v19  ;;  %v346_v15 = vadd.f32 %v9011_v33, %v345_v39  ;;  %5990 = vmatmul.msk.bf16.gmra.mxu1 %vm218_vm2, %v6442_v53 }
 0x180   :  { %v9147_v29 = vpop.eup %6862  ;;  %v1680_v9 = vadd.f32 %v9011_v33, %v1679_v58  ;;  %v3541_v1 = vsel %vm9155_vm12, %v9069_v24, %v3537_v49  ;;  %v3064_v34 = vadd.f32 %v9011_v33, %v3063_v40  ;;  %vm4923_vm13 = vweird.f32 %v9128_v35 }
 0x181   :  { %v831_v61 = vmul.f32 %v9147_v29, %v9088_v16  ;;  %v6362_v56 = vmul.f32 -1.442695, %v4445_v45  ;;  %v4920_v14 = vmul.f32 %v9128_v35, %v4919_v4  ;;  %v5838_v17 = vmul.f32 -1.442695, %v346_v15  ;;  %vm9182_vm14 = vmor %vm4922_vm11, %vm4923_vm13 }
 0x182   :  { %v6865_v11 = vpop.eup %6864  ;;  %v6013_v18 = vmul.f32 -1.442695, %v1680_v9  ;;  %v4448_v57 = vadd.f32 %v9011_v33, %v4447_v31  ;;  %v3546_v24 = vsel %vm9123_vm10, %v3545_v48, %v3541_v1  ;;  %v839_v26 = vand.u32 2147483647, %v9088_v16 }
 0x183   :  { %v832_v3 = vsub.f32 1.0, %v831_v61  ;;  %v9169_v25 = vadd.f32 1.0, %v6865_v11  ;;  %6868 = vpow2.f32 %v6362_v56  ;;  %v4921_v6 = vadd.f32 %v9128_v35, %v4920_v14 }
 0x184   :  { %6870 = vpow2.f32 %v5838_v17  ;;  %v6867_v5 = vpop.eup %6866  ;;  %v2731_v21 = vadd.f32 %v2162_v60, %v828_v62  ;;  %v6188_v0 = vmul.f32 -1.442695, %v3064_v34  ;;  %vm835_vm15 = vweird.f32 %v9088_v16 }
 0x185   :  { %v833_v27 = vmul.f32 %v9147_v29, %v832_v3  ;;  %6872 = vrcp.f32 %v9169_v25  ;;  %v9186_v22 = vadd.f32 1.0, %v6867_v5  ;;  %v4925_v2 = vsel %vm9182_vm14, %v9128_v35, %v4921_v6  ;;  %v6492_v35 = vld [vmem:[%s12902_s3 + $0x80] sm:$0xff] }
 0x186   :  { %6874 = vpow2.f32 %v6013_v18  ;;  %v4115_v13 = vadd.f32 %v3546_v24, %v2731_v21  ;;  %v6363_v32 = vmul.f32 -1.442695, %v4448_v57  ;;  %vm4927_vm0 = vcmp.eq.f32.partialorder %v4926_v63, 8.507059e+37  ;;  %6340 = vmatmul.msk.bf16.gmra.mxu3 %vm218_vm2, %v6492_v35 }
 0x187   :  { %v4929_v7 = vor.u32 1.1754944e-38, %v4928_v28  ;;  %v841_v54 = vand.u32 2147483648, %v9088_v16  ;;  %6876 = vrcp.f32 %v9186_v22  ;;  %v834_v36 = vadd.f32 %v9147_v29, %v833_v27  ;;  %v1681_v28 = vpop.f32.mrf.mxu1 }
 0x188   :  { %vm836_vm1 = vweird.f32 %v9147_v29  ;;  %vm9196_vm3 = vcmp.eq.f32.partialorder %v839_v26, 8.507059e+37  ;;  %6878 = vpow2.f32 %v6188_v0  ;;  %v2173_v41 = vand.u32 2147483647, %v9169_v25 }
 0x189   :  { %v6869_v59 = vpop.eup %6868  ;;  %v4930_v38 = vsel %vm4927_vm0, %v4929_v7, %v4925_v2  ;;  %v348_v20 = vadd.f32 %v9011_v33, %v347_v23  ;;  %v2175_v10 = vand.u32 2147483648, %v9169_v25  ;;  %6880 = vpow2.f32 %v6363_v32  ;;  %vm9223_vm4 = vmor %vm835_vm15, %vm836_vm1  ;;  %v3065_v32 = vpop.f32.mrf.mxu2 }
 0x18a   :  { %v6871_v8 = vpop.eup %6870  ;;  %v9201_v47 = vadd.f32 1.0, %v6869_v59  ;;  %v5499_v46 = vadd.f32 %v4930_v38, %v4115_v13  ;;  %v842_v49 = vor.u32 1.1754944e-38, %v841_v54  ;;  %vm2169_vm5 = vweird.f32 %v9169_v25 }
 0x18b   :  { %v6873_v42 = vpop.eup %6872  ;;  %v9211_v12 = vadd.f32 1.0, %v6871_v8  ;;  %v838_v39 = vsel %vm9223_vm4, %v9147_v29, %v834_v36  ;;  %v3557_v16 = vand.u32 2147483647, %v9186_v22  ;;  %v3559_v58 = vand.u32 2147483648, %v9186_v22 }
 0x18c   :  { %v6875_v43 = vpop.eup %6874  ;;  %v2165_v44 = vmul.f32 %v6873_v42, %v9169_v25  ;;  %6882 = vrcp.f32 %v9201_v47  ;;  %vm9240_vm6 = vcmp.eq.f32.partialorder %v2173_v41, 8.507059e+37  ;;  %v5839_v63 = vmul.f32 -1.442695, %v348_v20 }
 0x18d   :  { %6884 = vrcp.f32 %v9211_v12  ;;  %v6877_v62 = vpop.eup %6876  ;;  %v9244_v40 = vadd.f32 1.0, %v6875_v43  ;;  %v9246_v29 = vmul.f32 0.25, %v5499_v46  ;;  %v2176_v60 = vor.u32 1.1754944e-38, %v2175_v10 }
 0x18e   :  { %v2166_v48 = vsub.f32 1.0, %v2165_v44  ;;  %v6879_v45 = vpop.eup %6878  ;;  %v3549_v52 = vmul.f32 %v6877_v62, %v9186_v22  ;;  %vm3553_vm7 = vweird.f32 %v9186_v22  ;;  %v843_v4 = vsel %vm9196_vm3, %v842_v49, %v838_v39  ;;  %v4449_v44 = vpop.f32.mrf.mxu3 }
 0x18f   :  { %vm2170_vm8 = vweird.f32 %v6873_v42  ;;  %6886 = vrcp.f32 %v9244_v40  ;;  %v6881_v9 = vpop.eup %6880  ;;  %vm9253_vm9 = vcmp.eq.f32.partialorder %v3557_v16, 8.507059e+37  ;;  %v3560_v61 = vor.u32 1.1754944e-38, %v3559_v58  ;;  %v350_v39 = vpop.f32.mrf.mxu0 }
 0x190   :  { %v2167_v15 = vmul.f32 %v6873_v42, %v2166_v48  ;;  %v3550_v31 = vsub.f32 1.0, %v3549_v52  ;;  %v9258_v56 = vadd.f32 %v9011_v33, %v1681_v28  ;;  %vm4937_vm10 = vweird.f32 %v9201_v47  ;;  %vm2171_vm11 = vmor %vm2169_vm5, %vm2170_vm8 }
 0x191   :  { %v9261_v14 = vadd.f32 1.0, %v6879_v45  ;;  %6888 = vpow2.f32 %v5839_v63  ;;  %vm3554_vm12 = vweird.f32 %v6877_v62  ;;  %v4941_v57 = vand.u32 2147483647, %v9201_v47 }
 0x192   :  { %v6883_v34 = vpop.eup %6882  ;;  %v2168_v11 = vadd.f32 %v6873_v42, %v2167_v15  ;;  %v3551_v18 = vmul.f32 %v6877_v62, %v3550_v31  ;;  %v4943_v6 = vand.u32 2147483648, %v9201_v47  ;;  %v9272_v5 = vadd.f32 1.0, %v6881_v9  ;;  %vm3555_vm13 = vmor %vm3553_vm7, %vm3554_vm12  ;;  %v6418_v15 = vld [vmem:[%s12899_s0 + $0x88] sm:$0xff] }
 0x193   :  { %v9263_v17 = vpop.eup %6884  ;;  %v4933_v3 = vmul.f32 %v6883_v34, %v9201_v47  ;;  %6890 = vrcp.f32 %v9261_v14  ;;  %vm4938_vm14 = vweird.f32 %v6883_v34  ;;  %vm850_vm15 = vweird.f32 %v9211_v12  ;;  %v6468_v31 = vld [vmem:[%s12901_s2 + $0x88] sm:$0xff]  ;;  %5816 = vmatmul.msk.bf16.gmra.mxu0 %vm218_vm2, %v6418_v15 }
 0x194   :  { %v2172_v24 = vsel %vm2171_vm11, %v6873_v42, %v2168_v11  ;;  %v846_v26 = vmul.f32 %v9263_v17, %v9211_v12  ;;  %v3552_v27 = vadd.f32 %v6877_v62, %v3551_v18  ;;  %v854_v13 = vand.u32 2147483647, %v9211_v12  ;;  %vm4939_vm1 = vmor %vm4937_vm10, %vm4938_vm14  ;;  %v3068_v11 = vpop.f32.mrf.mxu2  ;;  %6166 = vmatmul.msk.bf16.gmra.mxu2 %vm218_vm2, %v6468_v31 }
 0x195   :  { %v2177_v21 = vsel %vm9240_vm6, %v2176_v60, %v2172_v24  ;;  %v4934_v25 = vsub.f32 1.0, %v4933_v3  ;;  %v9277_v0 = vpop.eup %6886  ;;  %v856_v2 = vand.u32 2147483648, %v9211_v12  ;;  %vm9288_vm0 = vcmp.eq.f32.partialorder %v4941_v57, 8.507059e+37 }
 0x196   :  { %v847_v30 = vsub.f32 1.0, %v846_v26  ;;  %v2732_v23 = vadd.f32 %v2177_v21, %v843_v4  ;;  %v3556_v7 = vsel %vm3555_vm13, %v6877_v62, %v3552_v27  ;;  %v2180_v59 = vmul.f32 %v9277_v0, %v9244_v40 }
 0x197   :  { %v4935_v54 = vmul.f32 %v6883_v34, %v4934_v25  ;;  %v6889_v36 = vpop.eup %6888  ;;  %v3561_v22 = vsel %vm9253_vm9, %v3560_v61, %v3556_v7  ;;  %v4944_v8 = vor.u32 1.1754944e-38, %v4943_v6  ;;  %6892 = vrcp.f32 %v9272_v5 }
 0x198   :  { %v848_v38 = vmul.f32 %v9263_v17, %v847_v30  ;;  %v4116_v41 = vadd.f32 %v3561_v22, %v2732_v23  ;;  %v2181_v51 = vsub.f32 1.0, %v2180_v59  ;;  %v857_v53 = vor.u32 1.1754944e-38, %v856_v2  ;;  %v352_v59 = vpop.f32.mrf.mxu0 }
 0x199   :  { %v4936_v20 = vadd.f32 %v6883_v34, %v4935_v54  ;;  %v2188_v42 = vand.u32 2147483647, %v9244_v40  ;;  %v2190_v46 = vand.u32 2147483648, %v9244_v40  ;;  %v3572_v10 = vand.u32 2147483647, %v9261_v14  ;;  %v9300_v50 = vpop.eup %6890  ;;  %v4452_v54 = vpop.f32.mrf.mxu3 }
 0x19a   :  { %v2182_v43 = vmul.f32 %v9277_v0, %v2181_v51  ;;  %v3574_v55 = vand.u32 2147483648, %v9261_v14  ;;  %v9304_v49 = vadd.f32 1.0, %v6889_v36  ;;  %vm851_vm3 = vweird.f32 %v9263_v17 }
 0x19b   :  { %v4940_v35 = vsel %vm4939_vm1, %v6883_v34, %v4936_v20  ;;  %vm9309_vm4 = vcmp.eq.f32.partialorder %v854_v13, 8.507059e+37  ;;  %vm2184_vm5 = vweird.f32 %v9244_v40  ;;  %v3564_v58 = vmul.f32 %v9300_v50, %v9261_v14  ;;  %vm9328_vm8 = vmor %vm850_vm15, %vm851_vm3  ;;  %v1684_v34 = vpop.f32.mrf.mxu1 }
 0x19c   :  { %v4945_v47 = vsel %vm9288_vm0, %v4944_v8, %v4940_v35  ;;  %v849_v48 = vadd.f32 %v9263_v17, %v848_v38  ;;  %v2183_v19 = vadd.f32 %v9277_v0, %v2182_v43  ;;  %vm2185_vm6 = vweird.f32 %v9277_v0 }
 0x19d   :  { %v5500_v62 = vadd.f32 %v4945_v47, %v4116_v41  ;;  %vm9319_vm7 = vcmp.eq.f32.partialorder %v2188_v42, 8.507059e+37  ;;  %v2191_v28 = vor.u32 1.1754944e-38, %v2190_v46  ;;  %v3565_v45 = vsub.f32 1.0, %v3564_v58  ;;  %v9324_v60 = vpop.eup %6892  ;;  %vm9339_vm11 = vmor %vm2184_vm5, %vm2185_vm6 }
 0x19e   :  { %6894 = vrcp.f32 %v9304_v49  ;;  %vm3568_vm9 = vweird.f32 %v9261_v14  ;;  %vm9333_vm10 = vcmp.eq.f32.partialorder %v3572_v10, 8.507059e+37  ;;  %v3575_v9 = vor.u32 1.1754944e-38, %v3574_v55 }
 0x19f   :  { %v5550_v52 = vmul.f32 0.25, %v5500_v62  ;;  %v3566_v1 = vmul.f32 %v9300_v50, %v3565_v45  ;;  %vm3569_vm12 = vweird.f32 %v9300_v50  ;;  %v4948_v12 = vmul.f32 %v9324_v60, %v9272_v5  ;;  %v3070_v62 = vpop.f32.mrf.mxu2 }
 0x1a0   :  { %vm4952_vm13 = vweird.f32 %v9272_v5  ;;  %v4956_v61 = vand.u32 2147483647, %v9272_v5  ;;  %v853_v40 = vsel %vm9328_vm8, %v9263_v17, %v849_v48  ;;  %v2187_v3 = vsel %vm9339_vm11, %v9277_v0, %v2183_v19  ;;  %vm9367_vm14 = vmor %vm3568_vm9, %vm3569_vm12 }
 0x1a1   :  { %v6534_v18 = vpack.c.bf16 %v5550_v52, %v9246_v29  ;;  %v4958_v57 = vand.u32 2147483648, %v9272_v5  ;;  %v3567_v24 = vadd.f32 %v9300_v50, %v3566_v1  ;;  %v4949_v6 = vsub.f32 1.0, %v4948_v12 }
 0x1a2   :  { %v6014_v26 = vmul.f32 -1.442695, %v9258_v56  ;;  %v3066_v21 = vadd.f32 %v9011_v33, %v3065_v32  ;;  %v4450_v17 = vadd.f32 %v9011_v33, %v4449_v44  ;;  %v351_v27 = vadd.f32 %v9011_v33, %v350_v39 }
 0x1a3   :  { %6631 = vst [vmem:[%s12903_s6 + $0x30] sm:$0xff] %v6534_v18   ;;  %v1685_v56 = vadd.f32 %v9011_v33, %v1684_v34  ;;  %v3069_v25 = vadd.f32 %v9011_v33, %v3068_v11  ;;  %v3571_v30 = vsel %vm9367_vm14, %v9300_v50, %v3567_v24  ;;  %v4950_v14 = vmul.f32 %v9324_v60, %v4949_v6  ;;  %v1686_v44 = vpop.f32.mrf.mxu1  ;;  %v4454_v11 = vpop.f32.mrf.mxu3 }
 0x1a4   :  { %v9375_v0 = vpop.eup %6894  ;;  %6896 = vpow2.f32 %v6014_v26  ;;  %v6189_v13 = vmul.f32 -1.442695, %v3066_v21  ;;  %v858_v2 = vsel %vm9309_vm4, %v857_v53, %v853_v40  ;;  %v2192_v32 = vsel %vm9319_vm7, %v2191_v28, %v2187_v3  ;;  %v355_v18 = vpop.f32.mrf.mxu0  ;;  %v6493_v40 = vld [vmem:[%s12902_s3 + $0x88] sm:$0xff] }
 0x1a5   :  { %v861_v23 = vmul.f32 %v9375_v0, %v9304_v49  ;;  %v6364_v7 = vmul.f32 -1.442695, %v4450_v17  ;;  %v4951_v36 = vadd.f32 %v9324_v60, %v4950_v14  ;;  %vm4953_vm15 = vweird.f32 %v9324_v60  ;;  %6341 = vmatmul.msk.bf16.gmra.mxu3 %vm218_vm2, %v6493_v40 }
 0x1a6   :  { %6898 = vpow2.f32 %v6189_v13  ;;  %v5840_v22 = vmul.f32 -1.442695, %v351_v27  ;;  %v3576_v37 = vsel %vm9333_vm10, %v3575_v9, %v3571_v30  ;;  %v6015_v38 = vmul.f32 -1.442695, %v1685_v56  ;;  %vm9394_vm0 = vmor %vm4952_vm13, %vm4953_vm15  ;;  %v6443_v9 = vld [vmem:[%s12900_s1 + $0x88] sm:$0xff] }
 0x1a7   :  { %v862_v8 = vsub.f32 1.0, %v861_v23  ;;  %6900 = vpow2.f32 %v6364_v7  ;;  %v2733_v41 = vadd.f32 %v2192_v32, %v858_v2  ;;  %v6190_v20 = vmul.f32 -1.442695, %v3069_v25  ;;  %5991 = vmatmul.msk.bf16.gmra.mxu1 %vm218_vm2, %v6443_v9 }
 0x1a8   :  { %6902 = vpow2.f32 %v5840_v22  ;;  %v4453_v51 = vadd.f32 %v9011_v33, %v4452_v54  ;;  %vm9398_vm1 = vcmp.eq.f32.partialorder %v4956_v61, 8.507059e+37  ;;  %v4955_v35 = vsel %vm9394_vm0, %v9324_v60, %v4951_v36 }
 0x1a9   :  { %v863_v46 = vmul.f32 %v9375_v0, %v862_v8  ;;  %v4117_v50 = vadd.f32 %v3576_v37, %v2733_v41  ;;  %v4959_v43 = vor.u32 1.1754944e-38, %v4958_v57  ;;  %vm865_vm3 = vweird.f32 %v9304_v49 }
 0x1aa   :  { %v6897_v10 = vpop.eup %6896  ;;  %v6365_v55 = vmul.f32 -1.442695, %v4453_v51  ;;  %6904 = vpow2.f32 %v6015_v38  ;;  %v353_v39 = vadd.f32 %v9011_v33, %v352_v59  ;;  %vm866_vm4 = vweird.f32 %v9375_v0 }
 0x1ab   :  { %v9407_v5 = vadd.f32 1.0, %v6897_v10  ;;  %v864_v16 = vadd.f32 %v9375_v0, %v863_v46  ;;  %v869_v58 = vand.u32 2147483647, %v9304_v49  ;;  %6906 = vpow2.f32 %v6190_v20  ;;  %vm9435_vm5 = vmor %vm865_vm3, %vm866_vm4 }
 0x1ac   :  { %v6899_v47 = vpop.eup %6898  ;;  %v4960_v19 = vsel %vm9398_vm1, %v4959_v43, %v4955_v35  ;;  %v871_v63 = vand.u32 2147483648, %v9304_v49  ;;  %v1687_v28 = vadd.f32 %v9011_v33, %v1686_v44  ;;  %v5841_v61 = vmul.f32 -1.442695, %v353_v39 }
 0x1ad   :  { %v6901_v48 = vpop.eup %6900  ;;  %6908 = vrcp.f32 %v9407_v5  ;;  %v5501_v60 = vadd.f32 %v4960_v19, %v4117_v50  ;;  %v9418_v52 = vadd.f32 1.0, %v6899_v47  ;;  %v3071_v34 = vadd.f32 %v9011_v33, %v3070_v62 }
 0x1ae   :  { %v6903_v45 = vpop.eup %6902  ;;  %v9420_v4 = vadd.f32 1.0, %v6901_v48  ;;  %6910 = vpow2.f32 %v6365_v55  ;;  %v868_v3 = vsel %vm9435_vm5, %v9375_v0, %v864_v16  ;;  %v2203_v49 = vand.u32 2147483647, %v9407_v5 }
 0x1af   :  { %v9439_v12 = vadd.f32 1.0, %v6903_v45  ;;  %v2205_v57 = vand.u32 2147483648, %v9407_v5  ;;  %6912 = vrcp.f32 %v9418_v52  ;;  %vm870_vm6 = vcmp.eq.f32.partialorder %v869_v58, 8.507059e+37 }
 0x1b0   :  { %v6905_v24 = vpop.eup %6904  ;;  %v872_v6 = vor.u32 1.1754944e-38, %v871_v63  ;;  %6914 = vrcp.f32 %v9420_v4  ;;  %v9454_v26 = vmul.f32 -1.442695, %v1687_v28  ;;  %v9458_v29 = vmul.f32 0.25, %v5501_v60 }
 0x1b1   :  { %v6907_v21 = vpop.eup %6906  ;;  %6916 = vrcp.f32 %v9439_v12  ;;  %v9462_v17 = vadd.f32 %v9011_v33, %v4454_v11  ;;  %v9465_v27 = vadd.f32 %v9011_v33, %v355_v18  ;;  %vm2199_vm7 = vweird.f32 %v9407_v5  ;;  %v6419_v18 = vld [vmem:[%s12899_s0 + $0x90] sm:$0xff] }
 0x1b2   :  { %v873_v25 = vsel %vm870_vm6, %v872_v6, %v868_v3  ;;  %v3587_v0 = vand.u32 2147483647, %v9418_v52  ;;  %6918 = vpow2.f32 %v5841_v61  ;;  %vm9470_vm8 = vcmp.eq.f32.partialorder %v2203_v49, 8.507059e+37  ;;  %5817 = vmatmul.msk.bf16.gmra.mxu0 %vm218_vm2, %v6419_v18 }
 0x1b3   :  { %v6909_v56 = vpop.eup %6908  ;;  %v2206_v2 = vor.u32 1.1754944e-38, %v2205_v57  ;;  %v9474_v32 = vadd.f32 1.0, %v6905_v24  ;;  %v9476_v23 = vmul.f32 -1.442695, %v3071_v34  ;;  %vm3583_vm9 = vweird.f32 %v9418_v52 }
 0x1b4   :  { %v6911_v30 = vpop.eup %6910  ;;  %v2195_v14 = vmul.f32 %v6909_v56, %v9407_v5  ;;  %v3589_v7 = vand.u32 2147483648, %v9418_v52  ;;  %v4971_v54 = vand.u32 2147483647, %v9420_v4  ;;  %v9481_v59 = vadd.f32 1.0, %v6907_v21 }
 0x1b5   :  { %v6913_v36 = vpop.eup %6912  ;;  %vm4967_vm10 = vweird.f32 %v9420_v4  ;;  %v4973_v37 = vand.u32 2147483648, %v9420_v4  ;;  %6920 = vrcp.f32 %v9474_v32  ;;  %vm9487_vm11 = vcmp.eq.f32.partialorder %v3587_v0, 8.507059e+37 }
 0x1b6   :  { %v2196_v22 = vsub.f32 1.0, %v2195_v14  ;;  %v6915_v8 = vpop.eup %6914  ;;  %v3579_v38 = vmul.f32 %v6913_v36, %v9418_v52  ;;  %6922 = vrcp.f32 %v9481_v59  ;;  %v9492_v20 = vadd.f32 1.0, %v6911_v30 }
 0x1b7   :  { %v9494_v51 = vpop.eup %6916  ;;  %vm2200_vm12 = vweird.f32 %v6909_v56  ;;  %v4963_v42 = vmul.f32 %v6915_v8, %v9420_v4  ;;  %v886_v46 = vand.u32 2147483648, %v9439_v12  ;;  %v3590_v35 = vor.u32 1.1754944e-38, %v3589_v7 }
 0x1b8   :  { %v2197_v53 = vmul.f32 %v6909_v56, %v2196_v22  ;;  %v6919_v10 = vpop.eup %6918  ;;  %v3580_v50 = vsub.f32 1.0, %v3579_v38  ;;  %vm9498_vm13 = vcmp.eq.f32.partialorder %v4971_v54, 8.507059e+37  ;;  %v876_v55 = vmul.f32 %v9494_v51, %v9439_v12  ;;  %vm2201_vm14 = vmor %vm2199_vm7, %vm2200_vm12 }
 0x1b9   :  { %v4964_v39 = vsub.f32 1.0, %v4963_v42  ;;  %v4974_v47 = vor.u32 1.1754944e-38, %v4973_v37  ;;  %v884_v16 = vand.u32 2147483647, %v9439_v12  ;;  %vm3584_vm15 = vweird.f32 %v6913_v36 }
 0x1ba   :  { %v2198_v44 = vadd.f32 %v6909_v56, %v2197_v53  ;;  %v3581_v58 = vmul.f32 %v6913_v36, %v3580_v50  ;;  %v877_v62 = vsub.f32 1.0, %v876_v55  ;;  %vm880_vm0 = vweird.f32 %v9439_v12  ;;  %vm3585_vm3 = vmor %vm3583_vm9, %vm3584_vm15 }
 0x1bb   :  { %6924 = vrcp.f32 %v9492_v20  ;;  %v9509_v48 = vpop.eup %6920  ;;  %v4965_v63 = vmul.f32 %v6915_v8, %v4964_v39  ;;  %vm4968_vm1 = vweird.f32 %v6915_v8  ;;  %v887_v28 = vor.u32 1.1754944e-38, %v886_v46  ;;  %v4457_v39 = vpop.f32.mrf.mxu3 }
 0x1bc   :  { %v2202_v19 = vsel %vm2201_vm14, %v6909_v56, %v2198_v44  ;;  %v9511_v45 = vpop.eup %6922  ;;  %v3582_v5 = vadd.f32 %v6913_v36, %v3581_v58  ;;  %v878_v15 = vmul.f32 %v9494_v51, %v877_v62  ;;  %v2210_v9 = vmul.f32 %v9509_v48, %v9474_v32  ;;  %vm4969_vm5 = vmor %vm4967_vm10, %vm4968_vm1 }
 0x1bd   :  { %v2207_v60 = vsel %vm9470_vm8, %v2206_v2, %v2202_v19  ;;  %v4966_v31 = vadd.f32 %v6915_v8, %v4965_v63  ;;  %vm2214_vm4 = vweird.f32 %v9474_v32  ;;  %v2218_v1 = vand.u32 2147483647, %v9474_v32 }
 0x1be   :  { %v3594_v61 = vmul.f32 %v9511_v45, %v9481_v59  ;;  %v2734_v34 = vadd.f32 %v2207_v60, %v873_v25  ;;  %v3586_v11 = vsel %vm3585_vm3, %v6913_v36, %v3582_v5  ;;  %vm9526_vm6 = vcmp.eq.f32.partialorder %v884_v16, 8.507059e+37 }
 0x1bf   :  { %v2211_v40 = vsub.f32 1.0, %v2210_v9  ;;  %v2220_v52 = vand.u32 2147483648, %v9474_v32  ;;  %v3591_v3 = vsel %vm9487_vm11, %v3590_v35, %v3586_v11  ;;  %v4970_v49 = vsel %vm4969_vm5, %v6915_v8, %v4966_v31  ;;  %v1689_v32 = vpop.f32.mrf.mxu1 }
 0x1c0   :  { %vm881_vm7 = vweird.f32 %v9494_v51  ;;  %v3595_v57 = vsub.f32 1.0, %v3594_v61  ;;  %v4118_v6 = vadd.f32 %v3591_v3, %v2734_v34  ;;  %v879_v4 = vadd.f32 %v9494_v51, %v878_v15 }
 0x1c1   :  { %v9534_v24 = vpop.eup %6924  ;;  %v2212_v21 = vmul.f32 %v9509_v48, %v2211_v40  ;;  %v3602_v56 = vand.u32 2147483647, %v9481_v59  ;;  %v4975_v25 = vsel %vm9498_vm13, %v4974_v47, %v4970_v49  ;;  %vm2215_vm8 = vweird.f32 %v9509_v48  ;;  %vm9552_vm10 = vmor %vm880_vm0, %vm881_vm7  ;;  %v6444_v40 = vld [vmem:[%s12900_s1 + $0x90] sm:$0xff] }
 0x1c2   :  { %v3596_v0 = vmul.f32 %v9511_v45, %v3595_v57  ;;  %v4978_v30 = vmul.f32 %v9534_v24, %v9492_v20  ;;  %v5502_v14 = vadd.f32 %v4975_v25, %v4118_v6  ;;  %vm3599_vm9 = vweird.f32 %v9511_v45  ;;  %vm9565_vm11 = vmor %vm2214_vm4, %vm2215_vm8  ;;  %v6494_v57 = vld [vmem:[%s12902_s3 + $0x90] sm:$0xff]  ;;  %5992 = vmatmul.msk.bf16.gmra.mxu1 %vm218_vm2, %v6444_v40 }
 0x1c3   :  { %v2213_v13 = vadd.f32 %v9509_v48, %v2212_v21  ;;  %v3604_v2 = vand.u32 2147483648, %v9481_v59  ;;  %v9557_v22 = vadd.f32 1.0, %v6919_v10  ;;  %6926 = vpow2.f32 %v9454_v26  ;;  %6342 = vmatmul.msk.bf16.gmra.mxu3 %vm218_vm2, %v6494_v57 }
 0x1c4   :  { %v3597_v54 = vadd.f32 %v9511_v45, %v3596_v0  ;;  %v4979_v36 = vsub.f32 1.0, %v4978_v30  ;;  %v5552_v37 = vmul.f32 0.25, %v5502_v14  ;;  %v883_v8 = vsel %vm9552_vm10, %v9494_v51, %v879_v4 }
 0x1c5   :  { %vm9569_vm12 = vcmp.eq.f32.partialorder %v2218_v1, 8.507059e+37  ;;  %v2221_v41 = vor.u32 1.1754944e-38, %v2220_v52  ;;  %v2217_v26 = vsel %vm9565_vm11, %v9509_v48, %v2213_v13  ;;  %vm3598_vm13 = vweird.f32 %v9481_v59  ;;  %v3073_v59 = vpop.f32.mrf.mxu2  ;;  %v6469_v52 = vld [vmem:[%s12901_s2 + $0x90] sm:$0xff] }
 0x1c6   :  { %v4980_v53 = vmul.f32 %v9534_v24, %v4979_v36  ;;  %6928 = vrcp.f32 %v9557_v22  ;;  %v6539_v51 = vpack.c.bf16 %v5552_v37, %v9458_v29  ;;  %vm9582_vm14 = vmor %vm3598_vm13, %vm3599_vm9  ;;  %vm9586_vm15 = vcmp.eq.f32.partialorder %v3602_v56, 8.507059e+37  ;;  %v357_v56 = vpop.f32.mrf.mxu0  ;;  %6167 = vmatmul.msk.bf16.gmra.mxu2 %vm218_vm2, %v6469_v52 }
 0x1c7   :  { %v3605_v10 = vor.u32 1.1754944e-38, %v3604_v2  ;;  %vm4982_vm0 = vweird.f32 %v9492_v20  ;;  %v888_v50 = vsel %vm9526_vm6, %v887_v28, %v883_v8  ;;  %v3601_v29 = vsel %vm9582_vm14, %v9511_v45, %v3597_v54  ;;  %v1691_v25 = vpop.f32.mrf.mxu1  ;;  %v9672_v8 = vld [vmem:[%s12898_s5] ss:$0 sm:$0xff] }
 0x1c8   :  { %vm4983_vm1 = vweird.f32 %v9534_v24  ;;  %6930 = vpow2.f32 %v9476_v23  ;;  %6632 = vst [vmem:[%s12903_s6 + $0x38] sm:$0xff] %v6539_v51   ;;  %v2222_v35 = vsel %vm9569_vm12, %v2221_v41, %v2217_v26  ;;  %v6366_v43 = vmul.f32 -1.442695, %v9462_v17 }
 0x1c9   :  { %v5842_v55 = vmul.f32 -1.442695, %v9465_v27  ;;  %v1690_v44 = vadd.f32 %v9011_v33, %v1689_v32  ;;  %v6927_v47 = vpop.eup %6926  ;;  %v4981_v16 = vadd.f32 %v9534_v24, %v4980_v53  ;;  %v4986_v58 = vand.u32 2147483647, %v9492_v20  ;;  %vm9621_vm3 = vmor %vm4982_vm0, %vm4983_vm1 }
 0x1ca   :  { %v4988_v23 = vand.u32 2147483648, %v9492_v20  ;;  %v3074_v62 = vadd.f32 %v9011_v33, %v3073_v59  ;;  %v3606_v48 = vsel %vm9586_vm15, %v3605_v10, %v3601_v29  ;;  %v9612_v19 = vadd.f32 1.0, %v6927_v47 }
 0x1cb   :  { %6932 = vpow2.f32 %v6366_v43  ;;  %v6017_v17 = vmul.f32 -1.442695, %v1690_v44  ;;  %v2735_v63 = vadd.f32 %v2222_v35, %v888_v50  ;;  %v4458_v45 = vadd.f32 %v9011_v33, %v4457_v39 }
 0x1cc   :  { %v9614_v27 = vpop.eup %6928  ;;  %6934 = vpow2.f32 %v5842_v55  ;;  %v6192_v28 = vmul.f32 -1.442695, %v3074_v62  ;;  %v4985_v31 = vsel %vm9621_vm3, %v9534_v24, %v4981_v16  ;;  %vm4987_vm4 = vcmp.eq.f32.partialorder %v4986_v58, 8.507059e+37 }
 0x1cd   :  { %v891_v5 = vmul.f32 %v9614_v27, %v9557_v22  ;;  %6936 = vrcp.f32 %v9612_v19  ;;  %v4119_v9 = vadd.f32 %v3606_v48, %v2735_v63  ;;  %v4989_v33 = vor.u32 1.1754944e-38, %v4988_v23 }
 0x1ce   :  { %v6931_v15 = vpop.eup %6930  ;;  %6938 = vpow2.f32 %v6017_v17  ;;  %v6367_v20 = vmul.f32 -1.442695, %v4458_v45  ;;  %v899_v34 = vand.u32 2147483647, %v9557_v22  ;;  %v901_v11 = vand.u32 2147483648, %v9557_v22 }
 0x1cf   :  { %v892_v1 = vsub.f32 1.0, %v891_v5  ;;  %v9631_v61 = vadd.f32 1.0, %v6931_v15  ;;  %6940 = vpow2.f32 %v6192_v28  ;;  %v4990_v49 = vsel %vm4987_vm4, %v4989_v33, %v4985_v31 }
 0x1d0   :  { %v5503_v6 = vadd.f32 %v4990_v49, %v4119_v9  ;;  %vm895_vm5 = vweird.f32 %v9557_v22  ;;  %v2233_v30 = vand.u32 2147483647, %v9612_v19  ;;  %v2235_v14 = vand.u32 2147483648, %v9612_v19 }
 0x1d1   :  { %v6933_v3 = vpop.eup %6932  ;;  %6942 = vrcp.f32 %v9631_v61  ;;  %v893_v4 = vmul.f32 %v9614_v27, %v892_v1  ;;  %vm896_vm6 = vweird.f32 %v9614_v27  ;;  %vm9661_vm7 = vcmp.eq.f32.partialorder %v899_v34, 8.507059e+37 }
 0x1d2   :  { %v6935_v24 = vpop.eup %6934  ;;  %v9650_v21 = vadd.f32 1.0, %v6933_v3  ;;  %6944 = vpow2.f32 %v6367_v20  ;;  %v902_v7 = vor.u32 1.1754944e-38, %v901_v11  ;;  %vm2229_vm8 = vweird.f32 %v9612_v19  ;;  %vm9693_vm12 = vmor %vm895_vm5, %vm896_vm6  ;;  %v3075_v11 = vpop.f32.mrf.mxu2 }
 0x1d3   :  { %v6937_v0 = vpop.eup %6936  ;;  %v9656_v13 = vadd.f32 1.0, %v6935_v24  ;;  %v3617_v37 = vand.u32 2147483647, %v9631_v61  ;;  %v358_v12 = vadd.f32 %v9672_v8, %v357_v56  ;;  %v1692_v38 = vadd.f32 %v9672_v8, %v1691_v25 }
 0x1d4   :  { %v2225_v54 = vmul.f32 %v6937_v0, %v9612_v19  ;;  %6946 = vrcp.f32 %v9650_v21  ;;  %v6939_v36 = vpop.eup %6938  ;;  %v9676_v26 = vmul.f32 0.25, %v5503_v6  ;;  %v894_v53 = vadd.f32 %v9614_v27, %v893_v4 }
 0x1d5   :  { %v6941_v41 = vpop.eup %6940  ;;  %6948 = vrcp.f32 %v9656_v13  ;;  %vm9680_vm9 = vcmp.eq.f32.partialorder %v2233_v30, 8.507059e+37  ;;  %v2236_v46 = vor.u32 1.1754944e-38, %v2235_v14  ;;  %vm3613_vm10 = vweird.f32 %v9631_v61 }
 0x1d6   :  { %v2226_v32 = vsub.f32 1.0, %v2225_v54  ;;  %v3619_v10 = vand.u32 2147483648, %v9631_v61  ;;  %vm2230_vm11 = vweird.f32 %v6937_v0  ;;  %v9687_v29 = vadd.f32 1.0, %v6939_v36 }
 0x1d7   :  { %v6943_v51 = vpop.eup %6942  ;;  %vm9697_vm13 = vcmp.eq.f32.partialorder %v3617_v37, 8.507059e+37  ;;  %v9701_v44 = vadd.f32 1.0, %v6941_v41  ;;  %v9703_v39 = vmul.f32 -1.442695, %v358_v12  ;;  %v9705_v47 = vmul.f32 -1.442695, %v1692_v38  ;;  %vm2231_vm14 = vmor %vm2229_vm8, %vm2230_vm11  ;;  %v4459_v41 = vpop.f32.mrf.mxu3 }
 0x1d8   :  { %v2227_v59 = vmul.f32 %v6937_v0, %v2226_v32  ;;  %v3609_v50 = vmul.f32 %v6943_v51, %v9631_v61  ;;  %v6945_v35 = vpop.eup %6944  ;;  %v898_v58 = vsel %vm9693_vm12, %v9614_v27, %v894_v53  ;;  %6950 = vrcp.f32 %v9687_v29 }
 0x1d9   :  { %vm3614_vm15 = vweird.f32 %v6943_v51  ;;  %v3620_v62 = vor.u32 1.1754944e-38, %v3619_v10  ;;  %v5001_v17 = vand.u32 2147483647, %v9650_v21  ;;  %6952 = vrcp.f32 %v9701_v44 }
 0x1da   :  { %v6947_v16 = vpop.eup %6946  ;;  %v2228_v22 = vadd.f32 %v6937_v0, %v2227_v59  ;;  %v3610_v23 = vsub.f32 1.0, %v3609_v50  ;;  %v9718_v27 = vadd.f32 1.0, %v6945_v35  ;;  %v903_v60 = vsel %vm9661_vm7, %v902_v7, %v898_v58  ;;  %vm3615_vm1 = vmor %vm3613_vm10, %vm3614_vm15  ;;  %v360_v50 = vpop.f32.mrf.mxu0 }
 0x1db   :  { %v4993_v48 = vmul.f32 %v6947_v16, %v9650_v21  ;;  %v9715_v63 = vpop.eup %6948  ;;  %vm4997_vm0 = vweird.f32 %v9650_v21  ;;  %v5003_v31 = vand.u32 2147483648, %v9650_v21  ;;  %v916_v33 = vand.u32 2147483648, %v9656_v13 }
 0x1dc   :  { %v2232_v28 = vsel %vm2231_vm14, %v6937_v0, %v2228_v22  ;;  %v3611_v45 = vmul.f32 %v6943_v51, %v3610_v23  ;;  %v906_v15 = vmul.f32 %v9715_v63, %v9656_v13  ;;  %vm4998_vm3 = vweird.f32 %v6947_v16 }
 0x1dd   :  { %v2237_v19 = vsel %vm9680_vm9, %v2236_v46, %v2232_v28  ;;  %v4994_v5 = vsub.f32 1.0, %v4993_v48  ;;  %vm9732_vm4 = vcmp.eq.f32.partialorder %v5001_v17, 8.507059e+37  ;;  %vm910_vm5 = vweird.f32 %v9656_v13  ;;  %vm4999_vm6 = vmor %vm4997_vm0, %vm4998_vm3 }
 0x1de   :  { %v3612_v9 = vadd.f32 %v6943_v51, %v3611_v45  ;;  %v907_v34 = vsub.f32 1.0, %v906_v15  ;;  %v9736_v18 = vpop.eup %6950  ;;  %v2736_v40 = vadd.f32 %v2237_v19, %v903_v60  ;;  %v914_v3 = vand.u32 2147483647, %v9656_v13 }
 0x1df   :  { %v4995_v1 = vmul.f32 %v6947_v16, %v4994_v5  ;;  %6954 = vrcp.f32 %v9718_v27  ;;  %v2240_v57 = vmul.f32 %v9736_v18, %v9687_v29  ;;  %v2248_v24 = vand.u32 2147483647, %v9687_v29  ;;  %v9746_v6 = vpop.eup %6952 }
 0x1e0   :  { %v3616_v52 = vsel %vm3615_vm1, %v6943_v51, %v3612_v9  ;;  %v5004_v56 = vor.u32 1.1754944e-38, %v5003_v31  ;;  %v908_v25 = vmul.f32 %v9715_v63, %v907_v34  ;;  %v917_v0 = vor.u32 1.1754944e-38, %v916_v33 }
 0x1e1   :  { %v3621_v61 = vsel %vm9697_vm13, %v3620_v62, %v3616_v52  ;;  %v4996_v49 = vadd.f32 %v6947_v16, %v4995_v1  ;;  %v2241_v14 = vsub.f32 1.0, %v2240_v57  ;;  %vm2244_vm7 = vweird.f32 %v9687_v29 }
 0x1e2   :  { %v4120_v4 = vadd.f32 %v3621_v61, %v2736_v40  ;;  %v3624_v2 = vmul.f32 %v9746_v6, %v9701_v44  ;;  %vm911_vm8 = vweird.f32 %v9715_v63  ;;  %v2250_v54 = vand.u32 2147483648, %v9687_v29 }
 0x1e3   :  { %v5000_v30 = vsel %vm4999_vm6, %v6947_v16, %v4996_v49  ;;  %vm3628_vm9 = vweird.f32 %v9701_v44  ;;  %vm9760_vm10 = vcmp.eq.f32.partialorder %v914_v3, 8.507059e+37  ;;  %v2242_v37 = vmul.f32 %v9736_v18, %v2241_v14  ;;  %v1694_v16 = vpop.f32.mrf.mxu1  ;;  %vm9787_vm13 = vmor %vm910_vm5, %vm911_vm8 }
 0x1e4   :  { %v5005_v7 = vsel %vm9732_vm4, %v5004_v56, %v5000_v30  ;;  %vm9765_vm11 = vcmp.eq.f32.partialorder %v2248_v24, 8.507059e+37  ;;  %v3625_v38 = vsub.f32 1.0, %v3624_v2  ;;  %v909_v32 = vadd.f32 %v9715_v63, %v908_v25  ;;  %v6420_v25 = vld [vmem:[%s12899_s0 + $0x98] sm:$0xff] }
 0x1e5   :  { %v5504_v21 = vadd.f32 %v5005_v7, %v4120_v4  ;;  %v9769_v53 = vpop.eup %6954  ;;  %vm2245_vm12 = vweird.f32 %v9736_v18  ;;  %6956 = vpow2.f32 %v9703_v39  ;;  %v3076_v51 = vadd.f32 %v9672_v8, %v3075_v11  ;;  %v4462_v4 = vpop.f32.mrf.mxu3  ;;  %v6470_v30 = vld [vmem:[%s12901_s2 + $0x98] sm:$0xff]  ;;  %5818 = vmatmul.msk.bf16.gmra.mxu0 %vm218_vm2, %v6420_v25 }
 0x1e6   :  { %v2243_v46 = vadd.f32 %v9736_v18, %v2242_v37  ;;  %v3626_v10 = vmul.f32 %v9746_v6, %v3625_v38  ;;  %v5008_v59 = vmul.f32 %v9769_v53, %v9718_v27  ;;  %v3634_v35 = vand.u32 2147483648, %v9701_v44  ;;  %vm9797_vm15 = vmor %vm2244_vm7, %vm2245_vm12  ;;  %v362_v7 = vpop.f32.mrf.mxu0  ;;  %6168 = vmatmul.msk.bf16.gmra.mxu2 %vm218_vm2, %v6470_v30 }
 0x1e7   :  { %v5554_v42 = vmul.f32 0.25, %v5504_v21  ;;  %6958 = vpow2.f32 %v9705_v47  ;;  %v6193_v43 = vmul.f32 -1.442695, %v3076_v51  ;;  %v4460_v55 = vadd.f32 %v9672_v8, %v4459_v41  ;;  %v3078_v47 = vpop.f32.mrf.mxu2 }
 0x1e8   :  { %v3627_v22 = vadd.f32 %v9746_v6, %v3626_v10  ;;  %vm3629_vm14 = vweird.f32 %v9746_v6  ;;  %v5009_v23 = vsub.f32 1.0, %v5008_v59  ;;  %v3632_v13 = vand.u32 2147483647, %v9701_v44 }
 0x1e9   :  { %v6544_v39 = vpack.c.bf16 %v5554_v42, %v9676_v26  ;;  %6960 = vpow2.f32 %v6193_v43  ;;  %v6368_v62 = vmul.f32 -1.442695, %v4460_v55  ;;  %v361_v48 = vadd.f32 %v9672_v8, %v360_v50  ;;  %vm9818_vm0 = vmor %vm3628_vm9, %vm3629_vm14 }
 0x1ea   :  { %v913_v17 = vsel %vm9787_vm13, %v9715_v63, %v909_v32  ;;  %v2247_v29 = vsel %vm9797_vm15, %v9736_v18, %v2243_v46  ;;  %v5010_v28 = vmul.f32 %v9769_v53, %v5009_v23  ;;  %v1695_v45 = vadd.f32 %v9672_v8, %v1694_v16 }
 0x1eb   :  { %6633 = vst [vmem:[%s12903_s6 + $0x40] sm:$0xff] %v6544_v39   ;;  %v6957_v60 = vpop.eup %6956  ;;  %v2251_v19 = vor.u32 1.1754944e-38, %v2250_v54  ;;  %6962 = vpow2.f32 %v6368_v62  ;;  %v5844_v63 = vmul.f32 -1.442695, %v361_v48  ;;  %v3079_v15 = vadd.f32 %v9672_v8, %v3078_v47  ;;  %v6495_v54 = vld [vmem:[%s12902_s3 + $0x98] sm:$0xff] }
 0x1ec   :  { %v3631_v9 = vsel %vm9818_vm0, %v9746_v6, %v3627_v22  ;;  %v3635_v31 = vor.u32 1.1754944e-38, %v3634_v35  ;;  %v9826_v33 = vadd.f32 1.0, %v6957_v60  ;;  %v6019_v1 = vmul.f32 -1.442695, %v1695_v45  ;;  %6343 = vmatmul.msk.bf16.gmra.mxu3 %vm218_vm2, %v6495_v54 }
 0x1ed   :  { %v6959_v20 = vpop.eup %6958  ;;  %v918_v44 = vsel %vm9760_vm10, %v917_v0, %v913_v17  ;;  %v2252_v34 = vsel %vm9765_vm11, %v2251_v19, %v2247_v29  ;;  %vm5013_vm1 = vweird.f32 %v9769_v53  ;;  %6964 = vpow2.f32 %v5844_v63  ;;  %v6445_v0 = vld [vmem:[%s12900_s1 + $0x98] sm:$0xff] }
 0x1ee   :  { %vm3633_vm3 = vcmp.eq.f32.partialorder %v3632_v13, 8.507059e+37  ;;  %v5011_v11 = vadd.f32 %v9769_v53, %v5010_v28  ;;  %vm5012_vm4 = vweird.f32 %v9718_v27  ;;  %6966 = vrcp.f32 %v9826_v33  ;;  %5993 = vmatmul.msk.bf16.gmra.mxu1 %vm218_vm2, %v6445_v0 }
 0x1ef   :  { %v6961_v18 = vpop.eup %6960  ;;  %v3636_v40 = vsel %vm3633_vm3, %v3635_v31, %v3631_v9  ;;  %v5018_v52 = vand.u32 2147483648, %v9718_v27  ;;  %v9837_v3 = vadd.f32 1.0, %v6959_v20  ;;  %v6194_v61 = vmul.f32 -1.442695, %v3079_v15  ;;  %vm9839_vm5 = vmor %vm5012_vm4, %vm5013_vm1 }
 0x1f0   :  { %v2737_v49 = vadd.f32 %v2252_v34, %v918_v44  ;;  %v5016_v24 = vand.u32 2147483647, %v9718_v27  ;;  %v9844_v6 = vadd.f32 1.0, %v6961_v18  ;;  %6968 = vpow2.f32 %v6019_v1 }
 0x1f1   :  { %v6963_v56 = vpop.eup %6962  ;;  %6970 = vrcp.f32 %v9837_v3  ;;  %v5015_v14 = vsel %vm9839_vm5, %v9769_v53, %v5011_v11  ;;  %v929_v2 = vand.u32 2147483647, %v9826_v33  ;;  %v5019_v36 = vor.u32 1.1754944e-38, %v5018_v52 }
 0x1f2   :  { %v4121_v27 = vadd.f32 %v3636_v40, %v2737_v49  ;;  %6972 = vrcp.f32 %v9844_v6  ;;  %v9864_v37 = vadd.f32 1.0, %v6963_v56  ;;  %v4463_v12 = vadd.f32 %v9672_v8, %v4462_v4 }
 0x1f3   :  { %v6965_v21 = vpop.eup %6964  ;;  %6974 = vpow2.f32 %v6194_v61  ;;  %vm5017_vm6 = vcmp.eq.f32.partialorder %v5016_v24, 8.507059e+37  ;;  %v931_v41 = vand.u32 2147483648, %v9826_v33  ;;  %v2263_v42 = vand.u32 2147483647, %v9837_v3 }
 0x1f4   :  { %v6967_v38 = vpop.eup %6966  ;;  %v9870_v53 = vadd.f32 1.0, %v6965_v21  ;;  %v5020_v32 = vsel %vm5017_vm6, %v5019_v36, %v5015_v14  ;;  %v363_v46 = vadd.f32 %v9672_v8, %v362_v7  ;;  %vm925_vm7 = vweird.f32 %v9826_v33 }
 0x1f5   :  { %v921_v51 = vmul.f32 %v6967_v38, %v9826_v33  ;;  %v9877_v59 = vadd.f32 %v5020_v32, %v4121_v27  ;;  %vm9880_vm8 = vcmp.eq.f32.partialorder %v929_v2, 8.507059e+37  ;;  %6976 = vrcp.f32 %v9864_v37  ;;  %v1696_v27 = vpop.f32.mrf.mxu1 }
 0x1f6   :  { %v6969_v10 = vpop.eup %6968  ;;  %v2265_v55 = vand.u32 2147483648, %v9837_v3  ;;  %6978 = vrcp.f32 %v9870_v53  ;;  %v6369_v16 = vmul.f32 -1.442695, %v4463_v12  ;;  %v932_v58 = vor.u32 1.1754944e-38, %v931_v41 }
 0x1f7   :  { %v6971_v35 = vpop.eup %6970  ;;  %v922_v43 = vsub.f32 1.0, %v921_v51  ;;  %vm2259_vm9 = vweird.f32 %v9837_v3  ;;  %vm3643_vm10 = vweird.f32 %v9844_v6  ;;  %vm926_vm11 = vweird.f32 %v6967_v38 }
 0x1f8   :  { %v6973_v39 = vpop.eup %6972  ;;  %v2255_v22 = vmul.f32 %v6971_v35, %v9837_v3  ;;  %vm9890_vm12 = vcmp.eq.f32.partialorder %v2263_v42, 8.507059e+37  ;;  %v3647_v48 = vand.u32 2147483647, %v9844_v6  ;;  %v3649_v17 = vand.u32 2147483648, %v9844_v6  ;;  %vm927_vm13 = vmor %vm925_vm7, %vm926_vm11 }
 0x1f9   :  { %v6975_v23 = vpop.eup %6974  ;;  %v923_v47 = vmul.f32 %v6967_v38, %v922_v43  ;;  %v3639_v13 = vmul.f32 %v6973_v39, %v9844_v6  ;;  %v9897_v29 = vadd.f32 1.0, %v6969_v10  ;;  %v2266_v45 = vor.u32 1.1754944e-38, %v2265_v55  ;;  %v3080_v43 = vpop.f32.mrf.mxu2 }
 0x1fa   :  { %v2256_v62 = vsub.f32 1.0, %v2255_v22  ;;  %6980 = vpow2.f32 %v6369_v16  ;;  %vm2260_vm14 = vweird.f32 %v6971_v35  ;;  %v9902_v63 = vadd.f32 1.0, %v6975_v23  ;;  %v4464_v55 = vpop.f32.mrf.mxu3 }
 0x1fb   :  { %v924_v28 = vadd.f32 %v6967_v38, %v923_v47  ;;  %v3640_v60 = vsub.f32 1.0, %v3639_v13  ;;  %v6977_v19 = vpop.eup %6976  ;;  %6982 = vrcp.f32 %v9897_v29  ;;  %vm3644_vm15 = vweird.f32 %v6973_v39  ;;  %vm2261_vm1 = vmor %vm2259_vm9, %vm2260_vm14 }
 0x1fc   :  { %v2257_v5 = vmul.f32 %v6971_v35, %v2256_v62  ;;  %v9904_v15 = vpop.eup %6978  ;;  %v5023_v1 = vmul.f32 %v6977_v19, %v9864_v37  ;;  %vm9907_vm0 = vcmp.eq.f32.partialorder %v3647_v48, 8.507059e+37  ;;  %v5845_v34 = vmul.f32 -1.442695, %v363_v46  ;;  %vm3645_vm3 = vmor %vm3643_vm10, %vm3644_vm15 }
 0x1fd   :  { %v928_v9 = vsel %vm927_vm13, %v6967_v38, %v924_v28  ;;  %v3641_v31 = vmul.f32 %v6973_v39, %v3640_v60  ;;  %v936_v33 = vmul.f32 %v9904_v15, %v9870_v53  ;;  %v3650_v40 = vor.u32 1.1754944e-38, %v3649_v17 }
 0x1fe   :  { %v2258_v20 = vadd.f32 %v6971_v35, %v2257_v5  ;;  %v933_v11 = vsel %vm9880_vm8, %v932_v58, %v928_v9  ;;  %v5024_v52 = vsub.f32 1.0, %v5023_v1  ;;  %v5031_v49 = vand.u32 2147483647, %v9864_v37  ;;  %v365_v1 = vpop.f32.mrf.mxu0 }
 0x1ff   :  { %v3642_v18 = vadd.f32 %v6973_v39, %v3641_v31  ;;  %v5033_v57 = vand.u32 2147483648, %v9864_v37  ;;  %6984 = vrcp.f32 %v9902_v63  ;;  %vm5028_vm4 = vweird.f32 %v6977_v19 }
 0x200   :  { %v2262_v61 = vsel %vm2261_vm1, %v6971_v35, %v2258_v20  ;;  %v6981_v24 = vpop.eup %6980  ;;  %v5025_v3 = vmul.f32 %v6977_v19, %v5024_v52  ;;  %vm5027_vm5 = vweird.f32 %v9864_v37  ;;  %v937_v30 = vsub.f32 1.0, %v936_v33 }
 0x201   :  { %v2267_v4 = vsel %vm9890_vm12, %v2266_v45, %v2262_v61  ;;  %v3646_v56 = vsel %vm3645_vm3, %v6973_v39, %v3642_v18  ;;  %v9924_v25 = vpop.eup %6982  ;;  %v944_v2 = vand.u32 2147483647, %v9870_v53  ;;  %v946_v7 = vand.u32 2147483648, %v9870_v53  ;;  %vm5029_vm6 = vmor %vm5027_vm5, %vm5028_vm4 }
 0x202   :  { %v2738_v0 = vadd.f32 %v2267_v4, %v933_v11  ;;  %v3651_v6 = vsel %vm9907_vm0, %v3650_v40, %v3646_v56  ;;  %v5026_v14 = vadd.f32 %v6977_v19, %v5025_v3  ;;  %v2270_v54 = vmul.f32 %v9924_v25, %v9897_v29  ;;  %v1699_v11 = vpop.f32.mrf.mxu1 }
 0x203   :  { %vm5032_vm7 = vcmp.eq.f32.partialorder %v5031_v49, 8.507059e+37  ;;  %v5034_v36 = vor.u32 1.1754944e-38, %v5033_v57  ;;  %v9933_v12 = vadd.f32 1.0, %v6981_v24  ;;  %6986 = vpow2.f32 %v5845_v34 }
 0x204   :  { %v4122_v21 = vadd.f32 %v3651_v6, %v2738_v0  ;;  %v5030_v38 = vsel %vm5029_vm6, %v6977_v19, %v5026_v14  ;;  %v2271_v41 = vsub.f32 1.0, %v2270_v54  ;;  %v1697_v37 = vadd.f32 %v9672_v8, %v1696_v27  ;;  %v3083_v6 = vpop.f32.mrf.mxu2 }
 0x205   :  { %v9936_v32 = vpop.eup %6984  ;;  %v5555_v51 = vmul.f32 0.25, %v9877_v59  ;;  %v5035_v42 = vsel %vm5032_vm7, %v5034_v36, %v5030_v38  ;;  %v938_v46 = vmul.f32 %v9904_v15, %v937_v30  ;;  %6988 = vrcp.f32 %v9933_v12 }
 0x206   :  { %v5506_v10 = vadd.f32 %v5035_v42, %v4122_v21  ;;  %vm940_vm8 = vweird.f32 %v9870_v53  ;;  %v947_v50 = vor.u32 1.1754944e-38, %v946_v7  ;;  %v3654_v35 = vmul.f32 %v9936_v32, %v9902_v63 }
 0x207   :  { %vm941_vm9 = vweird.f32 %v9904_v15  ;;  %vm9945_vm10 = vcmp.eq.f32.partialorder %v944_v2, 8.507059e+37  ;;  %v2272_v59 = vmul.f32 %v9924_v25, %v2271_v41  ;;  %vm2274_vm11 = vweird.f32 %v9897_v29 }
 0x208   :  { %v2278_v39 = vand.u32 2147483647, %v9897_v29  ;;  %v5556_v58 = vmul.f32 0.25, %v5506_v10  ;;  %v2280_v22 = vand.u32 2147483648, %v9897_v29  ;;  %v3655_v23 = vsub.f32 1.0, %v3654_v35  ;;  %vm9971_vm13 = vmor %vm940_vm8, %vm941_vm9  ;;  %v4467_v35 = vpop.f32.mrf.mxu3 }
 0x209   :  { %v6020_v47 = vmul.f32 -1.442695, %v1697_v37  ;;  %v939_v26 = vadd.f32 %v9904_v15, %v938_v46  ;;  %vm2275_vm12 = vweird.f32 %v9924_v25  ;;  %v3081_v13 = vadd.f32 %v9672_v8, %v3080_v43  ;;  %v6987_v48 = vpop.eup %6986  ;;  %v367_v43 = vpop.f32.mrf.mxu0 }
 0x20a   :  { %v4465_v62 = vadd.f32 %v9672_v8, %v4464_v55  ;;  %v6549_v17 = vpack.c.bf16 %v5556_v58, %v5555_v51  ;;  %v3656_v28 = vmul.f32 %v9936_v32, %v3655_v23  ;;  %v3662_v45 = vand.u32 2147483647, %v9902_v63  ;;  %vm9993_vm1 = vmor %vm2274_vm11, %vm2275_vm12 }
 0x20b   :  { %6990 = vpow2.f32 %v6020_v47  ;;  %v9959_v60 = vpop.eup %6988  ;;  %v2273_v19 = vadd.f32 %v9924_v25, %v2272_v59  ;;  %v9962_v5 = vadd.f32 1.0, %v6987_v48  ;;  %v6195_v9 = vmul.f32 -1.442695, %v3081_v13 }
 0x20c   :  { %v6370_v31 = vmul.f32 -1.442695, %v4465_v62  ;;  %6634 = vst [vmem:[%s12903_s6 + $0x48] sm:$0xff] %v6549_v17   ;;  %vm9975_vm14 = vcmp.eq.f32.partialorder %v2278_v39, 8.507059e+37  ;;  %vm3658_vm15 = vweird.f32 %v9902_v63  ;;  %v3664_v33 = vand.u32 2147483648, %v9902_v63  ;;  %v1701_v39 = vpop.f32.mrf.mxu1 }
 0x20d   :  { %v5038_v34 = vmul.f32 %v9959_v60, %v9933_v12  ;;  %v943_v53 = vsel %vm9971_vm13, %v9904_v15, %v939_v26  ;;  %v3657_v18 = vadd.f32 %v9936_v32, %v3656_v28  ;;  %vm3659_vm0 = vweird.f32 %v9936_v32 }
 0x20e   :  { %6992 = vrcp.f32 %v9962_v5  ;;  %v2281_v52 = vor.u32 1.1754944e-38, %v2280_v22  ;;  %v366_v49 = vadd.f32 %v9672_v8, %v365_v1  ;;  %v2277_v15 = vsel %vm9993_vm1, %v9924_v25, %v2273_v19  ;;  %vm10010_vm4 = vmor %vm3658_vm15, %vm3659_vm0 }
 0x20f   :  { %v5039_v61 = vsub.f32 1.0, %v5038_v34  ;;  %6994 = vpow2.f32 %v6195_v9  ;;  %vm10001_vm3 = vcmp.eq.f32.partialorder %v3662_v45, 8.507059e+37  ;;  %v5046_v24 = vand.u32 2147483647, %v9933_v12  ;;  %v6471_v34 = vld [vmem:[%s12901_s2 + $0xa0] sm:$0xff] }
 0x210   :  { %6996 = vpow2.f32 %v6370_v31  ;;  %v948_v4 = vsel %vm9945_vm10, %v947_v50, %v943_v53  ;;  %v3665_v3 = vor.u32 1.1754944e-38, %v3664_v33  ;;  %v5846_v0 = vmul.f32 -1.442695, %v366_v49  ;;  %v6421_v31 = vld [vmem:[%s12899_s0 + $0xa0] sm:$0xff]  ;;  %6169 = vmatmul.msk.bf16.gmra.mxu2 %vm218_vm2, %v6471_v34 }
 0x211   :  { %v6991_v29 = vpop.eup %6990  ;;  %v1700_v25 = vadd.f32 %v9672_v8, %v1699_v11  ;;  %v3661_v30 = vsel %vm10010_vm4, %v9936_v32, %v3657_v18  ;;  %v5040_v27 = vmul.f32 %v9959_v60, %v5039_v61  ;;  %vm5042_vm5 = vweird.f32 %v9933_v12  ;;  %v6496_v11 = vld [vmem:[%s12902_s3 + $0xa0] sm:$0xff]  ;;  %5819 = vmatmul.msk.bf16.gmra.mxu0 %vm218_vm2, %v6421_v31 }
 0x212   :  { %v10020_v14 = vadd.f32 1.0, %v6991_v29  ;;  %v2282_v63 = vsel %vm9975_vm14, %v2281_v52, %v2277_v15  ;;  %v5048_v2 = vand.u32 2147483648, %v9933_v12  ;;  %6998 = vpow2.f32 %v5846_v0  ;;  %6344 = vmatmul.msk.bf16.gmra.mxu3 %vm218_vm2, %v6496_v11 }
 0x213   :  { %v6021_v7 = vmul.f32 -1.442695, %v1700_v25  ;;  %vm10027_vm6 = vcmp.eq.f32.partialorder %v5046_v24, 8.507059e+37  ;;  %v961_v36 = vand.u32 2147483648, %v9962_v5  ;;  %v3084_v38 = vadd.f32 %v9672_v8, %v3083_v6 }
 0x214   :  { %v10025_v54 = vpop.eup %6992  ;;  %7000 = vrcp.f32 %v10020_v14  ;;  %v3666_v37 = vsel %vm10001_vm3, %v3665_v3, %v3661_v30  ;;  %v959_v51 = vand.u32 2147483647, %v9962_v5  ;;  %v2739_v46 = vadd.f32 %v2282_v63, %v948_v4 }
 0x215   :  { %v6995_v41 = vpop.eup %6994  ;;  %v951_v32 = vmul.f32 %v10025_v54, %v9962_v5  ;;  %7002 = vpow2.f32 %v6021_v7  ;;  %v5041_v10 = vadd.f32 %v9959_v60, %v5040_v27  ;;  %vm5043_vm7 = vweird.f32 %v9959_v60 }
 0x216   :  { %v6997_v42 = vpop.eup %6996  ;;  %v10041_v50 = vadd.f32 1.0, %v6995_v41  ;;  %v5049_v55 = vor.u32 1.1754944e-38, %v5048_v2  ;;  %vm955_vm8 = vweird.f32 %v9962_v5  ;;  %v4123_v58 = vadd.f32 %v3666_v37, %v2739_v46  ;;  %vm10049_vm9 = vmor %vm5042_vm5, %vm5043_vm7 }
 0x217   :  { %v952_v16 = vsub.f32 1.0, %v951_v32  ;;  %v10044_v59 = vadd.f32 1.0, %v6997_v42  ;;  %v962_v22 = vor.u32 1.1754944e-38, %v961_v36  ;;  %v6196_v23 = vmul.f32 -1.442695, %v3084_v38  ;;  %v3085_v38 = vpop.f32.mrf.mxu2 }
 0x218   :  { %7004 = vrcp.f32 %v10041_v50  ;;  %v6999_v47 = vpop.eup %6998  ;;  %vm10054_vm10 = vcmp.eq.f32.partialorder %v959_v51, 8.507059e+37  ;;  %v4468_v48 = vadd.f32 %v9672_v8, %v4467_v35  ;;  %v368_v17 = vadd.f32 %v9672_v8, %v367_v43 }
 0x219   :  { %v953_v13 = vmul.f32 %v10025_v54, %v952_v16  ;;  %7006 = vrcp.f32 %v10044_v59  ;;  %v5045_v12 = vsel %vm10049_vm9, %v9959_v60, %v5041_v10  ;;  %v2293_v45 = vand.u32 2147483647, %v10020_v14  ;;  %v6446_v60 = vld [vmem:[%s12900_s1 + $0xa0] sm:$0xff] }
 0x21a   :  { %v7001_v28 = vpop.eup %7000  ;;  %v2295_v19 = vand.u32 2147483648, %v10020_v14  ;;  %v10067_v9 = vadd.f32 %v9672_v8, %v1701_v39  ;;  %vm956_vm11 = vweird.f32 %v10025_v54  ;;  %v10075_v33 = vadd.f32 1.0, %v6999_v47  ;;  %5994 = vmatmul.msk.bf16.gmra.mxu1 %vm218_vm2, %v6446_v60  ;;  %v370_v60 = vpop.f32.mrf.mxu0 }
 0x21b   :  { %v7003_v1 = vpop.eup %7002  ;;  %v954_v20 = vadd.f32 %v10025_v54, %v953_v13  ;;  %v2285_v44 = vmul.f32 %v7001_v28, %v10020_v14  ;;  %vm2289_vm12 = vweird.f32 %v10020_v14  ;;  %v3677_v53 = vand.u32 2147483647, %v10041_v50  ;;  %vm10101_vm13 = vmor %vm955_vm8, %vm956_vm11 }
 0x21c   :  { %v10088_v18 = vadd.f32 1.0, %v7003_v1  ;;  %7008 = vpow2.f32 %v6196_v23  ;;  %v5050_v40 = vsel %vm10027_vm6, %v5049_v55, %v5045_v12  ;;  %v3679_v61 = vand.u32 2147483648, %v10041_v50 }
 0x21d   :  { %v2286_v52 = vsub.f32 1.0, %v2285_v44  ;;  %7010 = vrcp.f32 %v10075_v33  ;;  %v5507_v15 = vadd.f32 %v5050_v40, %v4123_v58  ;;  %vm10105_vm14 = vcmp.eq.f32.partialorder %v2293_v45, 8.507059e+37 }
 0x21e   :  { %v7005_v49 = vpop.eup %7004  ;;  %v2296_v29 = vor.u32 1.1754944e-38, %v2295_v19  ;;  %7012 = vrcp.f32 %v10088_v18  ;;  %v958_v56 = vsel %vm10101_vm13, %v10025_v54, %v954_v20  ;;  %vm2290_vm15 = vweird.f32 %v7001_v28 }
 0x21f   :  { %v7007_v4 = vpop.eup %7006  ;;  %v2287_v3 = vmul.f32 %v7001_v28, %v2286_v52  ;;  %v3669_v5 = vmul.f32 %v7005_v49, %v10041_v50  ;;  %vm3673_vm0 = vweird.f32 %v10041_v50  ;;  %vm10116_vm1 = vcmp.eq.f32.partialorder %v3677_v53, 8.507059e+37  ;;  %vm2291_vm4 = vmor %vm2289_vm12, %vm2290_vm15  ;;  %v4469_v50 = vpop.f32.mrf.mxu3 }
 0x220   :  { %v5053_v25 = vmul.f32 %v7007_v4, %v10044_v59  ;;  %vm5057_vm3 = vweird.f32 %v10044_v59  ;;  %v3680_v27 = vor.u32 1.1754944e-38, %v3679_v61  ;;  %v5061_v63 = vand.u32 2147483647, %v10044_v59 }
 0x221   :  { %v2288_v6 = vadd.f32 %v7001_v28, %v2287_v3  ;;  %v3670_v30 = vsub.f32 1.0, %v3669_v5  ;;  %v963_v7 = vsel %vm10054_vm10, %v962_v22, %v958_v56  ;;  %v5063_v21 = vand.u32 2147483648, %v10044_v59 }
 0x222   :  { %v7009_v2 = vpop.eup %7008  ;;  %v5054_v54 = vsub.f32 1.0, %v5053_v25  ;;  %v6371_v36 = vmul.f32 -1.442695, %v4468_v48  ;;  %vm3674_vm5 = vweird.f32 %v7005_v49  ;;  %v5847_v51 = vmul.f32 -1.442695, %v368_v17 }
 0x223   :  { %v10128_v41 = vpop.eup %7010  ;;  %v2292_v37 = vsel %vm2291_vm4, %v7001_v28, %v2288_v6  ;;  %v3671_v32 = vmul.f32 %v7005_v49, %v3670_v30  ;;  %vm5058_vm6 = vweird.f32 %v7007_v4  ;;  %v3086_v16 = vadd.f32 %v9672_v8, %v3085_v38  ;;  %vm3675_vm7 = vmor %vm3673_vm0, %vm3674_vm5 }
 0x224   :  { %v10130_v42 = vpop.eup %7012  ;;  %v2297_v46 = vsel %vm10105_vm14, %v2296_v29, %v2292_v37  ;;  %v5055_v10 = vmul.f32 %v7007_v4, %v5054_v54  ;;  %v966_v14 = vmul.f32 %v10128_v41, %v10075_v33  ;;  %v10141_v22 = vadd.f32 1.0, %v7009_v2  ;;  %vm5059_vm8 = vmor %vm5057_vm3, %vm5058_vm6 }
 0x225   :  { %v2740_v35 = vadd.f32 %v2297_v46, %v963_v7  ;;  %v3672_v43 = vadd.f32 %v7005_v49, %v3671_v32  ;;  %v2300_v55 = vmul.f32 %v10130_v42, %v10088_v18  ;;  %7014 = vpow2.f32 %v6371_v36  ;;  %v1704_v36 = vpop.f32.mrf.mxu1 }
 0x226   :  { %v5056_v39 = vadd.f32 %v7007_v4, %v5055_v10  ;;  %v967_v58 = vsub.f32 1.0, %v966_v14  ;;  %7016 = vpow2.f32 %v5847_v51  ;;  %v6022_v26 = vmul.f32 -1.442695, %v10067_v9 }
 0x227   :  { %v3676_v23 = vsel %vm3675_vm7, %v7005_v49, %v3672_v43  ;;  %v2301_v47 = vsub.f32 1.0, %v2300_v55  ;;  %v5064_v48 = vor.u32 1.1754944e-38, %v5063_v21  ;;  %7018 = vrcp.f32 %v10141_v22 }
 0x228   :  { %v3681_v13 = vsel %vm10116_vm1, %v3680_v27, %v3676_v23  ;;  %v5060_v62 = vsel %vm5059_vm8, %v7007_v4, %v5056_v39  ;;  %vm5062_vm9 = vcmp.eq.f32.partialorder %v5061_v63, 8.507059e+37  ;;  %v968_v28 = vmul.f32 %v10128_v41, %v967_v58 }
 0x229   :  { %v4124_v17 = vadd.f32 %v3681_v13, %v2740_v35  ;;  %v2302_v12 = vmul.f32 %v10130_v42, %v2301_v47  ;;  %v5557_v59 = vmul.f32 0.25, %v5507_v15  ;;  %v5065_v45 = vsel %vm5062_vm9, %v5064_v48, %v5060_v62 }
 0x22a   :  { %vm970_vm10 = vweird.f32 %v10075_v33  ;;  %7020 = vpow2.f32 %v6022_v26  ;;  %v974_v9 = vand.u32 2147483647, %v10075_v33  ;;  %v6197_v31 = vmul.f32 -1.442695, %v3086_v16 }
 0x22b   :  { %v5508_v19 = vadd.f32 %v5065_v45, %v4124_v17  ;;  %v4470_v1 = vadd.f32 %v9672_v8, %v4469_v50  ;;  %v7015_v20 = vpop.eup %7014  ;;  %vm971_vm11 = vweird.f32 %v10128_v41  ;;  %v976_v44 = vand.u32 2147483648, %v10075_v33 }
 0x22c   :  { %vm2304_vm12 = vweird.f32 %v10088_v18  ;;  %vm2305_vm13 = vweird.f32 %v10130_v42  ;;  %v7017_v34 = vpop.eup %7016  ;;  %v969_v53 = vadd.f32 %v10128_v41, %v968_v28  ;;  %v2303_v40 = vadd.f32 %v10130_v42, %v2302_v12  ;;  %vm10172_vm14 = vmor %vm970_vm10, %vm971_vm11  ;;  %v4472_v28 = vpop.f32.mrf.mxu3 }
 0x22d   :  { %v5558_v11 = vmul.f32 0.25, %v5508_v19  ;;  %v10160_v52 = vadd.f32 1.0, %v7015_v20  ;;  %v10162_v61 = vpop.eup %7018  ;;  %v2308_v49 = vand.u32 2147483647, %v10088_v18  ;;  %v2310_v15 = vand.u32 2147483648, %v10088_v18  ;;  %vm10187_vm0 = vmor %vm2304_vm12, %vm2305_vm13 }
 0x22e   :  { %v10166_v57 = vadd.f32 1.0, %v7017_v34  ;;  %7022 = vpow2.f32 %v6197_v31  ;;  %v3684_v4 = vmul.f32 %v10162_v61, %v10141_v22  ;;  %v6372_v56 = vmul.f32 -1.442695, %v4470_v1 }
 0x22f   :  { %v6554_v24 = vpack.c.bf16 %v5558_v11, %v5557_v59  ;;  %v371_v3 = vadd.f32 %v9672_v8, %v370_v60  ;;  %vm10179_vm15 = vcmp.eq.f32.partialorder %v974_v9, 8.507059e+37  ;;  %v977_v25 = vor.u32 1.1754944e-38, %v976_v44  ;;  %v10268_v60 = vld [vmem:[%s12898_s5] ss:$0 sm:$0xff]  ;;  %v6422_v11 = vld [vmem:[%s12899_s0 + $0xa8] sm:$0xff] }
 0x230   :  { %v7021_v5 = vpop.eup %7020  ;;  %v3692_v6 = vand.u32 2147483647, %v10141_v22  ;;  %7024 = vrcp.f32 %v10160_v52  ;;  %v973_v30 = vsel %vm10172_vm14, %v10128_v41, %v969_v53  ;;  %v2307_v18 = vsel %vm10187_vm0, %v10130_v42, %v2303_v40  ;;  %v6447_v53 = vld [vmem:[%s12900_s1 + $0xa8] sm:$0xff]  ;;  %5820 = vmatmul.msk.bf16.gmra.mxu0 %vm218_vm2, %v6422_v11 }
 0x231   :  { %6635 = vst [vmem:[%s12903_s6 + $0x50] sm:$0xff] %v6554_v24   ;;  %v3685_v27 = vsub.f32 1.0, %v3684_v4  ;;  %7026 = vrcp.f32 %v10166_v57  ;;  %vm2309_vm1 = vcmp.eq.f32.partialorder %v2308_v49, 8.507059e+37  ;;  %v2311_v63 = vor.u32 1.1754944e-38, %v2310_v15  ;;  %v6472_v40 = vld [vmem:[%s12901_s2 + $0xa8] sm:$0xff]  ;;  %5995 = vmatmul.msk.bf16.gmra.mxu1 %vm218_vm2, %v6447_v53 }
 0x232   :  { %v3694_v2 = vand.u32 2147483648, %v10141_v22  ;;  %v10204_v7 = vadd.f32 1.0, %v7021_v5  ;;  %vm3688_vm3 = vweird.f32 %v10141_v22  ;;  %7028 = vpow2.f32 %v6372_v56  ;;  %v6497_v24 = vld [vmem:[%s12902_s3 + $0xa8] sm:$0xff]  ;;  %6170 = vmatmul.msk.bf16.gmra.mxu2 %vm218_vm2, %v6472_v40 }
 0x233   :  { %v3686_v54 = vmul.f32 %v10162_v61, %v3685_v27  ;;  %v5848_v21 = vmul.f32 -1.442695, %v371_v3  ;;  %v978_v41 = vsel %vm10179_vm15, %v977_v25, %v973_v30  ;;  %v2312_v37 = vsel %vm2309_vm1, %v2311_v63, %v2307_v18  ;;  %6345 = vmatmul.msk.bf16.gmra.mxu3 %vm218_vm2, %v6497_v24 }
 0x234   :  { %v7023_v38 = vpop.eup %7022  ;;  %vm10210_vm4 = vcmp.eq.f32.partialorder %v3692_v6, 8.507059e+37  ;;  %7030 = vrcp.f32 %v10204_v7  ;;  %v5078_v51 = vand.u32 2147483648, %v10160_v52  ;;  %v991_v42 = vand.u32 2147483648, %v10166_v57 }
 0x235   :  { %v10217_v46 = vadd.f32 1.0, %v7023_v38  ;;  %7032 = vpow2.f32 %v5848_v21  ;;  %v3687_v14 = vadd.f32 %v10162_v61, %v3686_v54  ;;  %vm3689_vm5 = vweird.f32 %v10162_v61 }
 0x236   :  { %v10219_v10 = vpop.eup %7024  ;;  %v3695_v35 = vor.u32 1.1754944e-38, %v3694_v2  ;;  %v1705_v43 = vadd.f32 %v9672_v8, %v1704_v36  ;;  %v2741_v16 = vadd.f32 %v2312_v37, %v978_v41  ;;  %v989_v58 = vand.u32 2147483647, %v10166_v57  ;;  %v3088_v8 = vpop.f32.mrf.mxu2  ;;  %vm10237_vm7 = vmor %vm3688_vm3, %vm3689_vm5 }
 0x237   :  { %v10224_v55 = vpop.eup %7026  ;;  %v5068_v39 = vmul.f32 %v10219_v10, %v10160_v52  ;;  %v2323_v23 = vand.u32 2147483647, %v10204_v7  ;;  %v5076_v47 = vand.u32 2147483647, %v10160_v52  ;;  %vm985_vm6 = vweird.f32 %v10166_v57 }
 0x238   :  { %v981_v26 = vmul.f32 %v10224_v55, %v10166_v57  ;;  %7034 = vrcp.f32 %v10217_v46  ;;  %v7029_v13 = vpop.eup %7028  ;;  %v10241_v50 = vor.u32 1.1754944e-38, %v5078_v51  ;;  %v10243_v17 = vor.u32 1.1754944e-38, %v991_v42 }
 0x239   :  { %v5069_v48 = vsub.f32 1.0, %v5068_v39  ;;  %vm2319_vm8 = vweird.f32 %v10204_v7  ;;  %v3691_v59 = vsel %vm10237_vm7, %v10162_v61, %v3687_v14  ;;  %vm5072_vm9 = vweird.f32 %v10160_v52 }
 0x23a   :  { %v10246_v12 = vpop.eup %7030  ;;  %v982_v22 = vsub.f32 1.0, %v981_v26  ;;  %v10252_v45 = vadd.f32 1.0, %v7029_v13  ;;  %v6023_v19 = vmul.f32 -1.442695, %v1705_v43  ;;  %vm10254_vm10 = vcmp.eq.f32.partialorder %v989_v58, 8.507059e+37  ;;  %v372_v43 = vpop.f32.mrf.mxu0 }
 0x23b   :  { %v7033_v9 = vpop.eup %7032  ;;  %v2315_v1 = vmul.f32 %v10246_v12, %v10204_v7  ;;  %vm10260_vm11 = vcmp.eq.f32.partialorder %v2323_v23, 8.507059e+37  ;;  %v2325_v44 = vand.u32 2147483648, %v10204_v7  ;;  %v3089_v34 = vadd.f32 %v10268_v60, %v3088_v8 }
 0x23c   :  { %v5070_v61 = vmul.f32 %v10219_v10, %v5069_v48  ;;  %v983_v49 = vmul.f32 %v10224_v55, %v982_v22  ;;  %7036 = vrcp.f32 %v10252_v45  ;;  %v4473_v15 = vadd.f32 %v10268_v60, %v4472_v28 }
 0x23d   :  { %v3696_v29 = vsel %vm10210_vm4, %v3695_v35, %v3691_v59  ;;  %vm986_vm12 = vweird.f32 %v10224_v55  ;;  %v2316_v4 = vsub.f32 1.0, %v2315_v1  ;;  %v3707_v56 = vand.u32 2147483647, %v10217_v46  ;;  %v4474_v1 = vpop.f32.mrf.mxu3 }
 0x23e   :  { %v7035_v3 = vpop.eup %7034  ;;  %v984_v5 = vadd.f32 %v10224_v55, %v983_v49  ;;  %v3709_v0 = vand.u32 2147483648, %v10217_v46  ;;  %v10295_v25 = vadd.f32 1.0, %v7033_v9  ;;  %7038 = vpow2.f32 %v6023_v19  ;;  %vm10312_vm0 = vmor %vm985_vm6, %vm986_vm12  ;;  %v3090_v22 = vpop.f32.mrf.mxu2 }
 0x23f   :  { %vm5073_vm13 = vweird.f32 %v10219_v10  ;;  %vm10300_vm14 = vcmp.eq.f32.partialorder %v5076_v47, 8.507059e+37  ;;  %v2317_v6 = vmul.f32 %v10246_v12, %v2316_v4  ;;  %vm2320_vm15 = vweird.f32 %v10246_v12 }
 0x240   :  { %v3699_v30 = vmul.f32 %v7035_v3, %v10217_v46  ;;  %v4125_v18 = vadd.f32 %v3696_v29, %v2741_v16  ;;  %v5071_v27 = vadd.f32 %v10219_v10, %v5070_v61  ;;  %v2326_v2 = vor.u32 1.1754944e-38, %v2325_v44  ;;  %vm10327_vm4 = vmor %vm2319_vm8, %vm2320_vm15 }
 0x241   :  { %vm3703_vm1 = vweird.f32 %v10217_v46  ;;  %v988_v54 = vsel %vm10312_vm0, %v10224_v55, %v984_v5  ;;  %v2318_v21 = vadd.f32 %v10246_v12, %v2317_v6  ;;  %vm10321_vm3 = vcmp.eq.f32.partialorder %v3707_v56, 8.507059e+37  ;;  %vm10337_vm5 = vmor %vm5072_vm9, %vm5073_vm13  ;;  %v1706_v55 = vpop.f32.mrf.mxu1 }
 0x242   :  { %v3700_v36 = vsub.f32 1.0, %v3699_v30  ;;  %v7037_v41 = vpop.eup %7036  ;;  %v3710_v37 = vor.u32 1.1754944e-38, %v3709_v0  ;;  %v5091_v32 = vand.u32 2147483647, %v10252_v45  ;;  %7040 = vrcp.f32 %v10295_v25  ;;  %v375_v30 = vpop.f32.mrf.mxu0 }
 0x243   :  { %v6198_v51 = vmul.f32 -1.442695, %v3089_v34  ;;  %v2322_v7 = vsel %vm10327_vm4, %v10246_v12, %v2318_v21  ;;  %vm3704_vm6 = vweird.f32 %v7035_v3  ;;  %v5083_v35 = vmul.f32 %v7037_v41, %v10252_v45 }
 0x244   :  { %v3701_v14 = vmul.f32 %v7035_v3, %v3700_v36  ;;  %v7039_v16 = vpop.eup %7038  ;;  %v5075_v39 = vsel %vm10337_vm5, %v10219_v10, %v5071_v27  ;;  %v993_v52 = vsel %vm10254_vm10, %v10243_v17, %v988_v54  ;;  %v2327_v58 = vsel %vm10260_vm11, %v2326_v2, %v2322_v7  ;;  %vm3705_vm8 = vmor %vm3703_vm1, %vm3704_vm6 }
 0x245   :  { %v5093_v23 = vand.u32 2147483648, %v10252_v45  ;;  %v5084_v26 = vsub.f32 1.0, %v5083_v35  ;;  %vm5088_vm7 = vweird.f32 %v7037_v41  ;;  %v10354_v8 = vadd.f32 1.0, %v7039_v16 }
 0x246   :  { %v3702_v47 = vadd.f32 %v7035_v3, %v3701_v14  ;;  %7042 = vpow2.f32 %v6198_v51  ;;  %v6373_v13 = vmul.f32 -1.442695, %v4473_v15  ;;  %v373_v10 = vadd.f32 %v10268_v60, %v372_v43 }
 0x247   :  { %v1707_v62 = vadd.f32 %v10268_v60, %v1706_v55  ;;  %v2742_v48 = vadd.f32 %v2327_v58, %v993_v52  ;;  %v5085_v28 = vmul.f32 %v7037_v41, %v5084_v26  ;;  %7044 = vrcp.f32 %v10354_v8 }
 0x248   :  { %v3706_v17 = vsel %vm3705_vm8, %v7035_v3, %v3702_v47  ;;  %v10361_v12 = vpop.eup %7040  ;;  %v5080_v59 = vsel %vm10300_vm14, %v10241_v50, %v5075_v39  ;;  %vm5087_vm9 = vweird.f32 %v10252_v45  ;;  %7046 = vpow2.f32 %v6373_v13 }
 0x249   :  { %v3711_v46 = vsel %vm10321_vm3, %v3710_v37, %v3706_v17  ;;  %v5086_v9 = vadd.f32 %v7037_v41, %v5085_v28  ;;  %vm5092_vm10 = vcmp.eq.f32.partialorder %v5091_v32, 8.507059e+37  ;;  %v996_v31 = vmul.f32 %v10361_v12, %v10295_v25  ;;  %vm5089_vm11 = vmor %vm5087_vm9, %vm5088_vm7  ;;  %v1709_v63 = vpop.f32.mrf.mxu1 }
 0x24a   :  { %v4126_v19 = vadd.f32 %v3711_v46, %v2742_v48  ;;  %v5509_v20 = vadd.f32 %v5080_v59, %v4125_v18  ;;  %v5094_v44 = vor.u32 1.1754944e-38, %v5093_v23  ;;  %v5849_v34 = vmul.f32 -1.442695, %v373_v10  ;;  %v377_v17 = vpop.f32.mrf.mxu0 }
 0x24b   :  { %v6024_v50 = vmul.f32 -1.442695, %v1707_v62  ;;  %v5090_v11 = vsel %vm5089_vm11, %v7037_v41, %v5086_v9  ;;  %v997_v53 = vsub.f32 1.0, %v996_v31  ;;  %vm1000_vm12 = vweird.f32 %v10295_v25 }
 0x24c   :  { %v3091_v45 = vadd.f32 %v10268_v60, %v3090_v22  ;;  %v7043_v40 = vpop.eup %7042  ;;  %v5095_v61 = vsel %vm5092_vm10, %v5094_v44, %v5090_v11  ;;  %v1004_v49 = vand.u32 2147483647, %v10295_v25  ;;  %7048 = vpow2.f32 %v5849_v34 }
 0x24d   :  { %v4475_v15 = vadd.f32 %v10268_v60, %v4474_v1  ;;  %v7045_v24 = vpop.eup %7044  ;;  %v5510_v29 = vadd.f32 %v5095_v61, %v4126_v19  ;;  %v998_v4 = vmul.f32 %v10361_v12, %v997_v53  ;;  %v10377_v56 = vadd.f32 1.0, %v7043_v40 }
 0x24e   :  { %7050 = vpow2.f32 %v6024_v50  ;;  %v7047_v3 = vpop.eup %7046  ;;  %v5559_v5 = vmul.f32 0.25, %v5509_v20  ;;  %v1006_v0 = vand.u32 2147483648, %v10295_v25  ;;  %v2330_v33 = vmul.f32 %v7045_v24, %v10354_v8 }
 0x24f   :  { %v6199_v6 = vmul.f32 -1.442695, %v3091_v45  ;;  %v5560_v18 = vmul.f32 0.25, %v5510_v29  ;;  %v999_v27 = vadd.f32 %v10361_v12, %v998_v4  ;;  %vm1001_vm13 = vweird.f32 %v10361_v12 }
 0x250   :  { %7052 = vrcp.f32 %v10377_v56  ;;  %v2331_v2 = vsub.f32 1.0, %v2330_v33  ;;  %vm2334_vm14 = vweird.f32 %v10354_v8  ;;  %v10385_v54 = vadd.f32 1.0, %v7047_v3  ;;  %vm10391_vm15 = vmor %vm1000_vm12, %vm1001_vm13 }
 0x251   :  { %v6374_v21 = vmul.f32 -1.442695, %v4475_v15  ;;  %v6559_v36 = vpack.c.bf16 %v5560_v18, %v5559_v5  ;;  %v2338_v38 = vand.u32 2147483647, %v10354_v8  ;;  %7054 = vpow2.f32 %v6199_v6 }
 0x252   :  { %v376_v41 = vadd.f32 %v10268_v60, %v375_v30  ;;  %v7049_v57 = vpop.eup %7048  ;;  %v2332_v32 = vmul.f32 %v7045_v24, %v2331_v2  ;;  %vm2335_vm0 = vweird.f32 %v7045_v24  ;;  %v2340_v51 = vand.u32 2147483648, %v10354_v8 }
 0x253   :  { %v1710_v42 = vadd.f32 %v10268_v60, %v1709_v63  ;;  %6636 = vst [vmem:[%s12903_s6 + $0x58] sm:$0xff] %v6559_v36   ;;  %v1003_v14 = vsel %vm10391_vm15, %v10361_v12, %v999_v27  ;;  %v3722_v25 = vand.u32 2147483647, %v10377_v56  ;;  %v3724_v35 = vand.u32 2147483648, %v10377_v56  ;;  %vm10413_vm3 = vmor %vm2334_vm14, %vm2335_vm0 }
 0x254   :  { %v7051_v7 = vpop.eup %7050  ;;  %7056 = vrcp.f32 %v10385_v54  ;;  %v2333_v43 = vadd.f32 %v7045_v24, %v2332_v32  ;;  %v10406_v55 = vadd.f32 1.0, %v7049_v57  ;;  %vm1005_vm1 = vcmp.eq.f32.partialorder %v1004_v49, 8.507059e+37  ;;  %v3093_v32 = vpop.f32.mrf.mxu2 }
 0x255   :  { %v10408_v16 = vadd.f32 1.0, %v7051_v7  ;;  %7058 = vpow2.f32 %v6374_v21  ;;  %v1007_v52 = vor.u32 1.1754944e-38, %v1006_v0  ;;  %v5850_v23 = vmul.f32 -1.442695, %v376_v41  ;;  %v6473_v7 = vld [vmem:[%s12901_s2 + $0xb0] sm:$0xff] }
 0x256   :  { %v7053_v39 = vpop.eup %7052  ;;  %v2337_v47 = vsel %vm10413_vm3, %v7045_v24, %v2333_v43  ;;  %vm2339_vm4 = vcmp.eq.f32.partialorder %v2338_v38, 8.507059e+37  ;;  %7060 = vrcp.f32 %v10406_v55  ;;  %v2341_v62 = vor.u32 1.1754944e-38, %v2340_v51  ;;  %v6423_v51 = vld [vmem:[%s12899_s0 + $0xb0] sm:$0xff]  ;;  %v4477_v43 = vpop.f32.mrf.mxu3  ;;  %6171 = vmatmul.msk.bf16.gmra.mxu2 %vm218_vm2, %v6473_v7 }
 0x257   :  { %v3714_v26 = vmul.f32 %v7053_v39, %v10377_v56  ;;  %v7055_v13 = vpop.eup %7054  ;;  %v1008_v10 = vsel %vm1005_vm1, %v1007_v52, %v1003_v14  ;;  %vm3718_vm5 = vweird.f32 %v10377_v56  ;;  %v6025_v48 = vmul.f32 -1.442695, %v1710_v42  ;;  %v6448_v42 = vld [vmem:[%s12900_s1 + $0xb0] sm:$0xff]  ;;  %5821 = vmatmul.msk.bf16.gmra.mxu0 %vm218_vm2, %v6423_v51 }
 0x258   :  { %vm10422_vm6 = vcmp.eq.f32.partialorder %v3722_v25, 8.507059e+37  ;;  %v3725_v28 = vor.u32 1.1754944e-38, %v3724_v35  ;;  %v5106_v12 = vand.u32 2147483647, %v10385_v54  ;;  %7062 = vrcp.f32 %v10408_v16  ;;  %5996 = vmatmul.msk.bf16.gmra.mxu1 %vm218_vm2, %v6448_v42 }
 0x259   :  { %v3715_v8 = vsub.f32 1.0, %v3714_v26  ;;  %v2342_v46 = vsel %vm2339_vm4, %v2341_v62, %v2337_v47  ;;  %vm3719_vm7 = vweird.f32 %v7053_v39  ;;  %v5108_v22 = vand.u32 2147483648, %v10385_v54 }
 0x25a   :  { %v10428_v59 = vpop.eup %7056  ;;  %7064 = vpow2.f32 %v5850_v23  ;;  %v1019_v1 = vand.u32 2147483647, %v10406_v55  ;;  %v10434_v20 = vadd.f32 1.0, %v7055_v13  ;;  %v1021_v44 = vand.u32 2147483648, %v10406_v55  ;;  %vm10447_vm8 = vmor %vm3718_vm5, %vm3719_vm7 }
 0x25b   :  { %v7059_v19 = vpop.eup %7058  ;;  %v3716_v9 = vmul.f32 %v7053_v39, %v3715_v8  ;;  %v5098_v31 = vmul.f32 %v10428_v59, %v10385_v54  ;;  %v2353_v34 = vand.u32 2147483647, %v10408_v16  ;;  %7066 = vpow2.f32 %v6025_v48 }
 0x25c   :  { %v10438_v50 = vadd.f32 1.0, %v7059_v19  ;;  %v10440_v11 = vpop.eup %7060  ;;  %v2355_v40 = vand.u32 2147483648, %v10408_v16  ;;  %7068 = vrcp.f32 %v10434_v20  ;;  %vm5102_vm9 = vweird.f32 %v10385_v54 }
 0x25d   :  { %v3717_v53 = vadd.f32 %v7053_v39, %v3716_v9  ;;  %v5099_v45 = vsub.f32 1.0, %v5098_v31  ;;  %v10452_v49 = vor.u32 1.1754944e-38, %v5108_v22  ;;  %v1011_v15 = vmul.f32 %v10440_v11, %v10406_v55 }
 0x25e   :  { %vm1015_vm10 = vweird.f32 %v10406_v55  ;;  %v7063_v24 = vpop.eup %7062  ;;  %v2743_v29 = vadd.f32 %v2342_v46, %v1008_v10  ;;  %7070 = vrcp.f32 %v10438_v50  ;;  %vm10461_vm11 = vcmp.eq.f32.partialorder %v1019_v1, 8.507059e+37  ;;  %v4479_v0 = vpop.f32.mrf.mxu3 }
 0x25f   :  { %v3721_v4 = vsel %vm10447_vm8, %v7053_v39, %v3717_v53  ;;  %v5100_v56 = vmul.f32 %v10428_v59, %v5099_v45  ;;  %v1012_v5 = vsub.f32 1.0, %v1011_v15  ;;  %v2345_v33 = vmul.f32 %v7063_v24, %v10408_v16  ;;  %v6498_v39 = vld [vmem:[%s12902_s3 + $0xb0] sm:$0xff] }
 0x260   :  { %v7065_v3 = vpop.eup %7064  ;;  %vm2349_vm12 = vweird.f32 %v10408_v16  ;;  %vm5103_vm13 = vweird.f32 %v10428_v59  ;;  %vm10468_vm14 = vcmp.eq.f32.partialorder %v5106_v12, 8.507059e+37  ;;  %v1022_v30 = vor.u32 1.1754944e-38, %v1021_v44  ;;  %6346 = vmatmul.msk.bf16.gmra.mxu3 %vm218_vm2, %v6498_v39 }
 0x261   :  { %vm10472_vm15 = vcmp.eq.f32.partialorder %v2353_v34, 8.507059e+37  ;;  %v2356_v27 = vor.u32 1.1754944e-38, %v2355_v40  ;;  %v7067_v63 = vpop.eup %7066  ;;  %v3726_v2 = vsel %vm10422_vm6, %v3725_v28, %v3721_v4  ;;  %v1013_v21 = vmul.f32 %v10440_v11, %v1012_v5  ;;  %vm10517_vm6 = vmor %vm5102_vm9, %vm5103_vm13  ;;  %v1711_v4 = vpop.f32.mrf.mxu1 }
 0x262   :  { %vm1016_vm0 = vweird.f32 %v10440_v11  ;;  %v2346_v36 = vsub.f32 1.0, %v2345_v33  ;;  %v7069_v38 = vpop.eup %7068  ;;  %v5101_v41 = vadd.f32 %v10428_v59, %v5100_v56  ;;  %vm3733_vm1 = vweird.f32 %v10434_v20  ;;  %v3095_v56 = vpop.f32.mrf.mxu2 }
 0x263   :  { %v3737_v57 = vand.u32 2147483647, %v10434_v20  ;;  %v10483_v37 = vadd.f32 1.0, %v7065_v3  ;;  %v1014_v14 = vadd.f32 %v10440_v11, %v1013_v21  ;;  %vm2350_vm3 = vweird.f32 %v7063_v24  ;;  %vm10503_vm4 = vmor %vm1015_vm10, %vm1016_vm0 }
 0x264   :  { %v2347_v25 = vmul.f32 %v7063_v24, %v2346_v36  ;;  %v3729_v35 = vmul.f32 %v7069_v38, %v10434_v20  ;;  %v7071_v52 = vpop.eup %7070  ;;  %v4127_v58 = vadd.f32 %v3726_v2, %v2743_v29  ;;  %v3739_v47 = vand.u32 2147483648, %v10434_v20  ;;  %vm2351_vm7 = vmor %vm2349_vm12, %vm2350_vm3 }
 0x265   :  { %vm5117_vm5 = vweird.f32 %v10438_v50  ;;  %v10509_v26 = vadd.f32 1.0, %v7067_v63  ;;  %v1018_v13 = vsel %vm10503_vm4, %v10440_v11, %v1014_v14  ;;  %v5113_v48 = vmul.f32 %v7071_v52, %v10438_v50 }
 0x266   :  { %v2348_v10 = vadd.f32 %v7063_v24, %v2347_v25  ;;  %v3730_v62 = vsub.f32 1.0, %v3729_v35  ;;  %v5105_v54 = vsel %vm10517_vm6, %v10428_v59, %v5101_v41  ;;  %vm3734_vm8 = vweird.f32 %v7069_v38  ;;  %v380_v41 = vpop.f32.mrf.mxu0 }
 0x267   :  { %7072 = vrcp.f32 %v10483_v37  ;;  %v3094_v8 = vadd.f32 %v10268_v60, %v3093_v32  ;;  %v1023_v28 = vsel %vm10461_vm11, %v1022_v30, %v1018_v13  ;;  %v5114_v22 = vsub.f32 1.0, %v5113_v48  ;;  %vm3735_vm10 = vmor %vm3733_vm1, %vm3734_vm8 }
 0x268   :  { %v2352_v12 = vsel %vm2351_vm7, %v7063_v24, %v2348_v10  ;;  %v3731_v46 = vmul.f32 %v7069_v38, %v3730_v62  ;;  %v5121_v59 = vand.u32 2147483647, %v10438_v50  ;;  %v5123_v16 = vand.u32 2147483648, %v10438_v50  ;;  %v6449_v10 = vld [vmem:[%s12900_s1 + $0xb8] sm:$0xff] }
 0x269   :  { %v2357_v19 = vsel %vm10472_vm15, %v2356_v27, %v2352_v12  ;;  %7074 = vrcp.f32 %v10509_v26  ;;  %v5110_v9 = vsel %vm10468_vm14, %v10452_v49, %v5105_v54  ;;  %v5115_v1 = vmul.f32 %v7071_v52, %v5114_v22  ;;  %v1714_v54 = vpop.f32.mrf.mxu1  ;;  %5997 = vmatmul.msk.bf16.gmra.mxu1 %vm218_vm2, %v6449_v10 }
 0x26a   :  { %v3732_v31 = vadd.f32 %v7069_v38, %v3731_v46  ;;  %vm5118_vm9 = vweird.f32 %v7071_v52  ;;  %v5511_v44 = vadd.f32 %v5110_v9, %v4127_v58  ;;  %v2744_v34 = vadd.f32 %v2357_v19, %v1023_v28  ;;  %v4482_v46 = vpop.f32.mrf.mxu3 }
 0x26b   :  { %vm3738_vm11 = vcmp.eq.f32.partialorder %v3737_v57, 8.507059e+37  ;;  %v3740_v11 = vor.u32 1.1754944e-38, %v3739_v47  ;;  %v5116_v45 = vadd.f32 %v7071_v52, %v5115_v1  ;;  %v6200_v40 = vmul.f32 -1.442695, %v3094_v8  ;;  %vm5119_vm12 = vmor %vm5117_vm5, %vm5118_vm9  ;;  %v3098_v8 = vpop.f32.mrf.mxu2 }
 0x26c   :  { %v3736_v53 = vsel %vm3735_vm10, %v7069_v38, %v3732_v31  ;;  %v4478_v61 = vadd.f32 %v10268_v60, %v4477_v43  ;;  %v5124_v49 = vor.u32 1.1754944e-38, %v5123_v16  ;;  %v378_v29 = vadd.f32 %v10268_v60, %v377_v17 }
 0x26d   :  { %v10549_v15 = vpop.eup %7072  ;;  %v3741_v24 = vsel %vm3738_vm11, %v3740_v11, %v3736_v53  ;;  %v5120_v3 = vsel %vm5119_vm12, %v7071_v52, %v5116_v45  ;;  %vm5122_vm13 = vcmp.eq.f32.partialorder %v5121_v59, 8.507059e+37  ;;  %7076 = vpow2.f32 %v6200_v40 }
 0x26e   :  { %v4128_v20 = vadd.f32 %v3741_v24, %v2744_v34  ;;  %v1026_v5 = vmul.f32 %v10549_v15, %v10483_v37  ;;  %v5125_v6 = vsel %vm5122_vm13, %v5124_v49, %v5120_v3  ;;  %v6375_v30 = vmul.f32 -1.442695, %v4478_v61 }
 0x26f   :  { %v10556_v33 = vpop.eup %7074  ;;  %v5851_v18 = vmul.f32 -1.442695, %v378_v29  ;;  %v5561_v50 = vmul.f32 0.25, %v5511_v44  ;;  %v1712_v21 = vadd.f32 %v10268_v60, %v1711_v4  ;;  %v3096_v36 = vadd.f32 %v10268_v60, %v3095_v56 }
 0x270   :  { %v5512_v27 = vadd.f32 %v5125_v6, %v4128_v20  ;;  %v1027_v63 = vsub.f32 1.0, %v1026_v5  ;;  %v2360_v2 = vmul.f32 %v10556_v33, %v10509_v26  ;;  %7078 = vpow2.f32 %v6375_v30  ;;  %v382_v30 = vpop.f32.mrf.mxu0 }
 0x271   :  { %v4480_v38 = vadd.f32 %v10268_v60, %v4479_v0  ;;  %7080 = vpow2.f32 %v5851_v18  ;;  %vm1030_vm14 = vweird.f32 %v10483_v37  ;;  %v6026_v42 = vmul.f32 -1.442695, %v1712_v21 }
 0x272   :  { %v5562_v57 = vmul.f32 0.25, %v5512_v27  ;;  %v1028_v32 = vmul.f32 %v10549_v15, %v1027_v63  ;;  %v2361_v51 = vsub.f32 1.0, %v2360_v2  ;;  %v6201_v7 = vmul.f32 -1.442695, %v3096_v36 }
 0x273   :  { %v6376_v14 = vmul.f32 -1.442695, %v4480_v38  ;;  %vm1031_vm15 = vweird.f32 %v10549_v15  ;;  %v381_v43 = vadd.f32 %v10268_v60, %v380_v41  ;;  %v7077_v39 = vpop.eup %7076  ;;  %v1036_v58 = vand.u32 2147483648, %v10483_v37 }
 0x274   :  { %v6564_v25 = vpack.c.bf16 %v5562_v57, %v5561_v50  ;;  %v2362_v35 = vmul.f32 %v10556_v33, %v2361_v51  ;;  %v1029_v52 = vadd.f32 %v10549_v15, %v1028_v32  ;;  %vm2365_vm0 = vweird.f32 %v10556_v33  ;;  %vm10580_vm1 = vmor %vm1030_vm14, %vm1031_vm15 }
 0x275   :  { %7082 = vpow2.f32 %v6026_v42  ;;  %v2370_v47 = vand.u32 2147483648, %v10509_v26  ;;  %v10576_v55 = vadd.f32 1.0, %v7077_v39  ;;  %v1034_v62 = vand.u32 2147483647, %v10483_v37 }
 0x276   :  { %6637 = vst [vmem:[%s12903_s6 + $0x60] sm:$0xff] %v6564_v25   ;;  %v2363_v23 = vadd.f32 %v10556_v33, %v2362_v35  ;;  %7084 = vpow2.f32 %v6201_v7  ;;  %v7079_v13 = vpop.eup %7078  ;;  %vm2364_vm3 = vweird.f32 %v10509_v26  ;;  %v2368_v48 = vand.u32 2147483647, %v10509_v26 }
 0x277   :  { %7086 = vpow2.f32 %v6376_v14  ;;  %v7081_v17 = vpop.eup %7080  ;;  %vm10589_vm4 = vmor %vm2364_vm3, %vm2365_vm0  ;;  %v5852_v12 = vmul.f32 -1.442695, %v381_v43  ;;  %v1033_v37 = vsel %vm10580_vm1, %v10549_v15, %v1029_v52  ;;  %v10600_v22 = vadd.f32 1.0, %v7079_v13 }
 0x278   :  { %7088 = vrcp.f32 %v10576_v55  ;;  %v2367_v26 = vsel %vm10589_vm4, %v10556_v33, %v2363_v23  ;;  %v10602_v19 = vadd.f32 1.0, %v7081_v17  ;;  %v1037_v59 = vor.u32 1.1754944e-38, %v1036_v58  ;;  %v6499_v17 = vld [vmem:[%s12902_s3 + $0xb8] sm:$0xff] }
 0x279   :  { %v2371_v16 = vor.u32 1.1754944e-38, %v2370_v47  ;;  %v1715_v9 = vadd.f32 %v10268_v60, %v1714_v54  ;;  %v3099_v31 = vadd.f32 %v10268_v60, %v3098_v8  ;;  %vm1035_vm5 = vcmp.eq.f32.partialorder %v1034_v62, 8.507059e+37  ;;  %v6474_v62 = vld [vmem:[%s12901_s2 + $0xb8] sm:$0xff]  ;;  %6347 = vmatmul.msk.bf16.gmra.mxu3 %vm218_vm2, %v6499_v17  ;;  %v385_v17 = vpop.f32.mrf.mxu0 }
 0x27a   :  { %vm2369_vm6 = vcmp.eq.f32.partialorder %v2368_v48, 8.507059e+37  ;;  %7090 = vrcp.f32 %v10600_v22  ;;  %v4483_v44 = vadd.f32 %v10268_v60, %v4482_v46  ;;  %v1038_v11 = vsel %vm1035_vm5, %v1037_v59, %v1033_v37  ;;  %6172 = vmatmul.msk.bf16.gmra.mxu2 %vm218_vm2, %v6474_v62 }
 0x27b   :  { %v7083_v1 = vpop.eup %7082  ;;  %v2372_v53 = vsel %vm2369_vm6, %v2371_v16, %v2367_v26  ;;  %v3752_v45 = vand.u32 2147483647, %v10576_v55  ;;  %7092 = vrcp.f32 %v10602_v19  ;;  %v3754_v61 = vand.u32 2147483648, %v10576_v55 }
 0x27c   :  { %v7085_v34 = vpop.eup %7084  ;;  %v10611_v15 = vadd.f32 1.0, %v7083_v1  ;;  %7094 = vpow2.f32 %v5852_v12  ;;  %v6027_v29 = vmul.f32 -1.442695, %v1715_v9  ;;  %v10617_v4 = vmul.f32 -1.442695, %v3099_v31 }
 0x27d   :  { %v7087_v40 = vpop.eup %7086  ;;  %v10613_v24 = vadd.f32 1.0, %v7085_v34  ;;  %vm3748_vm7 = vweird.f32 %v10576_v55  ;;  %v1051_v20 = vand.u32 2147483648, %v10602_v19  ;;  %v10624_v3 = vadd.f32 %v2372_v53, %v1038_v11 }
 0x27e   :  { %v10615_v49 = vpop.eup %7088  ;;  %7096 = vrcp.f32 %v10611_v15  ;;  %v1049_v5 = vand.u32 2147483647, %v10602_v19  ;;  %v10628_v0 = vadd.f32 1.0, %v7087_v40  ;;  %vm10632_vm8 = vcmp.eq.f32.partialorder %v3752_v45, 8.507059e+37 }
 0x27f   :  { %v3744_v56 = vmul.f32 %v10615_v49, %v10576_v55  ;;  %7098 = vrcp.f32 %v10613_v24  ;;  %v3755_v18 = vor.u32 1.1754944e-38, %v3754_v61  ;;  %v5136_v50 = vand.u32 2147483647, %v10600_v22  ;;  %v6424_v55 = vld [vmem:[%s12899_s0 + $0xb8] sm:$0xff] }
 0x280   :  { %v10630_v33 = vpop.eup %7090  ;;  %v10637_v27 = vmul.f32 -1.442695, %v4483_v44  ;;  %vm3749_vm9 = vweird.f32 %v10615_v49  ;;  %v5138_v21 = vand.u32 2147483648, %v10600_v22  ;;  %vm1045_vm10 = vweird.f32 %v10602_v19  ;;  %5822 = vmatmul.msk.bf16.gmra.mxu0 %vm218_vm2, %v6424_v55 }
 0x281   :  { %v3745_v6 = vsub.f32 1.0, %v3744_v56  ;;  %v10639_v63 = vpop.eup %7092  ;;  %v5128_v2 = vmul.f32 %v10630_v33, %v10600_v22  ;;  %vm5132_vm11 = vweird.f32 %v10600_v22  ;;  %v1052_v57 = vor.u32 1.1754944e-38, %v1051_v20  ;;  %vm10663_vm14 = vmor %vm3748_vm7, %vm3749_vm9 }
 0x282   :  { %v7095_v36 = vpop.eup %7094  ;;  %v1041_v41 = vmul.f32 %v10639_v63, %v10602_v19  ;;  %7100 = vpow2.f32 %v6027_v29  ;;  %vm10650_vm12 = vcmp.eq.f32.partialorder %v1049_v5, 8.507059e+37  ;;  %vm2379_vm13 = vweird.f32 %v10611_v15 }
 0x283   :  { %v3746_v38 = vmul.f32 %v10615_v49, %v3745_v6  ;;  %v5129_v32 = vsub.f32 1.0, %v5128_v2  ;;  %v2383_v42 = vand.u32 2147483647, %v10611_v15  ;;  %v2385_v7 = vand.u32 2147483648, %v10611_v15 }
 0x284   :  { %7102 = vrcp.f32 %v10628_v0  ;;  %v7097_v14 = vpop.eup %7096  ;;  %v1042_v43 = vsub.f32 1.0, %v1041_v41  ;;  %vm3763_vm15 = vweird.f32 %v10613_v24  ;;  %v3767_v39 = vand.u32 2147483647, %v10613_v24  ;;  %v1716_v41 = vpop.f32.mrf.mxu1 }
 0x285   :  { %v3747_v25 = vadd.f32 %v10615_v49, %v3746_v38  ;;  %v7099_v52 = vpop.eup %7098  ;;  %v5130_v58 = vmul.f32 %v10630_v33, %v5129_v32  ;;  %v2375_v23 = vmul.f32 %v7097_v14, %v10611_v15  ;;  %v3769_v47 = vand.u32 2147483648, %v10613_v24  ;;  %v3100_v32 = vpop.f32.mrf.mxu2 }
 0x286   :  { %v10672_v13 = vadd.f32 1.0, %v7095_v36  ;;  %v1043_v54 = vmul.f32 %v10639_v63, %v1042_v43  ;;  %vm1046_vm0 = vweird.f32 %v10639_v63  ;;  %v3759_v8 = vmul.f32 %v7099_v52, %v10613_v24 }
 0x287   :  { %v3751_v48 = vsel %vm10663_vm14, %v10615_v49, %v3747_v25  ;;  %vm5133_vm1 = vweird.f32 %v10630_v33  ;;  %v2376_v28 = vsub.f32 1.0, %v2375_v23  ;;  %vm10693_vm3 = vcmp.eq.f32.partialorder %v2383_v42, 8.507059e+37  ;;  %vm1047_vm7 = vmor %vm1045_vm10, %vm1046_vm0 }
 0x288   :  { %v2386_v46 = vor.u32 1.1754944e-38, %v2385_v7  ;;  %v7101_v37 = vpop.eup %7100  ;;  %vm10699_vm4 = vcmp.eq.f32.partialorder %v5136_v50, 8.507059e+37  ;;  %v1044_v59 = vadd.f32 %v10639_v63, %v1043_v54  ;;  %vm2380_vm5 = vweird.f32 %v7097_v14 }
 0x289   :  { %v3760_v16 = vsub.f32 1.0, %v3759_v8  ;;  %vm10704_vm6 = vcmp.eq.f32.partialorder %v3767_v39, 8.507059e+37  ;;  %v3756_v1 = vsel %vm10632_vm8, %v3755_v18, %v3751_v48  ;;  %v5131_v44 = vadd.f32 %v10630_v33, %v5130_v58  ;;  %vm10724_vm8 = vmor %vm5132_vm11, %vm5133_vm1 }
 0x28a   :  { %v7103_v31 = vpop.eup %7102  ;;  %v2377_v34 = vmul.f32 %v7097_v14, %v2376_v28  ;;  %7104 = vrcp.f32 %v10672_v13  ;;  %v1048_v11 = vsel %vm1047_vm7, %v10639_v63, %v1044_v59  ;;  %vm3764_vm9 = vweird.f32 %v7099_v52  ;;  %vm2381_vm10 = vmor %vm2379_vm13, %vm2380_vm5 }
 0x28b   :  { %v3761_v53 = vmul.f32 %v7099_v52, %v3760_v16  ;;  %v5143_v45 = vmul.f32 %v7103_v31, %v10628_v0  ;;  %v3770_v19 = vor.u32 1.1754944e-38, %v3769_v47  ;;  %v5151_v49 = vand.u32 2147483647, %v10628_v0  ;;  %vm3765_vm11 = vmor %vm3763_vm15, %vm3764_vm9  ;;  %v4484_v47 = vpop.f32.mrf.mxu3 }
 0x28c   :  { %v2378_v61 = vadd.f32 %v7097_v14, %v2377_v34  ;;  %v5153_v29 = vand.u32 2147483648, %v10628_v0  ;;  %v4129_v56 = vadd.f32 %v3756_v1, %v10624_v3  ;;  %v1053_v20 = vsel %vm10650_vm12, %v1052_v57, %v1048_v11  ;;  %v1719_v1 = vpop.f32.mrf.mxu1 }
 0x28d   :  { %v3762_v5 = vadd.f32 %v7099_v52, %v3761_v53  ;;  %v5144_v6 = vsub.f32 1.0, %v5143_v45  ;;  %v5135_v18 = vsel %vm10724_vm8, %v10630_v33, %v5131_v44  ;;  %v10742_v3 = vadd.f32 1.0, %v7101_v37 }
 0x28e   :  { %v2382_v50 = vsel %vm2381_vm10, %v7097_v14, %v2378_v61  ;;  %7106 = vpow2.f32 %v10617_v4  ;;  %vm5148_vm12 = vweird.f32 %v7103_v31  ;;  %v5139_v33 = vor.u32 1.1754944e-38, %v5138_v21 }
 0x28f   :  { %v2387_v15 = vsel %vm10693_vm3, %v2386_v46, %v2382_v50  ;;  %v3766_v63 = vsel %vm3765_vm11, %v7099_v52, %v3762_v5  ;;  %v5145_v2 = vmul.f32 %v7103_v31, %v5144_v6  ;;  %7108 = vrcp.f32 %v10742_v3 }
 0x290   :  { %v10747_v36 = vpop.eup %7104  ;;  %v2746_v38 = vadd.f32 %v2387_v15, %v1053_v20  ;;  %v3771_v24 = vsel %vm10704_vm6, %v3770_v19, %v3766_v63  ;;  %vm5147_vm13 = vweird.f32 %v10628_v0  ;;  %vm5152_vm14 = vcmp.eq.f32.partialorder %v5151_v49, 8.507059e+37 }
 0x291   :  { %v5146_v57 = vadd.f32 %v7103_v31, %v5145_v2  ;;  %v1056_v4 = vmul.f32 %v10747_v36, %v10672_v13  ;;  %v5140_v51 = vsel %vm10699_vm4, %v5139_v33, %v5135_v18  ;;  %vm5149_vm15 = vmor %vm5147_vm13, %vm5148_vm12  ;;  %v5154_v21 = vor.u32 1.1754944e-38, %v5153_v29 }
 0x292   :  { %v4130_v22 = vadd.f32 %v3771_v24, %v2746_v38  ;;  %7110 = vpow2.f32 %v10637_v27  ;;  %v5513_v42 = vadd.f32 %v5140_v51, %v4129_v56  ;;  %v383_v25 = vadd.f32 %v10268_v60, %v382_v30  ;;  %v3103_v30 = vpop.f32.mrf.mxu2 }
 0x293   :  { %v5150_v7 = vsel %vm5149_vm15, %v7103_v31, %v5146_v57  ;;  %v1057_v14 = vsub.f32 1.0, %v1056_v4  ;;  %v1717_v43 = vadd.f32 %v10268_v60, %v1716_v41  ;;  %v3101_v39 = vadd.f32 %v10268_v60, %v3100_v32  ;;  %v4487_v2 = vpop.f32.mrf.mxu3 }
 0x294   :  { %v7107_v35 = vpop.eup %7106  ;;  %v5155_v0 = vsel %vm5152_vm14, %v5154_v21, %v5150_v7  ;;  %v1064_v27 = vand.u32 2147483647, %v10672_v13  ;;  %v1066_v10 = vand.u32 2147483648, %v10672_v13  ;;  %v5853_v62 = vmul.f32 -1.442695, %v383_v25 }
 0x295   :  { %v5514_v52 = vadd.f32 %v5155_v0, %v4130_v22  ;;  %v1058_v58 = vmul.f32 %v10747_v36, %v1057_v14  ;;  %v10764_v23 = vadd.f32 1.0, %v7107_v35  ;;  %v10766_v55 = vpop.eup %7108  ;;  %v5563_v48 = vmul.f32 0.25, %v5513_v42 }
 0x296   :  { %vm1061_vm0 = vweird.f32 %v10747_v36  ;;  %v2390_v8 = vmul.f32 %v10766_v55, %v10742_v3  ;;  %v6028_v12 = vmul.f32 -1.442695, %v1717_v43  ;;  %v6203_v46 = vmul.f32 -1.442695, %v3101_v39 }
 0x297   :  { %v5564_v54 = vmul.f32 0.25, %v5514_v52  ;;  %7112 = vrcp.f32 %v10764_v23  ;;  %v4485_v37 = vadd.f32 %v10268_v60, %v4484_v47  ;;  %v1059_v59 = vadd.f32 %v10747_v36, %v1058_v58  ;;  %v1721_v47 = vpop.f32.mrf.mxu1 }
 0x298   :  { %v7111_v28 = vpop.eup %7110  ;;  %v2391_v16 = vsub.f32 1.0, %v2390_v8  ;;  %vm1060_vm1 = vweird.f32 %v10672_v13  ;;  %7114 = vpow2.f32 %v5853_v62  ;;  %v386_v31 = vadd.f32 %v10268_v60, %v385_v17  ;;  %v387_v62 = vpop.f32.mrf.mxu0 }
 0x299   :  { %v6569_v26 = vpack.c.bf16 %v5564_v54, %v5563_v48  ;;  %v10776_v9 = vadd.f32 1.0, %v7111_v28  ;;  %v2398_v34 = vand.u32 2147483647, %v10742_v3  ;;  %v2400_v11 = vand.u32 2147483648, %v10742_v3  ;;  %vm10789_vm3 = vmor %vm1060_vm1, %vm1061_vm0 }
 0x29a   :  { %v2392_v44 = vmul.f32 %v10766_v55, %v2391_v16  ;;  %vm10793_vm4 = vcmp.eq.f32.partialorder %v1064_v27, 8.507059e+37  ;;  %v1067_v45 = vor.u32 1.1754944e-38, %v1066_v10  ;;  %v6378_v40 = vmul.f32 -1.442695, %v4485_v37  ;;  %v6450_v37 = vld [vmem:[%s12900_s1 + $0xc0] sm:$0xff] }
 0x29b   :  { %6638 = vst [vmem:[%s12903_s6 + $0x68] sm:$0xff] %v6569_v26   ;;  %7116 = vrcp.f32 %v10776_v9  ;;  %v1063_v61 = vsel %vm10789_vm3, %v10747_v36, %v1059_v59  ;;  %vm2394_vm5 = vweird.f32 %v10742_v3  ;;  %v1720_v19 = vadd.f32 %v10268_v60, %v1719_v1  ;;  %v10839_v3 = vld [vmem:[%s12898_s5] ss:$0 sm:$0xff]  ;;  %5998 = vmatmul.msk.bf16.gmra.mxu1 %vm218_vm2, %v6450_v37 }
 0x29c   :  { %7118 = vpow2.f32 %v6028_v12  ;;  %v2393_v29 = vadd.f32 %v10766_v55, %v2392_v44  ;;  %vm2395_vm6 = vweird.f32 %v10766_v55  ;;  %v5854_v56 = vmul.f32 -1.442695, %v386_v31  ;;  %v6475_v26 = vld [vmem:[%s12901_s2 + $0xc0] sm:$0xff] }
 0x29d   :  { %7120 = vpow2.f32 %v6203_v46  ;;  %v10802_v49 = vpop.eup %7112  ;;  %vm10806_vm7 = vcmp.eq.f32.partialorder %v2398_v34, 8.507059e+37  ;;  %v2401_v5 = vor.u32 1.1754944e-38, %v2400_v11  ;;  %vm3778_vm9 = vweird.f32 %v10764_v23  ;;  %vm10823_vm8 = vmor %vm2394_vm5, %vm2395_vm6  ;;  %v6425_v46 = vld [vmem:[%s12899_s0 + $0xc0] sm:$0xff]  ;;  %6173 = vmatmul.msk.bf16.gmra.mxu2 %vm218_vm2, %v6475_v26 }
 0x29e   :  { %7122 = vpow2.f32 %v6378_v40  ;;  %v3774_v6 = vmul.f32 %v10802_v49, %v10764_v23  ;;  %v7115_v60 = vpop.eup %7114  ;;  %v1068_v18 = vsel %vm10793_vm4, %v1067_v45, %v1063_v61  ;;  %v3782_v50 = vand.u32 2147483647, %v10764_v23  ;;  %v6500_v1 = vld [vmem:[%s12902_s3 + $0xc0] sm:$0xff]  ;;  %5823 = vmatmul.msk.bf16.gmra.mxu0 %vm218_vm2, %v6425_v46 }
 0x29f   :  { %v3784_v15 = vand.u32 2147483648, %v10764_v23  ;;  %v6029_v63 = vmul.f32 -1.442695, %v1720_v19  ;;  %v5166_v24 = vand.u32 2147483647, %v10776_v9  ;;  %v5168_v41 = vand.u32 2147483648, %v10776_v9  ;;  %6348 = vmatmul.msk.bf16.gmra.mxu3 %vm218_vm2, %v6500_v1 }
 0x2a0   :  { %v3775_v38 = vsub.f32 1.0, %v3774_v6  ;;  %v10829_v57 = vadd.f32 1.0, %v7115_v60  ;;  %v2397_v32 = vsel %vm10823_vm8, %v10766_v55, %v2393_v29  ;;  %7124 = vpow2.f32 %v5854_v56 }
 0x2a1   :  { %v10817_v36 = vpop.eup %7116  ;;  %v3104_v22 = vadd.f32 %v10839_v3, %v3103_v30  ;;  %vm3779_vm10 = vweird.f32 %v10802_v49  ;;  %v4488_v7 = vadd.f32 %v10839_v3, %v4487_v2  ;;  %v2402_v43 = vsel %vm10806_vm7, %v2401_v5, %v2397_v32 }
 0x2a2   :  { %v7119_v4 = vpop.eup %7118  ;;  %v5158_v51 = vmul.f32 %v10817_v36, %v10776_v9  ;;  %v3776_v42 = vmul.f32 %v10802_v49, %v3775_v38  ;;  %7126 = vrcp.f32 %v10829_v57  ;;  %vm10853_vm11 = vcmp.eq.f32.partialorder %v3782_v50, 8.507059e+37  ;;  %vm10859_vm12 = vmor %vm3778_vm9, %vm3779_vm10 }
 0x2a3   :  { %v7121_v21 = vpop.eup %7120  ;;  %v10846_v35 = vadd.f32 1.0, %v7119_v4  ;;  %7128 = vpow2.f32 %v6029_v63  ;;  %v3785_v58 = vor.u32 1.1754944e-38, %v3784_v15  ;;  %v1079_v27 = vand.u32 2147483647, %v10829_v57 }
 0x2a4   :  { %v7123_v14 = vpop.eup %7122  ;;  %v5159_v25 = vsub.f32 1.0, %v5158_v51  ;;  %v10848_v0 = vadd.f32 1.0, %v7121_v21  ;;  %v3777_v39 = vadd.f32 %v10802_v49, %v3776_v42  ;;  %v6204_v10 = vmul.f32 -1.442695, %v3104_v22 }
 0x2a5   :  { %7130 = vrcp.f32 %v10846_v35  ;;  %v1081_v54 = vand.u32 2147483648, %v10829_v57  ;;  %v10871_v23 = vadd.f32 1.0, %v7123_v14  ;;  %vm5162_vm13 = vweird.f32 %v10776_v9 }
 0x2a6   :  { %v5160_v55 = vmul.f32 %v10817_v36, %v5159_v25  ;;  %v3781_v48 = vsel %vm10859_vm12, %v10802_v49, %v3777_v39  ;;  %7132 = vrcp.f32 %v10848_v0  ;;  %v7125_v8 = vpop.eup %7124  ;;  %vm10874_vm14 = vcmp.eq.f32.partialorder %v5166_v24, 8.507059e+37 }
 0x2a7   :  { %v5169_v28 = vor.u32 1.1754944e-38, %v5168_v41  ;;  %v10878_v12 = vmul.f32 -1.442695, %v4488_v7  ;;  %v2747_v16 = vadd.f32 %v2402_v43, %v1068_v18  ;;  %vm5163_vm15 = vweird.f32 %v10817_v36 }
 0x2a8   :  { %v7127_v59 = vpop.eup %7126  ;;  %vm1075_vm0 = vweird.f32 %v10829_v57  ;;  %v10892_v31 = vadd.f32 %v10839_v3, %v387_v62  ;;  %v3786_v34 = vsel %vm10853_vm11, %v3785_v58, %v3781_v48  ;;  %v5161_v11 = vadd.f32 %v10817_v36, %v5160_v55  ;;  %vm10919_vm5 = vmor %vm5162_vm13, %vm5163_vm15 }
 0x2a9   :  { %v7129_v44 = vpop.eup %7128  ;;  %v1071_v13 = vmul.f32 %v7127_v59, %v10829_v57  ;;  %7134 = vpow2.f32 %v6204_v10  ;;  %vm10903_vm1 = vcmp.eq.f32.partialorder %v1079_v27, 8.507059e+37  ;;  %v1082_v45 = vor.u32 1.1754944e-38, %v1081_v54 }
 0x2aa   :  { %vm2409_vm3 = vweird.f32 %v10846_v35  ;;  %v2413_v40 = vand.u32 2147483647, %v10846_v35  ;;  %7136 = vrcp.f32 %v10871_v23  ;;  %v2415_v49 = vand.u32 2147483648, %v10846_v35 }
 0x2ab   :  { %v7131_v61 = vpop.eup %7130  ;;  %v1072_v19 = vsub.f32 1.0, %v1071_v13  ;;  %vm3793_vm4 = vweird.f32 %v10848_v0  ;;  %v3797_v29 = vand.u32 2147483647, %v10848_v0  ;;  %v4131_v20 = vadd.f32 %v3786_v34, %v2747_v16 }
 0x2ac   :  { %v7133_v56 = vpop.eup %7132  ;;  %v2405_v6 = vmul.f32 %v7131_v61, %v10846_v35  ;;  %v10924_v30 = vadd.f32 1.0, %v7125_v8  ;;  %v10926_v60 = vadd.f32 1.0, %v7129_v44  ;;  %v5165_v18 = vsel %vm10919_vm5, %v10817_v36, %v5161_v11 }
 0x2ad   :  { %v1073_v50 = vmul.f32 %v7127_v59, %v1072_v19  ;;  %vm1076_vm2 = vweird.f32 %v7127_v59  ;;  %v3789_v15 = vmul.f32 %v7133_v56, %v10848_v0  ;;  %vm10932_vm6 = vcmp.eq.f32.partialorder %v2413_v40, 8.507059e+37 }
 0x2ae   :  { %v2406_v63 = vsub.f32 1.0, %v2405_v6  ;;  %v3799_v2 = vand.u32 2147483648, %v10848_v0  ;;  %7138 = vrcp.f32 %v10924_v30  ;;  %v2416_v24 = vor.u32 1.1754944e-38, %v2415_v49  ;;  %vm1077_vm9 = vmor %vm1075_vm0, %vm1076_vm2 }
 0x2af   :  { %v7135_v33 = vpop.eup %7134  ;;  %v1074_v38 = vadd.f32 %v7127_v59, %v1073_v50  ;;  %v3790_v41 = vsub.f32 1.0, %v3789_v15  ;;  %vm10938_vm7 = vcmp.eq.f32.partialorder %v3797_v29, 8.507059e+37  ;;  %v5170_v32 = vsel %vm10874_vm14, %v5169_v28, %v5165_v18 }
 0x2b0   :  { %v7137_v36 = vpop.eup %7136  ;;  %v2407_v51 = vmul.f32 %v7131_v61, %v2406_v63  ;;  %vm2410_vm8 = vweird.f32 %v7131_v61  ;;  %7140 = vrcp.f32 %v10926_v60  ;;  %vm3794_vm10 = vweird.f32 %v7133_v56 }
 0x2b1   :  { %v1078_v22 = vsel %vm1077_vm9, %v7127_v59, %v1074_v38  ;;  %v3791_v21 = vmul.f32 %v7133_v56, %v3790_v41  ;;  %v5173_v42 = vmul.f32 %v7137_v36, %v10871_v23  ;;  %v5515_v7 = vadd.f32 %v5170_v32, %v4131_v20  ;;  %vm2411_vm11 = vmor %vm2409_vm3, %vm2410_vm8 }
 0x2b2   :  { %v2408_v14 = vadd.f32 %v7131_v61, %v2407_v51  ;;  %v3800_v25 = vor.u32 1.1754944e-38, %v3799_v2  ;;  %v5181_v43 = vand.u32 2147483647, %v10871_v23  ;;  %v1083_v39 = vsel %vm10903_vm1, %v1082_v45, %v1078_v22  ;;  %vm3795_vm12 = vmor %vm3793_vm4, %vm3794_vm10  ;;  %v4489_v45 = vpop.f32.mrf.mxu3 }
 0x2b3   :  { %v3792_v57 = vadd.f32 %v7133_v56, %v3791_v21  ;;  %v5174_v52 = vsub.f32 1.0, %v5173_v42  ;;  %v5183_v58 = vand.u32 2147483648, %v10871_v23  ;;  %vm5178_vm13 = vweird.f32 %v7137_v36 }
 0x2b4   :  { %v10954_v55 = vpop.eup %7138  ;;  %v2412_v27 = vsel %vm2411_vm11, %v7131_v61, %v2408_v14  ;;  %v10958_v10 = vadd.f32 1.0, %v7135_v33  ;;  %7142 = vpow2.f32 %v10878_v12  ;;  %v5855_v28 = vmul.f32 -1.442695, %v10892_v31  ;;  %v3105_v31 = vpop.f32.mrf.mxu2 }
 0x2b5   :  { %v2417_v35 = vsel %vm10932_vm6, %v2416_v24, %v2412_v27  ;;  %v3796_v62 = vsel %vm3795_vm12, %v7133_v56, %v3792_v57  ;;  %v5175_v48 = vmul.f32 %v7137_v36, %v5174_v52  ;;  %v1086_v54 = vmul.f32 %v10954_v55, %v10924_v30  ;;  %v390_v33 = vpop.f32.mrf.mxu0 }
 0x2b6   :  { %v10965_v8 = vpop.eup %7140  ;;  %v2748_v17 = vadd.f32 %v2417_v35, %v1083_v39  ;;  %v3801_v0 = vsel %vm10938_vm7, %v3800_v25, %v3796_v62  ;;  %v1722_v46 = vadd.f32 %v10839_v3, %v1721_v47  ;;  %vm5177_vm14 = vweird.f32 %v10871_v23 }
 0x2b7   :  { %v5176_v37 = vadd.f32 %v7137_v36, %v5175_v48  ;;  %v1087_v12 = vsub.f32 1.0, %v1086_v54  ;;  %v2420_v26 = vmul.f32 %v10965_v8, %v10926_v60  ;;  %vm5179_vm15 = vmor %vm5177_vm14, %vm5178_vm13  ;;  %v5184_v16 = vor.u32 1.1754944e-38, %v5183_v58 }
 0x2b8   :  { %v4132_v59 = vadd.f32 %v3801_v0, %v2748_v17  ;;  %7144 = vrcp.f32 %v10958_v10  ;;  %v5565_v1 = vmul.f32 0.25, %v5515_v7  ;;  %vm5182_vm0 = vcmp.eq.f32.partialorder %v5181_v43, 8.507059e+37  ;;  %v1724_v7 = vpop.f32.mrf.mxu1 }
 0x2b9   :  { %v5180_v44 = vsel %vm5179_vm15, %v7137_v36, %v5176_v37  ;;  %v2421_v34 = vsub.f32 1.0, %v2420_v26  ;;  %v1088_v53 = vmul.f32 %v10954_v55, %v1087_v12  ;;  %7146 = vpow2.f32 %v5855_v28 }
 0x2ba   :  { %v7143_v11 = vpop.eup %7142  ;;  %v5185_v13 = vsel %vm5182_vm0, %v5184_v16, %v5180_v44  ;;  %v6030_v23 = vmul.f32 -1.442695, %v1722_v46  ;;  %vm1090_vm1 = vweird.f32 %v10924_v30  ;;  %v1094_v61 = vand.u32 2147483647, %v10924_v30 }
 0x2bb   :  { %v5516_v40 = vadd.f32 %v5185_v13, %v4132_v59  ;;  %v2422_v19 = vmul.f32 %v10965_v8, %v2421_v34  ;;  %v1096_v49 = vand.u32 2147483648, %v10924_v30  ;;  %v10981_v29 = vadd.f32 1.0, %v7143_v11 }
 0x2bc   :  { %7148 = vpow2.f32 %v6030_v23  ;;  %v3106_v56 = vadd.f32 %v10839_v3, %v3105_v31  ;;  %vm2424_vm3 = vweird.f32 %v10926_v60  ;;  %v2428_v5 = vand.u32 2147483647, %v10926_v60  ;;  %v3108_v54 = vpop.f32.mrf.mxu2 }
 0x2bd   :  { %v5566_v20 = vmul.f32 0.25, %v5516_v40  ;;  %v4490_v6 = vadd.f32 %v10839_v3, %v4489_v45  ;;  %v1089_v50 = vadd.f32 %v10954_v55, %v1088_v53  ;;  %vm1091_vm4 = vweird.f32 %v10954_v55 }
 0x2be   :  { %v10987_v18 = vpop.eup %7144  ;;  %v2430_v15 = vand.u32 2147483648, %v10926_v60  ;;  %7150 = vrcp.f32 %v10981_v29  ;;  %v2423_v9 = vadd.f32 %v10965_v8, %v2422_v19  ;;  %vm2425_vm5 = vweird.f32 %v10965_v8  ;;  %vm11007_vm6 = vmor %vm1090_vm1, %vm1091_vm4 }
 0x2bf   :  { %v6574_v63 = vpack.c.bf16 %v5566_v20, %v5565_v1  ;;  %v3804_v2 = vmul.f32 %v10987_v18, %v10958_v10  ;;  %v7147_v38 = vpop.eup %7146  ;;  %vm10997_vm2 = vcmp.eq.f32.partialorder %v1094_v61, 8.507059e+37  ;;  %v1097_v41 = vor.u32 1.1754944e-38, %v1096_v49  ;;  %vm11024_vm9 = vmor %vm2424_vm3, %vm2425_vm5 }
 0x2c0   :  { %v3812_v4 = vand.u32 2147483647, %v10958_v10  ;;  %v6205_v36 = vmul.f32 -1.442695, %v3106_v56  ;;  %vm11011_vm7 = vcmp.eq.f32.partialorder %v2428_v5, 8.507059e+37  ;;  %v11015_v21 = vadd.f32 1.0, %v7147_v38  ;;  %v1726_v1 = vpop.f32.mrf.mxu1 }
 0x2c1   :  { %6639 = vst [vmem:[%s12903_s6 + $0x70] sm:$0xff] %v6574_v63   ;;  %v3805_v22 = vsub.f32 1.0, %v3804_v2  ;;  %v6380_v42 = vmul.f32 -1.442695, %v4490_v6  ;;  %v1093_v25 = vsel %vm11007_vm6, %v10954_v55, %v1089_v50  ;;  %v2431_v43 = vor.u32 1.1754944e-38, %v2430_v15 }
 0x2c2   :  { %v7149_v14 = vpop.eup %7148  ;;  %7152 = vpow2.f32 %v6205_v36  ;;  %v391_v39 = vadd.f32 %v10839_v3, %v390_v33  ;;  %v2427_v57 = vsel %vm11024_vm9, %v10965_v8, %v2423_v9  ;;  %v3814_v58 = vand.u32 2147483648, %v10958_v10 }
 0x2c3   :  { %v3806_v52 = vmul.f32 %v10987_v18, %v3805_v22  ;;  %7154 = vrcp.f32 %v11015_v21  ;;  %v11037_v60 = vadd.f32 1.0, %v7149_v14  ;;  %v1725_v27 = vadd.f32 %v10839_v3, %v1724_v7 }
 0x2c4   :  { %v11035_v47 = vpop.eup %7150  ;;  %7156 = vpow2.f32 %v6380_v42  ;;  %v5856_v55 = vmul.f32 -1.442695, %v391_v39  ;;  %v1098_v35 = vsel %vm10997_vm2, %v1097_v41, %v1093_v25  ;;  %vm3808_vm8 = vweird.f32 %v10958_v10  ;;  %v4492_v39 = vpop.f32.mrf.mxu3 }
 0x2c5   :  { %vm11043_vm10 = vcmp.eq.f32.partialorder %v3812_v4, 8.507059e+37  ;;  %v5188_v48 = vmul.f32 %v11035_v47, %v10981_v29  ;;  %v3807_v8 = vadd.f32 %v10987_v18, %v3806_v52  ;;  %vm3809_vm11 = vweird.f32 %v10987_v18 }
 0x2c6   :  { %v5196_v17 = vand.u32 2147483647, %v10981_v29  ;;  %7158 = vrcp.f32 %v11037_v60  ;;  %v2432_v0 = vsel %vm11011_vm7, %v2431_v43, %v2427_v57  ;;  %v5198_v46 = vand.u32 2147483648, %v10981_v29  ;;  %vm11062_vm13 = vmor %vm3808_vm8, %vm3809_vm11 }
 0x2c7   :  { %v5189_v28 = vsub.f32 1.0, %v5188_v48  ;;  %7160 = vpow2.f32 %v5856_v55  ;;  %v3815_v12 = vor.u32 1.1754944e-38, %v3814_v58  ;;  %vm5192_vm12 = vweird.f32 %v10981_v29 }
 0x2c8   :  { %v7153_v37 = vpop.eup %7152  ;;  %v6031_v26 = vmul.f32 -1.442695, %v1725_v27  ;;  %v3109_v59 = vadd.f32 %v10839_v3, %v3108_v54  ;;  %v1109_v34 = vand.u32 2147483647, %v11015_v21  ;;  %v1111_v31 = vand.u32 2147483648, %v11015_v21 }
 0x2c9   :  { %v11058_v16 = vpop.eup %7154  ;;  %v5190_v44 = vmul.f32 %v11035_v47, %v5189_v28  ;;  %v11069_v11 = vadd.f32 1.0, %v7153_v37  ;;  %v2749_v53 = vadd.f32 %v2432_v0, %v1098_v35  ;;  %v3811_v23 = vsel %vm11062_vm13, %v10987_v18, %v3807_v8  ;;  %v392_v37 = vpop.f32.mrf.mxu0 }
 0x2ca   :  { %v7157_v13 = vpop.eup %7156  ;;  %vm11074_vm14 = vcmp.eq.f32.partialorder %v5196_v17, 8.507059e+37  ;;  %v1101_v45 = vmul.f32 %v11058_v16, %v11015_v21  ;;  %7162 = vpow2.f32 %v6031_v26  ;;  %v5199_v40 = vor.u32 1.1754944e-38, %v5198_v46 }
 0x2cb   :  { %vm1105_vm15 = vweird.f32 %v11015_v21  ;;  %7164 = vrcp.f32 %v11069_v11  ;;  %v6206_v61 = vmul.f32 -1.442695, %v3109_v59  ;;  %v5191_v49 = vadd.f32 %v11035_v47, %v5190_v44 }
 0x2cc   :  { %v7159_v19 = vpop.eup %7158  ;;  %vm5193_vm0 = vweird.f32 %v11035_v47  ;;  %v1102_v56 = vsub.f32 1.0, %v1101_v45  ;;  %v11084_v20 = vadd.f32 1.0, %v7157_v13  ;;  %v3816_v6 = vsel %vm11043_vm10, %v3815_v12, %v3811_v23 }
 0x2cd   :  { %v7161_v5 = vpop.eup %7160  ;;  %vm11088_vm1 = vcmp.eq.f32.partialorder %v1109_v34, 8.507059e+37  ;;  %v1112_v50 = vor.u32 1.1754944e-38, %v1111_v31  ;;  %v2435_v15 = vmul.f32 %v7159_v19, %v11037_v60  ;;  %v2443_v9 = vand.u32 2147483647, %v11037_v60  ;;  %vm11099_vm3 = vmor %vm5192_vm12, %vm5193_vm0 }
 0x2ce   :  { %v1103_v63 = vmul.f32 %v11058_v16, %v1102_v56  ;;  %v2445_v2 = vand.u32 2147483648, %v11037_v60  ;;  %7166 = vrcp.f32 %v11084_v20  ;;  %vm1106_vm4 = vweird.f32 %v11058_v16 }
 0x2cf   :  { %v2436_v38 = vsub.f32 1.0, %v2435_v15  ;;  %vm2439_vm5 = vweird.f32 %v11037_v60  ;;  %7168 = vpow2.f32 %v6206_v61  ;;  %v4133_v41 = vadd.f32 %v3816_v6, %v2749_v53  ;;  %vm11116_vm6 = vmor %vm1105_vm15, %vm1106_vm4  ;;  %v4494_v15 = vpop.f32.mrf.mxu3 }
 0x2d0   :  { %v7163_v24 = vpop.eup %7162  ;;  %v5195_v4 = vsel %vm11099_vm3, %v11035_v47, %v5191_v49  ;;  %v1104_v36 = vadd.f32 %v11058_v16, %v1103_v63  ;;  %v11109_v32 = vadd.f32 1.0, %v7161_v5  ;;  %vm2440_vm2 = vweird.f32 %v7159_v19 }
 0x2d1   :  { %v7165_v29 = vpop.eup %7164  ;;  %v2437_v51 = vmul.f32 %v7159_v19, %v2436_v38  ;;  %v3827_v22 = vand.u32 2147483647, %v11069_v11  ;;  %v11112_v42 = vadd.f32 1.0, %v7163_v24  ;;  %vm11120_vm7 = vcmp.eq.f32.partialorder %v2443_v9, 8.507059e+37  ;;  %vm2441_vm9 = vmor %vm2439_vm5, %vm2440_vm2 }
 0x2d2   :  { %v2446_v25 = vor.u32 1.1754944e-38, %v2445_v2  ;;  %v3819_v30 = vmul.f32 %v7165_v29, %v11069_v11  ;;  %v3829_v43 = vand.u32 2147483648, %v11069_v11  ;;  %v5200_v57 = vsel %vm11074_vm14, %v5199_v40, %v5195_v4 }
 0x2d3   :  { %v1108_v21 = vsel %vm11116_vm6, %v11058_v16, %v1104_v36  ;;  %v2438_v52 = vadd.f32 %v7159_v19, %v2437_v51  ;;  %7170 = vrcp.f32 %v11109_v32  ;;  %v5517_v47 = vadd.f32 %v5200_v57, %v4133_v41 }
 0x2d4   :  { %v7167_v58 = vpop.eup %7166  ;;  %v3820_v55 = vsub.f32 1.0, %v3819_v30  ;;  %vm3823_vm8 = vweird.f32 %v11069_v11  ;;  %7172 = vrcp.f32 %v11112_v42  ;;  %vm11137_vm10 = vcmp.eq.f32.partialorder %v3827_v22, 8.507059e+37 }
 0x2d5   :  { %v7169_v27 = vpop.eup %7168  ;;  %v2442_v35 = vsel %vm2441_vm9, %v7159_v19, %v2438_v52  ;;  %v5203_v48 = vmul.f32 %v7167_v58, %v11084_v20  ;;  %v4493_v54 = vadd.f32 %v10839_v3, %v4492_v39  ;;  %v1113_v8 = vsel %vm11088_vm1, %v1112_v50, %v1108_v21  ;;  %v3110_v50 = vpop.f32.mrf.mxu2 }
 0x2d6   :  { %v2447_v60 = vsel %vm11120_vm7, %v2446_v25, %v2442_v35  ;;  %v3821_v17 = vmul.f32 %v7165_v29, %v3820_v55  ;;  %vm3824_vm11 = vweird.f32 %v7165_v29  ;;  %v3830_v0 = vor.u32 1.1754944e-38, %v3829_v43  ;;  %v395_v25 = vpop.f32.mrf.mxu0  ;;  %v1729_v39 = vpop.f32.mrf.mxu1 }
 0x2d7   :  { %v5204_v28 = vsub.f32 1.0, %v5203_v48  ;;  %vm5207_vm12 = vweird.f32 %v11084_v20  ;;  %v5211_v46 = vand.u32 2147483647, %v11084_v20  ;;  %v11149_v12 = vmul.f32 0.25, %v5517_v47  ;;  %vm3825_vm13 = vmor %vm3823_vm8, %vm3824_vm11 }
 0x2d8   :  { %v3822_v26 = vadd.f32 %v7165_v29, %v3821_v17  ;;  %v5213_v59 = vand.u32 2147483648, %v11084_v20  ;;  %v11152_v16 = vadd.f32 1.0, %v7169_v27  ;;  %v2750_v34 = vadd.f32 %v2447_v60, %v1113_v8 }
 0x2d9   :  { %v11154_v44 = vpop.eup %7170  ;;  %v5205_v31 = vmul.f32 %v7167_v58, %v5204_v28  ;;  %vm5208_vm14 = vweird.f32 %v7167_v58  ;;  %v6381_v13 = vmul.f32 -1.442695, %v4493_v54  ;;  %v393_v45 = vadd.f32 %v10839_v3, %v392_v37 }
 0x2da   :  { %v11158_v53 = vpop.eup %7172  ;;  %v3826_v23 = vsel %vm3825_vm13, %v7165_v29, %v3822_v26  ;;  %v1116_v10 = vmul.f32 %v11154_v44, %v11109_v32  ;;  %7174 = vrcp.f32 %v11152_v16  ;;  %v1727_v19 = vadd.f32 %v10839_v3, %v1726_v1  ;;  %vm5209_vm15 = vmor %vm5207_vm12, %vm5208_vm14 }
 0x2db   :  { %v3831_v40 = vsel %vm11137_vm10, %v3830_v0, %v3826_v23  ;;  %v5206_v61 = vadd.f32 %v7167_v58, %v5205_v31  ;;  %v2450_v11 = vmul.f32 %v11158_v53, %v11112_v42  ;;  %vm5212_vm0 = vcmp.eq.f32.partialorder %v5211_v46, 8.507059e+37 }
 0x2dc   :  { %v4134_v49 = vadd.f32 %v3831_v40, %v2750_v34  ;;  %v5214_v56 = vor.u32 1.1754944e-38, %v5213_v59  ;;  %v1117_v5 = vsub.f32 1.0, %v1116_v10  ;;  %vm1120_vm1 = vweird.f32 %v11109_v32 }
 0x2dd   :  { %v5210_v6 = vsel %vm5209_vm15, %v7167_v58, %v5206_v61  ;;  %v2451_v18 = vsub.f32 1.0, %v2450_v11  ;;  %7176 = vpow2.f32 %v6381_v13  ;;  %v1124_v9 = vand.u32 2147483647, %v11109_v32 }
 0x2de   :  { %v5215_v63 = vsel %vm5212_vm0, %v5214_v56, %v5210_v6  ;;  %v1126_v2 = vand.u32 2147483648, %v11109_v32  ;;  %v5857_v33 = vmul.f32 -1.442695, %v393_v45  ;;  %v1118_v20 = vmul.f32 %v11154_v44, %v1117_v5  ;;  %v4497_v6 = vpop.f32.mrf.mxu3 }
 0x2df   :  { %v5518_v38 = vadd.f32 %v5215_v63, %v4134_v49  ;;  %vm2454_vm3 = vweird.f32 %v11112_v42  ;;  %v6032_v24 = vmul.f32 -1.442695, %v1727_v19  ;;  %v2452_v4 = vmul.f32 %v11158_v53, %v2451_v18  ;;  %v3113_v19 = vpop.f32.mrf.mxu2 }
 0x2e0   :  { %v11176_v41 = vpop.eup %7174  ;;  %7178 = vpow2.f32 %v5857_v33  ;;  %v3111_v36 = vadd.f32 %v10839_v3, %v3110_v50  ;;  %v4495_v29 = vadd.f32 %v10839_v3, %v4494_v15  ;;  %v2458_v22 = vand.u32 2147483647, %v11112_v42 }
 0x2e1   :  { %v5568_v51 = vmul.f32 0.25, %v5518_v38  ;;  %v2460_v7 = vand.u32 2147483648, %v11112_v42  ;;  %v3834_v14 = vmul.f32 %v11176_v41, %v11152_v16  ;;  %vm1121_vm4 = vweird.f32 %v11154_v44 }
 0x2e2   :  { %7180 = vpow2.f32 %v6032_v24  ;;  %v6207_v30 = vmul.f32 -1.442695, %v3111_v36  ;;  %v6382_v43 = vmul.f32 -1.442695, %v4495_v29  ;;  %v1119_v52 = vadd.f32 %v11154_v44, %v1118_v20  ;;  %vm11203_vm2 = vmor %vm1120_vm1, %vm1121_vm4 }
 0x2e3   :  { %v7177_v57 = vpop.eup %7176  ;;  %v6579_v21 = vpack.c.bf16 %v5568_v51, %v11149_v12  ;;  %vm2455_vm5 = vweird.f32 %v11158_v53  ;;  %v3835_v58 = vsub.f32 1.0, %v3834_v14  ;;  %v2453_v47 = vadd.f32 %v11158_v53, %v2452_v4 }
 0x2e4   :  { %v11190_v55 = vadd.f32 1.0, %v7177_v57  ;;  %7182 = vpow2.f32 %v6207_v30  ;;  %v396_v27 = vadd.f32 %v10839_v3, %v395_v25  ;;  %v3844_v62 = vand.u32 2147483648, %v11152_v16  ;;  %vm11217_vm9 = vmor %vm2454_vm3, %vm2455_vm5 }
 0x2e5   :  { %6640 = vst [vmem:[%s12903_s6 + $0x78] sm:$0xff] %v6579_v21   ;;  %v3836_v35 = vmul.f32 %v11176_v41, %v3835_v58  ;;  %7184 = vpow2.f32 %v6382_v43  ;;  %v1730_v48 = vadd.f32 %v10839_v3, %v1729_v39  ;;  %vm11207_vm6 = vcmp.eq.f32.partialorder %v1124_v9, 8.507059e+37 }
 0x2e6   :  { %v7179_v54 = vpop.eup %7178  ;;  %v1127_v17 = vor.u32 1.1754944e-38, %v1126_v2  ;;  %vm3839_vm7 = vweird.f32 %v11176_v41  ;;  %7186 = vrcp.f32 %v11190_v55  ;;  %v5858_v46 = vmul.f32 -1.442695, %v396_v27 }
 0x2e7   :  { %v3837_v32 = vadd.f32 %v11176_v41, %v3836_v35  ;;  %v11222_v28 = vadd.f32 1.0, %v7179_v54  ;;  %v6033_v37 = vmul.f32 -1.442695, %v1730_v48  ;;  %v1123_v26 = vsel %vm11203_vm2, %v11154_v44, %v1119_v52 }
 0x2e8   :  { %v7181_v12 = vpop.eup %7180  ;;  %v2457_v59 = vsel %vm11217_vm9, %v11158_v53, %v2453_v47  ;;  %vm3838_vm8 = vweird.f32 %v11152_v16  ;;  %v3842_v42 = vand.u32 2147483647, %v11152_v16  ;;  %vm2459_vm10 = vcmp.eq.f32.partialorder %v2458_v22, 8.507059e+37 }
 0x2e9   :  { %v2461_v1 = vor.u32 1.1754944e-38, %v2460_v7  ;;  %vm11232_vm11 = vmor %vm3838_vm8, %vm3839_vm7  ;;  %v3845_v31 = vor.u32 1.1754944e-38, %v3844_v62  ;;  %7188 = vrcp.f32 %v11222_v28  ;;  %v5228_v53 = vand.u32 2147483648, %v11190_v55 }
 0x2ea   :  { %v7183_v13 = vpop.eup %7182  ;;  %v3841_v44 = vsel %vm11232_vm11, %v11176_v41, %v3837_v32  ;;  %v11241_v23 = vadd.f32 1.0, %v7181_v12  ;;  %7190 = vpow2.f32 %v5858_v46  ;;  %v1128_v10 = vsel %vm11207_vm6, %v1127_v17, %v1123_v26 }
 0x2eb   :  { %v7185_v16 = vpop.eup %7184  ;;  %v2462_v45 = vsel %vm2459_vm10, %v2461_v1, %v2457_v59  ;;  %v11245_v40 = vadd.f32 1.0, %v7183_v13  ;;  %7192 = vpow2.f32 %v6033_v37  ;;  %vm3843_vm12 = vcmp.eq.f32.partialorder %v3842_v42, 8.507059e+37 }
 0x2ec   :  { %v11247_v61 = vpop.eup %7186  ;;  %v1139_v11 = vand.u32 2147483647, %v11222_v28  ;;  %7194 = vrcp.f32 %v11241_v23  ;;  %v3846_v49 = vsel %vm3843_vm12, %v3845_v31, %v3841_v44  ;;  %v1141_v5 = vand.u32 2147483648, %v11222_v28 }
 0x2ed   :  { %v5218_v56 = vmul.f32 %v11247_v61, %v11190_v55  ;;  %7196 = vrcp.f32 %v11245_v40  ;;  %v2751_v18 = vadd.f32 %v2462_v45, %v1128_v10  ;;  %v5226_v50 = vand.u32 2147483647, %v11190_v55  ;;  %v397_v10 = vpop.f32.mrf.mxu0 }
 0x2ee   :  { %v11256_v15 = vor.u32 1.1754944e-38, %v5228_v53  ;;  %v2473_v2 = vand.u32 2147483647, %v11241_v23  ;;  %v11259_v33 = vadd.f32 1.0, %v7185_v16  ;;  %v3114_v38 = vadd.f32 %v10839_v3, %v3113_v19 }
 0x2ef   :  { %v7189_v63 = vpop.eup %7188  ;;  %v5219_v9 = vsub.f32 1.0, %v5218_v56  ;;  %v11262_v24 = vadd.f32 %v3846_v49, %v2751_v18  ;;  %vm5222_vm13 = vweird.f32 %v11190_v55  ;;  %vm1135_vm14 = vweird.f32 %v11222_v28  ;;  %v1731_v49 = vpop.f32.mrf.mxu1 }
 0x2f0   :  { %v7191_v20 = vpop.eup %7190  ;;  %v1131_v41 = vmul.f32 %v7189_v63, %v11222_v28  ;;  %v11268_v4 = vadd.f32 %v10839_v3, %v4497_v6  ;;  %vm11270_vm15 = vcmp.eq.f32.partialorder %v1139_v11, 8.507059e+37  ;;  %v1142_v51 = vor.u32 1.1754944e-38, %v1141_v5 }
 0x2f1   :  { %v7193_v36 = vpop.eup %7192  ;;  %vm2469_vm0 = vweird.f32 %v11241_v23  ;;  %v2475_v22 = vand.u32 2147483648, %v11241_v23  ;;  %7198 = vrcp.f32 %v11259_v33  ;;  %vm5223_vm1 = vweird.f32 %v11247_v61 }
 0x2f2   :  { %v7195_v7 = vpop.eup %7194  ;;  %v1132_v14 = vsub.f32 1.0, %v1131_v41  ;;  %v3857_v25 = vand.u32 2147483647, %v11245_v40  ;;  %v11279_v30 = vadd.f32 1.0, %v7191_v20  ;;  %v5220_v39 = vmul.f32 %v11247_v61, %v5219_v9  ;;  %vm11310_vm10 = vmor %vm5222_vm13, %vm5223_vm1 }
 0x2f3   :  { %v7197_v43 = vpop.eup %7196  ;;  %v2465_v57 = vmul.f32 %v7195_v7, %v11241_v23  ;;  %vm11283_vm3 = vcmp.eq.f32.partialorder %v2473_v2, 8.507059e+37  ;;  %v11287_v52 = vadd.f32 1.0, %v7193_v36  ;;  %vm1136_vm4 = vweird.f32 %v7189_v63  ;;  %v3115_v2 = vpop.f32.mrf.mxu2 }
 0x2f4   :  { %v1133_v58 = vmul.f32 %v7189_v63, %v1132_v14  ;;  %v3849_v47 = vmul.f32 %v7197_v43, %v11245_v40  ;;  %vm3853_vm5 = vweird.f32 %v11245_v40  ;;  %vm11291_vm2 = vcmp.eq.f32.partialorder %v5226_v50, 8.507059e+37  ;;  %vm1137_vm7 = vmor %vm1135_vm14, %vm1136_vm4 }
 0x2f5   :  { %v2466_v35 = vsub.f32 1.0, %v2465_v57  ;;  %v2476_v62 = vor.u32 1.1754944e-38, %v2475_v22  ;;  %v3859_v48 = vand.u32 2147483648, %v11245_v40  ;;  %7200 = vrcp.f32 %v11279_v30 }
 0x2f6   :  { %v1134_v54 = vadd.f32 %v7189_v63, %v1133_v58  ;;  %v3850_v8 = vsub.f32 1.0, %v3849_v47  ;;  %vm11297_vm6 = vcmp.eq.f32.partialorder %v3857_v25, 8.507059e+37  ;;  %v6208_v17 = vmul.f32 -1.442695, %v3114_v38 }
 0x2f7   :  { %v7199_v0 = vpop.eup %7198  ;;  %v5221_v32 = vadd.f32 %v11247_v61, %v5220_v39  ;;  %v2467_v46 = vmul.f32 %v7195_v7, %v2466_v35  ;;  %vm2470_vm9 = vweird.f32 %v7195_v7  ;;  %7202 = vrcp.f32 %v11287_v52 }
 0x2f8   :  { %v1138_v37 = vsel %vm1137_vm7, %v7189_v63, %v1134_v54  ;;  %v3851_v12 = vmul.f32 %v7197_v43, %v3850_v8  ;;  %vm3854_vm8 = vweird.f32 %v7197_v43  ;;  %v5233_v26 = vmul.f32 %v7199_v0, %v11259_v33  ;;  %vm2471_vm11 = vmor %vm2469_vm0, %vm2470_vm9 }
 0x2f9   :  { %v2468_v42 = vadd.f32 %v7195_v7, %v2467_v46  ;;  %v3860_v28 = vor.u32 1.1754944e-38, %v3859_v48  ;;  %v5241_v1 = vand.u32 2147483647, %v11259_v33  ;;  %v5243_v34 = vand.u32 2147483648, %v11259_v33  ;;  %vm3855_vm13 = vmor %vm3853_vm5, %vm3854_vm8  ;;  %v400_v48 = vpop.f32.mrf.mxu0 }
 0x2fa   :  { %v1143_v31 = vsel %vm11270_vm15, %v1142_v51, %v1138_v37  ;;  %v3852_v13 = vadd.f32 %v7197_v43, %v3851_v12  ;;  %v5234_v44 = vsub.f32 1.0, %v5233_v26  ;;  %vm5237_vm12 = vweird.f32 %v11259_v33  ;;  %v11385_v26 = vld [vmem:[%s12898_s5] ss:$0 sm:$0xff] }
 0x2fb   :  { %v11321_v55 = vpop.eup %7200  ;;  %v5225_v53 = vsel %vm11310_vm10, %v11247_v61, %v5221_v32  ;;  %v2472_v16 = vsel %vm2471_vm11, %v7195_v7, %v2468_v42  ;;  %vm5238_vm14 = vweird.f32 %v7199_v0  ;;  %7204 = vpow2.f32 %v6208_v17  ;;  %v4499_v7 = vpop.f32.mrf.mxu3 }
 0x2fc   :  { %v2477_v23 = vsel %vm11283_vm3, %v2476_v62, %v2472_v16  ;;  %v3856_v45 = vsel %vm3855_vm13, %v7197_v43, %v3852_v13  ;;  %v5235_v11 = vmul.f32 %v7199_v0, %v5234_v44  ;;  %v1146_v19 = vmul.f32 %v11321_v55, %v11279_v30  ;;  %vm5239_vm0 = vmor %vm5237_vm12, %vm5238_vm14  ;;  %v1734_v17 = vpop.f32.mrf.mxu1 }
 0x2fd   :  { %v11333_v56 = vpop.eup %7202  ;;  %v2752_v61 = vadd.f32 %v2477_v23, %v1143_v31  ;;  %v3861_v5 = vsel %vm11297_vm6, %v3860_v28, %v3856_v45  ;;  %vm11337_vm15 = vcmp.eq.f32.partialorder %v5241_v1, 8.507059e+37  ;;  %v5244_v6 = vor.u32 1.1754944e-38, %v5243_v34 }
 0x2fe   :  { %v5230_v18 = vsel %vm11291_vm2, %v11256_v15, %v5225_v53  ;;  %v5236_v50 = vadd.f32 %v7199_v0, %v5235_v11  ;;  %v1147_v63 = vsub.f32 1.0, %v1146_v19  ;;  %v2480_v9 = vmul.f32 %v11333_v56, %v11287_v52  ;;  %v3118_v11 = vpop.f32.mrf.mxu2 }
 0x2ff   :  { %v5519_v38 = vadd.f32 %v5230_v18, %v11262_v24  ;;  %v4136_v20 = vadd.f32 %v3861_v5, %v2752_v61  ;;  %v6383_v41 = vmul.f32 -1.442695, %v11268_v4  ;;  %v398_v36 = vadd.f32 %v10839_v3, %v397_v10 }
 0x300   :  { %v5240_v29 = vsel %vm5239_vm0, %v7199_v0, %v5236_v50  ;;  %v1148_v15 = vmul.f32 %v11321_v55, %v1147_v63  ;;  %v2481_v51 = vsub.f32 1.0, %v2480_v9  ;;  %v1732_v22 = vadd.f32 %v10839_v3, %v1731_v49 }
 0x301   :  { %v7205_v14 = vpop.eup %7204  ;;  %v5245_v24 = vsel %vm11337_vm15, %v5244_v6, %v5240_v29  ;;  %7206 = vpow2.f32 %v6383_v41  ;;  %v5859_v25 = vmul.f32 -1.442695, %v398_v36  ;;  %v3116_v33 = vadd.f32 %v10839_v3, %v3115_v2 }
 0x302   :  { %v5520_v43 = vadd.f32 %v5245_v24, %v4136_v20  ;;  %v2482_v4 = vmul.f32 %v11333_v56, %v2481_v51  ;;  %v11358_v39 = vadd.f32 1.0, %v7205_v14  ;;  %v6034_v57 = vmul.f32 -1.442695, %v1732_v22  ;;  %v402_v20 = vpop.f32.mrf.mxu0 }
 0x303   :  { %7208 = vpow2.f32 %v5859_v25  ;;  %v6209_v21 = vmul.f32 -1.442695, %v3116_v33  ;;  %v4500_v58 = vadd.f32 %v10839_v3, %v4499_v7  ;;  %v5569_v47 = vmul.f32 0.25, %v5519_v38  ;;  %v4502_v38 = vpop.f32.mrf.mxu3 }
 0x304   :  { %v5570_v27 = vmul.f32 0.25, %v5520_v43  ;;  %7210 = vrcp.f32 %v11358_v39  ;;  %v1149_v35 = vadd.f32 %v11321_v55, %v1148_v15  ;;  %vm1150_vm1 = vweird.f32 %v11279_v30 }
 0x305   :  { %vm1151_vm3 = vweird.f32 %v11321_v55  ;;  %v1154_v62 = vand.u32 2147483647, %v11279_v30  ;;  %v1156_v8 = vand.u32 2147483648, %v11279_v30  ;;  %7212 = vpow2.f32 %v6034_v57 }
 0x306   :  { %v6584_v54 = vpack.c.bf16 %v5570_v27, %v5569_v47  ;;  %v6384_v60 = vmul.f32 -1.442695, %v4500_v58  ;;  %v2483_v0 = vadd.f32 %v11333_v56, %v2482_v4  ;;  %vm2485_vm4 = vweird.f32 %v11333_v56  ;;  %vm11375_vm5 = vmor %vm1150_vm1, %vm1151_vm3 }
 0x307   :  { %v7207_v3 = vpop.eup %7206  ;;  %v2488_v32 = vand.u32 2147483647, %v11287_v52  ;;  %7214 = vpow2.f32 %v6209_v21  ;;  %v2490_v37 = vand.u32 2147483648, %v11287_v52  ;;  %v401_v59 = vadd.f32 %v11385_v26, %v400_v48 }
 0x308   :  { %6641 = vst [vmem:[%s12903_s6 + $0x80] sm:$0xff] %v6584_v54   ;;  %v11380_v12 = vadd.f32 1.0, %v7207_v3  ;;  %7216 = vpow2.f32 %v6384_v60  ;;  %v1153_v30 = vsel %vm11375_vm5, %v11321_v55, %v1149_v35  ;;  %vm1155_vm2 = vcmp.eq.f32.partialorder %v1154_v62, 8.507059e+37 }
 0x309   :  { %v7209_v42 = vpop.eup %7208  ;;  %vm2484_vm6 = vweird.f32 %v11287_v52  ;;  %v1735_v28 = vadd.f32 %v11385_v26, %v1734_v17  ;;  %v1157_v34 = vor.u32 1.1754944e-38, %v1156_v8  ;;  %v3872_v13 = vand.u32 2147483647, %v11358_v39 }
 0x30a   :  { %v11393_v1 = vpop.eup %7210  ;;  %vm11397_vm7 = vmor %vm2484_vm6, %vm2485_vm4  ;;  %v3874_v44 = vand.u32 2147483648, %v11358_v39  ;;  %7218 = vrcp.f32 %v11380_v12  ;;  %v11409_v53 = vadd.f32 1.0, %v7209_v42  ;;  %v5860_v16 = vmul.f32 -1.442695, %v401_v59 }
 0x30b   :  { %v2487_v52 = vsel %vm11397_vm7, %v11333_v56, %v2483_v0  ;;  %v3864_v55 = vmul.f32 %v11393_v1, %v11358_v39  ;;  %v7213_v10 = vpop.eup %7212  ;;  %v1158_v23 = vsel %vm1155_vm2, %v1157_v34, %v1153_v30  ;;  %vm2489_vm9 = vcmp.eq.f32.partialorder %v2488_v32, 8.507059e+37 }
 0x30c   :  { %v2491_v45 = vor.u32 1.1754944e-38, %v2490_v37  ;;  %vm3868_vm8 = vweird.f32 %v11358_v39  ;;  %7220 = vrcp.f32 %v11409_v53  ;;  %v6035_v61 = vmul.f32 -1.442695, %v1735_v28 }
 0x30d   :  { %v7215_v19 = vpop.eup %7214  ;;  %v3865_v49 = vsub.f32 1.0, %v3864_v55  ;;  %v11413_v40 = vadd.f32 1.0, %v7213_v10  ;;  %7222 = vpow2.f32 %v5860_v16  ;;  %vm11418_vm10 = vcmp.eq.f32.partialorder %v3872_v13, 8.507059e+37 }
 0x30e   :  { %v7217_v5 = vpop.eup %7216  ;;  %v2492_v56 = vsel %vm2489_vm9, %v2491_v45, %v2487_v52  ;;  %v11415_v6 = vadd.f32 1.0, %v7215_v19  ;;  %v3875_v63 = vor.u32 1.1754944e-38, %v3874_v44  ;;  %v5258_v9 = vand.u32 2147483648, %v11380_v12 }
 0x30f   :  { %v3866_v18 = vmul.f32 %v11393_v1, %v3865_v49  ;;  %v3119_v2 = vadd.f32 %v11385_v26, %v3118_v11  ;;  %vm3869_vm11 = vweird.f32 %v11393_v1  ;;  %v1169_v36 = vand.u32 2147483647, %v11409_v53 }
 0x310   :  { %v11424_v41 = vpop.eup %7218  ;;  %v1171_v29 = vand.u32 2147483648, %v11409_v53  ;;  %7224 = vrcp.f32 %v11413_v40  ;;  %v11433_v22 = vadd.f32 1.0, %v7217_v5  ;;  %v2753_v7 = vadd.f32 %v2492_v56, %v1158_v23  ;;  %vm11449_vm12 = vmor %vm3868_vm8, %vm3869_vm11 }
 0x311   :  { %v3867_v15 = vadd.f32 %v11393_v1, %v3866_v18  ;;  %v5248_v51 = vmul.f32 %v11424_v41, %v11380_v12  ;;  %7226 = vpow2.f32 %v6035_v61  ;;  %v11437_v14 = vadd.f32 %v11385_v26, %v4502_v38 }
 0x312   :  { %7228 = vrcp.f32 %v11415_v6  ;;  %v11440_v24 = vadd.f32 %v11385_v26, %v402_v20  ;;  %v7221_v25 = vpop.eup %7220  ;;  %v5256_v43 = vand.u32 2147483647, %v11380_v12  ;;  %v2503_v4 = vand.u32 2147483647, %v11413_v40 }
 0x313   :  { %v5249_v33 = vsub.f32 1.0, %v5248_v51  ;;  %v2505_v57 = vand.u32 2147483648, %v11413_v40  ;;  %v7223_v21 = vpop.eup %7222  ;;  %vm5252_vm13 = vweird.f32 %v11380_v12  ;;  %v11454_v47 = vor.u32 1.1754944e-38, %v5258_v9 }
 0x314   :  { %v1161_v27 = vmul.f32 %v7221_v25, %v11409_v53  ;;  %vm1165_vm14 = vweird.f32 %v11409_v53  ;;  %v6210_v35 = vmul.f32 -1.442695, %v3119_v2  ;;  %v3871_v62 = vsel %vm11449_vm12, %v11393_v1, %v3867_v15  ;;  %v1736_v15 = vpop.f32.mrf.mxu1 }
 0x315   :  { %vm11461_vm15 = vcmp.eq.f32.partialorder %v1169_v36, 8.507059e+37  ;;  %v1172_v39 = vor.u32 1.1754944e-38, %v1171_v29  ;;  %v3887_v54 = vand.u32 2147483647, %v11415_v6  ;;  %7230 = vrcp.f32 %v11433_v22 }
 0x316   :  { %v7225_v8 = vpop.eup %7224  ;;  %v5250_v60 = vmul.f32 %v11424_v41, %v5249_v33  ;;  %vm5253_vm0 = vweird.f32 %v11424_v41  ;;  %v1162_v17 = vsub.f32 1.0, %v1161_v27  ;;  %vm2499_vm1 = vweird.f32 %v11413_v40 }
 0x317   :  { %v7227_v3 = vpop.eup %7226  ;;  %v2495_v0 = vmul.f32 %v7225_v8, %v11413_v40  ;;  %vm11471_vm3 = vcmp.eq.f32.partialorder %v2503_v4, 8.507059e+37  ;;  %v2506_v46 = vor.u32 1.1754944e-38, %v2505_v57  ;;  %vm3883_vm4 = vweird.f32 %v11415_v6  ;;  %vm11509_vm8 = vmor %vm5252_vm13, %vm5253_vm0  ;;  %v4504_v4 = vpop.f32.mrf.mxu3 }
 0x318   :  { %v11476_v37 = vadd.f32 1.0, %v7223_v21  ;;  %v7229_v59 = vpop.eup %7228  ;;  %v3876_v42 = vsel %vm11418_vm10, %v3875_v63, %v3871_v62  ;;  %vm11480_vm5 = vcmp.eq.f32.partialorder %v5256_v43, 8.507059e+37  ;;  %v1163_v28 = vmul.f32 %v7221_v25, %v1162_v17  ;;  %v3120_v43 = vpop.f32.mrf.mxu2 }
 0x319   :  { %vm1166_vm2 = vweird.f32 %v7221_v25  ;;  %v3889_v1 = vand.u32 2147483648, %v11415_v6  ;;  %v2496_v34 = vsub.f32 1.0, %v2495_v0  ;;  %v3879_v31 = vmul.f32 %v7229_v59, %v11415_v6 }
 0x31a   :  { %vm11486_vm6 = vcmp.eq.f32.partialorder %v3887_v54, 8.507059e+37  ;;  %v5271_v44 = vand.u32 2147483647, %v11433_v22  ;;  %v5251_v52 = vadd.f32 %v11424_v41, %v5250_v60  ;;  %v1164_v55 = vadd.f32 %v7221_v25, %v1163_v28  ;;  %vm11497_vm7 = vmor %vm1165_vm14, %vm1166_vm2 }
 0x31b   :  { %7232 = vrcp.f32 %v11476_v37  ;;  %v11493_v16 = vadd.f32 1.0, %v7227_v3  ;;  %v7231_v10 = vpop.eup %7230  ;;  %v2497_v45 = vmul.f32 %v7225_v8, %v2496_v34  ;;  %vm2500_vm9 = vweird.f32 %v7225_v8  ;;  %v405_v34 = vpop.f32.mrf.mxu0 }
 0x31c   :  { %v3880_v11 = vsub.f32 1.0, %v3879_v31  ;;  %v5273_v19 = vand.u32 2147483648, %v11433_v22  ;;  %v4137_v49 = vadd.f32 %v3876_v42, %v2753_v7  ;;  %v1168_v61 = vsel %vm11497_vm7, %v7221_v25, %v1164_v55  ;;  %vm2501_vm12 = vmor %vm2499_vm1, %vm2500_vm9 }
 0x31d   :  { %v3890_v5 = vor.u32 1.1754944e-38, %v3889_v1  ;;  %v5263_v56 = vmul.f32 %v7231_v10, %v11433_v22  ;;  %v2498_v18 = vadd.f32 %v7225_v8, %v2497_v45  ;;  %vm3884_vm10 = vweird.f32 %v7229_v59 }
 0x31e   :  { %v3881_v50 = vmul.f32 %v7229_v59, %v3880_v11  ;;  %vm5267_vm11 = vweird.f32 %v11433_v22  ;;  %v5255_v63 = vsel %vm11509_vm8, %v11424_v41, %v5251_v52  ;;  %v1173_v9 = vsel %vm11461_vm15, %v1172_v39, %v1168_v61  ;;  %vm3885_vm14 = vmor %vm3883_vm4, %vm3884_vm10  ;;  %v1739_v11 = vpop.f32.mrf.mxu1 }
 0x31f   :  { %v5264_v12 = vsub.f32 1.0, %v5263_v56  ;;  %7234 = vrcp.f32 %v11493_v16  ;;  %v2502_v2 = vsel %vm2501_vm12, %v7225_v8, %v2498_v18  ;;  %vm11522_vm13 = vcmp.eq.f32.partialorder %v5271_v44, 8.507059e+37 }
 0x320   :  { %v3882_v38 = vadd.f32 %v7229_v59, %v3881_v50  ;;  %v5274_v36 = vor.u32 1.1754944e-38, %v5273_v19  ;;  %v2507_v41 = vsel %vm11471_vm3, %v2506_v46, %v2502_v2  ;;  %vm5268_vm15 = vweird.f32 %v7231_v10 }
 0x321   :  { %v11526_v29 = vpop.eup %7232  ;;  %v5265_v40 = vmul.f32 %v7231_v10, %v5264_v12  ;;  %7236 = vpow2.f32 %v6210_v35  ;;  %v5260_v51 = vsel %vm11480_vm5, %v11454_v47, %v5255_v63  ;;  %v2754_v7 = vadd.f32 %v2507_v41, %v1173_v9  ;;  %vm5269_vm0 = vmor %vm5267_vm11, %vm5268_vm15 }
 0x322   :  { %v3886_v25 = vsel %vm3885_vm14, %v7229_v59, %v3882_v38  ;;  %v1176_v33 = vmul.f32 %v11526_v29, %v11476_v37  ;;  %v5521_v57 = vadd.f32 %v5260_v51, %v4137_v49  ;;  %v1184_v58 = vand.u32 2147483647, %v11476_v37  ;;  %v4507_v51 = vpop.f32.mrf.mxu3 }
 0x323   :  { %v3891_v6 = vsel %vm11486_vm6, %v3890_v5, %v3886_v25  ;;  %v5266_v21 = vadd.f32 %v7231_v10, %v5265_v40  ;;  %v6385_v47 = vmul.f32 -1.442695, %v11437_v14  ;;  %v5861_v62 = vmul.f32 -1.442695, %v11440_v24 }
 0x324   :  { %v4138_v27 = vadd.f32 %v3891_v6, %v2754_v7  ;;  %v1177_v35 = vsub.f32 1.0, %v1176_v33  ;;  %v1737_v54 = vadd.f32 %v11385_v26, %v1736_v15  ;;  %v3121_v8 = vadd.f32 %v11385_v26, %v3120_v43 }
 0x325   :  { %v7235_v48 = vpop.eup %7234  ;;  %v5270_v39 = vsel %vm5269_vm0, %v7231_v10, %v5266_v21  ;;  %v4505_v60 = vadd.f32 %v11385_v26, %v4504_v4  ;;  %v1186_v22 = vand.u32 2147483648, %v11476_v37  ;;  %v5571_v32 = vmul.f32 0.25, %v5521_v57 }
 0x326   :  { %v5275_v17 = vsel %vm11522_vm13, %v5274_v36, %v5270_v39  ;;  %v1178_v3 = vmul.f32 %v11526_v29, %v1177_v35  ;;  %v2510_v0 = vmul.f32 %v7235_v48, %v11493_v16  ;;  %7238 = vpow2.f32 %v6385_v47 }
 0x327   :  { %v7237_v14 = vpop.eup %7236  ;;  %v5522_v24 = vadd.f32 %v5275_v17, %v4138_v27  ;;  %v6036_v46 = vmul.f32 -1.442695, %v1737_v54  ;;  %7240 = vpow2.f32 %v5861_v62  ;;  %v6211_v30 = vmul.f32 -1.442695, %v3121_v8 }
 0x328   :  { %v2511_v59 = vsub.f32 1.0, %v2510_v0  ;;  %v11552_v42 = vadd.f32 1.0, %v7237_v14  ;;  %vm1181_vm1 = vweird.f32 %v11526_v29  ;;  %v6386_v1 = vmul.f32 -1.442695, %v4505_v60 }
 0x329   :  { %v5572_v28 = vmul.f32 0.25, %v5522_v24  ;;  %7242 = vpow2.f32 %v6036_v46  ;;  %v1179_v31 = vadd.f32 %v11526_v29, %v1178_v3  ;;  %vm2515_vm3 = vweird.f32 %v7235_v48 }
 0x32a   :  { %v2512_v13 = vmul.f32 %v7235_v48, %v2511_v59  ;;  %7244 = vrcp.f32 %v11552_v42  ;;  %vm1180_vm4 = vweird.f32 %v11476_v37  ;;  %v2518_v52 = vand.u32 2147483647, %v11493_v16 }
 0x32b   :  { %v6589_v44 = vpack.c.bf16 %v5572_v28, %v5571_v32  ;;  %v2520_v55 = vand.u32 2147483648, %v11493_v16  ;;  %vm11560_vm5 = vmor %vm1180_vm4, %vm1181_vm1  ;;  %vm2514_vm2 = vweird.f32 %v11493_v16  ;;  %7246 = vpow2.f32 %v6211_v30  ;;  %v3123_v16 = vpop.f32.mrf.mxu2 }
 0x32c   :  { %v2513_v23 = vadd.f32 %v7235_v48, %v2512_v13  ;;  %v406_v45 = vadd.f32 %v11385_v26, %v405_v34  ;;  %v7239_v19 = vpop.eup %7238  ;;  %vm11569_vm6 = vcmp.eq.f32.partialorder %v1184_v58, 8.507059e+37  ;;  %v1187_v49 = vor.u32 1.1754944e-38, %v1186_v22  ;;  %vm11574_vm7 = vmor %vm2514_vm2, %vm2515_vm3 }
 0x32d   :  { %6642 = vst [vmem:[%s12903_s6 + $0x88] sm:$0xff] %v6589_v44   ;;  %7248 = vpow2.f32 %v6386_v1  ;;  %v7241_v5 = vpop.eup %7240  ;;  %v1183_v56 = vsel %vm11560_vm5, %v11526_v29, %v1179_v31  ;;  %v3904_v18 = vand.u32 2147483648, %v11552_v42  ;;  %v11584_v50 = vadd.f32 1.0, %v7239_v19 }
 0x32e   :  { %v2517_v53 = vsel %vm11574_vm7, %v7235_v48, %v2513_v23  ;;  %vm2519_vm9 = vcmp.eq.f32.partialorder %v2518_v52, 8.507059e+37  ;;  %v2521_v9 = vor.u32 1.1754944e-38, %v2520_v55  ;;  %v11586_v12 = vadd.f32 1.0, %v7241_v5 }
 0x32f   :  { %v7243_v63 = vpop.eup %7242  ;;  %v1740_v2 = vadd.f32 %v11385_v26, %v1739_v11  ;;  %v3902_v20 = vand.u32 2147483647, %v11552_v42  ;;  %7250 = vrcp.f32 %v11584_v50  ;;  %v5862_v36 = vmul.f32 -1.442695, %v406_v45 }
 0x330   :  { %v11589_v38 = vpop.eup %7244  ;;  %v3124_v29 = vadd.f32 %v11385_v26, %v3123_v16  ;;  %v1188_v41 = vsel %vm11569_vm6, %v1187_v49, %v1183_v56  ;;  %v2522_v40 = vsel %vm2519_vm9, %v2521_v9, %v2517_v53  ;;  %7252 = vrcp.f32 %v11586_v12 }
 0x331   :  { %v3894_v15 = vmul.f32 %v11589_v38, %v11552_v42  ;;  %v7247_v7 = vpop.eup %7246  ;;  %vm3898_vm8 = vweird.f32 %v11552_v42  ;;  %v3905_v25 = vor.u32 1.1754944e-38, %v3904_v18  ;;  %v11600_v4 = vadd.f32 1.0, %v7243_v63 }
 0x332   :  { %v11602_v57 = vadd.f32 1.0, %v7247_v7  ;;  %v6037_v6 = vmul.f32 -1.442695, %v1740_v2  ;;  %v11604_v21 = vadd.f32 %v2522_v40, %v1188_v41  ;;  %vm11606_vm10 = vcmp.eq.f32.partialorder %v3902_v20, 8.507059e+37 }
 0x333   :  { %v7249_v33 = vpop.eup %7248  ;;  %v3895_v43 = vsub.f32 1.0, %v3894_v15  ;;  %7254 = vpow2.f32 %v5862_v36  ;;  %v6212_v27 = vmul.f32 -1.442695, %v3124_v29  ;;  %v11611_v35 = vadd.f32 %v11385_v26, %v4507_v51 }
 0x334   :  { %v5288_v62 = vand.u32 2147483648, %v11584_v50  ;;  %7256 = vrcp.f32 %v11600_v4  ;;  %v11616_v48 = vadd.f32 1.0, %v7249_v33  ;;  %vm3899_vm11 = vweird.f32 %v11589_v38 }
 0x335   :  { %v3896_v47 = vmul.f32 %v11589_v38, %v3895_v43  ;;  %v11618_v39 = vpop.eup %7250  ;;  %v1199_v54 = vand.u32 2147483647, %v11586_v12  ;;  %v1201_v8 = vand.u32 2147483648, %v11586_v12  ;;  %7258 = vrcp.f32 %v11602_v57  ;;  %vm11637_vm13 = vmor %vm3898_vm8, %vm3899_vm11 }
 0x336   :  { %v11624_v60 = vpop.eup %7252  ;;  %v5278_v3 = vmul.f32 %v11618_v39, %v11584_v50  ;;  %v5286_v22 = vand.u32 2147483647, %v11584_v50  ;;  %7260 = vpow2.f32 %v6037_v6  ;;  %vm1195_vm12 = vweird.f32 %v11586_v12 }
 0x337   :  { %v3897_v17 = vadd.f32 %v11589_v38, %v3896_v47  ;;  %v1191_v0 = vmul.f32 %v11624_v60, %v11586_v12  ;;  %v2533_v14 = vand.u32 2147483647, %v11600_v4  ;;  %v2535_v32 = vand.u32 2147483648, %v11600_v4 }
 0x338   :  { %v5279_v46 = vsub.f32 1.0, %v5278_v3  ;;  %vm5282_vm14 = vweird.f32 %v11584_v50  ;;  %v11642_v59 = vor.u32 1.1754944e-38, %v5288_v62  ;;  %v3917_v30 = vand.u32 2147483647, %v11602_v57 }
 0x339   :  { %7262 = vrcp.f32 %v11616_v48  ;;  %v7255_v28 = vpop.eup %7254  ;;  %v3901_v1 = vsel %vm11637_vm13, %v11589_v38, %v3897_v17  ;;  %v1192_v34 = vsub.f32 1.0, %v1191_v0  ;;  %vm11649_vm15 = vcmp.eq.f32.partialorder %v1199_v54, 8.507059e+37  ;;  %v1741_v54 = vpop.f32.mrf.mxu1 }
 0x33a   :  { %v1202_v31 = vor.u32 1.1754944e-38, %v1201_v8  ;;  %v7257_v13 = vpop.eup %7256  ;;  %v5280_v44 = vmul.f32 %v11618_v39, %v5279_v46  ;;  %vm5283_vm0 = vweird.f32 %v11618_v39  ;;  %vm2529_vm1 = vweird.f32 %v11600_v4 }
 0x33b   :  { %vm3913_vm3 = vweird.f32 %v11602_v57  ;;  %v7259_v52 = vpop.eup %7258  ;;  %v1193_v55 = vmul.f32 %v11624_v60, %v1192_v34  ;;  %vm1196_vm4 = vweird.f32 %v11624_v60  ;;  %v2525_v10 = vmul.f32 %v7257_v13, %v11600_v4  ;;  %v3125_v34 = vpop.f32.mrf.mxu2 }
 0x33c   :  { %vm11660_vm5 = vcmp.eq.f32.partialorder %v2533_v14, 8.507059e+37  ;;  %v2536_v45 = vor.u32 1.1754944e-38, %v2535_v32  ;;  %v7261_v11 = vpop.eup %7260  ;;  %v3906_v19 = vsel %vm11606_vm10, %v3905_v25, %v3901_v1  ;;  %vm11666_vm2 = vcmp.eq.f32.partialorder %v5286_v22, 8.507059e+37  ;;  %vm11685_vm7 = vmor %vm1195_vm12, %vm1196_vm4 }
 0x33d   :  { %v3909_v49 = vmul.f32 %v7259_v52, %v11602_v57  ;;  %vm11671_vm6 = vcmp.eq.f32.partialorder %v3917_v30, 8.507059e+37  ;;  %v3919_v16 = vand.u32 2147483648, %v11602_v57  ;;  %v1194_v5 = vadd.f32 %v11624_v60, %v1193_v55  ;;  %vm11700_vm10 = vmor %vm5282_vm14, %vm5283_vm0 }
 0x33e   :  { %v2526_v56 = vsub.f32 1.0, %v2525_v10  ;;  %v5301_v53 = vand.u32 2147483647, %v11616_v48  ;;  %v11678_v18 = vadd.f32 1.0, %v7255_v28  ;;  %v5281_v9 = vadd.f32 %v11618_v39, %v5280_v44 }
 0x33f   :  { %v7263_v63 = vpop.eup %7262  ;;  %vm2530_vm9 = vweird.f32 %v7257_v13  ;;  %v3910_v38 = vsub.f32 1.0, %v3909_v49  ;;  %7264 = vpow2.f32 %v6212_v27  ;;  %v1198_v20 = vsel %vm11685_vm7, %v11624_v60, %v1194_v5 }
 0x340   :  { %v2527_v36 = vmul.f32 %v7257_v13, %v2526_v56  ;;  %v5293_v29 = vmul.f32 %v7263_v63, %v11616_v48  ;;  %v11693_v41 = vadd.f32 1.0, %v7261_v11  ;;  %v4139_v40 = vadd.f32 %v3906_v19, %v11604_v21  ;;  %vm2531_vm11 = vmor %vm2529_vm1, %vm2530_vm9 }
 0x341   :  { %v3911_v15 = vmul.f32 %v7259_v52, %v3910_v38  ;;  %vm3914_vm8 = vweird.f32 %v7259_v52  ;;  %v3920_v12 = vor.u32 1.1754944e-38, %v3919_v16  ;;  %v5303_v33 = vand.u32 2147483648, %v11616_v48 }
 0x342   :  { %v2528_v7 = vadd.f32 %v7257_v13, %v2527_v36  ;;  %v5294_v25 = vsub.f32 1.0, %v5293_v29  ;;  %7266 = vrcp.f32 %v11678_v18  ;;  %v5285_v43 = vsel %vm11700_vm10, %v11618_v39, %v5281_v9  ;;  %vm3915_vm12 = vmor %vm3913_vm3, %vm3914_vm8 }
 0x343   :  { %v1203_v6 = vsel %vm11649_vm15, %v1202_v31, %v1198_v20  ;;  %v3912_v50 = vadd.f32 %v7259_v52, %v3911_v15  ;;  %v6387_v21 = vmul.f32 -1.442695, %v11611_v35  ;;  %vm5298_vm13 = vweird.f32 %v7263_v63  ;;  %v407_v35 = vpop.f32.mrf.mxu0 }
 0x344   :  { %v2532_v58 = vsel %vm2531_vm11, %v7257_v13, %v2528_v7  ;;  %v5295_v27 = vmul.f32 %v7263_v63, %v5294_v25  ;;  %7268 = vrcp.f32 %v11693_v41  ;;  %vm5297_vm14 = vweird.f32 %v11616_v48 }
 0x345   :  { %v7265_v47 = vpop.eup %7264  ;;  %v2537_v62 = vsel %vm11660_vm5, %v2536_v45, %v2532_v58  ;;  %v3916_v39 = vsel %vm3915_vm12, %v7259_v52, %v3912_v50  ;;  %vm11721_vm15 = vcmp.eq.f32.partialorder %v5301_v53, 8.507059e+37  ;;  %v5290_v57 = vsel %vm11666_vm2, %v11642_v59, %v5285_v43  ;;  %vm5299_vm0 = vmor %vm5297_vm14, %vm5298_vm13  ;;  %v4509_v45 = vpop.f32.mrf.mxu3 }
 0x346   :  { %v2756_v8 = vadd.f32 %v2537_v62, %v1203_v6  ;;  %v3921_v60 = vsel %vm11671_vm6, %v3920_v12, %v3916_v39  ;;  %v5296_v17 = vadd.f32 %v7263_v63, %v5295_v27  ;;  %v5523_v3 = vadd.f32 %v5290_v57, %v4139_v40  ;;  %v1744_v58 = vpop.f32.mrf.mxu1 }
 0x347   :  { %v5304_v22 = vor.u32 1.1754944e-38, %v5303_v33  ;;  %v11730_v0 = vadd.f32 1.0, %v7265_v47  ;;  %7270 = vpow2.f32 %v6387_v21  ;;  %v408_v24 = vadd.f32 %v11385_v26, %v407_v35 }
 0x348   :  { %v11732_v48 = vpop.eup %7266  ;;  %v4140_v14 = vadd.f32 %v3921_v60, %v2756_v8  ;;  %v5300_v32 = vsel %vm5299_vm0, %v7263_v63, %v5296_v17  ;;  %v1742_v46 = vadd.f32 %v11385_v26, %v1741_v54  ;;  %v5573_v42 = vmul.f32 0.25, %v5523_v3  ;;  %v3128_v17 = vpop.f32.mrf.mxu2 }
 0x349   :  { %v5305_v59 = vsel %vm11721_vm15, %v5304_v22, %v5300_v32  ;;  %v1206_v30 = vmul.f32 %v11732_v48, %v11678_v18  ;;  %7272 = vrcp.f32 %v11730_v0  ;;  %v1214_v13 = vand.u32 2147483647, %v11678_v18 }
 0x34a   :  { %v11740_v28 = vpop.eup %7268  ;;  %v5524_v1 = vadd.f32 %v5305_v59, %v4140_v14  ;;  %v1216_v55 = vand.u32 2147483648, %v11678_v18  ;;  %v5863_v10 = vmul.f32 -1.442695, %v408_v24  ;;  %v6038_v23 = vmul.f32 -1.442695, %v1742_v46 }
 0x34b   :  { %v1207_v31 = vsub.f32 1.0, %v1206_v30  ;;  %v2540_v44 = vmul.f32 %v11740_v28, %v11693_v41  ;;  %v2548_v49 = vand.u32 2147483647, %v11693_v41  ;;  %v3126_v61 = vadd.f32 %v11385_v26, %v3125_v34  ;;  %v410_v29 = vpop.f32.mrf.mxu0 }
 0x34c   :  { %v5574_v52 = vmul.f32 0.25, %v5524_v1  ;;  %v2550_v5 = vand.u32 2147483648, %v11693_v41  ;;  %7274 = vpow2.f32 %v5863_v10  ;;  %v4510_v9 = vadd.f32 %v11385_v26, %v4509_v45 }
 0x34d   :  { %v7271_v11 = vpop.eup %7270  ;;  %v1208_v19 = vmul.f32 %v11732_v48, %v1207_v31  ;;  %v2541_v37 = vsub.f32 1.0, %v2540_v44  ;;  %7276 = vpow2.f32 %v6038_v23  ;;  %v6213_v63 = vmul.f32 -1.442695, %v3126_v61  ;;  %v4512_v32 = vpop.f32.mrf.mxu3 }
 0x34e   :  { %v6594_v16 = vpack.c.bf16 %v5574_v52, %v5573_v42  ;;  %v11751_v56 = vadd.f32 1.0, %v7271_v11  ;;  %vm1211_vm1 = vweird.f32 %v11732_v48  ;;  %vm1210_vm3 = vweird.f32 %v11678_v18 }
 0x34f   :  { %v2542_v53 = vmul.f32 %v11740_v28, %v2541_v37  ;;  %v11755_v2 = vpop.eup %7272  ;;  %v1209_v38 = vadd.f32 %v11732_v48, %v1208_v19  ;;  %vm2545_vm4 = vweird.f32 %v11740_v28  ;;  %vm11768_vm5 = vcmp.eq.f32.partialorder %v1214_v13, 8.507059e+37  ;;  %vm11773_vm6 = vmor %vm1210_vm3, %vm1211_vm1 }
 0x350   :  { %6643 = vst [vmem:[%s12903_s6 + $0x90] sm:$0xff] %v6594_v16   ;;  %7278 = vrcp.f32 %v11751_v56  ;;  %v3924_v36 = vmul.f32 %v11755_v2, %v11730_v0  ;;  %v1217_v15 = vor.u32 1.1754944e-38, %v1216_v55  ;;  %vm2544_vm2 = vweird.f32 %v11693_v41 }
 0x351   :  { %v2543_v20 = vadd.f32 %v11740_v28, %v2542_v53  ;;  %7280 = vpow2.f32 %v6213_v63  ;;  %vm11777_vm7 = vcmp.eq.f32.partialorder %v2548_v49, 8.507059e+37  ;;  %v2551_v51 = vor.u32 1.1754944e-38, %v2550_v5  ;;  %vm11784_vm9 = vmor %vm2544_vm2, %vm2545_vm4 }
 0x352   :  { %v3925_v7 = vsub.f32 1.0, %v3924_v36  ;;  %v6388_v25 = vmul.f32 -1.442695, %v4510_v9  ;;  %v7275_v33 = vpop.eup %7274  ;;  %v1213_v43 = vsel %vm11773_vm6, %v11732_v48, %v1209_v38  ;;  %v3932_v41 = vand.u32 2147483647, %v11730_v0  ;;  %v3130_v38 = vpop.f32.mrf.mxu2 }
 0x353   :  { %v3934_v50 = vand.u32 2147483648, %v11730_v0  ;;  %v411_v21 = vadd.f32 %v11385_v26, %v410_v29  ;;  %v7277_v27 = vpop.eup %7276  ;;  %v2547_v47 = vsel %vm11784_vm9, %v11740_v28, %v2543_v20  ;;  %v11795_v39 = vadd.f32 1.0, %v7275_v33  ;;  %v412_v55 = vpop.f32.mrf.mxu0  ;;  %v11939_v29 = vld [vmem:[%s12898_s5] ss:$0 sm:$0xff] }
 0x354   :  { %v3926_v62 = vmul.f32 %v11755_v2, %v3925_v7  ;;  %7282 = vpow2.f32 %v6388_v25  ;;  %vm3928_vm8 = vweird.f32 %v11730_v0  ;;  %vm3929_vm10 = vweird.f32 %v11755_v2 }
 0x355   :  { %v5318_v35 = vand.u32 2147483648, %v11751_v56  ;;  %v11802_v54 = vadd.f32 1.0, %v7277_v27  ;;  %7284 = vrcp.f32 %v11795_v39  ;;  %v1745_v60 = vadd.f32 %v11385_v26, %v1744_v58  ;;  %vm11816_vm11 = vmor %vm3928_vm8, %vm3929_vm10 }
 0x356   :  { %v11797_v4 = vpop.eup %7278  ;;  %v3927_v57 = vadd.f32 %v11755_v2, %v3926_v62  ;;  %v1218_v22 = vsel %vm11768_vm5, %v1217_v15, %v1213_v43  ;;  %v2552_v48 = vsel %vm11777_vm7, %v2551_v51, %v2547_v47  ;;  %v5864_v14 = vmul.f32 -1.442695, %v411_v21 }
 0x357   :  { %v5308_v8 = vmul.f32 %v11797_v4, %v11751_v56  ;;  %v7281_v3 = vpop.eup %7280  ;;  %7286 = vrcp.f32 %v11802_v54  ;;  %vm11820_vm12 = vcmp.eq.f32.partialorder %v3932_v41, 8.507059e+37  ;;  %v3935_v59 = vor.u32 1.1754944e-38, %v3934_v50 }
 0x358   :  { %v5316_v30 = vand.u32 2147483647, %v11751_v56  ;;  %v3931_v28 = vsel %vm11816_vm11, %v11755_v2, %v3927_v57  ;;  %v11828_v34 = vor.u32 1.1754944e-38, %v5318_v35  ;;  %v3129_v0 = vadd.f32 %v11385_v26, %v3128_v17 }
 0x359   :  { %v5309_v1 = vsub.f32 1.0, %v5308_v8  ;;  %v2757_v31 = vadd.f32 %v2552_v48, %v1218_v22  ;;  %vm5312_vm13 = vweird.f32 %v11751_v56  ;;  %v11832_v13 = vadd.f32 1.0, %v7281_v3 }
 0x35a   :  { %v7283_v42 = vpop.eup %7282  ;;  %v6039_v44 = vmul.f32 -1.442695, %v1745_v60  ;;  %v4513_v52 = vadd.f32 %v11385_v26, %v4512_v32  ;;  %v1229_v10 = vand.u32 2147483647, %v11795_v39  ;;  %v1231_v23 = vand.u32 2147483648, %v11795_v39 }
 0x35b   :  { %v11837_v45 = vadd.f32 1.0, %v7283_v42  ;;  %7288 = vpow2.f32 %v5864_v14  ;;  %v7285_v11 = vpop.eup %7284  ;;  %v3936_v19 = vsel %vm11820_vm12, %v3935_v59, %v3931_v28  ;;  %v2563_v37 = vand.u32 2147483647, %v11802_v54  ;;  %v1746_v14 = vpop.f32.mrf.mxu1 }
 0x35c   :  { %v2565_v49 = vand.u32 2147483648, %v11802_v54  ;;  %7290 = vrcp.f32 %v11832_v13  ;;  %v5310_v16 = vmul.f32 %v11797_v4, %v5309_v1  ;;  %v1221_v5 = vmul.f32 %v7285_v11, %v11795_v39 }
 0x35d   :  { %v7287_v61 = vpop.eup %7286  ;;  %7292 = vrcp.f32 %v11837_v45  ;;  %v413_v53 = vadd.f32 %v11385_v26, %v412_v55  ;;  %vm5313_vm14 = vweird.f32 %v11797_v4  ;;  %vm1225_vm15 = vweird.f32 %v11795_v39 }
 0x35e   :  { %v2555_v63 = vmul.f32 %v7287_v61, %v11802_v54  ;;  %vm2559_vm0 = vweird.f32 %v11802_v54  ;;  %v11852_v9 = vadd.f32 %v3936_v19, %v2757_v31  ;;  %v1222_v2 = vsub.f32 1.0, %v1221_v5  ;;  %vm11873_vm7 = vmor %vm5312_vm13, %vm5313_vm14 }
 0x35f   :  { %vm11854_vm1 = vcmp.eq.f32.partialorder %v1229_v10, 8.507059e+37  ;;  %v1232_v20 = vor.u32 1.1754944e-38, %v1231_v23  ;;  %vm11858_vm3 = vcmp.eq.f32.partialorder %v2563_v37, 8.507059e+37  ;;  %v2566_v40 = vor.u32 1.1754944e-38, %v2565_v49 }
 0x360   :  { %v2556_v36 = vsub.f32 1.0, %v2555_v63  ;;  %v6214_v15 = vmul.f32 -1.442695, %v3129_v0  ;;  %v5311_v18 = vadd.f32 %v11797_v4, %v5310_v16  ;;  %v1223_v51 = vmul.f32 %v7285_v11, %v1222_v2 }
 0x361   :  { %v7289_v12 = vpop.eup %7288  ;;  %vm1226_vm4 = vweird.f32 %v7285_v11  ;;  %7294 = vpow2.f32 %v6039_v44  ;;  %vm11863_vm5 = vcmp.eq.f32.partialorder %v5316_v30, 8.507059e+37  ;;  %vm2560_vm2 = vweird.f32 %v7287_v61 }
 0x362   :  { %v7291_v7 = vpop.eup %7290  ;;  %v2557_v33 = vmul.f32 %v7287_v61, %v2556_v36  ;;  %vm3943_vm6 = vweird.f32 %v11832_v13  ;;  %v3947_v43 = vand.u32 2147483647, %v11832_v13  ;;  %v1224_v50 = vadd.f32 %v7285_v11, %v1223_v51  ;;  %vm11881_vm9 = vmor %vm1225_vm15, %vm1226_vm4  ;;  %v415_v51 = vpop.f32.mrf.mxu0 }
 0x363   :  { %v7293_v6 = vpop.eup %7292  ;;  %v3939_v21 = vmul.f32 %v7291_v7, %v11832_v13  ;;  %v3949_v58 = vand.u32 2147483648, %v11832_v13  ;;  %v6389_v27 = vmul.f32 -1.442695, %v4513_v52  ;;  %v11886_v56 = vadd.f32 1.0, %v7289_v12  ;;  %vm2561_vm8 = vmor %vm2559_vm0, %vm2560_vm2 }
 0x364   :  { %v2558_v62 = vadd.f32 %v7287_v61, %v2557_v33  ;;  %v5323_v35 = vmul.f32 %v7293_v6, %v11837_v45  ;;  %7296 = vpow2.f32 %v6214_v15  ;;  %v5315_v57 = vsel %vm11873_vm7, %v11797_v4, %v5311_v18  ;;  %v4514_v15 = vpop.f32.mrf.mxu3 }
 0x365   :  { %v1228_v8 = vsel %vm11881_vm9, %v7285_v11, %v1224_v50  ;;  %v3940_v39 = vsub.f32 1.0, %v3939_v21  ;;  %v5865_v60 = vmul.f32 -1.442695, %v413_v53  ;;  %vm11896_vm10 = vcmp.eq.f32.partialorder %v3947_v43, 8.507059e+37 }
 0x366   :  { %v2562_v17 = vsel %vm2561_vm8, %v7287_v61, %v2558_v62  ;;  %v5324_v22 = vsub.f32 1.0, %v5323_v35  ;;  %v5333_v48 = vand.u32 2147483648, %v11837_v45  ;;  %vm3944_vm11 = vweird.f32 %v7291_v7 }
 0x367   :  { %v7295_v32 = vpop.eup %7294  ;;  %v3941_v4 = vmul.f32 %v7291_v7, %v3940_v39  ;;  %vm5328_vm12 = vweird.f32 %v7293_v6  ;;  %7298 = vpow2.f32 %v6389_v27  ;;  %v1233_v54 = vsel %vm11854_vm1, %v1232_v20, %v1228_v8  ;;  %vm3945_vm13 = vmor %vm3943_vm6, %vm3944_vm11  ;;  %v1749_v39 = vpop.f32.mrf.mxu1 }
 0x368   :  { %v2567_v24 = vsel %vm11858_vm3, %v2566_v40, %v2562_v17  ;;  %v5325_v46 = vmul.f32 %v7293_v6, %v5324_v22  ;;  %7300 = vrcp.f32 %v11886_v56  ;;  %v5331_v30 = vand.u32 2147483647, %v11837_v45 }
 0x369   :  { %v3942_v59 = vadd.f32 %v7291_v7, %v3941_v4  ;;  %7302 = vpow2.f32 %v5865_v60  ;;  %v1747_v28 = vadd.f32 %v11385_v26, %v1746_v14  ;;  %v3950_v0 = vor.u32 1.1754944e-38, %v3949_v58 }
 0x36a   :  { %v7297_v1 = vpop.eup %7296  ;;  %v5326_v42 = vadd.f32 %v7293_v6, %v5325_v46  ;;  %vm5327_vm14 = vweird.f32 %v11837_v45  ;;  %v11911_v31 = vadd.f32 1.0, %v7295_v32  ;;  %v5320_v44 = vsel %vm11863_vm5, %v11828_v34, %v5315_v57 }
 0x36b   :  { %v2758_v52 = vadd.f32 %v2567_v24, %v1233_v54  ;;  %v3946_v55 = vsel %vm3945_vm13, %v7291_v7, %v3942_v59  ;;  %vm5329_vm15 = vmor %vm5327_vm14, %vm5328_vm12  ;;  %v6040_v10 = vmul.f32 -1.442695, %v1747_v28  ;;  %v5334_v23 = vor.u32 1.1754944e-38, %v5333_v48  ;;  %v3133_v59 = vpop.f32.mrf.mxu2 }
 0x36c   :  { %v3951_v26 = vsel %vm11896_vm10, %v3950_v0, %v3946_v55  ;;  %v5330_v13 = vsel %vm5329_vm15, %v7293_v6, %v5326_v42  ;;  %v11919_v11 = vadd.f32 1.0, %v7297_v1  ;;  %v5525_v45 = vadd.f32 %v5320_v44, %v11852_v9  ;;  %v4517_v0 = vpop.f32.mrf.mxu3 }
 0x36d   :  { %v7299_v19 = vpop.eup %7298  ;;  %v4142_v37 = vadd.f32 %v3951_v26, %v2758_v52  ;;  %vm5332_vm0 = vcmp.eq.f32.partialorder %v5331_v30, 8.507059e+37  ;;  %7304 = vrcp.f32 %v11911_v31  ;;  %v3131_v40 = vadd.f32 %v11939_v29, %v3130_v38 }
 0x36e   :  { %v11922_v49 = vpop.eup %7300  ;;  %v5335_v34 = vsel %vm5332_vm0, %v5334_v23, %v5330_v13  ;;  %v11925_v5 = vadd.f32 1.0, %v7299_v19  ;;  %7306 = vpow2.f32 %v6040_v10  ;;  %v5575_v63 = vmul.f32 0.25, %v5525_v45  ;;  %v417_v10 = vpop.f32.mrf.mxu0 }
 0x36f   :  { %v7303_v61 = vpop.eup %7302  ;;  %v5526_v16 = vadd.f32 %v5335_v34, %v4142_v37  ;;  %7308 = vrcp.f32 %v11919_v11  ;;  %v1236_v9 = vmul.f32 %v11922_v49, %v11886_v56  ;;  %v1246_v25 = vand.u32 2147483648, %v11886_v56 }
 0x370   :  { %v11928_v53 = vadd.f32 1.0, %v7303_v61  ;;  %7310 = vrcp.f32 %v11925_v5  ;;  %v1244_v43 = vand.u32 2147483647, %v11886_v56  ;;  %v2580_v41 = vand.u32 2147483648, %v11911_v31 }
 0x371   :  { %v5576_v2 = vmul.f32 0.25, %v5526_v16  ;;  %v1237_v18 = vsub.f32 1.0, %v1236_v9  ;;  %v6215_v50 = vmul.f32 -1.442695, %v3131_v40  ;;  %v4515_v21 = vadd.f32 %v11939_v29, %v4514_v15 }
 0x372   :  { %7312 = vrcp.f32 %v11928_v53  ;;  %vm1240_vm1 = vweird.f32 %v11886_v56  ;;  %v1247_v35 = vor.u32 1.1754944e-38, %v1246_v25  ;;  %v2578_v57 = vand.u32 2147483647, %v11911_v31 }
 0x373   :  { %v6599_v20 = vpack.c.bf16 %v5576_v2, %v5575_v63  ;;  %v11933_v36 = vpop.eup %7304  ;;  %v1238_v27 = vmul.f32 %v11922_v49, %v1237_v18  ;;  %v3964_v8 = vand.u32 2147483648, %v11919_v11  ;;  %vm1241_vm3 = vweird.f32 %v11922_v49 }
 0x374   :  { %v7307_v12 = vpop.eup %7306  ;;  %v2570_v6 = vmul.f32 %v11933_v36, %v11911_v31  ;;  %vm11967_vm4 = vcmp.eq.f32.partialorder %v1244_v43, 8.507059e+37  ;;  %v11971_v3 = vor.u32 1.1754944e-38, %v2580_v41  ;;  %v3962_v22 = vand.u32 2147483647, %v11919_v11  ;;  %vm11997_vm7 = vmor %vm1240_vm1, %vm1241_vm3  ;;  %v3135_v41 = vpop.f32.mrf.mxu2 }
 0x375   :  { %6644 = vst [vmem:[%s12903_s6 + $0x98] sm:$0xff] %v6599_v20   ;;  %v11945_v7 = vpop.eup %7308  ;;  %v11948_v33 = vadd.f32 1.0, %v7307_v12  ;;  %v6390_v14 = vmul.f32 -1.442695, %v4515_v21  ;;  %v416_v32 = vadd.f32 %v11939_v29, %v415_v51  ;;  %v1239_v4 = vadd.f32 %v11922_v49, %v1238_v27 }
 0x376   :  { %v11956_v58 = vpop.eup %7310  ;;  %v3954_v47 = vmul.f32 %v11945_v7, %v11919_v11  ;;  %v2571_v17 = vsub.f32 1.0, %v2570_v6  ;;  %vm2574_vm5 = vweird.f32 %v11911_v31  ;;  %v1750_v46 = vadd.f32 %v11939_v29, %v1749_v39 }
 0x377   :  { %7314 = vrcp.f32 %v11948_v33  ;;  %v5338_v48 = vmul.f32 %v11956_v58, %v11925_v5  ;;  %vm2575_vm2 = vweird.f32 %v11933_v36  ;;  %v11985_v28 = vor.u32 1.1754944e-38, %v3964_v8 }
 0x378   :  { %v11961_v62 = vpop.eup %7312  ;;  %7316 = vpow2.f32 %v6215_v50  ;;  %v3955_v54 = vsub.f32 1.0, %v3954_v47  ;;  %v5866_v1 = vmul.f32 -1.442695, %v416_v32  ;;  %v2572_v42 = vmul.f32 %v11933_v36, %v2571_v17  ;;  %vm12033_vm13 = vmor %vm2574_vm5, %vm2575_vm2 }
 0x379   :  { %v1251_v24 = vmul.f32 %v11961_v62, %v11928_v53  ;;  %7318 = vpow2.f32 %v6390_v14  ;;  %vm3958_vm6 = vweird.f32 %v11919_v11  ;;  %v5346_v44 = vand.u32 2147483647, %v11925_v5 }
 0x37a   :  { %v5348_v52 = vand.u32 2147483648, %v11925_v5  ;;  %v5339_v13 = vsub.f32 1.0, %v5338_v48  ;;  %7320 = vpow2.f32 %v5866_v1  ;;  %v6041_v23 = vmul.f32 -1.442695, %v1750_v46 }
 0x37b   :  { %v3134_v19 = vadd.f32 %v11939_v29, %v3133_v59  ;;  %v1243_v45 = vsel %vm11997_vm7, %v11922_v49, %v1239_v4  ;;  %vm12005_vm9 = vcmp.eq.f32.partialorder %v2578_v57, 8.507059e+37  ;;  %v3956_v34 = vmul.f32 %v11945_v7, %v3955_v54 }
 0x37c   :  { %v1252_v56 = vsub.f32 1.0, %v1251_v24  ;;  %v4518_v61 = vadd.f32 %v11939_v29, %v4517_v0  ;;  %vm5342_vm8 = vweird.f32 %v11925_v5  ;;  %7322 = vpow2.f32 %v6041_v23 }
 0x37d   :  { %v11982_v30 = vpop.eup %7314  ;;  %v6216_v2 = vmul.f32 -1.442695, %v3134_v19  ;;  %v418_v9 = vadd.f32 %v11939_v29, %v417_v10  ;;  %v2573_v38 = vadd.f32 %v11933_v36, %v2572_v42  ;;  %vm12014_vm10 = vcmp.eq.f32.partialorder %v3962_v22, 8.507059e+37 }
 0x37e   :  { %v2585_v55 = vmul.f32 %v11982_v30, %v11948_v33  ;;  %v7317_v16 = vpop.eup %7316  ;;  %vm1255_vm11 = vweird.f32 %v11928_v53  ;;  %v1259_v20 = vand.u32 2147483647, %v11928_v53  ;;  %v1248_v12 = vsel %vm11967_vm4, %v1247_v35, %v1243_v45 }
 0x37f   :  { %v12020_v40 = vadd.f32 1.0, %v7317_v16  ;;  %v7319_v15 = vpop.eup %7318  ;;  %vm3959_vm12 = vweird.f32 %v11945_v7  ;;  %v5340_v18 = vmul.f32 %v11956_v58, %v5339_v13  ;;  %7324 = vpow2.f32 %v6216_v2 }
 0x380   :  { %v2586_v63 = vsub.f32 1.0, %v2585_v55  ;;  %v3957_v51 = vadd.f32 %v11945_v7, %v3956_v34  ;;  %v1253_v25 = vmul.f32 %v11961_v62, %v1252_v56  ;;  %v6391_v43 = vmul.f32 -1.442695, %v4518_v61  ;;  %v7321_v6 = vpop.eup %7320  ;;  %vm12057_vm0 = vmor %vm3958_vm6, %vm3959_vm12  ;;  %v1751_v61 = vpop.f32.mrf.mxu1 }
 0x381   :  { %7326 = vrcp.f32 %v12020_v40  ;;  %vm12037_vm14 = vcmp.eq.f32.partialorder %v5346_v44, 8.507059e+37  ;;  %v5349_v21 = vor.u32 1.1754944e-38, %v5348_v52  ;;  %v12042_v47 = vadd.f32 1.0, %v7319_v15 }
 0x382   :  { %v2587_v27 = vmul.f32 %v11982_v30, %v2586_v63  ;;  %v5867_v35 = vmul.f32 -1.442695, %v418_v9  ;;  %v2577_v57 = vsel %vm12033_vm13, %v11933_v36, %v2573_v38  ;;  %vm12047_vm15 = vcmp.eq.f32.partialorder %v1259_v20, 8.507059e+37  ;;  %v7323_v60 = vpop.eup %7322 }
 0x383   :  { %v1261_v8 = vand.u32 2147483648, %v11928_v53  ;;  %v2593_v39 = vand.u32 2147483647, %v11948_v33  ;;  %v5341_v22 = vadd.f32 %v11956_v58, %v5340_v18  ;;  %vm5343_vm1 = vweird.f32 %v11956_v58 }
 0x384   :  { %7328 = vrcp.f32 %v12042_v47  ;;  %v12064_v36 = vadd.f32 1.0, %v7321_v6  ;;  %v3961_v48 = vsel %vm12057_vm0, %v11945_v7, %v3957_v51  ;;  %v1254_v14 = vadd.f32 %v11961_v62, %v1253_v25  ;;  %vm12078_vm5 = vmor %vm5342_vm8, %vm5343_vm1  ;;  %v4519_v7 = vpop.f32.mrf.mxu3 }
 0x385   :  { %vm1256_vm3 = vweird.f32 %v11961_v62  ;;  %7330 = vpow2.f32 %v6391_v43  ;;  %v7325_v11 = vpop.eup %7324  ;;  %v2582_v32 = vsel %vm12005_vm9, %v11971_v3, %v2577_v57  ;;  %v2588_v4 = vadd.f32 %v11982_v30, %v2587_v27 }
 0x386   :  { %vm2590_vm4 = vweird.f32 %v11982_v30  ;;  %7332 = vpow2.f32 %v5867_v35  ;;  %v1262_v24 = vor.u32 1.1754944e-38, %v1261_v8  ;;  %vm2589_vm2 = vweird.f32 %v11948_v33  ;;  %vm12096_vm6 = vmor %vm1255_vm11, %vm1256_vm3 }
 0x387   :  { %v7327_v54 = vpop.eup %7326  ;;  %v2595_v46 = vand.u32 2147483648, %v11948_v33  ;;  %v12084_v59 = vadd.f32 1.0, %v7323_v60  ;;  %v3966_v3 = vsel %vm12014_vm10, %v11985_v28, %v3961_v48  ;;  %v5345_v1 = vsel %vm12078_vm5, %v11956_v58, %v5341_v22  ;;  %vm12107_vm7 = vmor %vm2589_vm2, %vm2590_vm4 }
 0x388   :  { %v3969_v33 = vmul.f32 %v7327_v54, %v12020_v40  ;;  %7334 = vrcp.f32 %v12064_v36  ;;  %v2759_v0 = vadd.f32 %v2582_v32, %v1248_v12  ;;  %v1258_v28 = vsel %vm12096_vm6, %v11961_v62, %v1254_v14 }
 0x389   :  { %7336 = vrcp.f32 %v12084_v59  ;;  %v12112_v53 = vadd.f32 1.0, %v7325_v11  ;;  %v2592_v44 = vsel %vm12107_vm7, %v11982_v30, %v2588_v4  ;;  %vm2594_vm9 = vcmp.eq.f32.partialorder %v2593_v39, 8.507059e+37 }
 0x38a   :  { %v7329_v42 = vpop.eup %7328  ;;  %v3970_v52 = vsub.f32 1.0, %v3969_v33  ;;  %v3979_v55 = vand.u32 2147483648, %v12020_v40  ;;  %v4143_v10 = vadd.f32 %v3966_v3, %v2759_v0  ;;  %v5350_v26 = vsel %vm12037_vm14, %v5349_v21, %v5345_v1  ;;  %v1754_v33 = vpop.f32.mrf.mxu1 }
 0x38b   :  { %v7331_v62 = vpop.eup %7330  ;;  %v2596_v13 = vor.u32 1.1754944e-38, %v2595_v46  ;;  %v5353_v23 = vmul.f32 %v7329_v42, %v12042_v47  ;;  %v1263_v45 = vsel %vm12047_vm15, %v1262_v24, %v1258_v28  ;;  %vm3974_vm8 = vweird.f32 %v7327_v54  ;;  %v420_v24 = vpop.f32.mrf.mxu0 }
 0x38c   :  { %v7333_v19 = vpop.eup %7332  ;;  %v3971_v37 = vmul.f32 %v7327_v54, %v3970_v52  ;;  %v3977_v30 = vand.u32 2147483647, %v12020_v40  ;;  %vm3973_vm10 = vweird.f32 %v12020_v40  ;;  %7338 = vrcp.f32 %v12112_v53 }
 0x38d   :  { %v2597_v34 = vsel %vm2594_vm9, %v2596_v13, %v2592_v44  ;;  %v5354_v56 = vsub.f32 1.0, %v5353_v23  ;;  %v3980_v2 = vor.u32 1.1754944e-38, %v3979_v55  ;;  %v5363_v9 = vand.u32 2147483648, %v12042_v47  ;;  %vm3975_vm11 = vmor %vm3973_vm10, %vm3974_vm8 }
 0x38e   :  { %v12126_v16 = vpop.eup %7334  ;;  %v3972_v63 = vadd.f32 %v7327_v54, %v3971_v37  ;;  %v12129_v38 = vadd.f32 1.0, %v7331_v62  ;;  %vm5358_vm12 = vweird.f32 %v7329_v42  ;;  %v5361_v15 = vand.u32 2147483647, %v12042_v47 }
 0x38f   :  { %v12131_v49 = vpop.eup %7336  ;;  %v5355_v20 = vmul.f32 %v7329_v42, %v5354_v56  ;;  %v12134_v40 = vadd.f32 1.0, %v7333_v19  ;;  %v2760_v12 = vadd.f32 %v2597_v34, %v1263_v45  ;;  %vm3978_vm13 = vcmp.eq.f32.partialorder %v3977_v30, 8.507059e+37 }
 0x390   :  { %v3976_v18 = vsel %vm3975_vm11, %v7327_v54, %v3972_v63  ;;  %v1752_v51 = vadd.f32 %v11939_v29, %v1751_v61  ;;  %vm5357_vm14 = vweird.f32 %v12042_v47  ;;  %v1266_v6 = vmul.f32 %v12126_v16, %v12064_v36 }
 0x391   :  { %v3981_v25 = vsel %vm3978_vm13, %v3980_v2, %v3976_v18  ;;  %v5356_v43 = vadd.f32 %v7329_v42, %v5355_v20  ;;  %vm5359_vm15 = vmor %vm5357_vm14, %vm5358_vm12  ;;  %v5364_v21 = vor.u32 1.1754944e-38, %v5363_v9  ;;  %v2600_v27 = vmul.f32 %v12131_v49, %v12084_v59 }
 0x392   :  { %v4144_v50 = vadd.f32 %v3981_v25, %v2760_v12  ;;  %7340 = vrcp.f32 %v12129_v38  ;;  %v12143_v35 = vpop.eup %7338  ;;  %v5527_v57 = vadd.f32 %v5350_v26, %v4143_v10  ;;  %vm5362_vm0 = vcmp.eq.f32.partialorder %v5361_v15, 8.507059e+37  ;;  %v3138_v10 = vpop.f32.mrf.mxu2 }
 0x393   :  { %v5360_v31 = vsel %vm5359_vm15, %v7329_v42, %v5356_v43  ;;  %7342 = vrcp.f32 %v12134_v40  ;;  %v6042_v8 = vmul.f32 -1.442695, %v1752_v51  ;;  %v1267_v60 = vsub.f32 1.0, %v1266_v6 }
 0x394   :  { %v5365_v47 = vsel %vm5362_vm0, %v5364_v21, %v5360_v31  ;;  %v1276_v17 = vand.u32 2147483648, %v12064_v36  ;;  %v2601_v22 = vsub.f32 1.0, %v2600_v27  ;;  %v3984_v48 = vmul.f32 %v12143_v35, %v12112_v53  ;;  %v422_v31 = vpop.f32.mrf.mxu0 }
 0x395   :  { %v5528_v39 = vadd.f32 %v5365_v47, %v4144_v50  ;;  %v5577_v14 = vmul.f32 0.25, %v5527_v57  ;;  %vm1270_vm1 = vweird.f32 %v12064_v36  ;;  %v1274_v4 = vand.u32 2147483647, %v12064_v36 }
 0x396   :  { %v2608_v54 = vand.u32 2147483647, %v12084_v59  ;;  %7344 = vpow2.f32 %v6042_v8  ;;  %v1268_v1 = vmul.f32 %v12126_v16, %v1267_v60  ;;  %v1277_v5 = vor.u32 1.1754944e-38, %v1276_v17 }
 0x397   :  { %v5578_v11 = vmul.f32 0.25, %v5528_v39  ;;  %vm2604_vm3 = vweird.f32 %v12084_v59  ;;  %v2602_v0 = vmul.f32 %v12131_v49, %v2601_v22  ;;  %v2610_v28 = vand.u32 2147483648, %v12084_v59 }
 0x398   :  { %v12149_v32 = vpop.eup %7340  ;;  %v3985_v58 = vsub.f32 1.0, %v3984_v48  ;;  %v3992_v42 = vand.u32 2147483647, %v12112_v53  ;;  %v3136_v52 = vadd.f32 %v11939_v29, %v3135_v41  ;;  %v4520_v55 = vadd.f32 %v11939_v29, %v4519_v7 }
 0x399   :  { %v12154_v46 = vpop.eup %7342  ;;  %v6604_v3 = vpack.c.bf16 %v5578_v11, %v5577_v14  ;;  %v5368_v44 = vmul.f32 %v12149_v32, %v12129_v38  ;;  %v421_v62 = vadd.f32 %v11939_v29, %v420_v24  ;;  %vm1271_vm4 = vweird.f32 %v12126_v16 }
 0x39a   :  { %vm12170_vm5 = vcmp.eq.f32.partialorder %v1274_v4, 8.507059e+37  ;;  %vm12174_vm2 = vcmp.eq.f32.partialorder %v2608_v54, 8.507059e+37  ;;  %vm3988_vm6 = vweird.f32 %v12112_v53  ;;  %v3994_v23 = vand.u32 2147483648, %v12112_v53  ;;  %vm12194_vm9 = vmor %vm1270_vm1, %vm1271_vm4 }
 0x39b   :  { %6645 = vst [vmem:[%s12903_s6 + $0xa0] sm:$0xff] %v6604_v3   ;;  %v1281_v19 = vmul.f32 %v12154_v46, %v12134_v40  ;;  %v1755_v45 = vadd.f32 %v11939_v29, %v1754_v33  ;;  %v1269_v37 = vadd.f32 %v12126_v16, %v1268_v1  ;;  %vm2605_vm7 = vweird.f32 %v12131_v49  ;;  %v1756_v33 = vpop.f32.mrf.mxu1 }
 0x39c   :  { %v6217_v30 = vmul.f32 -1.442695, %v3136_v52  ;;  %v6392_v34 = vmul.f32 -1.442695, %v4520_v55  ;;  %v7345_v56 = vpop.eup %7344  ;;  %v2603_v61 = vadd.f32 %v12131_v49, %v2602_v0  ;;  %v3986_v63 = vmul.f32 %v12143_v35, %v3985_v58  ;;  %vm12206_vm8 = vmor %vm2604_vm3, %vm2605_vm7 }
 0x39d   :  { %v5868_v2 = vmul.f32 -1.442695, %v421_v62  ;;  %v3139_v9 = vadd.f32 %v11939_v29, %v3138_v10  ;;  %v5369_v20 = vsub.f32 1.0, %v5368_v44  ;;  %v12188_v15 = vadd.f32 1.0, %v7345_v56 }
 0x39e   :  { %7346 = vpow2.f32 %v6217_v30  ;;  %v6043_v12 = vmul.f32 -1.442695, %v1755_v45  ;;  %v2611_v51 = vor.u32 1.1754944e-38, %v2610_v28  ;;  %v5378_v25 = vand.u32 2147483648, %v12129_v38 }
 0x39f   :  { %v1282_v43 = vsub.f32 1.0, %v1281_v19  ;;  %7348 = vpow2.f32 %v6392_v34  ;;  %v1273_v6 = vsel %vm12194_vm9, %v12126_v16, %v1269_v37  ;;  %vm3989_vm10 = vweird.f32 %v12143_v35 }
 0x3a0   :  { %v5376_v36 = vand.u32 2147483647, %v12129_v38  ;;  %7350 = vrcp.f32 %v12188_v15  ;;  %v2607_v50 = vsel %vm12206_vm8, %v12131_v49, %v2603_v61  ;;  %v3987_v16 = vadd.f32 %v12143_v35, %v3986_v63  ;;  %v4522_v49 = vpop.f32.mrf.mxu3  ;;  %vm12233_vm14 = vmor %vm3988_vm6, %vm3989_vm10  ;;  %v3140_v63 = vpop.f32.mrf.mxu2 }
 0x3a1   :  { %7352 = vpow2.f32 %v5868_v2  ;;  %v6218_v21 = vmul.f32 -1.442695, %v3139_v9  ;;  %vm12217_vm11 = vcmp.eq.f32.partialorder %v3992_v42, 8.507059e+37  ;;  %v3995_v27 = vor.u32 1.1754944e-38, %v3994_v23 }
 0x3a2   :  { %v5370_v57 = vmul.f32 %v12149_v32, %v5369_v20  ;;  %7354 = vpow2.f32 %v6043_v12  ;;  %vm5372_vm12 = vweird.f32 %v12129_v38  ;;  %v5379_v47 = vor.u32 1.1754944e-38, %v5378_v25 }
 0x3a3   :  { %v1283_v8 = vmul.f32 %v12154_v46, %v1282_v43  ;;  %vm1285_vm13 = vweird.f32 %v12134_v40  ;;  %v1278_v60 = vsel %vm12170_vm5, %v1277_v5, %v1273_v6  ;;  %v2612_v17 = vsel %vm12174_vm2, %v2611_v51, %v2607_v50 }
 0x3a4   :  { %v7347_v39 = vpop.eup %7346  ;;  %vm5373_vm15 = vweird.f32 %v12149_v32  ;;  %vm12238_vm0 = vcmp.eq.f32.partialorder %v5376_v36, 8.507059e+37  ;;  %v1289_v14 = vand.u32 2147483647, %v12134_v40  ;;  %v3991_v4 = vsel %vm12233_vm14, %v12143_v35, %v3987_v16 }
 0x3a5   :  { %v7349_v11 = vpop.eup %7348  ;;  %v12246_v54 = vadd.f32 1.0, %v7347_v39  ;;  %7356 = vpow2.f32 %v6218_v21  ;;  %v423_v53 = vadd.f32 %v11939_v29, %v422_v31  ;;  %v5371_v24 = vadd.f32 %v12149_v32, %v5370_v57  ;;  %vm12272_vm4 = vmor %vm5372_vm12, %vm5373_vm15 }
 0x3a6   :  { %v12249_v7 = vpop.eup %7350  ;;  %v1291_v3 = vand.u32 2147483648, %v12134_v40  ;;  %v12253_v1 = vadd.f32 1.0, %v7349_v11  ;;  %v4523_v5 = vadd.f32 %v11939_v29, %v4522_v49  ;;  %v1284_v28 = vadd.f32 %v12154_v46, %v1283_v8 }
 0x3a7   :  { %v7353_v0 = vpop.eup %7352  ;;  %vm1286_vm1 = vweird.f32 %v12154_v46  ;;  %v2615_v35 = vmul.f32 %v12249_v7, %v12188_v15  ;;  %7358 = vrcp.f32 %v12246_v54  ;;  %v2761_v42 = vadd.f32 %v2612_v17, %v1278_v60 }
 0x3a8   :  { %v7355_v58 = vpop.eup %7354  ;;  %v3996_v44 = vsel %vm12217_vm11, %v3995_v27, %v3991_v4  ;;  %vm12263_vm3 = vcmp.eq.f32.partialorder %v1289_v14, 8.507059e+37  ;;  %7360 = vrcp.f32 %v12253_v1  ;;  %v12276_v10 = vadd.f32 1.0, %v7353_v0  ;;  %vm12284_vm5 = vmor %vm1285_vm13, %vm1286_vm1  ;;  %v425_v0 = vpop.f32.mrf.mxu0 }
 0x3a9   :  { %v2616_v62 = vsub.f32 1.0, %v2615_v35  ;;  %v5869_v26 = vmul.f32 -1.442695, %v423_v53  ;;  %v1757_v13 = vadd.f32 %v11939_v29, %v1756_v33  ;;  %v5375_v23 = vsel %vm12272_vm4, %v12149_v32, %v5371_v24 }
 0x3aa   :  { %v1292_v38 = vor.u32 1.1754944e-38, %v1291_v3  ;;  %v12288_v45 = vadd.f32 1.0, %v7355_v58  ;;  %v6393_v37 = vmul.f32 -1.442695, %v4523_v5  ;;  %v4145_v34 = vadd.f32 %v3996_v44, %v2761_v42 }
 0x3ab   :  { %v7357_v30 = vpop.eup %7356  ;;  %v1288_v56 = vsel %vm12284_vm5, %v12154_v46, %v1284_v28  ;;  %v2617_v61 = vmul.f32 %v12249_v7, %v2616_v62  ;;  %7362 = vrcp.f32 %v12276_v10  ;;  %vm2620_vm2 = vweird.f32 %v12249_v7  ;;  %v1759_v28 = vpop.f32.mrf.mxu1 }
 0x3ac   :  { %v2623_v40 = vand.u32 2147483647, %v12188_v15  ;;  %v2625_v32 = vand.u32 2147483648, %v12188_v15  ;;  %7364 = vrcp.f32 %v12288_v45  ;;  %v5380_v9 = vsel %vm12238_vm0, %v5379_v47, %v5375_v23 }
 0x3ad   :  { %v7359_v2 = vpop.eup %7358  ;;  %v2618_v20 = vadd.f32 %v12249_v7, %v2617_v61  ;;  %7366 = vpow2.f32 %v5869_v26  ;;  %v6044_v46 = vmul.f32 -1.442695, %v1757_v13  ;;  %vm2619_vm6 = vweird.f32 %v12188_v15 }
 0x3ae   :  { %v7361_v12 = vpop.eup %7360  ;;  %v3999_v18 = vmul.f32 %v7359_v2, %v12246_v54  ;;  %v12304_v51 = vadd.f32 1.0, %v7357_v30  ;;  %7368 = vpow2.f32 %v6393_v37  ;;  %v5529_v25 = vadd.f32 %v5380_v9, %v4145_v34  ;;  %vm12310_vm7 = vmor %vm2619_vm6, %vm2620_vm2 }
 0x3af   :  { %v1293_v43 = vsel %vm12263_vm3, %v1292_v38, %v1288_v56  ;;  %v5383_v41 = vmul.f32 %v7361_v12, %v12253_v1  ;;  %v3141_v36 = vadd.f32 %v11939_v29, %v3140_v63  ;;  %v2622_v15 = vsel %vm12310_vm7, %v12249_v7, %v2618_v20  ;;  %v4524_v7 = vpop.f32.mrf.mxu3 }
 0x3b0   :  { %vm2624_vm9 = vcmp.eq.f32.partialorder %v2623_v40, 8.507059e+37  ;;  %v2626_v50 = vor.u32 1.1754944e-38, %v2625_v32  ;;  %v4000_v16 = vsub.f32 1.0, %v3999_v18  ;;  %v4007_v59 = vand.u32 2147483647, %v12246_v54 }
 0x3b1   :  { %v12319_v21 = vpop.eup %7362  ;;  %v4009_v27 = vand.u32 2147483648, %v12246_v54  ;;  %v5384_v57 = vsub.f32 1.0, %v5383_v41  ;;  %7370 = vpow2.f32 %v6044_v46  ;;  %vm4004_vm8 = vweird.f32 %v7359_v2  ;;  %v3143_v41 = vpop.f32.mrf.mxu2 }
 0x3b2   :  { %v12323_v31 = vpop.eup %7364  ;;  %v4001_v47 = vmul.f32 %v7359_v2, %v4000_v16  ;;  %v5393_v8 = vand.u32 2147483648, %v12253_v1  ;;  %7372 = vrcp.f32 %v12304_v51  ;;  %v2627_v39 = vsel %vm2624_vm9, %v2626_v50, %v2622_v15 }
 0x3b3   :  { %v7367_v49 = vpop.eup %7366  ;;  %v5385_v60 = vmul.f32 %v7361_v12, %v5384_v57  ;;  %vm5388_vm10 = vweird.f32 %v7361_v12  ;;  %v1296_v17 = vmul.f32 %v12319_v21, %v12276_v10  ;;  %vm4003_vm11 = vweird.f32 %v12246_v54 }
 0x3b4   :  { %v7369_v22 = vpop.eup %7368  ;;  %v4002_v48 = vadd.f32 %v7359_v2, %v4001_v47  ;;  %v5391_v14 = vand.u32 2147483647, %v12253_v1  ;;  %v2630_v11 = vmul.f32 %v12323_v31, %v12288_v45  ;;  %vm4005_vm12 = vmor %vm4003_vm11, %vm4004_vm8  ;;  %vm4008_vm13 = vcmp.eq.f32.partialorder %v4007_v59, 8.507059e+37 }
 0x3b5   :  { %v4010_v4 = vor.u32 1.1754944e-38, %v4009_v27  ;;  %v5386_v53 = vadd.f32 %v7361_v12, %v5385_v60  ;;  %vm5387_vm14 = vweird.f32 %v12253_v1  ;;  %v2762_v24 = vadd.f32 %v2627_v39, %v1293_v43 }
 0x3b6   :  { %v4006_v3 = vsel %vm4005_vm12, %v7359_v2, %v4002_v48  ;;  %vm12335_vm15 = vmor %vm5387_vm14, %vm5388_vm10  ;;  %v5394_v54 = vor.u32 1.1754944e-38, %v5393_v8  ;;  %v12339_v33 = vadd.f32 1.0, %v7367_v49  ;;  %v1297_v44 = vsub.f32 1.0, %v1296_v17 }
 0x3b7   :  { %v7371_v35 = vpop.eup %7370  ;;  %v4011_v58 = vsel %vm4008_vm13, %v4010_v4, %v4006_v3  ;;  %v5390_v42 = vsel %vm12335_vm15, %v7361_v12, %v5386_v53  ;;  %v12343_v1 = vadd.f32 1.0, %v7369_v22  ;;  %vm5392_vm0 = vcmp.eq.f32.partialorder %v5391_v14, 8.507059e+37  ;;  %v427_v22 = vpop.f32.mrf.mxu0 }
 0x3b8   :  { %v12345_v52 = vpop.eup %7372  ;;  %v4146_v55 = vadd.f32 %v4011_v58, %v2762_v24  ;;  %v2631_v62 = vsub.f32 1.0, %v2630_v11  ;;  %v4525_v26 = vadd.f32 %v11939_v29, %v4524_v7  ;;  %v5395_v13 = vsel %vm5392_vm0, %v5394_v54, %v5390_v42  ;;  %v4527_v7 = vpop.f32.mrf.mxu3 }
 0x3b9   :  { %v426_v23 = vadd.f32 %v11939_v29, %v425_v0  ;;  %v1760_v19 = vadd.f32 %v11939_v29, %v1759_v28  ;;  %7374 = vrcp.f32 %v12339_v33  ;;  %v12351_v37 = vadd.f32 1.0, %v7371_v35 }
 0x3ba   :  { %v5530_v38 = vadd.f32 %v5395_v13, %v4146_v55  ;;  %v5579_v30 = vmul.f32 0.25, %v5529_v25  ;;  %v1298_v34 = vmul.f32 %v12319_v21, %v1297_v44  ;;  %v4014_v56 = vmul.f32 %v12345_v52, %v12304_v51 }
 0x3bb   :  { %7376 = vrcp.f32 %v12343_v1  ;;  %v2632_v40 = vmul.f32 %v12323_v31, %v2631_v62  ;;  %v6219_v32 = vmul.f32 -1.442695, %v3141_v36  ;;  %v6394_v63 = vmul.f32 -1.442695, %v4525_v26 }
 0x3bc   :  { %v5580_v61 = vmul.f32 0.25, %v5530_v38  ;;  %v1304_v2 = vand.u32 2147483647, %v12276_v10  ;;  %v5870_v9 = vmul.f32 -1.442695, %v426_v23  ;;  %v1306_v12 = vand.u32 2147483648, %v12276_v10 }
 0x3bd   :  { %v6045_v20 = vmul.f32 -1.442695, %v1760_v19  ;;  %v2638_v18 = vand.u32 2147483647, %v12288_v45  ;;  %7378 = vrcp.f32 %v12351_v37  ;;  %v1299_v25 = vadd.f32 %v12319_v21, %v1298_v34 }
 0x3be   :  { %v6609_v46 = vpack.c.bf16 %v5580_v61, %v5579_v30  ;;  %vm1301_vm1 = vweird.f32 %v12319_v21  ;;  %v2640_v43 = vand.u32 2147483648, %v12288_v45  ;;  %v4015_v6 = vsub.f32 1.0, %v4014_v56 }
 0x3bf   :  { %v12365_v36 = vpop.eup %7374  ;;  %vm1300_vm3 = vweird.f32 %v12276_v10  ;;  %v2633_v15 = vadd.f32 %v12323_v31, %v2632_v40  ;;  %vm2635_vm4 = vweird.f32 %v12323_v31  ;;  %7380 = vpow2.f32 %v6219_v32 }
 0x3c0   :  { %6646 = vst [vmem:[%s12903_s6 + $0xa8] sm:$0xff] %v6609_v46   ;;  %vm12375_vm5 = vcmp.eq.f32.partialorder %v1304_v2, 8.507059e+37  ;;  %vm2634_vm2 = vweird.f32 %v12288_v45  ;;  %v4024_v59 = vand.u32 2147483648, %v12304_v51  ;;  %v1311_v27 = vmul.f32 %v12365_v36, %v12339_v33  ;;  %vm12385_vm6 = vmor %vm1300_vm3, %vm1301_vm1 }
 0x3c1   :  { %v12373_v50 = vpop.eup %7376  ;;  %v1307_v57 = vor.u32 1.1754944e-38, %v1306_v12  ;;  %v4022_v47 = vand.u32 2147483647, %v12304_v51  ;;  %7382 = vpow2.f32 %v6394_v63  ;;  %v3144_v8 = vadd.f32 %v11939_v29, %v3143_v41  ;;  %vm12394_vm7 = vmor %vm2634_vm2, %vm2635_vm4  ;;  %v430_v12 = vpop.f32.mrf.mxu0 }
 0x3c2   :  { %v1303_v45 = vsel %vm12385_vm6, %v12319_v21, %v1299_v25  ;;  %vm12398_vm9 = vcmp.eq.f32.partialorder %v2638_v18, 8.507059e+37  ;;  %v2641_v60 = vor.u32 1.1754944e-38, %v2640_v43  ;;  %v4016_v17 = vmul.f32 %v12345_v52, %v4015_v6 }
 0x3c3   :  { %v12403_v48 = vpop.eup %7378  ;;  %v2637_v14 = vsel %vm12394_vm7, %v12323_v31, %v2633_v15  ;;  %v5398_v21 = vmul.f32 %v12373_v50, %v12343_v1  ;;  %v1312_v11 = vsub.f32 1.0, %v1311_v27  ;;  %7384 = vpow2.f32 %v5870_v9 }
 0x3c4   :  { %vm4018_vm8 = vweird.f32 %v12304_v51  ;;  %v4025_v4 = vor.u32 1.1754944e-38, %v4024_v59  ;;  %v2645_v53 = vmul.f32 %v12403_v48, %v12351_v37  ;;  %7386 = vpow2.f32 %v6045_v20  ;;  %v1761_v20 = vpop.f32.mrf.mxu1 }
 0x3c5   :  { %v7381_v24 = vpop.eup %7380  ;;  %v1308_v3 = vsel %vm12375_vm5, %v1307_v57, %v1303_v45  ;;  %vm4019_vm10 = vweird.f32 %v12345_v52  ;;  %vm12416_vm11 = vcmp.eq.f32.partialorder %v4022_v47, 8.507059e+37  ;;  %v6220_v5 = vmul.f32 -1.442695, %v3144_v8 }
 0x3c6   :  { %v428_v54 = vadd.f32 %v11939_v29, %v427_v22  ;;  %v2642_v0 = vsel %vm12398_vm9, %v2641_v60, %v2637_v14  ;;  %v4017_v28 = vadd.f32 %v12345_v52, %v4016_v17  ;;  %v2646_v35 = vsub.f32 1.0, %v2645_v53  ;;  %vm12437_vm13 = vmor %vm4018_vm8, %vm4019_vm10 }
 0x3c7   :  { %v12424_v58 = vadd.f32 1.0, %v7381_v24  ;;  %v7383_v42 = vpop.eup %7382  ;;  %v5399_v44 = vsub.f32 1.0, %v5398_v21  ;;  %v5406_v55 = vand.u32 2147483647, %v12343_v1  ;;  %v1313_v62 = vmul.f32 %v12365_v36, %v1312_v11 }
 0x3c8   :  { %v4528_v26 = vadd.f32 %v11939_v29, %v4527_v7  ;;  %v5408_v13 = vand.u32 2147483648, %v12343_v1  ;;  %vm1315_vm12 = vweird.f32 %v12339_v33  ;;  %v2647_v23 = vmul.f32 %v12403_v48, %v2646_v35 }
 0x3c9   :  { %7388 = vrcp.f32 %v12424_v58  ;;  %v7385_v19 = vpop.eup %7384  ;;  %v2763_v38 = vadd.f32 %v2642_v0, %v1308_v3  ;;  %v1319_v34 = vand.u32 2147483647, %v12339_v33  ;;  %v5871_v56 = vmul.f32 -1.442695, %v428_v54 }
 0x3ca   :  { %7390 = vpow2.f32 %v6220_v5  ;;  %v7387_v61 = vpop.eup %7386  ;;  %v4021_v40 = vsel %vm12437_vm13, %v12345_v52, %v4017_v28  ;;  %vm5402_vm14 = vweird.f32 %v12343_v1  ;;  %vm5403_vm15 = vweird.f32 %v12373_v50 }
 0x3cb   :  { %v1321_v32 = vand.u32 2147483648, %v12339_v33  ;;  %v12448_v51 = vadd.f32 1.0, %v7383_v42  ;;  %v5400_v63 = vmul.f32 %v12373_v50, %v5399_v44  ;;  %v1314_v2 = vadd.f32 %v12365_v36, %v1313_v62  ;;  %vm12502_vm7 = vmor %vm5402_vm14, %vm5403_vm15 }
 0x3cc   :  { %vm1316_vm0 = vweird.f32 %v12365_v36  ;;  %v6395_v9 = vmul.f32 -1.442695, %v4528_v26  ;;  %v2648_v46 = vadd.f32 %v12403_v48, %v2647_v23  ;;  %vm2650_vm1 = vweird.f32 %v12403_v48 }
 0x3cd   :  { %7392 = vrcp.f32 %v12448_v51  ;;  %v12456_v52 = vadd.f32 1.0, %v7385_v19  ;;  %vm12458_vm3 = vcmp.eq.f32.partialorder %v1319_v34, 8.507059e+37  ;;  %v2655_v18 = vand.u32 2147483648, %v12351_v37  ;;  %vm12469_vm4 = vmor %vm1315_vm12, %vm1316_vm0  ;;  %v3145_v34 = vpop.f32.mrf.mxu2 }
 0x3ce   :  { %v12463_v25 = vadd.f32 1.0, %v7387_v61  ;;  %7394 = vpow2.f32 %v5871_v56  ;;  %v4026_v6 = vsel %vm12416_vm11, %v4025_v4, %v4021_v40  ;;  %vm2649_vm5 = vweird.f32 %v12351_v37  ;;  %v4529_v40 = vpop.f32.mrf.mxu3 }
 0x3cf   :  { %v7389_v43 = vpop.eup %7388  ;;  %v2653_v15 = vand.u32 2147483647, %v12351_v37  ;;  %v1762_v16 = vadd.f32 %v11939_v29, %v1761_v20  ;;  %v1318_v27 = vsel %vm12469_vm4, %v12365_v36, %v1314_v2  ;;  %v1322_v10 = vor.u32 1.1754944e-38, %v1321_v32  ;;  %vm12481_vm2 = vmor %vm2649_vm5, %vm2650_vm1 }
 0x3d0   :  { %v7391_v59 = vpop.eup %7390  ;;  %v4029_v57 = vmul.f32 %v7389_v43, %v12424_v58  ;;  %7396 = vpow2.f32 %v6395_v9  ;;  %v5401_v47 = vadd.f32 %v12373_v50, %v5400_v63  ;;  %v2652_v29 = vsel %vm12481_vm2, %v12403_v48, %v2648_v46  ;;  %v1764_v48 = vpop.f32.mrf.mxu1 }
 0x3d1   :  { %v4037_v37 = vand.u32 2147483647, %v12424_v58  ;;  %7398 = vrcp.f32 %v12456_v52  ;;  %v2656_v36 = vor.u32 1.1754944e-38, %v2655_v18  ;;  %v4039_v45 = vand.u32 2147483648, %v12424_v58 }
 0x3d2   :  { %v4030_v8 = vsub.f32 1.0, %v4029_v57  ;;  %7400 = vrcp.f32 %v12463_v25  ;;  %v1323_v39 = vsel %vm12458_vm3, %v1322_v10, %v1318_v27  ;;  %vm2654_vm6 = vcmp.eq.f32.partialorder %v2653_v15, 8.507059e+37 }
 0x3d3   :  { %v7393_v49 = vpop.eup %7392  ;;  %v12496_v60 = vadd.f32 1.0, %v7391_v59  ;;  %v6046_v17 = vmul.f32 -1.442695, %v1762_v16  ;;  %v2657_v14 = vsel %vm2654_vm6, %v2656_v36, %v2652_v29  ;;  %vm4034_vm9 = vweird.f32 %v7389_v43 }
 0x3d4   :  { %v7395_v22 = vpop.eup %7394  ;;  %v4031_v21 = vmul.f32 %v7389_v43, %v4030_v8  ;;  %v5413_v11 = vmul.f32 %v7393_v49, %v12448_v51  ;;  %v4147_v4 = vadd.f32 %v4026_v6, %v2763_v38  ;;  %v5405_v53 = vsel %vm12502_vm7, %v12373_v50, %v5401_v47 }
 0x3d5   :  { %vm4033_vm8 = vweird.f32 %v12424_v58  ;;  %vm12511_vm10 = vcmp.eq.f32.partialorder %v4037_v37, 8.507059e+37  ;;  %v4040_v31 = vor.u32 1.1754944e-38, %v4039_v45  ;;  %v5421_v54 = vand.u32 2147483647, %v12448_v51 }
 0x3d6   :  { %v7397_v24 = vpop.eup %7396  ;;  %v4032_v3 = vadd.f32 %v7389_v43, %v4031_v21  ;;  %v5414_v5 = vsub.f32 1.0, %v5413_v11  ;;  %v2764_v28 = vadd.f32 %v2657_v14, %v1323_v39  ;;  %vm4035_vm11 = vmor %vm4033_vm8, %vm4034_vm9  ;;  %v5423_v35 = vand.u32 2147483648, %v12448_v51 }
 0x3d7   :  { %v12516_v0 = vpop.eup %7398  ;;  %7402 = vrcp.f32 %v12496_v60  ;;  %v12520_v50 = vadd.f32 1.0, %v7395_v22  ;;  %vm5418_vm12 = vweird.f32 %v7393_v49  ;;  %vm5407_vm13 = vcmp.eq.f32.partialorder %v5406_v55, 8.507059e+37 }
 0x3d8   :  { %v12522_v58 = vpop.eup %7400  ;;  %v4036_v42 = vsel %vm4035_vm11, %v7389_v43, %v4032_v3  ;;  %v5415_v44 = vmul.f32 %v7393_v49, %v5414_v5  ;;  %7404 = vpow2.f32 %v6046_v17  ;;  %v5409_v62 = vor.u32 1.1754944e-38, %v5408_v13 }
 0x3d9   :  { %v4041_v26 = vsel %vm12511_vm10, %v4040_v31, %v4036_v42  ;;  %v12530_v23 = vadd.f32 1.0, %v7397_v24  ;;  %vm5417_vm14 = vweird.f32 %v12448_v51  ;;  %v1326_v30 = vmul.f32 %v12516_v0, %v12456_v52  ;;  %v12544_v51 = vld [vmem:[%s12898_s5] ss:$0 sm:$0xff] }
 0x3da   :  { %v4148_v19 = vadd.f32 %v4041_v26, %v2764_v28  ;;  %v5416_v38 = vadd.f32 %v7393_v49, %v5415_v44  ;;  %v5410_v56 = vsel %vm5407_vm13, %v5409_v62, %v5405_v53  ;;  %vm5419_vm15 = vmor %vm5417_vm14, %vm5418_vm12  ;;  %v5424_v61 = vor.u32 1.1754944e-38, %v5423_v35  ;;  %v432_v44 = vpop.f32.mrf.mxu0 }
 0x3db   :  { %v2660_v1 = vmul.f32 %v12522_v58, %v12463_v25  ;;  %v5531_v55 = vadd.f32 %v5410_v56, %v4147_v4  ;;  %vm5422_vm0 = vcmp.eq.f32.partialorder %v5421_v54, 8.507059e+37  ;;  %7406 = vrcp.f32 %v12520_v50  ;;  %v3148_v4 = vpop.f32.mrf.mxu2 }
 0x3dc   :  { %v5420_v13 = vsel %vm5419_vm15, %v7393_v49, %v5416_v38  ;;  %7408 = vrcp.f32 %v12530_v23  ;;  %v3146_v2 = vadd.f32 %v12544_v51, %v3145_v34  ;;  %v1327_v46 = vsub.f32 1.0, %v1326_v30 }
 0x3dd   :  { %v12538_v32 = vpop.eup %7402  ;;  %v5425_v63 = vsel %vm5422_vm0, %v5424_v61, %v5420_v13  ;;  %v1336_v18 = vand.u32 2147483648, %v12456_v52  ;;  %v2661_v43 = vsub.f32 1.0, %v2660_v1  ;;  %v4530_v6 = vadd.f32 %v12544_v51, %v4529_v40 }
 0x3de   :  { %v7405_v9 = vpop.eup %7404  ;;  %v5532_v20 = vadd.f32 %v5425_v63, %v4148_v19  ;;  %v5581_v41 = vmul.f32 0.25, %v5531_v55  ;;  %v2670_v16 = vand.u32 2147483648, %v12463_v25  ;;  %v4044_v59 = vmul.f32 %v12538_v32, %v12496_v60  ;;  %v4532_v55 = vpop.f32.mrf.mxu3 }
 0x3df   :  { %v1334_v27 = vand.u32 2147483647, %v12456_v52  ;;  %v12553_v10 = vadd.f32 1.0, %v7405_v9  ;;  %v6221_v33 = vmul.f32 -1.442695, %v3146_v2  ;;  %v1328_v29 = vmul.f32 %v12516_v0, %v1327_v46 }
 0x3e0   :  { %v5582_v15 = vmul.f32 0.25, %v5532_v20  ;;  %vm1330_vm1 = vweird.f32 %v12456_v52  ;;  %v2668_v37 = vand.u32 2147483647, %v12463_v25  ;;  %v1337_v8 = vor.u32 1.1754944e-38, %v1336_v18 }
 0x3e1   :  { %v12555_v57 = vpop.eup %7406  ;;  %v2662_v45 = vmul.f32 %v12522_v58, %v2661_v43  ;;  %7410 = vrcp.f32 %v12553_v10  ;;  %v6396_v49 = vmul.f32 -1.442695, %v4530_v6  ;;  %vm2664_vm3 = vweird.f32 %v12463_v25 }
 0x3e2   :  { %v6614_v47 = vpack.c.bf16 %v5582_v15, %v5581_v41  ;;  %v12560_v36 = vpop.eup %7408  ;;  %v2671_v39 = vor.u32 1.1754944e-38, %v2670_v16  ;;  %v4045_v17 = vsub.f32 1.0, %v4044_v59  ;;  %v4054_v22 = vand.u32 2147483648, %v12496_v60 }
 0x3e3   :  { %vm1331_vm4 = vweird.f32 %v12516_v0  ;;  %vm12570_vm5 = vcmp.eq.f32.partialorder %v1334_v27, 8.507059e+37  ;;  %v1341_v21 = vmul.f32 %v12555_v57, %v12520_v50  ;;  %7412 = vpow2.f32 %v6221_v33 }
 0x3e4   :  { %6647 = vst [vmem:[%s12903_s6 + $0xb0] sm:$0xff] %v6614_v47   ;;  %v431_v11 = vadd.f32 %v12544_v51, %v430_v12  ;;  %v1329_v53 = vadd.f32 %v12516_v0, %v1328_v29  ;;  %vm2665_vm2 = vweird.f32 %v12522_v58  ;;  %vm12579_vm6 = vcmp.eq.f32.partialorder %v2668_v37, 8.507059e+37  ;;  %vm12597_vm9 = vmor %vm1330_vm1, %vm1331_vm4 }
 0x3e5   :  { %v4052_v24 = vand.u32 2147483647, %v12496_v60  ;;  %v5428_v3 = vmul.f32 %v12560_v36, %v12530_v23  ;;  %v2663_v31 = vadd.f32 %v12522_v58, %v2662_v45  ;;  %7414 = vpow2.f32 %v6396_v49  ;;  %vm12606_vm8 = vmor %vm2664_vm3, %vm2665_vm2  ;;  %v1766_v49 = vpop.f32.mrf.mxu1 }
 0x3e6   :  { %v5872_v5 = vmul.f32 -1.442695, %v431_v11  ;;  %v1765_v54 = vadd.f32 %v12544_v51, %v1764_v48  ;;  %v4046_v28 = vmul.f32 %v12538_v32, %v4045_v17  ;;  %vm4048_vm7 = vweird.f32 %v12496_v60 }
 0x3e7   :  { %v4055_v35 = vor.u32 1.1754944e-38, %v4054_v22  ;;  %v3149_v42 = vadd.f32 %v12544_v51, %v3148_v4  ;;  %v12591_v62 = vpop.eup %7410  ;;  %v5438_v19 = vand.u32 2147483648, %v12530_v23  ;;  %v1342_v38 = vsub.f32 1.0, %v1341_v21 }
 0x3e8   :  { %7416 = vpow2.f32 %v5872_v5  ;;  %v6047_v30 = vmul.f32 -1.442695, %v1765_v54  ;;  %vm4049_vm10 = vweird.f32 %v12538_v32  ;;  %vm12611_vm11 = vcmp.eq.f32.partialorder %v4052_v24, 8.507059e+37 }
 0x3e9   :  { %v5429_v56 = vsub.f32 1.0, %v5428_v3  ;;  %v5436_v61 = vand.u32 2147483647, %v12530_v23  ;;  %v2675_v1 = vmul.f32 %v12591_v62, %v12553_v10  ;;  %v7413_v13 = vpop.eup %7412  ;;  %v1333_v25 = vsel %vm12597_vm9, %v12516_v0, %v1329_v53  ;;  %vm12645_vm14 = vmor %vm4048_vm7, %vm4049_vm10 }
 0x3ea   :  { %v2667_v40 = vsel %vm12606_vm8, %v12522_v58, %v2663_v31  ;;  %vm1345_vm12 = vweird.f32 %v12520_v50  ;;  %v6222_v63 = vmul.f32 -1.442695, %v3149_v42  ;;  %v433_v2 = vadd.f32 %v12544_v51, %v432_v44 }
 0x3eb   :  { %v4047_v9 = vadd.f32 %v12538_v32, %v4046_v28  ;;  %vm5432_vm13 = vweird.f32 %v12530_v23  ;;  %v2676_v20 = vsub.f32 1.0, %v2675_v1  ;;  %v12628_v46 = vadd.f32 1.0, %v7413_v13  ;;  %v7415_v12 = vpop.eup %7414 }
 0x3ec   :  { %7418 = vpow2.f32 %v6047_v30  ;;  %v12630_v18 = vor.u32 1.1754944e-38, %v5438_v19  ;;  %v1343_v0 = vmul.f32 %v12555_v57, %v1342_v38  ;;  %v4533_v58 = vadd.f32 %v12544_v51, %v4532_v55 }
 0x3ed   :  { %7420 = vpow2.f32 %v6222_v63  ;;  %v1338_v43 = vsel %vm12570_vm5, %v1337_v8, %v1333_v25  ;;  %v5430_v6 = vmul.f32 %v12560_v36, %v5429_v56  ;;  %v1349_v41 = vand.u32 2147483647, %v12520_v50  ;;  %v3150_v25 = vpop.f32.mrf.mxu2 }
 0x3ee   :  { %7422 = vrcp.f32 %v12628_v46  ;;  %v7417_v15 = vpop.eup %7416  ;;  %v2672_v16 = vsel %vm12579_vm6, %v2671_v39, %v2667_v40  ;;  %v2677_v27 = vmul.f32 %v12591_v62, %v2676_v20  ;;  %v12650_v33 = vadd.f32 1.0, %v7415_v12 }
 0x3ef   :  { %v5873_v47 = vmul.f32 -1.442695, %v433_v2  ;;  %v4051_v29 = vsel %vm12645_vm14, %v12538_v32, %v4047_v9  ;;  %vm5433_vm15 = vweird.f32 %v12560_v36  ;;  %vm1346_vm0 = vweird.f32 %v12555_v57 }
 0x3f0   :  { %v1351_v37 = vand.u32 2147483648, %v12520_v50  ;;  %v1344_v60 = vadd.f32 %v12555_v57, %v1343_v0  ;;  %v2683_v8 = vand.u32 2147483647, %v12553_v10  ;;  %7424 = vrcp.f32 %v12650_v33  ;;  %vm12676_vm4 = vmor %vm1345_vm12, %vm1346_vm0 }
 0x3f1   :  { %v6397_v45 = vmul.f32 -1.442695, %v4533_v58  ;;  %v2765_v17 = vadd.f32 %v2672_v16, %v1338_v43  ;;  %v5431_v22 = vadd.f32 %v12560_v36, %v5430_v6  ;;  %vm12662_vm1 = vcmp.eq.f32.partialorder %v1349_v41, 8.507059e+37  ;;  %vm12687_vm2 = vmor %vm5432_vm13, %vm5433_vm15 }
 0x3f2   :  { %v7419_v39 = vpop.eup %7418  ;;  %v12666_v48 = vadd.f32 1.0, %v7417_v15  ;;  %v4056_v21 = vsel %vm12611_vm11, %v4055_v35, %v4051_v29  ;;  %v2678_v11 = vadd.f32 %v12591_v62, %v2677_v27  ;;  %vm2680_vm3 = vweird.f32 %v12591_v62  ;;  %v4534_v29 = vpop.f32.mrf.mxu3 }
 0x3f3   :  { %v7421_v14 = vpop.eup %7420  ;;  %7426 = vpow2.f32 %v5873_v47  ;;  %v1352_v7 = vor.u32 1.1754944e-38, %v1351_v37  ;;  %vm2679_vm5 = vweird.f32 %v12553_v10  ;;  %v2685_v24 = vand.u32 2147483648, %v12553_v10 }
 0x3f4   :  { %v7423_v4 = vpop.eup %7422  ;;  %v1767_v3 = vadd.f32 %v12544_v51, %v1766_v49  ;;  %vm12691_vm6 = vcmp.eq.f32.partialorder %v5436_v61, 8.507059e+37  ;;  %v1348_v5 = vsel %vm12676_vm4, %v12555_v57, %v1344_v60  ;;  %vm12698_vm7 = vcmp.eq.f32.partialorder %v2683_v8, 8.507059e+37  ;;  %vm12705_vm9 = vmor %vm2679_vm5, %vm2680_vm3 }
 0x3f5   :  { %v4059_v54 = vmul.f32 %v7423_v4, %v12628_v46  ;;  %7428 = vpow2.f32 %v6397_v45  ;;  %v4149_v23 = vadd.f32 %v4056_v21, %v2765_v17  ;;  %v4069_v35 = vand.u32 2147483648, %v12628_v46 }
 0x3f6   :  { %7430 = vrcp.f32 %v12666_v48  ;;  %v12711_v42 = vadd.f32 1.0, %v7419_v39  ;;  %v7425_v57 = vpop.eup %7424  ;;  %v5435_v44 = vsel %vm12687_vm2, %v12560_v36, %v5431_v22  ;;  %v2682_v26 = vsel %vm12705_vm9, %v12591_v62, %v2678_v11 }
 0x3f7   :  { %v4060_v19 = vsub.f32 1.0, %v4059_v54  ;;  %v12719_v38 = vadd.f32 1.0, %v7421_v14  ;;  %v1353_v30 = vsel %vm12662_vm1, %v1352_v7, %v1348_v5  ;;  %v2686_v34 = vor.u32 1.1754944e-38, %v2685_v24 }
 0x3f8   :  { %v5443_v52 = vmul.f32 %v7425_v57, %v12650_v33  ;;  %v6048_v56 = vmul.f32 -1.442695, %v1767_v3  ;;  %vm4063_vm8 = vweird.f32 %v12628_v46  ;;  %vm4064_vm10 = vweird.f32 %v7423_v4 }
 0x3f9   :  { %v7427_v61 = vpop.eup %7426  ;;  %v4061_v1 = vmul.f32 %v7423_v4, %v4060_v19  ;;  %v4067_v36 = vand.u32 2147483647, %v12628_v46  ;;  %v2687_v62 = vsel %vm12698_vm7, %v2686_v34, %v2682_v26  ;;  %v4070_v55 = vor.u32 1.1754944e-38, %v4069_v35  ;;  %vm4065_vm11 = vmor %vm4063_vm8, %vm4064_vm10 }
 0x3fa   :  { %v5444_v13 = vsub.f32 1.0, %v5443_v52  ;;  %7432 = vrcp.f32 %v12711_v42  ;;  %v5451_v2 = vand.u32 2147483647, %v12650_v33  ;;  %v5453_v9 = vand.u32 2147483648, %v12650_v33 }
 0x3fb   :  { %v7429_v40 = vpop.eup %7428  ;;  %v4062_v63 = vadd.f32 %v7423_v4, %v4061_v1  ;;  %7434 = vrcp.f32 %v12719_v38  ;;  %vm5448_vm12 = vweird.f32 %v7425_v57  ;;  %v12734_v12 = vadd.f32 1.0, %v7427_v61 }
 0x3fc   :  { %v12732_v20 = vpop.eup %7430  ;;  %v5445_v46 = vmul.f32 %v7425_v57, %v5444_v13  ;;  %7436 = vpow2.f32 %v6048_v56  ;;  %v2766_v0 = vadd.f32 %v2687_v62, %v1353_v30  ;;  %vm4068_vm13 = vcmp.eq.f32.partialorder %v4067_v36, 8.507059e+37 }
 0x3fd   :  { %v4066_v58 = vsel %vm4065_vm11, %v7423_v4, %v4062_v63  ;;  %v3151_v43 = vadd.f32 %v12544_v51, %v3150_v25  ;;  %v5440_v6 = vsel %vm12691_vm6, %v12630_v18, %v5435_v44  ;;  %vm5447_vm14 = vweird.f32 %v12650_v33 }
 0x3fe   :  { %v4071_v41 = vsel %vm4068_vm13, %v4070_v55, %v4066_v58  ;;  %v5446_v15 = vadd.f32 %v7425_v57, %v5445_v46  ;;  %vm5449_vm15 = vmor %vm5447_vm14, %vm5448_vm12  ;;  %v5454_v59 = vor.u32 1.1754944e-38, %v5453_v9  ;;  %v1356_v27 = vmul.f32 %v12732_v20, %v12666_v48 }
 0x3ff   :  { %v4150_v16 = vadd.f32 %v4071_v41, %v2766_v0  ;;  %v12743_v47 = vadd.f32 1.0, %v7429_v40  ;;  %v5533_v60 = vadd.f32 %v5440_v6, %v4149_v23  ;;  %vm5452_vm0 = vcmp.eq.f32.partialorder %v5451_v2, 8.507059e+37 }
 0x400   :  { %v12745_v37 = vpop.eup %7432  ;;  %v5450_v8 = vsel %vm5449_vm15, %v7425_v57, %v5446_v15  ;;  %7438 = vrcp.f32 %v12734_v12  ;;  %v6223_v33 = vmul.f32 -1.442695, %v3151_v43  ;;  %v4535_v17 = vadd.f32 %v12544_v51, %v4534_v29 }
 0x401   :  { %v12748_v18 = vpop.eup %7434  ;;  %v5455_v45 = vsel %vm5452_vm0, %v5454_v59, %v5450_v8  ;;  %v1357_v22 = vsub.f32 1.0, %v1356_v27  ;;  %v2690_v32 = vmul.f32 %v12745_v37, %v12711_v42  ;;  %7440 = vrcp.f32 %v12743_v47 }
 0x402   :  { %v7437_v49 = vpop.eup %7436  ;;  %v5534_v39 = vadd.f32 %v5455_v45, %v4150_v16  ;;  %v5583_v14 = vmul.f32 0.25, %v5533_v60  ;;  %v4074_v11 = vmul.f32 %v12748_v18, %v12719_v38  ;;  %7442 = vpow2.f32 %v6223_v33 }
 0x403   :  { %v12756_v4 = vadd.f32 1.0, %v7437_v49  ;;  %v6398_v24 = vmul.f32 -1.442695, %v4535_v17  ;;  %v1358_v51 = vmul.f32 %v12732_v20, %v1357_v22  ;;  %v1364_v3 = vand.u32 2147483647, %v12666_v48 }
 0x404   :  { %v5584_v21 = vmul.f32 0.25, %v5534_v39  ;;  %v2691_v31 = vsub.f32 1.0, %v2690_v32  ;;  %v4075_v50 = vsub.f32 1.0, %v4074_v11  ;;  %v1366_v54 = vand.u32 2147483648, %v12666_v48 }
 0x405   :  { %7444 = vrcp.f32 %v12756_v4  ;;  %vm1360_vm1 = vweird.f32 %v12666_v48  ;;  %v2698_v23 = vand.u32 2147483647, %v12711_v42  ;;  %v2700_v28 = vand.u32 2147483648, %v12711_v42 }
 0x406   :  { %v12758_v53 = vpop.eup %7438  ;;  %v6619_v7 = vpack.c.bf16 %v5584_v21, %v5583_v14  ;;  %7446 = vpow2.f32 %v6398_v24  ;;  %v1359_v57 = vadd.f32 %v12732_v20, %v1358_v51  ;;  %vm1361_vm3 = vweird.f32 %v12732_v20 }
 0x407   :  { %v1371_v5 = vmul.f32 %v12758_v53, %v12734_v12  ;;  %v12768_v10 = vpop.eup %7440  ;;  %vm12776_vm4 = vcmp.eq.f32.partialorder %v1364_v3, 8.507059e+37  ;;  %v2692_v26 = vmul.f32 %v12745_v37, %v2691_v31  ;;  %v4076_v19 = vmul.f32 %v12748_v18, %v4075_v50  ;;  %vm12793_vm2 = vmor %vm1360_vm1, %vm1361_vm3 }
 0x408   :  { %6648 = vst [vmem:[%s12903_s6 + $0xb8] sm:$0xff] %v6619_v7   ;;  %v7443_v35 = vpop.eup %7442  ;;  %v5458_v30 = vmul.f32 %v12768_v10, %v12743_v47  ;;  %v1367_v56 = vor.u32 1.1754944e-38, %v1366_v54  ;;  %vm2694_vm5 = vweird.f32 %v12711_v42  ;;  %v4082_v61 = vand.u32 2147483647, %v12719_v38 }
 0x409   :  { %v1372_v34 = vsub.f32 1.0, %v1371_v5  ;;  %v12784_v52 = vadd.f32 1.0, %v7443_v35  ;;  %v4084_v1 = vand.u32 2147483648, %v12719_v38  ;;  %vm12797_vm6 = vcmp.eq.f32.partialorder %v2698_v23, 8.507059e+37 }
 0x40a   :  { %v2701_v13 = vor.u32 1.1754944e-38, %v2700_v28  ;;  %vm4078_vm7 = vweird.f32 %v12719_v38  ;;  %v1363_v25 = vsel %vm12793_vm2, %v12732_v20, %v1359_v57  ;;  %v2693_v40 = vadd.f32 %v12745_v37, %v2692_v26 }
 0x40b   :  { %v12789_v36 = vpop.eup %7444  ;;  %7448 = vrcp.f32 %v12784_v52  ;;  %vm2695_vm9 = vweird.f32 %v12745_v37  ;;  %v4077_v2 = vadd.f32 %v12748_v18, %v4076_v19  ;;  %vm4079_vm8 = vweird.f32 %v12748_v18 }
 0x40c   :  { %v2705_v48 = vmul.f32 %v12789_v36, %v12756_v4  ;;  %v7447_v63 = vpop.eup %7446  ;;  %v5459_v9 = vsub.f32 1.0, %v5458_v30  ;;  %v1373_v46 = vmul.f32 %v12758_v53, %v1372_v34  ;;  %vm12813_vm10 = vcmp.eq.f32.partialorder %v4082_v61, 8.507059e+37  ;;  %vm12823_vm11 = vmor %vm2694_vm5, %vm2695_vm9 }
 0x40d   :  { %v4085_v20 = vor.u32 1.1754944e-38, %v4084_v1  ;;  %v12817_v43 = vadd.f32 1.0, %v7447_v63  ;;  %v1368_v6 = vsel %vm12776_vm4, %v1367_v56, %v1363_v25  ;;  %vm5462_vm12 = vweird.f32 %v12743_v47  ;;  %vm12836_vm13 = vmor %vm4078_vm7, %vm4079_vm8 }
 0x40e   :  { %v2706_v58 = vsub.f32 1.0, %v2705_v48  ;;  %v5466_v15 = vand.u32 2147483647, %v12743_v47  ;;  %v5468_v16 = vand.u32 2147483648, %v12743_v47  ;;  %v1381_v59 = vand.u32 2147483648, %v12734_v12 }
 0x40f   :  { %v2697_v27 = vsel %vm12823_vm11, %v12745_v37, %v2693_v40  ;;  %vm1376_vm14 = vweird.f32 %v12758_v53  ;;  %7450 = vrcp.f32 %v12817_v43  ;;  %v4081_v8 = vsel %vm12836_vm13, %v12748_v18, %v4077_v2 }
 0x410   :  { %v2707_v29 = vmul.f32 %v12789_v36, %v2706_v58  ;;  %v5460_v45 = vmul.f32 %v12768_v10, %v5459_v9  ;;  %v1374_v37 = vadd.f32 %v12758_v53, %v1373_v46  ;;  %vm2710_vm15 = vweird.f32 %v12789_v36 }
 0x411   :  { %v7449_v60 = vpop.eup %7448  ;;  %vm1375_vm0 = vweird.f32 %v12734_v12  ;;  %v2715_v33 = vand.u32 2147483648, %v12756_v4  ;;  %vm5463_vm1 = vweird.f32 %v12768_v10  ;;  %v1379_v18 = vand.u32 2147483647, %v12734_v12 }
 0x412   :  { %v2708_v38 = vadd.f32 %v12789_v36, %v2707_v29  ;;  %v4089_v49 = vmul.f32 %v7449_v60, %v12784_v52  ;;  %vm12854_vm3 = vmor %vm1375_vm0, %vm1376_vm14  ;;  %vm2709_vm4 = vweird.f32 %v12756_v4  ;;  %v2713_v17 = vand.u32 2147483647, %v12756_v4 }
 0x413   :  { %v2702_v22 = vsel %vm12797_vm6, %v2701_v13, %v2697_v27  ;;  %v4086_v32 = vsel %vm12813_vm10, %v4085_v20, %v4081_v8  ;;  %v1382_v14 = vor.u32 1.1754944e-38, %v1381_v59  ;;  %vm12865_vm5 = vmor %vm2709_vm4, %vm2710_vm15  ;;  %v5461_v7 = vadd.f32 %v12768_v10, %v5460_v45 }
 0x414   :  { %v4090_v11 = vsub.f32 1.0, %v4089_v49  ;;  %v1378_v12 = vsel %vm12854_vm3, %v12758_v53, %v1374_v37  ;;  %v2712_v4 = vsel %vm12865_vm5, %v12789_v36, %v2708_v38  ;;  %v4099_v24 = vand.u32 2147483648, %v12784_v52  ;;  %vm12883_vm9 = vmor %vm5462_vm12, %vm5463_vm1 }
 0x415   :  { %v7451_v51 = vpop.eup %7450  ;;  %v2716_v3 = vor.u32 1.1754944e-38, %v2715_v33  ;;  %vm4094_vm2 = vweird.f32 %v7449_v60  ;;  %v4097_v50 = vand.u32 2147483647, %v12784_v52  ;;  %v2767_v5 = vadd.f32 %v2702_v22, %v1368_v6 }
 0x416   :  { %v4091_v31 = vmul.f32 %v7449_v60, %v4090_v11  ;;  %vm1380_vm6 = vcmp.eq.f32.partialorder %v1379_v18, 8.507059e+37  ;;  %vm2714_vm7 = vcmp.eq.f32.partialorder %v2713_v17, 8.507059e+37  ;;  %v5473_v54 = vmul.f32 %v7451_v51, %v12817_v43 }
 0x417   :  { %v1383_v23 = vsel %vm1380_vm6, %v1382_v14, %v1378_v12  ;;  %v2717_v28 = vsel %vm2714_vm7, %v2716_v3, %v2712_v4  ;;  %vm4093_vm8 = vweird.f32 %v12784_v52  ;;  %v4151_v57 = vadd.f32 %v4086_v32, %v2767_v5 }
 0x418   :  { %v4092_v35 = vadd.f32 %v7449_v60, %v4091_v31  ;;  %v5465_v44 = vsel %vm12883_vm9, %v12768_v10, %v5461_v7  ;;  %vm4095_vm10 = vmor %vm4093_vm8, %vm4094_vm2  ;;  %v4100_v26 = vor.u32 1.1754944e-38, %v4099_v24  ;;  %v5474_v19 = vsub.f32 1.0, %v5473_v54 }
 0x419   :  { %vm4098_vm11 = vcmp.eq.f32.partialorder %v4097_v50, 8.507059e+37  ;;  %v5481_v47 = vand.u32 2147483647, %v12817_v43  ;;  %v5483_v34 = vand.u32 2147483648, %v12817_v43  ;;  %v2768_v56 = vadd.f32 %v2717_v28, %v1383_v23 }
 0x41a   :  { %v4096_v30 = vsel %vm4095_vm10, %v7449_v60, %v4092_v35  ;;  %v5475_v1 = vmul.f32 %v7451_v51, %v5474_v19  ;;  %vm5478_vm12 = vweird.f32 %v7451_v51  ;;  %v5469_v36 = vor.u32 1.1754944e-38, %v5468_v16 }
 0x41b   :  { %v4101_v61 = vsel %vm4098_vm11, %v4100_v26, %v4096_v30  ;;  %vm5467_vm13 = vcmp.eq.f32.partialorder %v5466_v15, 8.507059e+37  ;;  %vm5477_vm14 = vweird.f32 %v12817_v43  ;;  %v5484_v55 = vor.u32 1.1754944e-38, %v5483_v34 }
 0x41c   :  { %v4152_v52 = vadd.f32 %v4101_v61, %v2768_v56  ;;  %v5476_v62 = vadd.f32 %v7451_v51, %v5475_v1  ;;  %v5470_v10 = vsel %vm5467_vm13, %v5469_v36, %v5465_v44  ;;  %vm5479_vm15 = vmor %vm5477_vm14, %vm5478_vm12  ;;  %vm5482_vm0 = vcmp.eq.f32.partialorder %v5481_v47, 8.507059e+37 }
 0x41d   :  { %v5535_v13 = vadd.f32 %v5470_v10, %v4151_v57 }
 0x41e   :  { %v5480_v25 = vsel %vm5479_vm15, %v7451_v51, %v5476_v62 }
 0x41f   :  { %v5485_v40 = vsel %vm5482_vm0, %v5484_v55, %v5480_v25  ;;  %v5585_v63 = vmul.f32 0.25, %v5535_v13 }
 0x420   :  { %v5536_v48 = vadd.f32 %v5485_v40, %v4152_v52 }
 0x422   :  { %v5586_v2 = vmul.f32 0.25, %v5536_v48 }
 0x424   :  { %v6624_v9 = vpack.c.bf16 %v5586_v2, %v5585_v63 }
 0x426   :  { %6649 = vst [vmem:[%s12903_s6 + $0xc0] sm:$0xff] %v6624_v9  }

// kernel: lenet_forward.4
= control target key start
LH: loop header
LB: loop body
LE: loop exit
PB: predicated region body
PF: predicated region fallthrough
CT: control target
= control target key end

     0   :  { %vm161_vm0 = vcmask 1042432   ;;  %vm148_vm1 = vcmask 179200   ;;  %s2860_s4 = inlined_call_operand.vmem [shape: bf16[150,128], index: 4, kind: input, shape index: {}]   ;;  %s2861_s1 = inlined_call_operand.vmem [shape: bf16[64,150], index: 1, kind: input, shape index: {}]   ;;  %s2862_s0 = inlined_call_operand.vmem [shape: bf16[64,150], index: 0, kind: input, shape index: {}]   ;;  %s2863_s5 = inlined_call_operand.vmem [shape: f32[1,128], index: 5, kind: input, shape index: {}]   ;;  %s2864_s2 = inlined_call_operand.vmem [shape: bf16[64,150], index: 2, kind: input, shape index: {}]   ;;  %s2865_s3 = inlined_call_operand.vmem [shape: bf16[64,150], index: 3, kind: input, shape index: {}]   ;;  %s2866_s6 = inlined_call_operand.vmem [shape: bf16[64,128], index: 6, kind: output, shape index: {}]  }
   0x1   :  { %v1669_v0 = vld [vmem:[%s2860_s4 + $0x38] sm:$0xff]  ;;  %v42_v1 = vld [vmem:[%s2860_s4 + $0x48] sm:$0x7]  ;;  %v1679_v3 = vld [vmem:[%s2860_s4 + $0x30] sm:$0xff] }
   0x2   :  { %v128_v2 = vunpack.c.l.b16 %v42_v1  ;;  %165 = vmatpush.bf16.msra.mxu0 %v1669_v0  ;;  %431 = vmatpush.bf16.msra.mxu2 %v1669_v0  ;;  %v1445_v6 = vld [vmem:[%s2860_s4 + $0x40] sm:$0xff]  ;;  %v1688_v7 = vld [vmem:[%s2860_s4 + $0x28] sm:$0xff]  ;;  %v1440_v15 = vld [vmem:[%s2860_s4 + $0x18] sm:$0xff] }
   0x3   :  { %v1454_v8 = vld [vmem:[%s2861_s1 + $0x4] sm:$0xf]  ;;  %v1309_v9 = vld [vmem:[%s2861_s1 + $0x8] sm:$0xf0]  ;;  %v1439_v16 = vld [vmem:[%s2860_s4 + $0x10] sm:$0xff] }
   0x4   :  { %v138_v4 = vpack.c.b16 %v128_v2, %v128_v2  ;;  %v1446_v10 = vld [vmem:[%s2862_s0 + $0x4] sm:$0xf]  ;;  %v1229_v11 = vld [vmem:[%s2862_s0 + $0x8] sm:$0xf0]  ;;  %v1312_v12 = vor.u32 %v1454_v8, %v1309_v9  ;;  %v1456_v18 = vld [vmem:[%s2861_s1 + $0x14] sm:$0xf] }
   0x5   :  { %v1441_v13 = vld [vmem:[%s2860_s4 + $0x20] sm:$0xff]  ;;  %v1232_v14 = vor.u32 %v1446_v10, %v1229_v11  ;;  %v1438_v17 = vld [vmem:[%s2860_s4 + $0x8] sm:$0xff]  ;;  %v1317_v19 = vld [vmem:[%s2861_s1 + $0x18] sm:$0xf0] }
   0x6   :  { %v163_v5 = vsel %vm161_vm0, %v138_v4, 0  ;;  %166 = vmatpush.bf16.msra.mxu0 %v1679_v3  ;;  %432 = vmatpush.bf16.msra.mxu2 %v1679_v3  ;;  %v1448_v20 = vld [vmem:[%s2862_s0 + $0x14] sm:$0xf]  ;;  %v1237_v21 = vld [vmem:[%s2862_s0 + $0x18] sm:$0xf0]  ;;  %v1320_v22 = vor.u32 %v1456_v18, %v1317_v19  ;;  %v1437_v23 = vld [vmem:[%s2860_s4] sm:$0xff] }
   0x7   :  { %466 = vmatpush.bf16.msra.mxu3 %v163_v5  ;;  %200 = vmatpush.bf16.msra.mxu1 %v163_v5  ;;  %v1240_v24 = vor.u32 %v1448_v20, %v1237_v21  ;;  %v1227_v25 = vld [vmem:[%s2862_s0] sm:$0xf]  ;;  %v1447_v26 = vld [vmem:[%s2862_s0 + $0x4] sm:$0xf0]  ;;  %v1458_v31 = vld [vmem:[%s2861_s1 + $0x24] sm:$0xf] }
   0x8   :  { %v1307_v27 = vld [vmem:[%s2861_s1] sm:$0xf]  ;;  %v1455_v28 = vld [vmem:[%s2861_s1 + $0x4] sm:$0xf0]  ;;  %v1228_v29 = vor.u32 %v1447_v26, %v1227_v25  ;;  %v1325_v32 = vld [vmem:[%s2861_s1 + $0x28] sm:$0xf0] }
   0x9   :  { %v1308_v30 = vor.u32 %v1455_v28, %v1307_v27  ;;  %v1450_v33 = vld [vmem:[%s2862_s0 + $0x24] sm:$0xf]  ;;  %v1245_v34 = vld [vmem:[%s2862_s0 + $0x28] sm:$0xf0]  ;;  %v1328_v35 = vor.u32 %v1458_v31, %v1325_v32  ;;  %v1235_v37 = vld [vmem:[%s2862_s0 + $0x10] sm:$0xf] }
   0xa   :  { %167 = vmatpush.bf16.msra.mxu0 %v1688_v7  ;;  %433 = vmatpush.bf16.msra.mxu2 %v1688_v7  ;;  %v1248_v36 = vor.u32 %v1450_v33, %v1245_v34  ;;  %v1449_v38 = vld [vmem:[%s2862_s0 + $0x14] sm:$0xf0]  ;;  %v1315_v39 = vld [vmem:[%s2861_s1 + $0x10] sm:$0xf]  ;;  %v1460_v43 = vld [vmem:[%s2861_s1 + $0x34] sm:$0xf] }
   0xb   :  { %467 = vmatpush.bf16.msra.mxu3 %v1445_v6  ;;  %201 = vmatpush.bf16.msra.mxu1 %v1445_v6  ;;  %v1457_v40 = vld [vmem:[%s2861_s1 + $0x14] sm:$0xf0]  ;;  %v1236_v41 = vor.u32 %v1449_v38, %v1235_v37  ;;  %v1333_v44 = vld [vmem:[%s2861_s1 + $0x38] sm:$0xf0]  ;;  %v1452_v45 = vld [vmem:[%s2862_s0 + $0x34] sm:$0xf] }
   0xc   :  { %v1316_v42 = vor.u32 %v1457_v40, %v1315_v39  ;;  %v1253_v46 = vld [vmem:[%s2862_s0 + $0x38] sm:$0xf0]  ;;  %v1336_v47 = vor.u32 %v1460_v43, %v1333_v44  ;;  %v1243_v49 = vld [vmem:[%s2862_s0 + $0x20] sm:$0xf]  ;;  %v1451_v50 = vld [vmem:[%s2862_s0 + $0x24] sm:$0xf0] }
   0xd   :  { %v1256_v48 = vor.u32 %v1452_v45, %v1253_v46  ;;  %v1323_v51 = vld [vmem:[%s2861_s1 + $0x20] sm:$0xf]  ;;  %v1459_v52 = vld [vmem:[%s2861_s1 + $0x24] sm:$0xf0]  ;;  %v1244_v53 = vor.u32 %v1451_v50, %v1243_v49  ;;  %v1462_v55 = vld [vmem:[%s2864_s2 + $0x4] sm:$0xf] }
   0xe   :  { %1337 = vmatmul.msk.bf16.vlgmr.msra.gmra.mxu3 %vm148_vm1, %v1312_v12  ;;  %168 = vmatpush.bf16.msra.mxu0 %v1441_v13  ;;  %v1324_v54 = vor.u32 %v1459_v52, %v1323_v51  ;;  %v1353_v56 = vld [vmem:[%s2864_s2 + $0x8] sm:$0xf0]  ;;  %v1351_v57 = vld [vmem:[%s2864_s2] sm:$0xf]  ;;  %v1463_v58 = vld [vmem:[%s2864_s2 + $0x4] sm:$0xf0] }
   0xf   :  { %740 = vmatpush.bf16.msrb.mxu3 %v163_v5  ;;  %705 = vmatpush.bf16.msrb.mxu1 %v1669_v0  ;;  %v1356_v59 = vor.u32 %v1462_v55, %v1353_v56  ;;  %v1352_v60 = vor.u32 %v1463_v58, %v1351_v57  ;;  %v1251_v61 = vld [vmem:[%s2862_s0 + $0x30] sm:$0xf]  ;;  %v1453_v62 = vld [vmem:[%s2862_s0 + $0x34] sm:$0xf0]  ;;  %v1361_v4 = vld [vmem:[%s2864_s2 + $0x18] sm:$0xf0] }
  0x10   :  { %1293 = vmatmul.msk.bf16.vlgmr.msra.gmra.mxu1 %vm148_vm1, %v1232_v14  ;;  %434 = vmatpush.bf16.msra.mxu2 %v1441_v13  ;;  %v1331_v63 = vld [vmem:[%s2861_s1 + $0x30] sm:$0xf]  ;;  %v1252_v1 = vor.u32 %v1453_v62, %v1251_v61  ;;  %v1395_v9 = vld [vmem:[%s2865_s3] sm:$0xf]  ;;  %v1471_v10 = vld [vmem:[%s2865_s3 + $0x4] sm:$0xf0] }
  0x11   :  { %v1470_v11 = vld [vmem:[%s2865_s3 + $0x4] sm:$0xf]  ;;  %v1397_v12 = vld [vmem:[%s2865_s3 + $0x8] sm:$0xf0]  ;;  %v1467_v18 = vld [vmem:[%s2864_s2 + $0x24] sm:$0xf0] }
  0x12   :  { %169 = vmatpush.bf16.msra.mxu0 %v1440_v15  ;;  %v1400_v14 = vor.u32 %v1470_v11, %v1397_v12  ;;  %v1403_v21 = vld [vmem:[%s2865_s3 + $0x10] sm:$0xf]  ;;  %v1468_v27 = vld [vmem:[%s2864_s2 + $0x34] sm:$0xf]  ;;  %v1377_v28 = vld [vmem:[%s2864_s2 + $0x38] sm:$0xf0] }
  0x13   :  { %706 = vmatpush.bf16.msrb.mxu1 %v1679_v3  ;;  %741 = vmatpush.bf16.msrb.mxu3 %v1445_v6  ;;  %v1380_v31 = vor.u32 %v1468_v27, %v1377_v28  ;;  %v1411_v33 = vld [vmem:[%s2865_s3 + $0x20] sm:$0xf]  ;;  %v1475_v34 = vld [vmem:[%s2865_s3 + $0x24] sm:$0xf0]  ;;  %v1419_v39 = vld [vmem:[%s2865_s3 + $0x30] sm:$0xf] }
  0x14   :  { %435 = vmatpush.bf16.msra.mxu2 %v1440_v15  ;;  %v1412_v37 = vor.u32 %v1475_v34, %v1411_v33  ;;  %v1477_v40 = vld [vmem:[%s2865_s3 + $0x34] sm:$0xf0]  ;;  %v1421_v43 = vld [vmem:[%s2865_s3 + $0x38] sm:$0xf0]  ;;  %v1925_v50 = vld [vmem:[%s2863_s5] ss:$0 sm:$0xff] }
  0x15   :  { %v1420_v44 = vor.u32 %v1477_v40, %v1419_v39 }
  0x16   :  { %170 = vmatpush.bf16.msra.mxu0 %v1439_v16 }
  0x17   :  { %707 = vmatpush.bf16.msrb.mxu1 %v1688_v7 }
  0x18   :  { %436 = vmatpush.bf16.msra.mxu2 %v1439_v16 }
  0x1a   :  { %171 = vmatpush.bf16.msra.mxu0 %v1438_v17 }
  0x1b   :  { %708 = vmatpush.bf16.msrb.mxu1 %v1441_v13 }
  0x1c   :  { %437 = vmatpush.bf16.msra.mxu2 %v1438_v17 }
  0x1e   :  { %1338 = vmatmul.msk.bf16.gmra.mxu3 %vm148_vm1, %v1320_v22  ;;  %172 = vmatpush.bf16.msra.mxu0 %v1437_v23  ;;  %v1473_v22 = vld [vmem:[%s2865_s3 + $0x14] sm:$0xf0] }
  0x1f   :  { %709 = vmatpush.bf16.msrb.mxu1 %v1440_v15  ;;  %v1404_v25 = vor.u32 %v1473_v22, %v1403_v21 }
  0x20   :  { %1294 = vmatmul.msk.bf16.gmra.mxu1 %vm148_vm1, %v1240_v24  ;;  %438 = vmatpush.bf16.msra.mxu2 %v1437_v23  ;;  %v1405_v24 = vld [vmem:[%s2865_s3 + $0x18] sm:$0xf0] }
  0x21   :  { %173 = vmatmul.bf16.vlgmr.msra.gmra.mxu0 %v1228_v29  ;;  %v1375_v29 = vld [vmem:[%s2864_s2 + $0x30] sm:$0xf] }
  0x22   :  { %979 = vmatpush.bf16.msrb.mxu0 %v1669_v0  ;;  %v1461_v0 = vld [vmem:[%s2861_s1 + $0x34] sm:$0xf0] }
  0x23   :  { %710 = vmatpush.bf16.msrb.mxu1 %v1439_v16  ;;  %439 = vmatmul.bf16.vlgmr.msra.gmra.mxu2 %v1308_v30  ;;  %v1332_v2 = vor.u32 %v1461_v0, %v1331_v63  ;;  %v1469_v30 = vld [vmem:[%s2864_s2 + $0x34] sm:$0xf0] }
  0x24   :  { %1014 = vmatpush.bf16.msrb.mxu2 %v163_v5  ;;  %v1359_v5 = vld [vmem:[%s2864_s2 + $0x10] sm:$0xf]  ;;  %v1376_v32 = vor.u32 %v1469_v30, %v1375_v29 }
  0x26   :  { %980 = vmatpush.bf16.msrb.mxu0 %v1679_v3  ;;  %v1464_v3 = vld [vmem:[%s2864_s2 + $0x14] sm:$0xf] }
  0x27   :  { %711 = vmatpush.bf16.msrb.mxu1 %v1438_v17 }
  0x28   :  { %1015 = vmatpush.bf16.msrb.mxu2 %v1445_v6  ;;  %v1465_v6 = vld [vmem:[%s2864_s2 + $0x14] sm:$0xf0] }
  0x29   :  { %v1360_v8 = vor.u32 %v1465_v6, %v1359_v5 }
  0x2a   :  { %981 = vmatpush.bf16.msrb.mxu0 %v1688_v7  ;;  %v1364_v7 = vor.u32 %v1464_v3, %v1361_v4 }
  0x2b   :  { %712 = vmatpush.bf16.msrb.mxu1 %v1437_v23 }
  0x2e   :  { %982 = vmatpush.bf16.msrb.mxu0 %v1441_v13  ;;  %1339 = vmatmul.msk.bf16.gmra.mxu3 %vm148_vm1, %v1328_v35  ;;  %v1396_v13 = vor.u32 %v1471_v10, %v1395_v9  ;;  %v1474_v35 = vld [vmem:[%s2865_s3 + $0x24] sm:$0xf] }
  0x30   :  { %1295 = vmatmul.msk.bf16.gmra.mxu1 %vm148_vm1, %v1248_v36  ;;  %v1413_v36 = vld [vmem:[%s2865_s3 + $0x28] sm:$0xf0] }
  0x31   :  { %178 = vmatmul.bf16.gmra.mxu0 %v1236_v41  ;;  %v1416_v38 = vor.u32 %v1474_v35, %v1413_v36 }
  0x32   :  { %983 = vmatpush.bf16.msrb.mxu0 %v1440_v15  ;;  %v1466_v15 = vld [vmem:[%s2864_s2 + $0x24] sm:$0xf] }
  0x33   :  { %444 = vmatmul.bf16.gmra.mxu2 %v1316_v42  ;;  %v1476_v42 = vld [vmem:[%s2865_s3 + $0x34] sm:$0xf] }
  0x34   :  { %v1424_v45 = vor.u32 %v1476_v42, %v1421_v43 }
  0x36   :  { %984 = vmatpush.bf16.msrb.mxu0 %v1439_v16  ;;  %v1369_v16 = vld [vmem:[%s2864_s2 + $0x28] sm:$0xf0] }
  0x37   :  { %v1372_v19 = vor.u32 %v1466_v15, %v1369_v16 }
  0x3a   :  { %985 = vmatpush.bf16.msrb.mxu0 %v1438_v17  ;;  %v1367_v17 = vld [vmem:[%s2864_s2 + $0x20] sm:$0xf] }
  0x3b   :  { %v1368_v20 = vor.u32 %v1467_v18, %v1367_v17 }
  0x3e   :  { %986 = vmatpush.bf16.msrb.mxu0 %v1437_v23  ;;  %1340 = vmatmul.msk.bf16.gmra.mxu3 %vm148_vm1, %v1336_v47  ;;  %v1472_v23 = vld [vmem:[%s2865_s3 + $0x14] sm:$0xf] }
  0x3f   :  { %v1408_v26 = vor.u32 %v1472_v23, %v1405_v24 }
  0x40   :  { %1296 = vmatmul.msk.bf16.gmra.mxu1 %vm148_vm1, %v1256_v48 }
  0x41   :  { %183 = vmatmul.bf16.gmra.mxu0 %v1244_v53 }
  0x43   :  { %449 = vmatmul.bf16.gmra.mxu2 %v1324_v54 }
  0x4e   :  { %1381 = vmatmul.msk.bf16.vlgmr.msrb.gmra.mxu3 %vm148_vm1, %v1356_v59 }
  0x50   :  { %713 = vmatmul.bf16.vlgmr.msrb.gmra.mxu1 %v1352_v60 }
  0x51   :  { %188 = vmatmul.bf16.gmra.mxu0 %v1252_v1 }
  0x53   :  { %454 = vmatmul.bf16.gmra.mxu2 %v1332_v2 }
  0x5e   :  { %1382 = vmatmul.msk.bf16.gmra.mxu3 %vm148_vm1, %v1364_v7 }
  0x60   :  { %718 = vmatmul.bf16.gmra.mxu1 %v1360_v8 }
  0x61   :  { %987 = vmatmul.bf16.vlgmr.msrb.gmra.mxu0 %v1396_v13 }
  0x63   :  { %1425 = vmatmul.msk.bf16.vlgmr.msrb.gmra.mxu2 %vm148_vm1, %v1400_v14 }
  0x6e   :  { %1383 = vmatmul.msk.bf16.gmra.mxu3 %vm148_vm1, %v1372_v19 }
  0x70   :  { %723 = vmatmul.bf16.gmra.mxu1 %v1368_v20 }
  0x71   :  { %992 = vmatmul.bf16.gmra.mxu0 %v1404_v25 }
  0x73   :  { %1426 = vmatmul.msk.bf16.gmra.mxu2 %vm148_vm1, %v1408_v26 }
  0x7e   :  { %1384 = vmatmul.msk.bf16.gmra.mxu3 %vm148_vm1, %v1380_v31 }
  0x80   :  { %728 = vmatmul.bf16.gmra.mxu1 %v1376_v32 }
  0x81   :  { %997 = vmatmul.bf16.gmra.mxu0 %v1412_v37 }
  0x83   :  { %1427 = vmatmul.msk.bf16.gmra.mxu2 %vm148_vm1, %v1416_v38 }
  0x8d   :  { %v203_v41 = vpop.f32.mrf.mxu1 }
  0x91   :  { %v469_v46 = vpop.f32.mrf.mxu3  ;;  %1002 = vmatmul.bf16.gmra.mxu0 %v1420_v44 }
  0x93   :  { %1428 = vmatmul.msk.bf16.gmra.mxu2 %vm148_vm1, %v1424_v45 }
  0x95   :  { %v205_v47 = vpop.f32.mrf.mxu1 }
  0x99   :  { %v471_v48 = vpop.f32.mrf.mxu3 }
  0x9d   :  { %v208_v49 = vpop.f32.mrf.mxu1 }
  0x9e   :  { %v174_v51 = vpop.f32.mrf.mxu0 }
  0x9f   :  { %v175_v52 = vadd.f32 %v1925_v50, %v174_v51 }
  0xa1   :  { %v474_v53 = vpop.f32.mrf.mxu3  ;;  %v204_v54 = vadd.f32 %v203_v41, %v175_v52 }
  0xa3   :  { %v1297_v55 = vmul.f32 -1.442695, %v204_v54 }
  0xa5   :  { %v210_v56 = vpop.f32.mrf.mxu1  ;;  %1502 = vpow2.f32 %v1297_v55 }
  0xa6   :  { %v440_v57 = vpop.f32.mrf.mxu2  ;;  %v176_v59 = vpop.f32.mrf.mxu0 }
  0xa7   :  { %v441_v58 = vadd.f32 %v1925_v50, %v440_v57  ;;  %v177_v61 = vadd.f32 %v1925_v50, %v176_v59 }
  0xa9   :  { %v470_v60 = vadd.f32 %v469_v46, %v441_v58  ;;  %v476_v62 = vpop.f32.mrf.mxu3  ;;  %v206_v3 = vadd.f32 %v205_v47, %v177_v61 }
  0xab   :  { %v1341_v63 = vmul.f32 -1.442695, %v470_v60  ;;  %v1503_v0 = vpop.eup %1502  ;;  %v1298_v8 = vmul.f32 -1.442695, %v206_v3 }
  0xac   :  { %v1932_v2 = vadd.f32 1.0, %v1503_v0 }
  0xad   :  { %v1930_v1 = vpop.f32.mrf.mxu1  ;;  %1504 = vpow2.f32 %v1341_v63 }
  0xae   :  { %v442_v4 = vpop.f32.mrf.mxu2  ;;  %v179_v5 = vpop.f32.mrf.mxu0  ;;  %1506 = vrcp.f32 %v1932_v2  ;;  %vm260_vm6 = vweird.f32 %v1932_v2  ;;  %v264_v57 = vand.u32 2147483647, %v1932_v2 }
  0xaf   :  { %v443_v6 = vadd.f32 %v1925_v50, %v442_v4  ;;  %v180_v7 = vadd.f32 %v1925_v50, %v179_v5  ;;  %1508 = vpow2.f32 %v1298_v8 }
  0xb0   :  { %vm265_vm9 = vcmp.eq.f32.partialorder %v264_v57, 8.507059e+37 }
  0xb1   :  { %v1937_v9 = vpop.f32.mrf.mxu3  ;;  %v209_v10 = vadd.f32 %v208_v49, %v180_v7  ;;  %v472_v13 = vadd.f32 %v471_v48, %v443_v6 }
  0xb3   :  { %v1505_v11 = vpop.eup %1504  ;;  %v1342_v18 = vmul.f32 -1.442695, %v472_v13  ;;  %v1299_v26 = vmul.f32 -1.442695, %v209_v10 }
  0xb4   :  { %v1939_v12 = vadd.f32 1.0, %v1505_v11  ;;  %v1944_v16 = vpop.eup %1506 }
  0xb5   :  { %v1942_v15 = vpop.f32.mrf.mxu1  ;;  %v256_v20 = vmul.f32 %v1944_v16, %v1932_v2  ;;  %v1509_v23 = vpop.eup %1508  ;;  %vm261_vm3 = vweird.f32 %v1944_v16 }
  0xb6   :  { %1510 = vrcp.f32 %v1939_v12  ;;  %v445_v14 = vpop.f32.mrf.mxu2  ;;  %v181_v17 = vpop.f32.mrf.mxu0  ;;  %v1953_v33 = vadd.f32 1.0, %v1509_v23  ;;  %v532_v45 = vand.u32 2147483648, %v1939_v12  ;;  %vm526_vm4 = vweird.f32 %v1939_v12  ;;  %vm1985_vm7 = vmor %vm260_vm6, %vm261_vm3 }
  0xb7   :  { %v446_v19 = vadd.f32 %v1925_v50, %v445_v14  ;;  %v182_v21 = vadd.f32 %v1925_v50, %v181_v17  ;;  %1512 = vpow2.f32 %v1342_v18  ;;  %v257_v29 = vsub.f32 1.0, %v256_v20 }
  0xb8   :  { %1514 = vpow2.f32 %v1299_v26  ;;  %v530_v49 = vand.u32 2147483647, %v1939_v12  ;;  %vm275_vm10 = vweird.f32 %v1953_v33 }
  0xb9   :  { %v1950_v22 = vpop.f32.mrf.mxu3  ;;  %v475_v24 = vadd.f32 %v474_v53, %v446_v19  ;;  %v211_v30 = vadd.f32 %v210_v56, %v182_v21  ;;  %v258_v39 = vmul.f32 %v1944_v16, %v257_v29  ;;  %v266_v53 = vand.u32 2147483648, %v1932_v2 }
  0xba   :  { %vm531_vm8 = vcmp.eq.f32.partialorder %v530_v49, 8.507059e+37 }
  0xbb   :  { %v1343_v28 = vmul.f32 -1.442695, %v475_v24  ;;  %v1300_v40 = vmul.f32 -1.442695, %v211_v30  ;;  %v259_v48 = vadd.f32 %v1944_v16, %v258_v39  ;;  %v267_v4 = vor.u32 1.1754944e-38, %v266_v53 }
  0xbc   :  { %v1511_v25 = vpop.eup %1510  ;;  %v281_v30 = vand.u32 2147483648, %v1953_v33 }
  0xbd   :  { %v522_v27 = vmul.f32 %v1511_v25, %v1939_v12  ;;  %v1956_v36 = vpop.f32.mrf.mxu1  ;;  %1516 = vpow2.f32 %v1343_v28  ;;  %v1513_v38 = vpop.eup %1512  ;;  %vm527_vm2 = vweird.f32 %v1511_v25 }
  0xbe   :  { %v447_v31 = vpop.f32.mrf.mxu2  ;;  %v184_v34 = vpop.f32.mrf.mxu0  ;;  %1518 = vrcp.f32 %v1953_v33  ;;  %v1965_v46 = vadd.f32 1.0, %v1513_v38  ;;  %vm1972_vm5 = vmor %vm526_vm4, %vm527_vm2 }
  0xbf   :  { %v523_v32 = vsub.f32 1.0, %v522_v27  ;;  %v448_v35 = vadd.f32 %v1925_v50, %v447_v31  ;;  %v185_v43 = vadd.f32 %v1925_v50, %v184_v34  ;;  %v1515_v47 = vpop.eup %1514  ;;  %1520 = vpow2.f32 %v1300_v40 }
  0xc0   :  { %1522 = vrcp.f32 %v1965_v46  ;;  %v1990_v63 = vadd.f32 1.0, %v1515_v47  ;;  %v545_v47 = vand.u32 2147483647, %v1965_v46  ;;  %vm541_vm14 = vweird.f32 %v1965_v46 }
  0xc1   :  { %v524_v37 = vmul.f32 %v1511_v25, %v523_v32  ;;  %v477_v42 = vadd.f32 %v476_v62, %v448_v35  ;;  %v1961_v44 = vpop.f32.mrf.mxu3  ;;  %v214_v55 = vadd.f32 %v1930_v1, %v185_v43  ;;  %v533_v62 = vor.u32 1.1754944e-38, %v532_v45 }
  0xc2   :  { %v263_v1 = vsel %vm1985_vm7, %v1944_v16, %v259_v48  ;;  %v282_v45 = vor.u32 1.1754944e-38, %v281_v30  ;;  %vm290_vm15 = vweird.f32 %v1990_v63  ;;  %vm2082_vm1 = vcmp.eq.f32.partialorder %v545_v47, 8.507059e+37 }
  0xc3   :  { %v525_v41 = vadd.f32 %v1511_v25, %v524_v37  ;;  %v1517_v52 = vpop.eup %1516  ;;  %v1344_v59 = vmul.f32 -1.442695, %v477_v42  ;;  %v1301_v8 = vmul.f32 -1.442695, %v214_v55  ;;  %v268_v10 = vsel %vm265_vm9, %v267_v4, %v263_v1 }
  0xc4   :  { %v1981_v60 = vpop.eup %1518  ;;  %v1996_v2 = vadd.f32 1.0, %v1517_v52  ;;  %v547_v52 = vand.u32 2147483648, %v1965_v46 }
  0xc5   :  { %v529_v58 = vsel %vm1972_vm5, %v1511_v25, %v525_v41  ;;  %v1998_v3 = vpop.f32.mrf.mxu1  ;;  %v1521_v6 = vpop.eup %1520  ;;  %v271_v7 = vmul.f32 %v1981_v60, %v1953_v33  ;;  %1524 = vpow2.f32 %v1344_v59  ;;  %vm276_vm11 = vweird.f32 %v1981_v60 }
  0xc6   :  { %v450_v51 = vpop.f32.mrf.mxu2  ;;  %v186_v56 = vpop.f32.mrf.mxu0  ;;  %v534_v5 = vsel %vm531_vm8, %v533_v62, %v529_v58  ;;  %1526 = vrcp.f32 %v1990_v63  ;;  %v2012_v18 = vadd.f32 1.0, %v1521_v6  ;;  %v296_v58 = vand.u32 2147483648, %v1990_v63  ;;  %vm2059_vm13 = vmor %vm275_vm10, %vm276_vm11 }
  0xc7   :  { %v451_v0 = vadd.f32 %v1925_v50, %v450_v51  ;;  %v187_v12 = vadd.f32 %v1925_v50, %v186_v56  ;;  %1528 = vrcp.f32 %v1996_v2  ;;  %v2008_v16 = vadd.f32 %v534_v5, %v268_v10  ;;  %v2010_v17 = vpop.eup %1522 }
  0xc8   :  { %1530 = vpow2.f32 %v1301_v8  ;;  %v272_v24 = vsub.f32 1.0, %v271_v7  ;;  %v537_v26 = vmul.f32 %v2010_v17, %v1965_v46  ;;  %v294_v56 = vand.u32 2147483647, %v1990_v63 }
  0xc9   :  { %v480_v11 = vadd.f32 %v1937_v9, %v451_v0  ;;  %v2006_v13 = vpop.f32.mrf.mxu3  ;;  %v216_v21 = vadd.f32 %v1942_v15, %v187_v12  ;;  %v279_v15 = vand.u32 2147483647, %v1953_v33  ;;  %vm542_vm0 = vweird.f32 %v2010_v17 }
  0xca   :  { %v273_v34 = vmul.f32 %v1981_v60, %v272_v24  ;;  %v538_v38 = vsub.f32 1.0, %v537_v26  ;;  %vm2086_vm2 = vcmp.eq.f32.partialorder %v294_v56, 8.507059e+37  ;;  %vm2098_vm3 = vmor %vm541_vm14, %vm542_vm0  ;;  %vm556_vm5 = vweird.f32 %v1996_v2 }
  0xcb   :  { %v1345_v19 = vmul.f32 -1.442695, %v480_v11  ;;  %v1525_v25 = vpop.eup %1524  ;;  %v1302_v41 = vmul.f32 -1.442695, %v216_v21  ;;  %vm2038_vm12 = vcmp.eq.f32.partialorder %v279_v15, 8.507059e+37  ;;  %vm305_vm7 = vweird.f32 %v2012_v18 }
  0xcc   :  { %v2019_v27 = vpop.eup %1526  ;;  %v2029_v35 = vadd.f32 1.0, %v1525_v25  ;;  %v274_v51 = vadd.f32 %v1981_v60, %v273_v34  ;;  %v539_v54 = vmul.f32 %v2010_v17, %v538_v38  ;;  %v560_v15 = vand.u32 2147483647, %v1996_v2 }
  0xcd   :  { %1532 = vpow2.f32 %v1345_v19  ;;  %v2023_v29 = vpop.eup %1528  ;;  %v714_v31 = vpop.f32.mrf.mxu1  ;;  %v286_v39 = vmul.f32 %v2019_v27, %v1990_v63  ;;  %vm291_vm4 = vweird.f32 %v2019_v27  ;;  %v562_v34 = vand.u32 2147483648, %v1996_v2 }
  0xce   :  { %v452_v14 = vpop.f32.mrf.mxu2  ;;  %v189_v20 = vpop.f32.mrf.mxu0  ;;  %1534 = vrcp.f32 %v2012_v18  ;;  %v715_v42 = vadd.f32 %v1925_v50, %v714_v31  ;;  %v278_v6 = vsel %vm2059_vm13, %v1981_v60, %v274_v51  ;;  %v540_v33 = vadd.f32 %v2010_v17, %v539_v54  ;;  %vm2130_vm8 = vmor %vm290_vm15, %vm291_vm4 }
  0xcf   :  { %v453_v9 = vadd.f32 %v1925_v50, %v452_v14  ;;  %v190_v23 = vadd.f32 %v1925_v50, %v189_v20  ;;  %v1531_v37 = vpop.eup %1530  ;;  %1536 = vrcp.f32 %v2029_v35  ;;  %v287_v55 = vsub.f32 1.0, %v286_v39 }
  0xd0   :  { %v2048_v53 = vadd.f32 1.0, %v1531_v37  ;;  %1538 = vpow2.f32 %v1302_v41  ;;  %v548_v60 = vor.u32 1.1754944e-38, %v547_v52  ;;  %v297_v14 = vor.u32 1.1754944e-38, %v296_v58 }
  0xd1   :  { %v482_v28 = vadd.f32 %v1950_v22, %v453_v9  ;;  %v219_v32 = vadd.f32 %v1956_v36, %v190_v23  ;;  %v552_v22 = vmul.f32 %v2023_v29, %v1996_v2  ;;  %v743_v48 = vpop.f32.mrf.mxu3  ;;  %v288_v7 = vmul.f32 %v2019_v27, %v287_v55 }
  0xd2   :  { %v744_v61 = vadd.f32 %v743_v48, %v715_v42  ;;  %v283_v26 = vsel %vm2038_vm12, %v282_v45, %v278_v6  ;;  %vm557_vm6 = vweird.f32 %v2023_v29  ;;  %vm2134_vm9 = vcmp.eq.f32.partialorder %v560_v15, 8.507059e+37 }
  0xd3   :  { %v1533_v43 = vpop.eup %1532  ;;  %v553_v59 = vsub.f32 1.0, %v552_v22  ;;  %v1346_v1 = vmul.f32 -1.442695, %v482_v28  ;;  %v1303_v8 = vmul.f32 -1.442695, %v219_v32  ;;  %v289_v31 = vadd.f32 %v2019_v27, %v288_v7  ;;  %vm2149_vm10 = vmor %vm556_vm5, %vm557_vm6 }
  0xd4   :  { %v2043_v49 = vpop.eup %1534  ;;  %v2052_v57 = vadd.f32 1.0, %v1533_v43  ;;  %v1385_v19 = vmul.f32 -1.442695, %v744_v61  ;;  %v309_v43 = vand.u32 2147483647, %v2012_v18  ;;  %v311_v36 = vand.u32 2147483648, %v2012_v18 }
  0xd5   :  { %v301_v0 = vmul.f32 %v2043_v49, %v2012_v18  ;;  %v2080_v11 = vpop.eup %1536  ;;  %v716_v20 = vpop.f32.mrf.mxu1  ;;  %v554_v9 = vmul.f32 %v2023_v29, %v553_v59  ;;  %v293_v47 = vsel %vm2130_vm8, %v2019_v27, %v289_v31  ;;  %v563_v55 = vor.u32 1.1754944e-38, %v562_v34 }
  0xd6   :  { %v455_v40 = vpop.f32.mrf.mxu2  ;;  %1540 = vrcp.f32 %v2052_v57  ;;  %v2067_v5 = vpop.f32.mrf.mxu0  ;;  %v567_v46 = vmul.f32 %v2080_v11, %v2029_v35  ;;  %vm306_vm11 = vweird.f32 %v2043_v49  ;;  %v575_v56 = vand.u32 2147483647, %v2029_v35 }
  0xd7   :  { %v456_v4 = vadd.f32 %v1925_v50, %v455_v40  ;;  %1542 = vrcp.f32 %v2048_v53  ;;  %v302_v23 = vsub.f32 1.0, %v301_v0  ;;  %v1539_v25 = vpop.eup %1538  ;;  %v555_v38 = vadd.f32 %v2023_v29, %v554_v9  ;;  %vm2181_vm13 = vmor %vm305_vm7, %vm306_vm11 }
  0xd8   :  { %1544 = vpow2.f32 %v1346_v1  ;;  %v2122_v40 = vadd.f32 1.0, %v1539_v25  ;;  %v568_v48 = vsub.f32 1.0, %v567_v46  ;;  %v577_v27 = vand.u32 2147483648, %v2029_v35 }
  0xd9   :  { %v485_v24 = vadd.f32 %v1961_v44, %v456_v4  ;;  %v544_v44 = vsel %vm2098_vm3, %v2010_v17, %v540_v33  ;;  %1546 = vpow2.f32 %v1303_v8  ;;  %v745_v37 = vpop.f32.mrf.mxu3  ;;  %v303_v17 = vmul.f32 %v2043_v49, %v302_v23 }
  0xda   :  { %1548 = vpow2.f32 %v1385_v19  ;;  %v549_v22 = vsel %vm2082_vm1, %v548_v60, %v544_v44  ;;  %v559_v59 = vsel %vm2149_vm10, %v2023_v29, %v555_v38  ;;  %v298_v1 = vsel %vm2086_vm2, %v297_v14, %v293_v47 }
  0xdb   :  { %v1347_v51 = vmul.f32 -1.442695, %v485_v24  ;;  %v304_v61 = vadd.f32 %v2043_v49, %v303_v17  ;;  %1550 = vrcp.f32 %v2122_v40  ;;  %v312_v4 = vor.u32 1.1754944e-38, %v311_v36 }
  0xdc   :  { %v2105_v30 = vpop.eup %1540  ;;  %v2167_v33 = vadd.f32 %v549_v22, %v283_v26  ;;  %vm2169_vm12 = vcmp.eq.f32.partialorder %v309_v43, 8.507059e+37  ;;  %v569_v29 = vmul.f32 %v2080_v11, %v568_v48  ;;  %v717_v60 = vadd.f32 %v1925_v50, %v716_v20 }
  0xdd   :  { %v2113_v32 = vpop.eup %1542  ;;  %v582_v39 = vmul.f32 %v2105_v30, %v2052_v57  ;;  %v719_v7 = vpop.f32.mrf.mxu1  ;;  %1552 = vpow2.f32 %v1347_v51  ;;  %v564_v19 = vsel %vm2134_vm9, %v563_v55, %v559_v59  ;;  %vm571_vm14 = vweird.f32 %v2029_v35 }
  0xde   :  { %v2078_v10 = vpop.f32.mrf.mxu2  ;;  %v1545_v45 = vpop.eup %1544  ;;  %v316_v63 = vmul.f32 %v2113_v32, %v2048_v53  ;;  %v578_v21 = vor.u32 1.1754944e-38, %v577_v27  ;;  %v308_v20 = vsel %vm2181_vm13, %v2043_v49, %v304_v61  ;;  %vm2191_vm15 = vcmp.eq.f32.partialorder %v575_v56, 8.507059e+37 }
  0xdf   :  { %v988_v52 = vpop.f32.mrf.mxu0  ;;  %v1547_v58 = vpop.eup %1546  ;;  %v583_v62 = vsub.f32 1.0, %v582_v39  ;;  %v2165_v6 = vadd.f32 1.0, %v1545_v45  ;;  %v192_v25 = vadd.f32 %v1925_v50, %v2067_v5  ;;  %vm320_vm0 = vweird.f32 %v2048_v53 }
  0xe0   :  { %v1549_v0 = vpop.eup %1548  ;;  %v317_v12 = vsub.f32 1.0, %v316_v63  ;;  %v2186_v9 = vadd.f32 1.0, %v1547_v58  ;;  %v324_v26 = vand.u32 2147483647, %v2048_v53  ;;  %v326_v28 = vand.u32 2147483648, %v2048_v53 }
  0xe1   :  { %v584_v24 = vmul.f32 %v2105_v30, %v583_v62  ;;  %v2196_v18 = vadd.f32 1.0, %v1549_v0  ;;  %1554 = vrcp.f32 %v2165_v6  ;;  %v748_v49 = vpop.f32.mrf.mxu3  ;;  %v2204_v15 = vpop.eup %1550  ;;  %v570_v44 = vadd.f32 %v2080_v11, %v569_v29 }
  0xe2   :  { %vm572_vm1 = vweird.f32 %v2080_v11  ;;  %v318_v31 = vmul.f32 %v2113_v32, %v317_v12  ;;  %v746_v46 = vadd.f32 %v745_v37, %v717_v60  ;;  %vm586_vm2 = vweird.f32 %v2052_v57 }
  0xe3   :  { %vm587_vm3 = vweird.f32 %v2105_v30  ;;  %v592_v5 = vand.u32 2147483648, %v2052_v57  ;;  %1556 = vrcp.f32 %v2186_v9  ;;  %v1553_v34 = vpop.eup %1552  ;;  %v585_v38 = vadd.f32 %v2105_v30, %v584_v24  ;;  %vm2221_vm4 = vmor %vm571_vm14, %vm572_vm1 }
  0xe4   :  { %1558 = vrcp.f32 %v2196_v18  ;;  %v221_v17 = vadd.f32 %v1998_v3, %v192_v25  ;;  %v720_v39 = vadd.f32 %v1925_v50, %v719_v7  ;;  %v331_v41 = vmul.f32 %v2204_v15, %v2122_v40  ;;  %vm2250_vm7 = vmor %vm586_vm2, %vm587_vm3 }
  0xe5   :  { %v1386_v42 = vmul.f32 -1.442695, %v746_v46  ;;  %v989_v43 = vadd.f32 %v1925_v50, %v988_v52  ;;  %v2228_v36 = vadd.f32 %v564_v19, %v298_v1  ;;  %v574_v3 = vsel %vm2221_vm4, %v2080_v11, %v570_v44  ;;  %v721_v55 = vpop.f32.mrf.mxu1 }
  0xe6   :  { %v2161_v2 = vpop.f32.mrf.mxu2  ;;  %v319_v45 = vadd.f32 %v2113_v32, %v318_v31  ;;  %vm321_vm5 = vweird.f32 %v2113_v32  ;;  %v590_v35 = vand.u32 2147483647, %v2052_v57  ;;  %v313_v63 = vsel %vm2169_vm12, %v312_v4, %v308_v20 }
  0xe7   :  { %v2217_v22 = vpop.f32.mrf.mxu0  ;;  %v2238_v48 = vpop.eup %1554  ;;  %vm2242_vm6 = vcmp.eq.f32.partialorder %v324_v26, 8.507059e+37  ;;  %v327_v52 = vor.u32 1.1754944e-38, %v326_v28  ;;  %v2254_v54 = vadd.f32 1.0, %v1553_v34  ;;  %v589_v56 = vsel %vm2250_vm7, %v2105_v30, %v585_v38  ;;  %vm2267_vm8 = vmor %vm320_vm0, %vm321_vm5 }
  0xe8   :  { %v593_v27 = vor.u32 1.1754944e-38, %v592_v5  ;;  %v1304_v58 = vmul.f32 -1.442695, %v221_v17  ;;  %v749_v59 = vadd.f32 %v748_v49, %v720_v39  ;;  %v579_v62 = vsel %vm2191_vm15, %v578_v21, %v574_v3 }
  0xe9   :  { %v2259_v61 = vpop.eup %1556  ;;  %v332_v0 = vsub.f32 1.0, %v331_v41  ;;  %1560 = vpow2.f32 %v1386_v42  ;;  %v1018_v30 = vadd.f32 %v2161_v2, %v989_v43  ;;  %v323_v4 = vsel %vm2267_vm8, %v2113_v32, %v319_v45  ;;  %v750_v2 = vpop.f32.mrf.mxu3 }
  0xea   :  { %v2272_v1 = vpop.eup %1558  ;;  %vm591_vm9 = vcmp.eq.f32.partialorder %v590_v35, 8.507059e+37  ;;  %v341_v7 = vand.u32 2147483648, %v2122_v40  ;;  %v597_v53 = vmul.f32 %v2238_v48, %v2165_v6  ;;  %1562 = vrcp.f32 %v2254_v54 }
  0xeb   :  { %v594_v8 = vsel %vm591_vm9, %v593_v27, %v589_v56  ;;  %v458_v29 = vadd.f32 %v1925_v50, %v2078_v10  ;;  %v1429_v12 = vmul.f32 -1.442695, %v1018_v30  ;;  %v346_v60 = vmul.f32 %v2259_v61, %v2186_v9 }
  0xec   :  { %1564 = vpow2.f32 %v1304_v58  ;;  %v1387_v19 = vmul.f32 -1.442695, %v749_v59  ;;  %v2285_v32 = vadd.f32 %v579_v62, %v313_v63  ;;  %v328_v14 = vsel %vm2242_vm6, %v327_v52, %v323_v4 }
  0xed   :  { %v333_v21 = vmul.f32 %v2204_v15, %v332_v0  ;;  %v796_v20 = vmul.f32 %v2272_v1, %v2196_v18  ;;  %1566 = vpow2.f32 %v1429_v12  ;;  %v339_v10 = vand.u32 2147483647, %v2122_v40  ;;  %v724_v41 = vpop.f32.mrf.mxu1 }
  0xee   :  { %v2236_v47 = vpop.f32.mrf.mxu2  ;;  %v598_v23 = vsub.f32 1.0, %v597_v53  ;;  %v607_v24 = vand.u32 2147483648, %v2165_v6  ;;  %v2294_v26 = vadd.f32 %v594_v8, %v328_v14  ;;  %vm335_vm10 = vweird.f32 %v2122_v40 }
  0xef   :  { %v993_v25 = vpop.f32.mrf.mxu0  ;;  %v1561_v28 = vpop.eup %1560  ;;  %v2297_v49 = vor.u32 1.1754944e-38, %v341_v7  ;;  %v487_v44 = vadd.f32 %v2006_v13, %v458_v29  ;;  %v722_v31 = vadd.f32 %v1925_v50, %v721_v55  ;;  %v605_v46 = vand.u32 2147483647, %v2165_v6 }
  0xf0   :  { %v347_v5 = vsub.f32 1.0, %v346_v60  ;;  %v2302_v34 = vadd.f32 1.0, %v1561_v28  ;;  %1568 = vpow2.f32 %v1387_v19  ;;  %v2304_v17 = vpop.eup %1562  ;;  %v334_v39 = vadd.f32 %v2204_v15, %v333_v21 }
  0xf1   :  { %vm336_vm11 = vweird.f32 %v2204_v15  ;;  %vm601_vm12 = vweird.f32 %v2165_v6  ;;  %v797_v37 = vsub.f32 1.0, %v796_v20  ;;  %vm2309_vm13 = vcmp.eq.f32.partialorder %v339_v10, 8.507059e+37  ;;  %v753_v57 = vpop.f32.mrf.mxu3 }
  0xf2   :  { %v1565_v13 = vpop.eup %1564  ;;  %v599_v43 = vmul.f32 %v2238_v48, %v598_v23  ;;  %v608_v3 = vor.u32 1.1754944e-38, %v607_v24  ;;  %vm350_vm14 = vweird.f32 %v2186_v9  ;;  %v354_v45 = vand.u32 2147483647, %v2186_v9  ;;  %vm2322_vm15 = vmor %vm335_vm10, %vm336_vm11 }
  0xf3   :  { %v1567_v35 = vpop.eup %1566  ;;  %v356_v63 = vand.u32 2147483648, %v2186_v9  ;;  %1570 = vrcp.f32 %v2302_v34  ;;  %v1348_v51 = vmul.f32 -1.442695, %v487_v44  ;;  %v751_v52 = vadd.f32 %v750_v2, %v722_v31 }
  0xf4   :  { %vm602_vm0 = vweird.f32 %v2238_v48  ;;  %vm2327_vm1 = vcmp.eq.f32.partialorder %v605_v46, 8.507059e+37  ;;  %v348_v56 = vmul.f32 %v2259_v61, %v347_v5  ;;  %v612_v27 = vmul.f32 %v2304_v17, %v2254_v54 }
  0xf5   :  { %v2334_v58 = vadd.f32 1.0, %v1567_v35  ;;  %v338_v40 = vsel %vm2322_vm15, %v2204_v15, %v334_v39  ;;  %v798_v59 = vmul.f32 %v2272_v1, %v797_v37  ;;  %vm800_vm2 = vweird.f32 %v2196_v18  ;;  %vm2365_vm6 = vmor %vm601_vm12, %vm602_vm0  ;;  %v726_v31 = vpop.f32.mrf.mxu1 }
  0xf6   :  { %v1022_v38 = vpop.f32.mrf.mxu2  ;;  %v991_v62 = vadd.f32 %v1925_v50, %v2217_v22  ;;  %v1569_v0 = vpop.eup %1568  ;;  %v600_v30 = vadd.f32 %v2238_v48, %v599_v43  ;;  %vm2344_vm3 = vcmp.eq.f32.partialorder %v354_v45, 8.507059e+37  ;;  %vm801_vm4 = vweird.f32 %v2272_v1 }
  0xf7   :  { %v806_v7 = vand.u32 2147483648, %v2196_v18  ;;  %v2350_v15 = vadd.f32 1.0, %v1565_v13  ;;  %1572 = vpow2.f32 %v1348_v51  ;;  %v1388_v53 = vmul.f32 -1.442695, %v751_v52  ;;  %v2357_v2 = vpop.f32.mrf.mxu0  ;;  %vm2380_vm7 = vmor %vm800_vm2, %vm801_vm4 }
  0xf8   :  { %v1020_v8 = vadd.f32 %v2236_v47, %v991_v62  ;;  %v994_v22 = vadd.f32 %v1925_v50, %v993_v25  ;;  %v349_v29 = vadd.f32 %v2259_v61, %v348_v56  ;;  %vm351_vm5 = vweird.f32 %v2259_v61 }
  0xf9   :  { %v613_v12 = vsub.f32 1.0, %v612_v27  ;;  %1574 = vrcp.f32 %v2334_v58  ;;  %v2359_v60 = vpop.eup %1570  ;;  %v357_v47 = vor.u32 1.1754944e-38, %v356_v63  ;;  %v799_v14 = vadd.f32 %v2272_v1, %v798_v59  ;;  %vm2396_vm8 = vmor %vm350_vm14, %vm351_vm5 }
  0xfa   :  { %v804_v21 = vand.u32 2147483647, %v2196_v18  ;;  %v2371_v20 = vadd.f32 1.0, %v1569_v0  ;;  %v604_v10 = vsel %vm2365_vm6, %v2238_v48, %v600_v30  ;;  %v620_v23 = vand.u32 2147483647, %v2254_v54 }
  0xfb   :  { %1576 = vrcp.f32 %v2350_v15  ;;  %v725_v24 = vadd.f32 %v1925_v50, %v724_v41  ;;  %v343_v48 = vsel %vm2309_vm13, %v2297_v49, %v338_v40  ;;  %v1430_v28 = vmul.f32 -1.442695, %v1020_v8 }
  0xfc   :  { %1578 = vpow2.f32 %v1388_v53  ;;  %v1023_v44 = vadd.f32 %v1022_v38, %v994_v22  ;;  %v353_v46 = vsel %vm2396_vm8, %v2259_v61, %v349_v29  ;;  %v807_v5 = vor.u32 1.1754944e-38, %v806_v7 }
  0xfd   :  { %v614_v39 = vmul.f32 %v2304_v17, %v613_v12  ;;  %v811_v49 = vmul.f32 %v2359_v60, %v2302_v34  ;;  %v1573_v37 = vpop.eup %1572  ;;  %v609_v9 = vsel %vm2327_vm1, %v608_v3, %v604_v10  ;;  %v803_v41 = vsel %vm2380_vm7, %v2272_v1, %v799_v14  ;;  %v755_v3 = vpop.f32.mrf.mxu3 }
  0xfe   :  { %v2387_v25 = vpop.f32.mrf.mxu2  ;;  %vm805_vm9 = vcmp.eq.f32.partialorder %v804_v21, 8.507059e+37  ;;  %1580 = vrcp.f32 %v2371_v20  ;;  %vm616_vm10 = vweird.f32 %v2254_v54  ;;  %vm2415_vm11 = vcmp.eq.f32.partialorder %v620_v23, 8.507059e+37  ;;  %v729_v10 = vpop.f32.mrf.mxu1 }
  0xff   :  { %v2412_v38 = vpop.eup %1574  ;;  %v622_v13 = vand.u32 2147483648, %v2254_v54  ;;  %v754_v42 = vadd.f32 %v753_v57, %v725_v24  ;;  %v2422_v43 = vsel %vm2344_vm3, %v357_v47, %v353_v46  ;;  %vm617_vm12 = vweird.f32 %v2304_v17  ;;  %v2436_v0 = vpop.f32.mrf.mxu0 }
 0x100   :  { %1582 = vpow2.f32 %v1430_v28  ;;  %v1431_v1 = vmul.f32 -1.442695, %v1023_v44  ;;  %v808_v35 = vsel %vm805_vm9, %v807_v5, %v803_v41  ;;  %v615_v63 = vadd.f32 %v2304_v17, %v614_v39  ;;  %vm2447_vm13 = vmor %vm616_vm10, %vm617_vm12 }
 0x101   :  { %v2425_v45 = vpop.eup %1576  ;;  %v812_v51 = vsub.f32 1.0, %v811_v49  ;;  %v2428_v52 = vadd.f32 1.0, %v1573_v37  ;;  %v371_v55 = vand.u32 2147483648, %v2350_v15  ;;  %v821_v56 = vand.u32 2147483648, %v2302_v34 }
 0x102   :  { %v1579_v11 = vpop.eup %1578  ;;  %v1070_v27 = vmul.f32 %v2412_v38, %v2334_v58  ;;  %1584 = vpow2.f32 %v1431_v1  ;;  %v623_v40 = vor.u32 1.1754944e-38, %v622_v13  ;;  %v819_v59 = vand.u32 2147483647, %v2302_v34 }
 0x103   :  { %v1389_v62 = vmul.f32 -1.442695, %v754_v42  ;;  %v727_v57 = vadd.f32 %v1925_v50, %v726_v31  ;;  %v2441_v4 = vadd.f32 %v808_v35, %v2008_v16  ;;  %v369_v53 = vand.u32 2147483647, %v2350_v15 }
 0x104   :  { %v2438_v30 = vpop.eup %1580  ;;  %v2452_v8 = vadd.f32 1.0, %v1579_v11  ;;  %v2454_v22 = vadd.f32 %v609_v9, %v343_v48  ;;  %v619_v29 = vsel %vm2447_vm13, %v2304_v17, %v615_v63  ;;  %v361_v16 = vmul.f32 %v2425_v45, %v2350_v15 }
 0x105   :  { %v813_v12 = vmul.f32 %v2359_v60, %v812_v51  ;;  %1586 = vrcp.f32 %v2428_v52  ;;  %v2465_v47 = vor.u32 1.1754944e-38, %v371_v55  ;;  %vm815_vm14 = vweird.f32 %v2302_v34  ;;  %v758_v9 = vpop.f32.mrf.mxu3 }
 0x106   :  { %v2463_v54 = vpop.f32.mrf.mxu2  ;;  %v1583_v19 = vpop.eup %1582  ;;  %v822_v14 = vor.u32 1.1754944e-38, %v821_v56  ;;  %v1071_v21 = vsub.f32 1.0, %v1070_v27  ;;  %vm2468_vm15 = vcmp.eq.f32.partialorder %v819_v59, 8.507059e+37  ;;  %v826_v17 = vmul.f32 %v2438_v30, %v2371_v20 }
 0x107   :  { %v2474_v23 = vadd.f32 1.0, %v1583_v19  ;;  %1588 = vpow2.f32 %v1389_v62  ;;  %v756_v24 = vadd.f32 %v755_v3, %v727_v57  ;;  %v624_v18 = vsel %vm2415_vm11, %v623_v40, %v619_v29  ;;  %v2513_v34 = vpop.f32.mrf.mxu0  ;;  %v731_v19 = vpop.f32.mrf.mxu1 }
 0x108   :  { %v1585_v48 = vpop.eup %1584  ;;  %vm816_vm0 = vweird.f32 %v2359_v60  ;;  %v836_v28 = vand.u32 2147483648, %v2371_v20  ;;  %1590 = vrcp.f32 %v2452_v8  ;;  %v362_v44 = vsub.f32 1.0, %v361_v16 }
 0x109   :  { %v814_v31 = vadd.f32 %v2359_v60, %v813_v12  ;;  %1592 = vrcp.f32 %v2474_v23  ;;  %v996_v46 = vadd.f32 %v1925_v50, %v2357_v2  ;;  %v635_v5 = vand.u32 2147483647, %v2428_v52  ;;  %vm2498_vm1 = vmor %vm815_vm14, %vm816_vm0 }
 0x10a   :  { %v637_v39 = vand.u32 2147483648, %v2428_v52  ;;  %v1072_v49 = vmul.f32 %v2412_v38, %v1071_v21  ;;  %v2488_v37 = vadd.f32 1.0, %v1585_v48  ;;  %v827_v61 = vsub.f32 1.0, %v826_v17 }
 0x10b   :  { %v2490_v41 = vpop.eup %1586  ;;  %v1078_v13 = vand.u32 2147483647, %v2334_v58  ;;  %v1390_v42 = vmul.f32 -1.442695, %v756_v24  ;;  %v1025_v1 = vadd.f32 %v2387_v25, %v996_v46  ;;  %vm830_vm2 = vweird.f32 %v2371_v20 }
 0x10c   :  { %v834_v3 = vand.u32 2147483647, %v2371_v20  ;;  %v2504_v35 = vor.u32 1.1754944e-38, %v836_v28  ;;  %v1080_v63 = vand.u32 2147483648, %v2334_v58  ;;  %v363_v11 = vmul.f32 %v2425_v45, %v362_v44 }
 0x10d   :  { %v1589_v51 = vpop.eup %1588  ;;  %v818_v25 = vsel %vm2498_vm1, %v2359_v60, %v814_v31  ;;  %vm1074_vm3 = vweird.f32 %v2334_v58  ;;  %1594 = vrcp.f32 %v2488_v37  ;;  %v2519_v56 = vmul.f32 %v2490_v41, %v2428_v52 }
 0x10e   :  { %v2515_v55 = vpop.eup %1590  ;;  %v1073_v27 = vadd.f32 %v2412_v38, %v1072_v49  ;;  %vm1075_vm4 = vweird.f32 %v2412_v38  ;;  %v730_v40 = vadd.f32 %v1925_v50, %v729_v10  ;;  %v828_v60 = vmul.f32 %v2438_v30, %v827_v61  ;;  %v2529_v7 = vpop.f32.mrf.mxu2 }
 0x10f   :  { %v1593_v59 = vpop.eup %1592  ;;  %vm2525_vm5 = vcmp.eq.f32.partialorder %v1078_v13, 8.507059e+37  ;;  %1596 = vpow2.f32 %v1390_v42  ;;  %v1432_v57 = vmul.f32 -1.442695, %v1025_v1  ;;  %v823_v29 = vsel %vm2468_vm15, %v822_v14, %v818_v25  ;;  %vm2537_vm7 = vmor %vm1074_vm3, %vm1075_vm4  ;;  %v760_v61 = vpop.f32.mrf.mxu3 }
 0x110   :  { %vm831_vm6 = vweird.f32 %v2438_v30  ;;  %v1081_v16 = vor.u32 1.1754944e-38, %v1080_v63  ;;  %v1085_v12 = vmul.f32 %v1593_v59, %v2474_v23  ;;  %v841_v10 = vmul.f32 %v2515_v55, %v2452_v8 }
 0x111   :  { %1598 = vpow2.f32 %v1432_v57  ;;  %v999_v6 = vadd.f32 %v1925_v50, %v2436_v0  ;;  %v2546_v14 = vadd.f32 %v624_v18, %v2422_v43  ;;  %vm2548_vm8 = vcmp.eq.f32.partialorder %v834_v3, 8.507059e+37  ;;  %vm2573_vm11 = vmor %vm830_vm2, %vm831_vm6 }
 0x112   :  { %v1077_v58 = vsel %vm2537_vm7, %v2412_v38, %v1073_v27  ;;  %v1086_v24 = vsub.f32 1.0, %v1085_v12  ;;  %v2555_v48 = vadd.f32 1.0, %v1589_v51  ;;  %v759_v28 = vadd.f32 %v758_v9, %v730_v40  ;;  %v1003_v27 = vpop.f32.mrf.mxu0 }
 0x113   :  { %v2557_v44 = vpop.eup %1594  ;;  %v829_v31 = vadd.f32 %v2438_v30, %v828_v60  ;;  %v1095_v0 = vand.u32 2147483648, %v2474_v23  ;;  %v1028_v43 = vadd.f32 %v2463_v54, %v999_v6  ;;  %v732_v18 = vadd.f32 %v1925_v50, %v731_v19 }
 0x114   :  { %v1087_v46 = vmul.f32 %v1593_v59, %v1086_v24  ;;  %vm1090_vm9 = vweird.f32 %v1593_v59  ;;  %v1093_v49 = vand.u32 2147483647, %v2474_v23  ;;  %v1100_v38 = vmul.f32 %v2557_v44, %v2488_v37 }
 0x115   :  { %v1597_v13 = vpop.eup %1596  ;;  %v1082_v9 = vsel %vm2525_vm5, %v1081_v16, %v1077_v58  ;;  %v842_v42 = vsub.f32 1.0, %v841_v10  ;;  %vm1089_vm10 = vweird.f32 %v2474_v23  ;;  %v1391_v1 = vmul.f32 -1.442695, %v759_v28 }
 0x116   :  { %v1088_v54 = vadd.f32 %v1593_v59, %v1087_v46  ;;  %1600 = vrcp.f32 %v2555_v48  ;;  %v1101_v2 = vsub.f32 1.0, %v1100_v38  ;;  %v1433_v3 = vmul.f32 -1.442695, %v1028_v43  ;;  %vm1091_vm12 = vmor %vm1089_vm10, %vm1090_vm9  ;;  %v2590_v19 = vpop.f32.mrf.mxu2 }
 0x117   :  { %v1599_v63 = vpop.eup %1598  ;;  %v1096_v51 = vor.u32 1.1754944e-38, %v1095_v0  ;;  %v2579_v25 = vadd.f32 1.0, %v1597_v13  ;;  %1602 = vpow2.f32 %v1391_v1  ;;  %v761_v23 = vadd.f32 %v760_v61, %v732_v18  ;;  %v1630_v13 = vld [vmem:[%s2863_s5] ss:$0 sm:$0xff] }
 0x118   :  { %v916_v20 = vadd.f32 %v823_v29, %v2167_v33  ;;  %v1189_v40 = vadd.f32 %v1082_v9, %v2441_v4  ;;  %v1092_v60 = vsel %vm1091_vm12, %v1593_v59, %v1088_v54  ;;  %vm1094_vm13 = vcmp.eq.f32.partialorder %v1093_v49, 8.507059e+37 }
 0x119   :  { %v2584_v62 = vadd.f32 %v2425_v45, %v363_v11  ;;  %v833_v57 = vsel %vm2573_vm11, %v2438_v30, %v829_v31  ;;  %v843_v16 = vmul.f32 %v2515_v55, %v842_v42  ;;  %v1097_v12 = vsel %vm1094_vm13, %v1096_v51, %v1092_v60 }
 0x11a   :  { %v1190_v21 = vadd.f32 %v1097_v12, %v916_v20  ;;  %v1102_v10 = vmul.f32 %v2557_v44, %v1101_v2  ;;  %v2593_v33 = vadd.f32 1.0, %v1599_v63  ;;  %1604 = vpow2.f32 %v1433_v3 }
 0x11b   :  { %v628_v4 = vsub.f32 1.0, %v2519_v56  ;;  %vm845_vm14 = vweird.f32 %v2452_v8  ;;  %1606 = vrcp.f32 %v2579_v25  ;;  %v1392_v11 = vmul.f32 -1.442695, %v761_v23 }
 0x11c   :  { %v2598_v59 = vpop.eup %1600  ;;  %v1197_v30 = vmul.f32 0.25, %v1189_v40  ;;  %v849_v29 = vand.u32 2147483647, %v2452_v8  ;;  %v1198_v6 = vmul.f32 0.25, %v1190_v21  ;;  %1608 = vrcp.f32 %v2593_v33 }
 0x11d   :  { %v1603_v58 = vpop.eup %1602  ;;  %v838_v24 = vsel %vm2548_vm8, %v2504_v35, %v833_v57  ;;  %v844_v56 = vadd.f32 %v2515_v55, %v843_v16  ;;  %vm846_vm15 = vweird.f32 %v2515_v55  ;;  %v851_v28 = vand.u32 2147483648, %v2452_v8 }
 0x11e   :  { %v1481_v31 = vpack.c.bf16 %v1198_v6, %v1197_v30  ;;  %v1103_v0 = vadd.f32 %v2557_v44, %v1102_v10  ;;  %vm1105_vm0 = vweird.f32 %v2557_v44  ;;  %v2610_v43 = vadd.f32 1.0, %v1603_v58  ;;  %vm2620_vm1 = vmor %vm845_vm14, %vm846_vm15  ;;  %v1034_v23 = vpop.f32.mrf.mxu2 }
 0x11f   :  { %v2613_v18 = vmul.f32 %v2490_v41, %v628_v4  ;;  %v1108_v46 = vand.u32 2147483647, %v2488_v37  ;;  %v1110_v35 = vand.u32 2147483648, %v2488_v37  ;;  %1610 = vpow2.f32 %v1392_v11 }
 0x120   :  { %v1605_v17 = vpop.eup %1604  ;;  %v917_v49 = vadd.f32 %v838_v24, %v2228_v36  ;;  %1482 = vst [vmem:[%s2866_s6] sm:$0xff] %v1481_v31   ;;  %v856_v61 = vmul.f32 %v2598_v59, %v2555_v48  ;;  %vm1104_vm2 = vweird.f32 %v2488_v37  ;;  %v1001_v36 = vadd.f32 %v1630_v13, %v2513_v34  ;;  %v1005_v34 = vpop.f32.mrf.mxu0 }
 0x121   :  { %v2634_v8 = vpop.eup %1606  ;;  %v848_v9 = vsel %vm2620_vm1, %v2515_v55, %v844_v56  ;;  %vm2639_vm3 = vcmp.eq.f32.partialorder %v849_v29, 8.507059e+37  ;;  %v852_v1 = vor.u32 1.1754944e-38, %v851_v28  ;;  %vm2645_vm4 = vmor %vm1104_vm2, %vm1105_vm0  ;;  %v2649_v50 = vadd.f32 1.0, %v1605_v17 }
 0x122   :  { %v1609_v54 = vpop.eup %1608  ;;  %v1107_v2 = vsel %vm2645_vm4, %v2557_v44, %v1103_v0  ;;  %1612 = vrcp.f32 %v2610_v43  ;;  %v1030_v55 = vadd.f32 %v2529_v7, %v1001_v36  ;;  %v1004_v3 = vadd.f32 %v1630_v13, %v1003_v27 }
 0x123   :  { %vm860_vm5 = vweird.f32 %v2555_v48  ;;  %vm1109_vm6 = vcmp.eq.f32.partialorder %v1108_v46, 8.507059e+37  ;;  %v1111_v63 = vor.u32 1.1754944e-38, %v1110_v35  ;;  %v1115_v51 = vmul.f32 %v1609_v54, %v2593_v33 }
 0x124   :  { %vm366_vm7 = vweird.f32 %v2425_v45  ;;  %v853_v20 = vsel %vm2639_vm3, %v852_v1, %v848_v9  ;;  %v857_v40 = vsub.f32 1.0, %v856_v61  ;;  %1614 = vrcp.f32 %v2649_v50 }
 0x125   :  { %v1006_v44 = vadd.f32 %v1630_v13, %v1005_v34  ;;  %v1611_v60 = vpop.eup %1610  ;;  %v1112_v57 = vsel %vm1109_vm6, %v1111_v63, %v1107_v2  ;;  %v871_v7 = vmul.f32 %v2634_v8, %v2579_v25  ;;  %v1116_v27 = vsub.f32 1.0, %v1115_v51 }
 0x126   :  { %v1125_v16 = vand.u32 2147483648, %v2593_v33  ;;  %vm365_vm8 = vweird.f32 %v2350_v15  ;;  %v2666_v12 = vadd.f32 1.0, %v1611_v60  ;;  %v1434_v21 = vmul.f32 -1.442695, %v1030_v55 }
 0x127   :  { %v1033_v10 = vadd.f32 %v2590_v19, %v1004_v3  ;;  %v1035_v4 = vadd.f32 %v1034_v23, %v1006_v44  ;;  %v866_v11 = vand.u32 2147483648, %v2555_v48  ;;  %v1117_v30 = vmul.f32 %v1609_v54, %v1116_v27  ;;  %vm2713_vm2 = vmor %vm365_vm8, %vm366_vm7 }
 0x128   :  { %vm1120_vm9 = vweird.f32 %v1609_v54  ;;  %v1123_v29 = vand.u32 2147483647, %v2593_v33  ;;  %v2671_v6 = vpop.eup %1612  ;;  %vm631_vm10 = vweird.f32 %v2428_v52  ;;  %v918_v58 = vadd.f32 %v853_v20, %v2285_v32 }
 0x129   :  { %v858_v24 = vmul.f32 %v2598_v59, %v857_v40  ;;  %vm861_vm11 = vweird.f32 %v2598_v59  ;;  %1616 = vrcp.f32 %v2666_v12  ;;  %v1191_v19 = vadd.f32 %v1112_v57, %v917_v49 }
 0x12a   :  { %v872_v56 = vsub.f32 1.0, %v871_v7  ;;  %v1118_v28 = vadd.f32 %v1609_v54, %v1117_v30  ;;  %vm1119_vm12 = vweird.f32 %v2593_v33  ;;  %v2679_v31 = vpop.eup %1614  ;;  %v1126_v0 = vor.u32 1.1754944e-38, %v1125_v16  ;;  %vm2694_vm0 = vmor %vm860_vm5, %vm861_vm11 }
 0x12b   :  { %vm1121_vm13 = vmor %vm1119_vm12, %vm1120_vm9  ;;  %1618 = vpow2.f32 %v1434_v21  ;;  %v1435_v46 = vmul.f32 -1.442695, %v1033_v10  ;;  %v1436_v35 = vmul.f32 -1.442695, %v1035_v4  ;;  %vm1124_vm14 = vcmp.eq.f32.partialorder %v1123_v29, 8.507059e+37 }
 0x12c   :  { %v1122_v17 = vsel %vm1121_vm13, %v1609_v54, %v1118_v28  ;;  %v886_v32 = vmul.f32 %v2671_v6, %v2610_v43  ;;  %v1130_v38 = vmul.f32 %v2679_v31, %v2649_v50  ;;  %v859_v49 = vadd.f32 %v2598_v59, %v858_v24 }
 0x12d   :  { %v864_v61 = vand.u32 2147483647, %v2555_v48  ;;  %v1127_v33 = vsel %vm1124_vm14, %v1126_v0, %v1122_v17  ;;  %1620 = vpow2.f32 %v1435_v46  ;;  %vm632_vm15 = vweird.f32 %v2490_v41 }
 0x12e   :  { %v638_v13 = vor.u32 1.1754944e-38, %v637_v39  ;;  %v873_v9 = vmul.f32 %v2634_v8, %v872_v56  ;;  %v1192_v42 = vadd.f32 %v1127_v33, %v918_v58  ;;  %v630_v37 = vadd.f32 %v2490_v41, %v2613_v18  ;;  %vm2730_vm5 = vmor %vm631_vm10, %vm632_vm15 }
 0x12f   :  { %v2699_v1 = vpop.eup %1616  ;;  %vm2705_vm1 = vcmp.eq.f32.partialorder %v635_v5, 8.507059e+37  ;;  %v867_v34 = vor.u32 1.1754944e-38, %v866_v11  ;;  %v1131_v48 = vsub.f32 1.0, %v1130_v38  ;;  %1622 = vpow2.f32 %v1436_v35 }
 0x130   :  { %v1199_v2 = vmul.f32 0.25, %v1191_v19  ;;  %v881_v18 = vand.u32 2147483648, %v2579_v25  ;;  %v1200_v55 = vmul.f32 0.25, %v1192_v42  ;;  %v887_v3 = vsub.f32 1.0, %v886_v32 }
 0x131   :  { %v1619_v5 = vpop.eup %1618  ;;  %v368_v63 = vsel %vm2713_vm2, %v2425_v45, %v2584_v62  ;;  %v863_v51 = vsel %vm2694_vm0, %v2598_v59, %v859_v49  ;;  %vm865_vm3 = vcmp.eq.f32.partialorder %v864_v61, 8.507059e+37  ;;  %vm875_vm4 = vweird.f32 %v2579_v25 }
 0x132   :  { %v874_v20 = vadd.f32 %v2634_v8, %v873_v9  ;;  %vm876_vm6 = vweird.f32 %v2634_v8  ;;  %v1486_v40 = vpack.c.bf16 %v1200_v55, %v1199_v2  ;;  %v901_v44 = vmul.f32 %v2699_v1, %v2666_v12 }
 0x133   :  { %v1621_v59 = vpop.eup %1620  ;;  %v634_v60 = vsel %vm2730_vm5, %v2490_v41, %v630_v37  ;;  %v879_v57 = vand.u32 2147483647, %v2579_v25  ;;  %v1132_v52 = vmul.f32 %v2679_v31, %v1131_v48  ;;  %v2743_v7 = vadd.f32 1.0, %v1619_v5  ;;  %vm2753_vm7 = vmor %vm875_vm4, %vm876_vm6 }
 0x134   :  { %v868_v27 = vsel %vm865_vm3, %v867_v34, %v863_v51  ;;  %v882_v16 = vor.u32 1.1754944e-38, %v881_v18  ;;  %1498 = vst [vmem:[%s2866_s6 + $0x8] sm:$0xff] %v1486_v40   ;;  %v888_v21 = vmul.f32 %v2671_v6, %v887_v3  ;;  %v2749_v10 = vadd.f32 1.0, %v1621_v59 }
 0x135   :  { %v1623_v4 = vpop.eup %1622  ;;  %vm890_vm8 = vweird.f32 %v2610_v43  ;;  %v894_v11 = vand.u32 2147483647, %v2610_v43  ;;  %v896_v30 = vand.u32 2147483648, %v2610_v43  ;;  %1624 = vrcp.f32 %v2743_v7 }
 0x136   :  { %v878_v29 = vsel %vm2753_vm7, %v2634_v8, %v874_v20  ;;  %vm891_vm9 = vweird.f32 %v2671_v6  ;;  %v902_v58 = vsub.f32 1.0, %v901_v44  ;;  %1626 = vrcp.f32 %v2749_v10 }
 0x137   :  { %v1133_v25 = vadd.f32 %v2679_v31, %v1132_v52  ;;  %vm1135_vm10 = vweird.f32 %v2679_v31  ;;  %v1138_v24 = vand.u32 2147483647, %v2649_v50  ;;  %v1140_v19 = vand.u32 2147483648, %v2649_v50  ;;  %vm2779_vm12 = vmor %vm890_vm8, %vm891_vm9 }
 0x138   :  { %v2772_v56 = vsel %vm2705_vm1, %v638_v13, %v634_v60  ;;  %vm880_vm11 = vcmp.eq.f32.partialorder %v879_v57, 8.507059e+37  ;;  %v889_v8 = vadd.f32 %v2671_v6, %v888_v21  ;;  %v2775_v28 = vadd.f32 1.0, %v1623_v4 }
 0x139   :  { %v883_v0 = vsel %vm880_vm11, %v882_v16, %v878_v29  ;;  %vm1134_vm13 = vweird.f32 %v2649_v50  ;;  %v909_v35 = vand.u32 2147483647, %v2666_v12  ;;  %v911_v17 = vand.u32 2147483648, %v2666_v12 }
 0x13a   :  { %v919_v32 = vadd.f32 %v868_v27, %v2294_v26  ;;  %vm2787_vm14 = vcmp.eq.f32.partialorder %v894_v11, 8.507059e+37  ;;  %vm2791_vm15 = vmor %vm1134_vm13, %vm1135_vm10  ;;  %v903_v43 = vmul.f32 %v2699_v1, %v902_v58  ;;  %1628 = vrcp.f32 %v2775_v28 }
 0x13b   :  { %v1625_v61 = vpop.eup %1624  ;;  %v897_v50 = vor.u32 1.1754944e-38, %v896_v30  ;;  %v1137_v33 = vsel %vm2791_vm15, %v2679_v31, %v1133_v25  ;;  %vm1139_vm0 = vcmp.eq.f32.partialorder %v1138_v24, 8.507059e+37  ;;  %v1141_v26 = vor.u32 1.1754944e-38, %v1140_v19 }
 0x13c   :  { %v1627_v13 = vpop.eup %1626  ;;  %v920_v36 = vadd.f32 %v883_v0, %v2454_v22  ;;  %v893_v9 = vsel %vm2779_vm12, %v2671_v6, %v889_v8  ;;  %vm905_vm1 = vweird.f32 %v2666_v12  ;;  %v1145_v42 = vmul.f32 %v1625_v61, %v2743_v7 }
 0x13d   :  { %vm2808_vm3 = vcmp.eq.f32.partialorder %v369_v53, 8.507059e+37  ;;  %vm906_vm4 = vweird.f32 %v2699_v1  ;;  %vm2813_vm5 = vcmp.eq.f32.partialorder %v909_v35, 8.507059e+37  ;;  %v912_v22 = vor.u32 1.1754944e-38, %v911_v17 }
 0x13e   :  { %v1160_v39 = vmul.f32 %v1627_v13, %v2749_v10  ;;  %v1142_v6 = vsel %vm1139_vm0, %v1141_v26, %v1137_v33  ;;  %v904_v34 = vadd.f32 %v2699_v1, %v903_v43  ;;  %v1146_v48 = vsub.f32 1.0, %v1145_v42  ;;  %vm2830_vm8 = vmor %vm905_vm1, %vm906_vm4 }
 0x13f   :  { %v1153_v2 = vand.u32 2147483647, %v2743_v7  ;;  %v898_v15 = vsel %vm2787_vm14, %v897_v50, %v893_v9  ;;  %v1155_v53 = vand.u32 2147483648, %v2743_v7  ;;  %v1168_v55 = vand.u32 2147483647, %v2749_v10 }
 0x140   :  { %v1161_v18 = vsub.f32 1.0, %v1160_v39  ;;  %v1629_v3 = vpop.eup %1628  ;;  %v1147_v5 = vmul.f32 %v1625_v61, %v1146_v48  ;;  %vm1149_vm6 = vweird.f32 %v2743_v7  ;;  %vm1150_vm7 = vweird.f32 %v1625_v61 }
 0x141   :  { %v1170_v51 = vand.u32 2147483648, %v2749_v10  ;;  %v1193_v23 = vadd.f32 %v1142_v6, %v919_v32  ;;  %vm1165_vm9 = vweird.f32 %v1627_v13  ;;  %v1175_v44 = vmul.f32 %v1629_v3, %v2775_v28  ;;  %vm1151_vm12 = vmor %vm1149_vm6, %vm1150_vm7 }
 0x142   :  { %v1162_v40 = vmul.f32 %v1627_v13, %v1161_v18  ;;  %v908_v59 = vsel %vm2830_vm8, %v2699_v1, %v904_v34  ;;  %v1148_v60 = vadd.f32 %v1625_v61, %v1147_v5  ;;  %vm1154_vm10 = vcmp.eq.f32.partialorder %v1153_v2, 8.507059e+37 }
 0x143   :  { %vm1164_vm11 = vweird.f32 %v2749_v10  ;;  %v1156_v57 = vor.u32 1.1754944e-38, %v1155_v53  ;;  %vm1169_vm13 = vcmp.eq.f32.partialorder %v1168_v55, 8.507059e+37  ;;  %v1176_v12 = vsub.f32 1.0, %v1175_v44 }
 0x144   :  { %v1163_v52 = vadd.f32 %v1627_v13, %v1162_v40  ;;  %v1152_v7 = vsel %vm1151_vm12, %v1625_v61, %v1148_v60  ;;  %vm1166_vm14 = vmor %vm1164_vm11, %vm1165_vm9  ;;  %v1171_v27 = vor.u32 1.1754944e-38, %v1170_v51  ;;  %v1183_v16 = vand.u32 2147483647, %v2775_v28 }
 0x145   :  { %v1185_v21 = vand.u32 2147483648, %v2775_v28  ;;  %v1157_v4 = vsel %vm1154_vm10, %v1156_v57, %v1152_v7  ;;  %v1177_v11 = vmul.f32 %v1629_v3, %v1176_v12  ;;  %vm1180_vm15 = vweird.f32 %v1629_v3 }
 0x146   :  { %v1167_v41 = vsel %vm1166_vm14, %v1627_v13, %v1163_v52  ;;  %v373_v1 = vsel %vm2808_vm3, %v2465_v47, %v368_v63  ;;  %v913_v10 = vsel %vm2813_vm5, %v912_v22, %v908_v59  ;;  %v1194_v30 = vadd.f32 %v1157_v4, %v920_v36 }
 0x147   :  { %v1172_v29 = vsel %vm1169_vm13, %v1171_v27, %v1167_v41  ;;  %v921_v58 = vadd.f32 %v898_v15, %v2546_v14  ;;  %v648_v25 = vadd.f32 %v2772_v56, %v373_v1  ;;  %v1178_v24 = vadd.f32 %v1629_v3, %v1177_v11 }
 0x148   :  { %vm1179_vm0 = vweird.f32 %v2775_v28  ;;  %v1201_v54 = vmul.f32 0.25, %v1193_v23  ;;  %v1202_v19 = vmul.f32 0.25, %v1194_v30  ;;  %v1186_v45 = vor.u32 1.1754944e-38, %v1185_v21 }
 0x149   :  { %vm1181_vm1 = vmor %vm1179_vm0, %vm1180_vm15  ;;  %v922_v62 = vadd.f32 %v913_v10, %v648_v25  ;;  %v1195_v8 = vadd.f32 %v1172_v29, %v921_v58  ;;  %vm1184_vm2 = vcmp.eq.f32.partialorder %v1183_v16, 8.507059e+37 }
 0x14a   :  { %v1182_v0 = vsel %vm1181_vm1, %v1629_v3, %v1178_v24  ;;  %v1491_v47 = vpack.c.bf16 %v1202_v19, %v1201_v54 }
 0x14b   :  { %v1187_v63 = vsel %vm1184_vm2, %v1186_v45, %v1182_v0  ;;  %v1203_v14 = vmul.f32 0.25, %v1195_v8 }
 0x14c   :  { %v1196_v46 = vadd.f32 %v1187_v63, %v922_v62  ;;  %1499 = vst [vmem:[%s2866_s6 + $0x10] sm:$0xff] %v1491_v47  }
 0x14e   :  { %v1204_v56 = vmul.f32 0.25, %v1196_v46 }
 0x150   :  { %v1496_v35 = vpack.c.bf16 %v1204_v56, %v1203_v14 }
 0x152   :  { %1500 = vst [vmem:[%s2866_s6 + $0x18] sm:$0xff] %v1496_v35  }

// kernel: lenet_forward.5
= control target key start
LH: loop header
LB: loop body
LE: loop exit
PB: predicated region body
PF: predicated region fallthrough
CT: control target
= control target key end

     0   :  { %vm254_vm0 = vcmask 130048   ;;  %s1013_s1 = inlined_call_operand.vmem [shape: bf16[400,128], index: 1, kind: input, shape index: {}]   ;;  %s1014_s0 = inlined_call_operand.vmem [shape: bf16[16,400], index: 0, kind: input, shape index: {}]   ;;  %s1015_s2 = inlined_call_operand.vmem [shape: f32[1,128], index: 2, kind: input, shape index: {}]   ;;  %s1016_s4 = inlined_call_operand.vmem [shape: f32[1,128], index: 4, kind: input, shape index: {}]   ;;  %s1017_s3 = inlined_call_operand.vmem [shape: bf16[128,128], index: 3, kind: input, shape index: {}]   ;;  %s1018_s6 = inlined_call_operand.vmem [shape: f32[1,128], index: 6, kind: input, shape index: {}]   ;;  %s1019_s5 = inlined_call_operand.vmem [shape: bf16[128,128], index: 5, kind: input, shape index: {}]   ;;  %s1020_s7 = inlined_call_operand.vmem [shape: f32[16,128], index: 7, kind: output, shape index: {}]  }
   0x1   :  { %v758_v0 = vld [vmem:[%s1013_s1 + $0x38] sm:$0xff]  ;;  %v757_v3 = vld [vmem:[%s1013_s1 + $0x30] sm:$0xff]  ;;  %v756_v6 = vld [vmem:[%s1013_s1 + $0x28] sm:$0xff] }
   0x2   :  { %v766_v1 = vld [vmem:[%s1013_s1 + $0x78] sm:$0xff]  ;;  %258 = vmatpush.bf16.msra.mxu0 %v758_v0  ;;  %v765_v4 = vld [vmem:[%s1013_s1 + $0x70] sm:$0xff]  ;;  %v764_v7 = vld [vmem:[%s1013_s1 + $0x68] sm:$0xff] }
   0x3   :  { %v774_v2 = vld [vmem:[%s1013_s1 + $0xb8] sm:$0xff]  ;;  %272 = vmatpush.bf16.msra.mxu1 %v766_v1  ;;  %v773_v5 = vld [vmem:[%s1013_s1 + $0xb0] sm:$0xff]  ;;  %v775_v8 = vld [vmem:[%s1013_s1 + $0xc0] sm:$0xff] }
   0x4   :  { %286 = vmatpush.bf16.msra.mxu2 %v774_v2  ;;  %v772_v9 = vld [vmem:[%s1013_s1 + $0xa8] sm:$0xff]  ;;  %v574_v11 = vld [vmem:[%s1014_s0 + $0x18] sm:$0xf0]  ;;  %307 = vmatpush.bf16.msra.mxu3 %v775_v8  ;;  %v755_v13 = vld [vmem:[%s1013_s1 + $0x20] sm:$0xff] }
   0x5   :  { %v748_v10 = vld [vmem:[%s1014_s0 + $0xc] sm:$0xf]  ;;  %v763_v14 = vld [vmem:[%s1013_s1 + $0x60] sm:$0xff]  ;;  %v754_v16 = vld [vmem:[%s1013_s1 + $0x18] sm:$0xff] }
   0x6   :  { %259 = vmatpush.bf16.msra.mxu0 %v757_v3  ;;  %v577_v12 = vor.u32 %v748_v10, %v574_v11  ;;  %v771_v15 = vld [vmem:[%s1013_s1 + $0xa0] sm:$0xff]  ;;  %v762_v17 = vld [vmem:[%s1013_s1 + $0x58] sm:$0xff]  ;;  %v753_v19 = vld [vmem:[%s1013_s1 + $0x10] sm:$0xff] }
   0x7   :  { %273 = vmatpush.bf16.msra.mxu1 %v765_v4  ;;  %v770_v18 = vld [vmem:[%s1013_s1 + $0x98] sm:$0xff]  ;;  %v761_v20 = vld [vmem:[%s1013_s1 + $0x50] sm:$0xff]  ;;  %v752_v22 = vld [vmem:[%s1013_s1 + $0x8] sm:$0xff] }
   0x8   :  { %287 = vmatpush.bf16.msra.mxu2 %v773_v5  ;;  %678 = vmatmul.msk.bf16.vlgmr.msra.gmra.mxu3 %vm254_vm0, %v577_v12  ;;  %v769_v21 = vld [vmem:[%s1013_s1 + $0x90] sm:$0xff]  ;;  %v760_v23 = vld [vmem:[%s1013_s1 + $0x48] sm:$0xff]  ;;  %v751_v25 = vld [vmem:[%s1013_s1] sm:$0xff] }
   0x9   :  { %v768_v24 = vld [vmem:[%s1013_s1 + $0x88] sm:$0xff]  ;;  %v759_v26 = vld [vmem:[%s1013_s1 + $0x40] sm:$0xff]  ;;  %v749_v28 = vld [vmem:[%s1014_s0 + $0xc] sm:$0xf0] }
   0xa   :  { %260 = vmatpush.bf16.msra.mxu0 %v756_v6  ;;  %v564_v27 = vld [vmem:[%s1014_s0] sm:$0xf]  ;;  %v747_v29 = vld [vmem:[%s1014_s0 + $0x4] sm:$0xf]  ;;  %v566_v30 = vld [vmem:[%s1014_s0 + $0x10] sm:$0xf0] }
   0xb   :  { %274 = vmatpush.bf16.msra.mxu1 %v764_v7  ;;  %v767_v31 = vld [vmem:[%s1013_s1 + $0x80] sm:$0xff]  ;;  %v572_v32 = vld [vmem:[%s1014_s0 + $0x8] sm:$0xf]  ;;  %v750_v33 = vld [vmem:[%s1014_s0 + $0x14] sm:$0xf0]  ;;  %v565_v34 = vor.u32 %v749_v28, %v564_v27  ;;  %v569_v35 = vor.u32 %v747_v29, %v566_v30 }
   0xc   :  { %288 = vmatpush.bf16.msra.mxu2 %v772_v9  ;;  %v573_v36 = vor.u32 %v750_v33, %v572_v32  ;;  %v783_v37 = vld [vmem:[%s1017_s3 + $0x38] sm:$0xff]  ;;  %v782_v38 = vld [vmem:[%s1017_s3 + $0x30] sm:$0xff]  ;;  %v781_v39 = vld [vmem:[%s1017_s3 + $0x28] sm:$0xff] }
   0xd   :  { %421 = vmatpush.bf16.msrb.mxu3 %v783_v37  ;;  %v792_v40 = vld [vmem:[%s1015_s2] ss:$0 sm:$0xff]  ;;  %v779_v42 = vld [vmem:[%s1017_s3 + $0x18] sm:$0xff]  ;;  %v778_v46 = vld [vmem:[%s1017_s3 + $0x10] sm:$0xff] }
   0xe   :  { %261 = vmatpush.bf16.msra.mxu0 %v755_v13  ;;  %v780_v41 = vld [vmem:[%s1017_s3 + $0x20] sm:$0xff]  ;;  %v777_v50 = vld [vmem:[%s1017_s3 + $0x8] sm:$0xff]  ;;  %v787_v29 = vld [vmem:[%s1019_s5 + $0x18] sm:$0xff] }
   0xf   :  { %275 = vmatpush.bf16.msra.mxu1 %v763_v14  ;;  %v776_v55 = vld [vmem:[%s1017_s3] sm:$0xff]  ;;  %v789_v27 = vld [vmem:[%s1019_s5 + $0x28] sm:$0xff]  ;;  %v786_v30 = vld [vmem:[%s1019_s5 + $0x10] sm:$0xff] }
  0x10   :  { %289 = vmatpush.bf16.msra.mxu2 %v771_v15  ;;  %v788_v28 = vld [vmem:[%s1019_s5 + $0x20] sm:$0xff]  ;;  %v785_v32 = vld [vmem:[%s1019_s5 + $0x8] sm:$0xff] }
  0x11   :  { %422 = vmatpush.bf16.msrb.mxu3 %v782_v38 }
  0x12   :  { %262 = vmatpush.bf16.msra.mxu0 %v754_v16 }
  0x13   :  { %276 = vmatpush.bf16.msra.mxu1 %v762_v17 }
  0x14   :  { %290 = vmatpush.bf16.msra.mxu2 %v770_v18 }
  0x15   :  { %423 = vmatpush.bf16.msrb.mxu3 %v781_v39 }
  0x16   :  { %263 = vmatpush.bf16.msra.mxu0 %v753_v19 }
  0x17   :  { %277 = vmatpush.bf16.msra.mxu1 %v761_v20 }
  0x18   :  { %291 = vmatpush.bf16.msra.mxu2 %v769_v21 }
  0x19   :  { %424 = vmatpush.bf16.msrb.mxu3 %v780_v41 }
  0x1a   :  { %264 = vmatpush.bf16.msra.mxu0 %v752_v22 }
  0x1b   :  { %278 = vmatpush.bf16.msra.mxu1 %v760_v23 }
  0x1c   :  { %292 = vmatpush.bf16.msra.mxu2 %v768_v24 }
  0x1d   :  { %425 = vmatpush.bf16.msrb.mxu3 %v779_v42 }
  0x1e   :  { %265 = vmatpush.bf16.msra.mxu0 %v751_v25  ;;  %v791_v25 = vld [vmem:[%s1019_s5 + $0x38] sm:$0xff] }
  0x1f   :  { %279 = vmatpush.bf16.msra.mxu1 %v759_v26  ;;  %v790_v26 = vld [vmem:[%s1019_s5 + $0x30] sm:$0xff] }
  0x20   :  { %293 = vmatpush.bf16.msra.mxu2 %v767_v31  ;;  %v793_v31 = vld [vmem:[%s1016_s4] ss:$0 sm:$0xff] }
  0x21   :  { %266 = vmatmul.bf16.vlgmr.msra.gmra.mxu0 %v565_v34  ;;  %426 = vmatpush.bf16.msrb.mxu3 %v778_v46 }
  0x22   :  { %280 = vmatmul.bf16.vlgmr.msra.gmra.mxu1 %v569_v35  ;;  %542 = vmatpush.bf16.msrb.mxu0 %v791_v25  ;;  %v784_v35 = vld [vmem:[%s1019_s5] sm:$0xff] }
  0x23   :  { %294 = vmatmul.bf16.vlgmr.msra.gmra.mxu2 %v573_v36 }
  0x25   :  { %427 = vmatpush.bf16.msrb.mxu3 %v777_v50 }
  0x26   :  { %543 = vmatpush.bf16.msrb.mxu0 %v790_v26 }
  0x29   :  { %428 = vmatpush.bf16.msrb.mxu3 %v776_v55 }
  0x2a   :  { %544 = vmatpush.bf16.msrb.mxu0 %v789_v27 }
  0x2e   :  { %545 = vmatpush.bf16.msrb.mxu0 %v788_v28 }
  0x32   :  { %546 = vmatpush.bf16.msrb.mxu0 %v787_v29 }
  0x36   :  { %547 = vmatpush.bf16.msrb.mxu0 %v786_v30 }
  0x3a   :  { %548 = vmatpush.bf16.msrb.mxu0 %v785_v32 }
  0x3e   :  { %549 = vmatpush.bf16.msrb.mxu0 %v784_v35 }
  0x8b   :  { %v309_v48 = vpop.f32.mrf.mxu3 }
  0x93   :  { %v311_v61 = vpop.f32.mrf.mxu3 }
  0x9e   :  { %v267_v43 = vpop.f32.mrf.mxu0 }
  0x9f   :  { %v268_v44 = vadd.f32 %v792_v40, %v267_v43  ;;  %v281_v45 = vpop.f32.mrf.mxu1 }
  0xa1   :  { %v282_v47 = vadd.f32 %v281_v45, %v268_v44 }
  0xa6   :  { %v295_v49 = vpop.f32.mrf.mxu2  ;;  %v269_v52 = vpop.f32.mrf.mxu0 }
  0xa7   :  { %v296_v51 = vadd.f32 %v295_v49, %v282_v47  ;;  %v270_v54 = vadd.f32 %v792_v40, %v269_v52  ;;  %v283_v57 = vpop.f32.mrf.mxu1 }
  0xa9   :  { %v310_v53 = vadd.f32 %v309_v48, %v296_v51  ;;  %v284_v58 = vadd.f32 %v283_v57, %v270_v54 }
  0xab   :  { %v679_v56 = vmul.f32 -1.442695, %v310_v53 }
  0xad   :  { %795 = vpow2.f32 %v679_v56 }
  0xae   :  { %v297_v59 = vpop.f32.mrf.mxu2 }
  0xaf   :  { %v298_v60 = vadd.f32 %v297_v59, %v284_v58 }
  0xb1   :  { %v312_v62 = vadd.f32 %v311_v61, %v298_v60 }
  0xb3   :  { %v796_v63 = vpop.eup %795  ;;  %v680_v0 = vmul.f32 -1.442695, %v312_v62 }
  0xb4   :  { %v320_v1 = vadd.f32 1.0, %v796_v63 }
  0xb5   :  { %797 = vpow2.f32 %v680_v0 }
  0xb6   :  { %799 = vrcp.f32 %v320_v1  ;;  %vm327_vm2 = vweird.f32 %v320_v1  ;;  %v333_v12 = vand.u32 2147483648, %v320_v1  ;;  %v331_v14 = vand.u32 2147483647, %v320_v1 }
  0xb8   :  { %v334_v19 = vor.u32 1.1754944e-38, %v333_v12  ;;  %vm332_vm7 = vcmp.eq.f32.partialorder %v331_v14, 8.507059e+37 }
  0xbb   :  { %v798_v2 = vpop.eup %797 }
  0xbc   :  { %v800_v3 = vpop.eup %799  ;;  %v321_v4 = vadd.f32 1.0, %v798_v2 }
  0xbd   :  { %v323_v5 = vmul.f32 %v800_v3, %v320_v1  ;;  %vm328_vm1 = vweird.f32 %v800_v3  ;;  %v794_v1 = vld [vmem:[%s1018_s6] ss:$0 sm:$0xff] }
  0xbe   :  { %801 = vrcp.f32 %v321_v4  ;;  %v348_v13 = vand.u32 2147483648, %v321_v4  ;;  %v346_v16 = vand.u32 2147483647, %v321_v4  ;;  %vm329_vm4 = vmor %vm327_vm2, %vm328_vm1  ;;  %vm342_vm5 = vweird.f32 %v321_v4 }
  0xbf   :  { %v324_v6 = vsub.f32 1.0, %v323_v5 }
  0xc0   :  { %v349_v20 = vor.u32 1.1754944e-38, %v348_v13  ;;  %vm347_vm8 = vcmp.eq.f32.partialorder %v346_v16, 8.507059e+37 }
  0xc1   :  { %v325_v7 = vmul.f32 %v800_v3, %v324_v6 }
  0xc3   :  { %v326_v10 = vadd.f32 %v800_v3, %v325_v7 }
  0xc4   :  { %v802_v8 = vpop.eup %801 }
  0xc5   :  { %v338_v9 = vmul.f32 %v802_v8, %v321_v4  ;;  %vm343_vm3 = vweird.f32 %v802_v8  ;;  %v330_v17 = vsel %vm329_vm4, %v800_v3, %v326_v10 }
  0xc6   :  { %vm344_vm6 = vmor %vm342_vm5, %vm343_vm3  ;;  %v335_v22 = vsel %vm332_vm7, %v334_v19, %v330_v17 }
  0xc7   :  { %v339_v11 = vsub.f32 1.0, %v338_v9 }
  0xc9   :  { %v340_v15 = vmul.f32 %v802_v8, %v339_v11 }
  0xcb   :  { %v341_v18 = vadd.f32 %v802_v8, %v340_v15 }
  0xcd   :  { %v345_v21 = vsel %vm344_vm6, %v802_v8, %v341_v18 }
  0xce   :  { %v350_v23 = vsel %vm347_vm8, %v349_v20, %v345_v21 }
  0xcf   :  { %v352_v24 = vpack.c.bf16 %v350_v23, %v335_v22 }
  0xd1   :  { %429 = vmatmul.bf16.vlgmr.msrb.gmra.mxu3 %v352_v24 }
 0x154   :  { %v430_v33 = vpop.f32.mrf.mxu3 }
 0x155   :  { %v431_v34 = vadd.f32 %v793_v31, %v430_v33 }
 0x157   :  { %v713_v36 = vmul.f32 -1.442695, %v431_v34 }
 0x159   :  { %803 = vpow2.f32 %v713_v36 }
 0x15c   :  { %v432_v37 = vpop.f32.mrf.mxu3 }
 0x15d   :  { %v433_v38 = vadd.f32 %v793_v31, %v432_v37 }
 0x15f   :  { %v804_v39 = vpop.eup %803  ;;  %v714_v40 = vmul.f32 -1.442695, %v433_v38 }
 0x160   :  { %v441_v41 = vadd.f32 1.0, %v804_v39 }
 0x161   :  { %805 = vpow2.f32 %v714_v40 }
 0x162   :  { %807 = vrcp.f32 %v441_v41  ;;  %vm448_vm10 = vweird.f32 %v441_v41  ;;  %v454_v52 = vand.u32 2147483648, %v441_v41  ;;  %v452_v54 = vand.u32 2147483647, %v441_v41 }
 0x164   :  { %v455_v59 = vor.u32 1.1754944e-38, %v454_v52  ;;  %vm453_vm15 = vcmp.eq.f32.partialorder %v452_v54, 8.507059e+37 }
 0x167   :  { %v806_v42 = vpop.eup %805 }
 0x168   :  { %v808_v43 = vpop.eup %807  ;;  %v442_v44 = vadd.f32 1.0, %v806_v42 }
 0x169   :  { %v444_v45 = vmul.f32 %v808_v43, %v441_v41  ;;  %vm449_vm9 = vweird.f32 %v808_v43 }
 0x16a   :  { %809 = vrcp.f32 %v442_v44  ;;  %v469_v53 = vand.u32 2147483648, %v442_v44  ;;  %v467_v56 = vand.u32 2147483647, %v442_v44  ;;  %vm450_vm12 = vmor %vm448_vm10, %vm449_vm9  ;;  %vm463_vm13 = vweird.f32 %v442_v44 }
 0x16b   :  { %v445_v46 = vsub.f32 1.0, %v444_v45 }
 0x16c   :  { %v470_v60 = vor.u32 1.1754944e-38, %v469_v53  ;;  %vm468_vm0 = vcmp.eq.f32.partialorder %v467_v56, 8.507059e+37 }
 0x16d   :  { %v446_v47 = vmul.f32 %v808_v43, %v445_v46 }
 0x16f   :  { %v447_v50 = vadd.f32 %v808_v43, %v446_v47 }
 0x170   :  { %v810_v48 = vpop.eup %809 }
 0x171   :  { %v459_v49 = vmul.f32 %v810_v48, %v442_v44  ;;  %vm464_vm11 = vweird.f32 %v810_v48  ;;  %v451_v57 = vsel %vm450_vm12, %v808_v43, %v447_v50 }
 0x172   :  { %vm465_vm14 = vmor %vm463_vm13, %vm464_vm11  ;;  %v456_v62 = vsel %vm453_vm15, %v455_v59, %v451_v57 }
 0x173   :  { %v460_v51 = vsub.f32 1.0, %v459_v49 }
 0x175   :  { %v461_v55 = vmul.f32 %v810_v48, %v460_v51 }
 0x177   :  { %v462_v58 = vadd.f32 %v810_v48, %v461_v55 }
 0x179   :  { %v466_v61 = vsel %vm465_vm14, %v810_v48, %v462_v58 }
 0x17a   :  { %v471_v63 = vsel %vm468_vm0, %v470_v60, %v466_v61 }
 0x17b   :  { %v473_v0 = vpack.c.bf16 %v471_v63, %v456_v62 }
 0x17d   :  { %550 = vmatmul.bf16.vlgmr.msrb.gmra.mxu0 %v473_v0 }
 0x1fa   :  { %v551_v2 = vpop.f32.mrf.mxu0 }
 0x1fb   :  { %v552_v3 = vadd.f32 %v794_v1, %v551_v2 }
 0x1fd   :  { %556 = vst [vmem:[%s1020_s7] sm:$0xff] %v552_v3 }
 0x202   :  { %v553_v4 = vpop.f32.mrf.mxu0 }
 0x203   :  { %v554_v5 = vadd.f32 %v794_v1, %v553_v4 }
 0x205   :  { %557 = vst [vmem:[%s1020_s7 + $0x8] sm:$0xff] %v554_v5 }

</bundles_post_ra>
